<compile_context>
chip_gen: v7x
topology: tpu7x:2x2x1
jax: 0.10.0
libtpu: 0.0.40
codegen_flags: <defaults>
</compile_context>

<pallas_src>
import functools

import jax
import jax.numpy as jnp
from jax.experimental import pallas as pl
from jax.experimental.pallas import tpu as pltpu

_VMEM_LIMIT = 40 * 1024 * 1024   # conservative: fits v7x's 64 MiB/TC, ample on v5e/v6e


# ---------------------------------------------------------------------------
# Pallas kernels
# ---------------------------------------------------------------------------
def _conv_pool_kernel(p_ref, w_ref, b_ref, o_ref, *, nc):
    # p_ref: (rows, K) bf16 -- rows = (image, pooled_y, pooled_x); K = 16 spatial taps * cin,
    #        i.e. the 4x4 input neighbourhood feeding one pooled output position.
    # w_ref: (K, 4*nc) bf16 -- conv weights for the four 2x2-pool candidates, candidate-major.
    # b_ref: (1, nc) f32 bias.    o_ref: (rows, nc) bf16 fused conv+ReLU+pool output.
    g = jnp.dot(p_ref[...], w_ref[...], preferred_element_type=jnp.float32)   # (rows, 4*nc)
    m = jnp.maximum(jnp.maximum(g[:, 0 * nc:1 * nc], g[:, 1 * nc:2 * nc]),
                    jnp.maximum(g[:, 2 * nc:3 * nc], g[:, 3 * nc:4 * nc]))    # 2x2 max-pool
    # relu(max_i(a_i) + b) == max_i(relu(a_i + b)), so bias/ReLU go after the pool max.
    o_ref[...] = jnp.maximum(m + b_ref[...], 0.0).astype(o_ref.dtype)


def _mlp_kernel(x_ref, w1_ref, b1_ref, w2_ref, b2_ref, o_ref):
    # Fused fc1 + ReLU + fc2.  x: (tm, 3136) bf16; w1: (3136, 128) bf16; w2: (128, NC) bf16
    # (both weights VMEM-resident across the grid); biases f32; o: (tm, NC) f32.
    h = jnp.dot(x_ref[...], w1_ref[...], preferred_element_type=jnp.float32)
    h = jnp.maximum(h + b1_ref[...], 0.0).astype(jnp.bfloat16)
    out = jnp.dot(h, w2_ref[...], preferred_element_type=jnp.float32) + b2_ref[...]
    o_ref[...] = out.astype(o_ref.dtype)


# ---------------------------------------------------------------------------
# pallas_call wrappers
# ---------------------------------------------------------------------------
def _compiler_params():
    return pltpu.CompilerParams(dimension_semantics=("parallel",),
                                vmem_limit_bytes=_VMEM_LIMIT)


def _plan_batch(batch, pref=32):
    """Images per grid step: big tiles, but keep >=2 steps when the batch allows (v7x dual TC)."""
    tb = pref
    while tb > 8 and batch <= tb:
        tb //= 2
    bp = ((batch + tb - 1) // tb) * tb
    return bp, tb


def conv_relu_pool(patches, w, b, *, rows_per_img, nc, bp, tb):
    k = patches.shape[1]
    rows = tb * rows_per_img
    flops = 2 * bp * rows_per_img * k * 4 * nc
    bytes_acc = patches.size * 2 + w.size * 2 + bp * rows_per_img * nc * 2
    return pl.pallas_call(
        functools.partial(_conv_pool_kernel, nc=nc),
        out_shape=jax.ShapeDtypeStruct((bp * rows_per_img, nc), jnp.bfloat16),
        grid=(bp // tb,),
        in_specs=[
            pl.BlockSpec((rows, k), lambda i: (i, 0)),
            pl.BlockSpec((k, 4 * nc), lambda i: (0, 0)),   # weights resident across the grid
            pl.BlockSpec((1, nc), lambda i: (0, 0)),
        ],
        out_specs=pl.BlockSpec((rows, nc), lambda i: (i, 0)),
        compiler_params=_compiler_params(),
        cost_estimate=pl.CostEstimate(flops=flops, transcendentals=0,
                                      bytes_accessed=bytes_acc),
    )(patches, w, b)


def mlp(x, w1, b1, w2, b2, tm):
    bp, kin = x.shape
    nout = w2.shape[1]
    flops = 2 * bp * (kin * w1.shape[1] + w1.shape[1] * nout)
    bytes_acc = x.size * 2 + w1.size * 2 + w2.size * 2 + bp * nout * 4
    return pl.pallas_call(
        _mlp_kernel,
        out_shape=jax.ShapeDtypeStruct((bp, nout), jnp.float32),
        grid=(bp // tm,),
        in_specs=[
            pl.BlockSpec((tm, kin), lambda i: (i, 0)),
            pl.BlockSpec((kin, 128), lambda i: (0, 0)),
            pl.BlockSpec((1, 128), lambda i: (0, 0)),
            pl.BlockSpec((128, nout), lambda i: (0, 0)),
            pl.BlockSpec((1, nout), lambda i: (0, 0)),
        ],
        out_specs=pl.BlockSpec((tm, nout), lambda i: (i, 0)),
        compiler_params=_compiler_params(),
        cost_estimate=pl.CostEstimate(flops=flops, transcendentals=0,
                                      bytes_accessed=bytes_acc),
    )(x, w1, b1, w2, b2)


# ---------------------------------------------------------------------------
# Parameters (deterministic PyTorch-like init) and one-time layout preparation
# ---------------------------------------------------------------------------
def init_params(key, num_classes=10):
    ks = jax.random.split(key, 8)

    def u(k, shape, fan_in):
        bound = 1.0 / jnp.sqrt(float(fan_in))
        return jax.random.uniform(k, shape, jnp.float32, -bound, bound)

    return {
        "conv1_w": u(ks[0], (32, 1, 3, 3), 1 * 9),
        "conv1_b": u(ks[1], (32,), 1 * 9),
        "conv2_w": u(ks[2], (64, 32, 3, 3), 32 * 9),
        "conv2_b": u(ks[3], (64,), 32 * 9),
        "fc1_w": u(ks[4], (128, 64 * 7 * 7), 64 * 7 * 7),
        "fc1_b": u(ks[5], (128,), 64 * 7 * 7),
        "fc2_w": u(ks[6], (num_classes, 128), 128),
        "fc2_b": u(ks[7], (num_classes,), 128),
    }


def _pool_conv_weight(w):
    """(cout, cin, 3, 3) -> (16*cin, 4*cout): 4x4-neighbourhood taps x (pool candidate, cout).

    Row index = (4*ry + rx)*cin + ci  (tap (ry,rx) of the 4x4 neighbourhood).
    Col index = (2*cy + cx)*cout + co (pool candidate (cy,cx) of the 2x2 cell).
    Entry = conv weight w[co, ci, ry-cy, rx-cx] when (ry-cy, rx-cx) is inside the 3x3 window.
    """
    cout, cin = w.shape[0], w.shape[1]
    wk = jnp.transpose(w, (2, 3, 1, 0))                       # (3, 3, cin, cout)
    full = jnp.zeros((4, 4, cin, 4, cout), w.dtype)
    for cy in range(2):
        for cx in range(2):
            full = full.at[cy:cy + 3, cx:cx + 3, :, 2 * cy + cx, :].set(wk)
    return full.reshape(16 * cin, 4 * cout)


def prepare_params(p):
    """Hoist all weight reshapes/permutations out of forward()."""
    num_classes = p["fc2_w"].shape[0]
    # fc1: fold PyTorch's (C,H,W) flatten order into the weight layout; activations arrive as
    # (yo*7 + xo)*64 + c, so permute columns accordingly and transpose to (in, out).
    fc1 = jnp.transpose(p["fc1_w"].reshape(128, 64, 7, 7), (2, 3, 1, 0)).reshape(49 * 64, 128)
    return {
        "w1": _pool_conv_weight(p["conv1_w"]).astype(jnp.bfloat16),       # (16, 128)
        "b1": p["conv1_b"].reshape(1, 32).astype(jnp.float32),
        "w2": _pool_conv_weight(p["conv2_w"]).astype(jnp.bfloat16),       # (512, 256)
        "b2": p["conv2_b"].reshape(1, 64).astype(jnp.float32),
        "fc1_w": fc1.astype(jnp.bfloat16),                                # (3136, 128)
        "fc1_b": p["fc1_b"].reshape(1, 128).astype(jnp.float32),
        "fc2_w": p["fc2_w"].T.astype(jnp.bfloat16),                       # (128, num_classes)
        "fc2_b": p["fc2_b"].reshape(1, num_classes).astype(jnp.float32),
    }


# ---------------------------------------------------------------------------
# Forward pass (matches SimpleConvNet.forward semantics)
# ---------------------------------------------------------------------------
def forward(prep, x):
    if x.ndim == 2:                    # (B, 784) -> (B, 28, 28)
        x = x.reshape(-1, 28, 28)
    if x.ndim == 4:                    # (B, 1, 28, 28) -> (B, 28, 28)
        x = x[:, 0, :, :]
    assert x.shape[1:] == (28, 28)
    b = x.shape[0]
    bp, tb = _plan_batch(b)
    if bp != b:
        x = jnp.pad(x, ((0, bp - b), (0, 0), (0, 0)))
    x = x.astype(jnp.float32)

    # conv1 + ReLU + pool: pool-grouped 16-tap im2col (one row per pooled output position).
    xpad = jnp.pad(x, ((0, 0), (1, 1), (1, 1)))                              # (bp, 30, 30)
    t1 = [xpad[:, ry:ry + 27:2, rx:rx + 27:2] for ry in range(4) for rx in range(4)]
    p1 = jnp.stack(t1, axis=-1).reshape(bp * 196, 16).astype(jnp.bfloat16)   # (bp*196, 16)
    h1 = conv_relu_pool(p1, prep["w1"], prep["b1"],
                        rows_per_img=196, nc=32, bp=bp, tb=tb)               # (bp*196, 32) bf16

    # conv2 + ReLU + pool: pool-grouped 16x32-tap im2col -> single K=512, N=256 matmul.
    h1p = jnp.pad(h1.reshape(bp, 14, 14, 32), ((0, 0), (1, 1), (1, 1), (0, 0)))  # (bp,16,16,32)
    t2 = [h1p[:, i:i + 13:2, j:j + 13:2, :] for i in range(4) for j in range(4)]
    p2 = jnp.stack(t2, axis=3).reshape(bp * 49, 16 * 32)                     # (bp*49, 512) bf16
    h2 = conv_relu_pool(p2, prep["w2"], prep["b2"],
                        rows_per_img=49, nc=64, bp=bp, tb=tb)                # (bp*49, 64) bf16

    # fused fc1 + ReLU + fc2 (PyTorch flatten order already folded into fc1's weights)
    feats = h2.reshape(bp, 49 * 64)                                          # (bp, 3136) bf16
    out = mlp(feats, prep["fc1_w"], prep["fc1_b"], prep["fc2_w"], prep["fc2_b"], tb)
    return out[:b]


# ---------------------------------------------------------------------------
# Pure-JAX f32 reference (for a correctness sanity check only)
# ---------------------------------------------------------------------------
def reference_forward(params, x):
    x = jnp.asarray(x, jnp.float32).reshape(-1, 1, 28, 28)

    def conv(v, w, b):
        y = jax.lax.conv_general_dilated(v, w, (1, 1), ((1, 1), (1, 1)),
                                         dimension_numbers=("NCHW", "OIHW", "NCHW"))
        return jax.nn.relu(y + b[None, :, None, None])

    def pool(v):
        return jax.lax.reduce_window(v, -jnp.inf, jax.lax.max,
                                     (1, 1, 2, 2), (1, 1, 2, 2), "VALID")

    h = pool(conv(x, params["conv1_w"], params["conv1_b"]))
    h = pool(conv(h, params["conv2_w"], params["conv2_b"]))
    h = h.reshape(h.shape[0], -1)
    h = jax.nn.relu(h @ params["fc1_w"].T + params["fc1_b"])
    return h @ params["fc2_w"].T + params["fc2_b"]


if __name__ == "__main__":
    key = jax.random.PRNGKey(0)
    pkey, xkey = jax.random.split(key)
    params = init_params(pkey, num_classes=10)
    prep = prepare_params(params)

    # fc1 requires 28x28 spatial (28 -> 14 -> 7): input (batch=2, 1, 28, 28)
    x = jax.random.normal(xkey, (2, 1, 28, 28), jnp.float32)

    out = jax.block_until_ready(jax.jit(forward)(prep, x))
    assert out.shape == (2, 10)
    assert bool(jnp.all(jnp.isfinite(out)))

    # sanity check against the pure-JAX f32 reference (kernels use bf16 MXU inputs, f32 accum)
    ref = reference_forward(params, x)
    err = float(jnp.max(jnp.abs(out - ref)))
    assert err < 0.1, f"mismatch vs reference: max abs err {err}"
    print("KERNEL_OK")
</pallas_src>

<mosaic_0001>
module attributes {stable_mosaic.version = 11 : i64} {
  func.func @_conv_pool_kernel(%arg0: i32, %arg1: memref<1568x16xbf16, #tpu.memory_space<vmem>>, %arg2: memref<16x128xbf16, #tpu.memory_space<vmem>>, %arg3: memref<1x32xf32, #tpu.memory_space<vmem>>, %arg4: memref<1568x32xbf16, #tpu.memory_space<vmem>>) attributes {dimension_semantics = [#tpu.dimension_semantics<parallel>], iteration_bounds = array<i64: 1>, scalar_prefetch = 0 : i64, scratch_operands = 0 : i64, tpu.core_type = #tpu.core_type<tc>, window_params = [{transform_indices = @transform_0, window_bounds = array<i64: 1568, 16>}, {pipeline_mode = #tpu.pipeline_mode<synchronous>, transform_indices = @transform_1, window_bounds = array<i64: 16, 128>}, {pipeline_mode = #tpu.pipeline_mode<synchronous>, transform_indices = @transform_2, window_bounds = array<i64: 1, 32>}, {transform_indices = @transform_3, window_bounds = array<i64: 1568, 32>}]} {
    %c0 = arith.constant 0 : index
    %c0_0 = arith.constant 0 : index
    %0 = vector.load %arg1[%c0, %c0_0] : memref<1568x16xbf16, #tpu.memory_space<vmem>>, vector<1568x16xbf16>
    %c0_1 = arith.constant 0 : index
    %c0_2 = arith.constant 0 : index
    %1 = vector.load %arg2[%c0_1, %c0_2] : memref<16x128xbf16, #tpu.memory_space<vmem>>, vector<16x128xbf16>
    %cst = arith.constant dense<0.000000e+00> : vector<1568x128xf32>
    %2 = tpu.matmul %0, %1, %cst {dimension_numbers = #tpu.dot_dimension_numbers<[1], [0], [0], [1], [0, 0, 1, 1], [], []>} : vector<1568x16xbf16>, vector<16x128xbf16>, vector<1568x128xf32> -> vector<1568x128xf32>
    %3 = vector.extract_strided_slice %2 {offsets = [0, 0], sizes = [1568, 32], strides = [1, 1]} : vector<1568x128xf32> to vector<1568x32xf32>
    %4 = vector.extract_strided_slice %2 {offsets = [0, 32], sizes = [1568, 32], strides = [1, 1]} : vector<1568x128xf32> to vector<1568x32xf32>
    %5 = arith.maximumf %3, %4 : vector<1568x32xf32>
    %6 = vector.extract_strided_slice %2 {offsets = [0, 64], sizes = [1568, 32], strides = [1, 1]} : vector<1568x128xf32> to vector<1568x32xf32>
    %7 = vector.extract_strided_slice %2 {offsets = [0, 96], sizes = [1568, 32], strides = [1, 1]} : vector<1568x128xf32> to vector<1568x32xf32>
    %8 = arith.maximumf %6, %7 : vector<1568x32xf32>
    %9 = arith.maximumf %5, %8 : vector<1568x32xf32>
    %c0_3 = arith.constant 0 : index
    %c0_4 = arith.constant 0 : index
    %10 = vector.load %arg3[%c0_3, %c0_4] : memref<1x32xf32, #tpu.memory_space<vmem>>, vector<1x32xf32>
    %11 = vector.broadcast %10 : vector<1x32xf32> to vector<1568x32xf32>
    %12 = arith.addf %9, %11 : vector<1568x32xf32>
    %cst_5 = arith.constant 0.000000e+00 : f32
    %13 = vector.broadcast %cst_5 : f32 to vector<1568x32xf32>
    %14 = arith.maximumf %12, %13 : vector<1568x32xf32>
    %15 = arith.truncf %14 : vector<1568x32xf32> to vector<1568x32xbf16>
    %c0_6 = arith.constant 0 : index
    %c0_7 = arith.constant 0 : index
    %16 = vector.load %arg4[%c0_6, %c0_7] : memref<1568x32xbf16, #tpu.memory_space<vmem>>, vector<1568x32xbf16>
    tpu.vector_store %arg4[%c0_6, %c0_7], %15 {strides = array<i32>} : memref<1568x32xbf16, #tpu.memory_space<vmem>>, vector<1568x32xbf16>,
    return
  }
  func.func @transform_0(%arg0: i32) -> (i32, i32) {
    %c0_i32 = arith.constant 0 : i32
    %c0_i32_0 = arith.constant 0 : i32
    return %arg0, %c0_i32 : i32, i32
  }
  func.func @transform_1(%arg0: i32) -> (i32, i32) {
    %c0_i32 = arith.constant 0 : i32
    %c0_i32_0 = arith.constant 0 : i32
    %c0_i32_1 = arith.constant 0 : i32
    return %c0_i32, %c0_i32_0 : i32, i32
  }
  func.func @transform_2(%arg0: i32) -> (i32, i32) {
    %c0_i32 = arith.constant 0 : i32
    %c0_i32_0 = arith.constant 0 : i32
    %c0_i32_1 = arith.constant 0 : i32
    return %c0_i32, %c0_i32_0 : i32, i32
  }
  func.func @transform_3(%arg0: i32) -> (i32, i32) {
    %c0_i32 = arith.constant 0 : i32
    %c0_i32_0 = arith.constant 0 : i32
    return %arg0, %c0_i32 : i32, i32
  }
}

module attributes {stable_mosaic.version = 11 : i64} {
  func.func @_conv_pool_kernel(%arg0: i32, %arg1: memref<392x512xbf16, #tpu.memory_space<vmem>>, %arg2: memref<512x256xbf16, #tpu.memory_space<vmem>>, %arg3: memref<1x64xf32, #tpu.memory_space<vmem>>, %arg4: memref<392x64xbf16, #tpu.memory_space<vmem>>) attributes {dimension_semantics = [#tpu.dimension_semantics<parallel>], iteration_bounds = array<i64: 1>, scalar_prefetch = 0 : i64, scratch_operands = 0 : i64, tpu.core_type = #tpu.core_type<tc>, window_params = [{transform_indices = @transform_0, window_bounds = array<i64: 392, 512>}, {pipeline_mode = #tpu.pipeline_mode<synchronous>, transform_indices = @transform_1, window_bounds = array<i64: 512, 256>}, {pipeline_mode = #tpu.pipeline_mode<synchronous>, transform_indices = @transform_2, window_bounds = array<i64: 1, 64>}, {transform_indices = @transform_3, window_bounds = array<i64: 392, 64>}]} {
    %c0 = arith.constant 0 : index
    %c0_0 = arith.constant 0 : index
    %0 = vector.load %arg1[%c0, %c0_0] : memref<392x512xbf16, #tpu.memory_space<vmem>>, vector<392x512xbf16>
    %c0_1 = arith.constant 0 : index
    %c0_2 = arith.constant 0 : index
    %1 = vector.load %arg2[%c0_1, %c0_2] : memref<512x256xbf16, #tpu.memory_space<vmem>>, vector<512x256xbf16>
    %cst = arith.constant dense<0.000000e+00> : vector<392x256xf32>
    %2 = tpu.matmul %0, %1, %cst {dimension_numbers = #tpu.dot_dimension_numbers<[1], [0], [0], [1], [0, 0, 1, 1], [], []>} : vector<392x512xbf16>, vector<512x256xbf16>, vector<392x256xf32> -> vector<392x256xf32>
    %3 = vector.extract_strided_slice %2 {offsets = [0, 0], sizes = [392, 64], strides = [1, 1]} : vector<392x256xf32> to vector<392x64xf32>
    %4 = vector.extract_strided_slice %2 {offsets = [0, 64], sizes = [392, 64], strides = [1, 1]} : vector<392x256xf32> to vector<392x64xf32>
    %5 = arith.maximumf %3, %4 : vector<392x64xf32>
    %6 = vector.extract_strided_slice %2 {offsets = [0, 128], sizes = [392, 64], strides = [1, 1]} : vector<392x256xf32> to vector<392x64xf32>
    %7 = vector.extract_strided_slice %2 {offsets = [0, 192], sizes = [392, 64], strides = [1, 1]} : vector<392x256xf32> to vector<392x64xf32>
    %8 = arith.maximumf %6, %7 : vector<392x64xf32>
    %9 = arith.maximumf %5, %8 : vector<392x64xf32>
    %c0_3 = arith.constant 0 : index
    %c0_4 = arith.constant 0 : index
    %10 = vector.load %arg3[%c0_3, %c0_4] : memref<1x64xf32, #tpu.memory_space<vmem>>, vector<1x64xf32>
    %11 = vector.broadcast %10 : vector<1x64xf32> to vector<392x64xf32>
    %12 = arith.addf %9, %11 : vector<392x64xf32>
    %cst_5 = arith.constant 0.000000e+00 : f32
    %13 = vector.broadcast %cst_5 : f32 to vector<392x64xf32>
    %14 = arith.maximumf %12, %13 : vector<392x64xf32>
    %15 = arith.truncf %14 : vector<392x64xf32> to vector<392x64xbf16>
    %c0_6 = arith.constant 0 : index
    %c0_7 = arith.constant 0 : index
    %16 = vector.load %arg4[%c0_6, %c0_7] : memref<392x64xbf16, #tpu.memory_space<vmem>>, vector<392x64xbf16>
    tpu.vector_store %arg4[%c0_6, %c0_7], %15 {strides = array<i32>} : memref<392x64xbf16, #tpu.memory_space<vmem>>, vector<392x64xbf16>,
    return
  }
  func.func @transform_0(%arg0: i32) -> (i32, i32) {
    %c0_i32 = arith.constant 0 : i32
    %c0_i32_0 = arith.constant 0 : i32
    return %arg0, %c0_i32 : i32, i32
  }
  func.func @transform_1(%arg0: i32) -> (i32, i32) {
    %c0_i32 = arith.constant 0 : i32
    %c0_i32_0 = arith.constant 0 : i32
    %c0_i32_1 = arith.constant 0 : i32
    return %c0_i32, %c0_i32_0 : i32, i32
  }
  func.func @transform_2(%arg0: i32) -> (i32, i32) {
    %c0_i32 = arith.constant 0 : i32
    %c0_i32_0 = arith.constant 0 : i32
    %c0_i32_1 = arith.constant 0 : i32
    return %c0_i32, %c0_i32_0 : i32, i32
  }
  func.func @transform_3(%arg0: i32) -> (i32, i32) {
    %c0_i32 = arith.constant 0 : i32
    %c0_i32_0 = arith.constant 0 : i32
    return %arg0, %c0_i32 : i32, i32
  }
}

module attributes {stable_mosaic.version = 11 : i64} {
  func.func @_mlp_kernel(%arg0: i32, %arg1: memref<8x3136xbf16, #tpu.memory_space<vmem>>, %arg2: memref<3136x128xbf16, #tpu.memory_space<vmem>>, %arg3: memref<1x128xf32, #tpu.memory_space<vmem>>, %arg4: memref<128x10xbf16, #tpu.memory_space<vmem>>, %arg5: memref<1x10xf32, #tpu.memory_space<vmem>>, %arg6: memref<8x10xf32, #tpu.memory_space<vmem>>) attributes {dimension_semantics = [#tpu.dimension_semantics<parallel>], iteration_bounds = array<i64: 1>, scalar_prefetch = 0 : i64, scratch_operands = 0 : i64, tpu.core_type = #tpu.core_type<tc>, window_params = [{transform_indices = @transform_0, window_bounds = array<i64: 8, 3136>}, {pipeline_mode = #tpu.pipeline_mode<synchronous>, transform_indices = @transform_1, window_bounds = array<i64: 3136, 128>}, {pipeline_mode = #tpu.pipeline_mode<synchronous>, transform_indices = @transform_2, window_bounds = array<i64: 1, 128>}, {pipeline_mode = #tpu.pipeline_mode<synchronous>, transform_indices = @transform_3, window_bounds = array<i64: 128, 10>}, {pipeline_mode = #tpu.pipeline_mode<synchronous>, transform_indices = @transform_4, window_bounds = array<i64: 1, 10>}, {transform_indices = @transform_5, window_bounds = array<i64: 8, 10>}]} {
    %c0 = arith.constant 0 : index
    %c0_0 = arith.constant 0 : index
    %0 = vector.load %arg1[%c0, %c0_0] : memref<8x3136xbf16, #tpu.memory_space<vmem>>, vector<8x3136xbf16>
    %c0_1 = arith.constant 0 : index
    %c0_2 = arith.constant 0 : index
    %1 = vector.load %arg2[%c0_1, %c0_2] : memref<3136x128xbf16, #tpu.memory_space<vmem>>, vector<3136x128xbf16>
    %cst = arith.constant dense<0.000000e+00> : vector<8x128xf32>
    %2 = tpu.matmul %0, %1, %cst {dimension_numbers = #tpu.dot_dimension_numbers<[1], [0], [0], [1], [0, 0, 1, 1], [], []>} : vector<8x3136xbf16>, vector<3136x128xbf16>, vector<8x128xf32> -> vector<8x128xf32>
    %c0_3 = arith.constant 0 : index
    %c0_4 = arith.constant 0 : index
    %3 = vector.load %arg3[%c0_3, %c0_4] : memref<1x128xf32, #tpu.memory_space<vmem>>, vector<1x128xf32>
    %4 = vector.broadcast %3 : vector<1x128xf32> to vector<8x128xf32>
    %5 = arith.addf %2, %4 : vector<8x128xf32>
    %cst_5 = arith.constant 0.000000e+00 : f32
    %6 = vector.broadcast %cst_5 : f32 to vector<8x128xf32>
    %7 = arith.maximumf %5, %6 : vector<8x128xf32>
    %8 = arith.truncf %7 : vector<8x128xf32> to vector<8x128xbf16>
    %c0_6 = arith.constant 0 : index
    %c0_7 = arith.constant 0 : index
    %9 = vector.load %arg4[%c0_6, %c0_7] : memref<128x10xbf16, #tpu.memory_space<vmem>>, vector<128x10xbf16>
    %cst_8 = arith.constant dense<0.000000e+00> : vector<8x10xf32>
    %10 = tpu.matmul %8, %9, %cst_8 {dimension_numbers = #tpu.dot_dimension_numbers<[1], [0], [0], [1], [0, 0, 1, 1], [], []>} : vector<8x128xbf16>, vector<128x10xbf16>, vector<8x10xf32> -> vector<8x10xf32>
    %c0_9 = arith.constant 0 : index
    %c0_10 = arith.constant 0 : index
    %11 = vector.load %arg5[%c0_9, %c0_10] : memref<1x10xf32, #tpu.memory_space<vmem>>, vector<1x10xf32>
    %12 = vector.broadcast %11 : vector<1x10xf32> to vector<8x10xf32>
    %13 = arith.addf %10, %12 : vector<8x10xf32>
    %c0_11 = arith.constant 0 : index
    %c0_12 = arith.constant 0 : index
    %14 = vector.load %arg6[%c0_11, %c0_12] : memref<8x10xf32, #tpu.memory_space<vmem>>, vector<8x10xf32>
    tpu.vector_store %arg6[%c0_11, %c0_12], %13 {strides = array<i32>} : memref<8x10xf32, #tpu.memory_space<vmem>>, vector<8x10xf32>,
    return
  }
  func.func @transform_0(%arg0: i32) -> (i32, i32) {
    %c0_i32 = arith.constant 0 : i32
    %c0_i32_0 = arith.constant 0 : i32
    return %arg0, %c0_i32 : i32, i32
  }
  func.func @transform_1(%arg0: i32) -> (i32, i32) {
    %c0_i32 = arith.constant 0 : i32
    %c0_i32_0 = arith.constant 0 : i32
    %c0_i32_1 = arith.constant 0 : i32
    return %c0_i32, %c0_i32_0 : i32, i32
  }
  func.func @transform_2(%arg0: i32) -> (i32, i32) {
    %c0_i32 = arith.constant 0 : i32
    %c0_i32_0 = arith.constant 0 : i32
    %c0_i32_1 = arith.constant 0 : i32
    return %c0_i32, %c0_i32_0 : i32, i32
  }
  func.func @transform_3(%arg0: i32) -> (i32, i32) {
    %c0_i32 = arith.constant 0 : i32
    %c0_i32_0 = arith.constant 0 : i32
    %c0_i32_1 = arith.constant 0 : i32
    return %c0_i32, %c0_i32_0 : i32, i32
  }
  func.func @transform_4(%arg0: i32) -> (i32, i32) {
    %c0_i32 = arith.constant 0 : i32
    %c0_i32_0 = arith.constant 0 : i32
    %c0_i32_1 = arith.constant 0 : i32
    return %c0_i32, %c0_i32_0 : i32, i32
  }
  func.func @transform_5(%arg0: i32) -> (i32, i32) {
    %c0_i32 = arith.constant 0 : i32
    %c0_i32_0 = arith.constant 0 : i32
    return %arg0, %c0_i32 : i32, i32
  }
}

</mosaic_0001>

<bundles_post_ra>
// kernel: forward.3
= control target key start
LH: loop header
LB: loop body
LE: loop exit
PB: predicated region body
PF: predicated region fallthrough
CT: control target
= control target key end

     0   :  { %vm709_vm0 = vcmask 130048   ;;  %s6158_s10 = smov 96   ;;  %vm4964_vm1 = vcmask 257024   ;;  %s10123_s1 = inlined_call_operand.vmem [shape: bf16[16,128], index: 1, kind: input, shape index: {}]   ;;  %s10124_s0 = inlined_call_operand.vmem [shape: bf16[1568,16], index: 0, kind: input, shape index: {}]   ;;  %s10125_s2 = inlined_call_operand.vmem [shape: f32[1,32], index: 2, kind: input, shape index: {}]   ;;  %s10126_s3 = inlined_call_operand.vmem [shape: bf16[1568,32], index: 3, kind: output, shape index: {}]  }
   0x1   :  { %v6056_v0 = vld [vmem:[%s10123_s1] sm:$0xff]   ;;  %v6058_v2 = vld [vmem:[%s10124_s0 + $0x190] sm:$0xff]   ;;  %v6059_v3 = vld [vmem:[%s10124_s0 + $0x8] sm:$0xff]  }
   0x2   :  { %v6057_v1 = vld [vmem:[%s10124_s0] sm:$0xff]   ;;  %5854 = vmatprep.subr.bf16.mxu0 %v6056_v0  ;;  %6052 = vmatprep.subr.bf16.mxu1 %v6056_v0  ;;  %v6060_v4 = vld [vmem:[%s10124_s0 + $0x198] sm:$0xff]   ;;  %v6061_v5 = vld [vmem:[%s10124_s0 + $0x10] sm:$0xff]  }
   0x3   :  { %5855 = vmatpush3.bf16.msra.mxu0 %v6056_v0  ;;  %6053 = vmatpush3.bf16.msra.mxu1 %v6056_v0  ;;  %v6063_v6 = vld [vmem:[%s10124_s0 + $0x1a0] sm:$0xff]   ;;  %v6062_v7 = vld [vmem:[%s10124_s0 + $0x18] sm:$0xff]   ;;  %v6064_v8 = vld [vmem:[%s10124_s0 + $0x1a8] sm:$0xff]  }
   0x4   :  { %5856 = vmatprep.mubr.msk.bf16.mxu0 %vm709_vm0, %v6057_v1  ;;  %5956 = vmatprep.mubr.msk.bf16.mxu1 %vm709_vm0, %v6058_v2  ;;  %v6065_v9 = vld [vmem:[%s10124_s0 + $0x20] sm:$0xff]   ;;  %v6067_v10 = vld [vmem:[%s10124_s0 + $0x1b0] sm:$0xff]   ;;  %v6066_v11 = vld [vmem:[%s10124_s0 + $0x28] sm:$0xff]  }
   0x5   :  { %v6068_v12 = vld [vmem:[%s10124_s0 + $0x1b8] sm:$0xff]   ;;  %v6069_v13 = vld [vmem:[%s10124_s0 + $0x30] sm:$0xff]   ;;  %v6071_v14 = vld [vmem:[%s10124_s0 + $0x1c0] sm:$0xff]  }
   0x6   :  { %5857 = vmatmul.mubr.msk.bf16.vlgmr.msra.gmra.mrb[0].mxu0 %vm709_vm0, %v6059_v3  ;;  %5957 = vmatmul.mubr.msk.bf16.vlgmr.msra.gmra.mrb[0].mxu1 %vm709_vm0, %v6060_v4  ;;  %v6070_v15 = vld [vmem:[%s10124_s0 + $0x38] sm:$0xff]   ;;  %v6072_v16 = vld [vmem:[%s10124_s0 + $0x1c8] sm:$0xff]   ;;  %v6073_v17 = vld [vmem:[%s10124_s0 + $0x40] sm:$0xff]  }
   0x7   :  { %5860 = vmatprep.mubr.msk.bf16.mxu0 %vm709_vm0, %v6061_v5  ;;  %5960 = vmatprep.mubr.msk.bf16.mxu1 %vm709_vm0, %v6063_v6  ;;  %v6075_v18 = vld [vmem:[%s10124_s0 + $0x1d0] sm:$0xff]   ;;  %v6074_v19 = vld [vmem:[%s10124_s0 + $0x48] sm:$0xff]   ;;  %v6076_v20 = vld [vmem:[%s10124_s0 + $0x1d8] sm:$0xff]  }
   0x8   :  { %v6077_v21 = vld [vmem:[%s10124_s0 + $0x50] sm:$0xff]   ;;  %v6079_v22 = vld [vmem:[%s10124_s0 + $0x1e0] sm:$0xff]   ;;  %v6078_v23 = vld [vmem:[%s10124_s0 + $0x58] sm:$0xff]  }
   0x9   :  { %v6080_v24 = vld [vmem:[%s10124_s0 + $0x1e8] sm:$0xff]   ;;  %v6081_v25 = vld [vmem:[%s10124_s0 + $0x60] sm:$0xff]   ;;  %v6083_v26 = vld [vmem:[%s10124_s0 + $0x1f0] sm:$0xff]  }
   0xa   :  { %v6082_v27 = vld [vmem:[%s10124_s0 + $0x68] sm:$0xff]   ;;  %v6084_v28 = vld [vmem:[%s10124_s0 + $0x1f8] sm:$0xff]   ;;  %v6085_v29 = vld [vmem:[%s10124_s0 + $0x70] sm:$0xff]  }
   0xb   :  { %v6087_v30 = vld [vmem:[%s10124_s0 + $0x200] sm:$0xff]   ;;  %v6086_v31 = vld [vmem:[%s10124_s0 + $0x78] sm:$0xff]   ;;  %v6088_v32 = vld [vmem:[%s10124_s0 + $0x208] sm:$0xff]  }
   0xc   :  { %v6089_v33 = vld [vmem:[%s10124_s0 + $0x80] sm:$0xff]   ;;  %v6091_v34 = vld [vmem:[%s10124_s0 + $0x210] sm:$0xff]   ;;  %v6090_v35 = vld [vmem:[%s10124_s0 + $0x88] sm:$0xff]  }
   0xd   :  { %v6092_v36 = vld [vmem:[%s10124_s0 + $0x218] sm:$0xff]   ;;  %v6093_v37 = vld [vmem:[%s10124_s0 + $0x90] sm:$0xff]   ;;  %v6095_v38 = vld [vmem:[%s10124_s0 + $0x220] sm:$0xff]  }
   0xe   :  { %5861 = vmatmul.mubr.msk.bf16.gmra.mrb[4].mxu0 %vm709_vm0, %v6062_v7  ;;  %5961 = vmatmul.mubr.msk.bf16.gmra.mrb[4].mxu1 %vm709_vm0, %v6064_v8  ;;  %v6094_v39 = vld [vmem:[%s10124_s0 + $0x98] sm:$0xff]   ;;  %v6096_v40 = vld [vmem:[%s10124_s0 + $0x228] sm:$0xff]   ;;  %v6097_v41 = vld [vmem:[%s10124_s0 + $0xa0] sm:$0xff]  }
   0xf   :  { %5864 = vmatprep.mubr.msk.bf16.mxu0 %vm709_vm0, %v6065_v9  ;;  %5964 = vmatprep.mubr.msk.bf16.mxu1 %vm709_vm0, %v6067_v10  ;;  %v6099_v42 = vld [vmem:[%s10124_s0 + $0x230] sm:$0xff]   ;;  %v6098_v43 = vld [vmem:[%s10124_s0 + $0xa8] sm:$0xff]   ;;  %v6100_v44 = vld [vmem:[%s10124_s0 + $0x238] sm:$0xff]  }
  0x10   :  { %v6101_v45 = vld [vmem:[%s10124_s0 + $0xb0] sm:$0xff]   ;;  %v6103_v46 = vld [vmem:[%s10124_s0 + $0x240] sm:$0xff]   ;;  %v6102_v47 = vld [vmem:[%s10124_s0 + $0xb8] sm:$0xff]  }
  0x11   :  { %v6104_v48 = vld [vmem:[%s10124_s0 + $0x248] sm:$0xff]   ;;  %v6105_v49 = vld [vmem:[%s10124_s0 + $0xc0] sm:$0xff]   ;;  %v6107_v50 = vld [vmem:[%s10124_s0 + $0x250] sm:$0xff]  }
  0x12   :  { %v6106_v51 = vld [vmem:[%s10124_s0 + $0xc8] sm:$0xff]   ;;  %v6108_v52 = vld [vmem:[%s10124_s0 + $0x258] sm:$0xff]   ;;  %v6109_v53 = vld [vmem:[%s10124_s0 + $0xd0] sm:$0xff]  }
  0x13   :  { %v6111_v54 = vld [vmem:[%s10124_s0 + $0x260] sm:$0xff]   ;;  %v6110_v55 = vld [vmem:[%s10124_s0 + $0xd8] sm:$0xff]   ;;  %v6112_v56 = vld [vmem:[%s10124_s0 + $0x268] sm:$0xff]  }
  0x14   :  { %v6113_v57 = vld [vmem:[%s10124_s0 + $0xe0] sm:$0xff]   ;;  %v6115_v58 = vld [vmem:[%s10124_s0 + $0x270] sm:$0xff]   ;;  %v6114_v59 = vld [vmem:[%s10124_s0 + $0xe8] sm:$0xff]  }
  0x15   :  { %v6116_v60 = vld [vmem:[%s10124_s0 + $0x278] sm:$0xff]   ;;  %v6117_v61 = vld [vmem:[%s10124_s0 + $0xf0] sm:$0xff]   ;;  %v6119_v63 = vld [vmem:[%s10124_s0 + $0x280] sm:$0xff]  }
  0x16   :  { %5865 = vmatmul.mubr.msk.bf16.gmra.mrb[8].mxu0 %vm709_vm0, %v6066_v11  ;;  %5965 = vmatmul.mubr.msk.bf16.gmra.mrb[8].mxu1 %vm709_vm0, %v6068_v12  ;;  %v6118_v62 = vld [vmem:[%s10124_s0 + $0xf8] sm:$0xff]   ;;  %v6120_v0 = vld [vmem:[%s10124_s0 + $0x288] sm:$0xff]   ;;  %v6121_v1 = vld [vmem:[%s10124_s0 + $0x100] sm:$0xff]  }
  0x17   :  { %5868 = vmatprep.mubr.msk.bf16.mxu0 %vm709_vm0, %v6069_v13  ;;  %5968 = vmatprep.mubr.msk.bf16.mxu1 %vm709_vm0, %v6071_v14  ;;  %v6122_v2 = vld [vmem:[%s10124_s0 + $0x108] sm:$0xff]   ;;  %v6123_v3 = vld [vmem:[%s10124_s0 + $0x290] sm:$0xff]   ;;  %v6124_v4 = vld [vmem:[%s10124_s0 + $0x298] sm:$0xff]  }
  0x18   :  { %v6125_v5 = vld [vmem:[%s10124_s0 + $0x110] sm:$0xff]   ;;  %v6126_v6 = vld [vmem:[%s10124_s0 + $0x118] sm:$0xff]   ;;  %v6127_v7 = vld [vmem:[%s10124_s0 + $0x2a0] sm:$0xff]  }
  0x19   :  { %v6128_v8 = vld [vmem:[%s10124_s0 + $0x2a8] sm:$0xff]   ;;  %v6129_v9 = vld [vmem:[%s10124_s0 + $0x120] sm:$0xff]   ;;  %v6131_v11 = vld [vmem:[%s10124_s0 + $0x2b0] sm:$0xff]  }
  0x1a   :  { %v6130_v10 = vld [vmem:[%s10124_s0 + $0x128] sm:$0xff]   ;;  %v6132_v12 = vld [vmem:[%s10124_s0 + $0x2b8] sm:$0xff]   ;;  %v6133_v13 = vld [vmem:[%s10124_s0 + $0x130] sm:$0xff]  }
  0x1b   :  { %v6134_v14 = vld [vmem:[%s10124_s0 + $0x138] sm:$0xff]  }
  0x1e   :  { %5869 = vmatmul.mubr.msk.bf16.gmra.mrb[12].mxu0 %vm709_vm0, %v6070_v15  ;;  %5969 = vmatmul.mubr.msk.bf16.gmra.mrb[12].mxu1 %vm709_vm0, %v6072_v16  ;;  %v6135_v15 = vld [vmem:[%s10124_s0 + $0x2c0] sm:$0xff]   ;;  %v6136_v16 = vld [vmem:[%s10124_s0 + $0x2c8] sm:$0xff]  }
  0x1f   :  { %5872 = vmatprep.mubr.msk.bf16.mxu0 %vm709_vm0, %v6073_v17  ;;  %5972 = vmatprep.mubr.msk.bf16.mxu1 %vm709_vm0, %v6075_v18  ;;  %v6137_v17 = vld [vmem:[%s10124_s0 + $0x140] sm:$0xff]   ;;  %v6138_v18 = vld [vmem:[%s10124_s0 + $0x148] sm:$0xff]  }
  0x26   :  { %5873 = vmatmul.mubr.msk.bf16.gmra.mrb[16].mxu0 %vm709_vm0, %v6074_v19  ;;  %5973 = vmatmul.mubr.msk.bf16.gmra.mrb[16].mxu1 %vm709_vm0, %v6076_v20 }
  0x27   :  { %5876 = vmatprep.mubr.msk.bf16.mxu0 %vm709_vm0, %v6077_v21  ;;  %5976 = vmatprep.mubr.msk.bf16.mxu1 %vm709_vm0, %v6079_v22 }
  0x2e   :  { %5877 = vmatmul.mubr.msk.bf16.gmra.mrb[20].mxu0 %vm709_vm0, %v6078_v23  ;;  %5977 = vmatmul.mubr.msk.bf16.gmra.mrb[20].mxu1 %vm709_vm0, %v6080_v24  ;;  %v6139_v23 = vld [vmem:[%s10124_s0 + $0x2d0] sm:$0xff]  }
  0x2f   :  { %5880 = vmatprep.mubr.msk.bf16.mxu0 %vm709_vm0, %v6081_v25  ;;  %5980 = vmatprep.mubr.msk.bf16.mxu1 %vm709_vm0, %v6083_v26  ;;  %v6140_v26 = vld [vmem:[%s10124_s0 + $0x2d8] sm:$0xff]  }
  0x36   :  { %5881 = vmatmul.mubr.msk.bf16.gmra.mrb[24].mxu0 %vm709_vm0, %v6082_v27  ;;  %5981 = vmatmul.mubr.msk.bf16.gmra.mrb[24].mxu1 %vm709_vm0, %v6084_v28 }
  0x37   :  { %5884 = vmatprep.mubr.msk.bf16.mxu0 %vm709_vm0, %v6085_v29  ;;  %5984 = vmatprep.mubr.msk.bf16.mxu1 %vm709_vm0, %v6087_v30 }
  0x3e   :  { %5885 = vmatmul.mubr.msk.bf16.gmra.mrb[28].mxu0 %vm709_vm0, %v6086_v31  ;;  %5985 = vmatmul.mubr.msk.bf16.gmra.mrb[28].mxu1 %vm709_vm0, %v6088_v32 }
  0x3f   :  { %5888 = vmatprep.mubr.msk.bf16.mxu0 %vm709_vm0, %v6089_v33  ;;  %5988 = vmatprep.mubr.msk.bf16.mxu1 %vm709_vm0, %v6091_v34 }
  0x46   :  { %5889 = vmatmul.mubr.msk.bf16.gmra.mrb[32].mxu0 %vm709_vm0, %v6090_v35  ;;  %5989 = vmatmul.mubr.msk.bf16.gmra.mrb[32].mxu1 %vm709_vm0, %v6092_v36 }
  0x47   :  { %5892 = vmatprep.mubr.msk.bf16.mxu0 %vm709_vm0, %v6093_v37  ;;  %5992 = vmatprep.mubr.msk.bf16.mxu1 %vm709_vm0, %v6095_v38  ;;  %v6141_v37 = vld [vmem:[%s10124_s0 + $0x150] sm:$0xff]   ;;  %v6142_v38 = vld [vmem:[%s10124_s0 + $0x158] sm:$0xff]  }
  0x4e   :  { %5893 = vmatmul.mubr.msk.bf16.gmra.mrb[36].mxu0 %vm709_vm0, %v6094_v39  ;;  %5993 = vmatmul.mubr.msk.bf16.gmra.mrb[36].mxu1 %vm709_vm0, %v6096_v40 }
  0x4f   :  { %5896 = vmatprep.mubr.msk.bf16.mxu0 %vm709_vm0, %v6097_v41  ;;  %5996 = vmatprep.mubr.msk.bf16.mxu1 %vm709_vm0, %v6099_v42 }
  0x56   :  { %5897 = vmatmul.mubr.msk.bf16.gmra.mrb[40].mxu0 %vm709_vm0, %v6098_v43  ;;  %5997 = vmatmul.mubr.msk.bf16.gmra.mrb[40].mxu1 %vm709_vm0, %v6100_v44  ;;  %v6143_v43 = vld [vmem:[%s10124_s0 + $0x2e0] sm:$0xff]  }
  0x57   :  { %5900 = vmatprep.mubr.msk.bf16.mxu0 %vm709_vm0, %v6101_v45  ;;  %6000 = vmatprep.mubr.msk.bf16.mxu1 %vm709_vm0, %v6103_v46  ;;  %v6144_v46 = vld [vmem:[%s10124_s0 + $0x2e8] sm:$0xff]  }
  0x5e   :  { %5901 = vmatmul.mubr.msk.bf16.gmra.mrb[44].mxu0 %vm709_vm0, %v6102_v47  ;;  %6001 = vmatmul.mubr.msk.bf16.gmra.mrb[44].mxu1 %vm709_vm0, %v6104_v48 }
  0x5f   :  { %5904 = vmatprep.mubr.msk.bf16.mxu0 %vm709_vm0, %v6105_v49  ;;  %6004 = vmatprep.mubr.msk.bf16.mxu1 %vm709_vm0, %v6107_v50 }
  0x66   :  { %5905 = vmatmul.mubr.msk.bf16.gmra.mrb[48].mxu0 %vm709_vm0, %v6106_v51  ;;  %6005 = vmatmul.mubr.msk.bf16.gmra.mrb[48].mxu1 %vm709_vm0, %v6108_v52 }
  0x67   :  { %5908 = vmatprep.mubr.msk.bf16.mxu0 %vm709_vm0, %v6109_v53  ;;  %6008 = vmatprep.mubr.msk.bf16.mxu1 %vm709_vm0, %v6111_v54 }
  0x6e   :  { %5909 = vmatmul.mubr.msk.bf16.gmra.mrb[52].mxu0 %vm709_vm0, %v6110_v55  ;;  %6009 = vmatmul.mubr.msk.bf16.gmra.mrb[52].mxu1 %vm709_vm0, %v6112_v56 }
  0x6f   :  { %5912 = vmatprep.mubr.msk.bf16.mxu0 %vm709_vm0, %v6113_v57  ;;  %6012 = vmatprep.mubr.msk.bf16.mxu1 %vm709_vm0, %v6115_v58  ;;  %v6145_v57 = vld [vmem:[%s10124_s0 + $0x160] sm:$0xff]   ;;  %v6146_v58 = vld [vmem:[%s10124_s0 + $0x168] sm:$0xff]  }
  0x76   :  { %5913 = vmatmul.mubr.msk.bf16.gmra.mrb[56].mxu0 %vm709_vm0, %v6114_v59  ;;  %6013 = vmatmul.mubr.msk.bf16.gmra.mrb[56].mxu1 %vm709_vm0, %v6116_v60 }
  0x77   :  { %5916 = vmatprep.mubr.msk.bf16.mxu0 %vm709_vm0, %v6117_v61  ;;  %6016 = vmatprep.mubr.msk.bf16.mxu1 %vm709_vm0, %v6119_v63  ;;  %v6147_v63 = vld [vmem:[%s10124_s0 + $0x2f0] sm:$0xff]  }
  0x7e   :  { %5917 = vmatmul.mubr.msk.bf16.gmra.mrb[60].mxu0 %vm709_vm0, %v6118_v62  ;;  %6017 = vmatmul.mubr.msk.bf16.gmra.mrb[60].mxu1 %vm709_vm0, %v6120_v0 }
  0x7f   :  { %5920 = vmatprep.mubr.msk.bf16.mxu0 %vm709_vm0, %v6121_v1  ;;  %6020 = vmatprep.mubr.msk.bf16.mxu1 %vm709_vm0, %v6123_v3 }
  0x86   :  { %5921 = vmatmul.mubr.msk.bf16.gmra.mrb[64].mxu0 %vm709_vm0, %v6122_v2  ;;  %6021 = vmatmul.mubr.msk.bf16.gmra.mrb[64].mxu1 %vm709_vm0, %v6124_v4  ;;  %v6148_v2 = vld [vmem:[%s10124_s0 + $0x2f8] sm:$0xff]  }
  0x87   :  { %5924 = vmatprep.mubr.msk.bf16.mxu0 %vm709_vm0, %v6125_v5  ;;  %6024 = vmatprep.mubr.msk.bf16.mxu1 %vm709_vm0, %v6127_v7 }
  0x8e   :  { %5925 = vmatmul.mubr.msk.bf16.gmra.mrb[68].mxu0 %vm709_vm0, %v6126_v6  ;;  %6025 = vmatmul.mubr.msk.bf16.gmra.mrb[68].mxu1 %vm709_vm0, %v6128_v8 }
  0x8f   :  { %5928 = vmatprep.mubr.msk.bf16.mxu0 %vm709_vm0, %v6129_v9  ;;  %6028 = vmatprep.mubr.msk.bf16.mxu1 %vm709_vm0, %v6131_v11 }
  0x96   :  { %5929 = vmatmul.mubr.msk.bf16.gmra.mrb[72].mxu0 %vm709_vm0, %v6130_v10  ;;  %6029 = vmatmul.mubr.msk.bf16.gmra.mrb[72].mxu1 %vm709_vm0, %v6132_v12 }
  0x97   :  { %5932 = vmatprep.mubr.msk.bf16.mxu0 %vm709_vm0, %v6133_v13  ;;  %6032 = vmatprep.mubr.msk.bf16.mxu1 %vm709_vm0, %v6135_v15  ;;  %v6149_v13 = vld [vmem:[%s10124_s0 + $0x170] sm:$0xff]  }
  0x9e   :  { %5933 = vmatmul.mubr.msk.bf16.gmra.mrb[76].mxu0 %vm709_vm0, %v6134_v14  ;;  %6033 = vmatmul.mubr.msk.bf16.gmra.mrb[76].mxu1 %vm709_vm0, %v6136_v16  ;;  %v6150_v14 = vld [vmem:[%s10124_s0 + $0x178] sm:$0xff]  }
  0x9f   :  { %5936 = vmatprep.mubr.msk.bf16.mxu0 %vm709_vm0, %v6137_v17  ;;  %6036 = vmatprep.mubr.msk.bf16.mxu1 %vm709_vm0, %v6139_v23  ;;  %v6151_v23 = vld [vmem:[%s10124_s0 + $0x300] sm:$0xff]  }
  0xa6   :  { %5937 = vmatmul.mubr.msk.bf16.gmra.mrb[80].mxu0 %vm709_vm0, %v6138_v18  ;;  %6037 = vmatmul.mubr.msk.bf16.gmra.mrb[80].mxu1 %vm709_vm0, %v6140_v26 }
  0xa7   :  { %5940 = vmatprep.mubr.msk.bf16.mxu0 %vm709_vm0, %v6141_v37  ;;  %6040 = vmatprep.mubr.msk.bf16.mxu1 %vm709_vm0, %v6143_v43 }
  0xae   :  { %5941 = vmatmul.mubr.msk.bf16.gmra.mrb[84].mxu0 %vm709_vm0, %v6142_v38  ;;  %6041 = vmatmul.mubr.msk.bf16.gmra.mrb[84].mxu1 %vm709_vm0, %v6144_v46  ;;  %v6152_v38 = vld [vmem:[%s10124_s0 + $0x308] sm:$0xff]  }
  0xaf   :  { %5944 = vmatprep.mubr.msk.bf16.mxu0 %vm709_vm0, %v6145_v57  ;;  %6044 = vmatprep.mubr.msk.bf16.mxu1 %vm709_vm0, %v6147_v63 }
  0xb6   :  { %5945 = vmatmul.mubr.msk.bf16.gmra.mrb[88].mxu0 %vm709_vm0, %v6146_v58  ;;  %6045 = vmatmul.mubr.msk.bf16.gmra.mrb[88].mxu1 %vm709_vm0, %v6148_v2 }
  0xb7   :  { %5948 = vmatprep.mubr.msk.bf16.mxu0 %vm709_vm0, %v6149_v13  ;;  %6048 = vmatprep.mubr.msk.bf16.mxu1 %vm709_vm0, %v6151_v23 }
  0xbe   :  { %5949 = vmatmul.mubr.msk.bf16.gmra.mrb[92].mxu0 %vm709_vm0, %v6150_v14  ;;  %6049 = vmatmul.mubr.msk.bf16.gmra.mrb[92].mxu1 %vm709_vm0, %v6152_v38 }
  0xd9   :  { %v6510_v19 = vpop.f32.mrb[0].mxu0  ;;  %v6512_v20 = vpop.f32.mrb[0].mxu1 }
  0xda   :  { %10372 = vst [vmem:[#allocation2_spill] sm:$0xff] %v6510_v19  ;;  %10373 = vst [vmem:[#allocation3_spill] sm:$0xff] %v6512_v20  ;;  %2221 = vrot.lane.b32.xlu0 %v6512_v20, %s6158_s10  ;;  %v6517_v21 = vpop.f32.mrb[1].mxu1  ;;  %2021 = vrot.lane.b32.xlu1 %v6510_v19, %s6158_s10  ;;  %v6521_v22 = vpop.f32.mrb[1].mxu0 }
  0xdb   :  { %10374 = vst [vmem:[#allocation4_spill] sm:$0xff] %v6517_v21  ;;  %10375 = vst [vmem:[#allocation5_spill] sm:$0xff] %v6521_v22  ;;  %v6526_v24 = vpop.f32.mrb[2].mxu0  ;;  %v6528_v25 = vpop.f32.mrb[2].mxu1 }
  0xdc   :  { %10376 = vst [vmem:[#allocation6_spill] sm:$0xff] %v6526_v24  ;;  %10377 = vst [vmem:[#allocation7_spill] sm:$0xff] %v6528_v25  ;;  %v6533_v27 = vpop.f32.mrb[3].mxu0  ;;  %v6535_v28 = vpop.f32.mrb[3].mxu1 }
  0xdd   :  { %10378 = vst [vmem:[#allocation8_spill] sm:$0xff] %v6533_v27  ;;  %10379 = vst [vmem:[#allocation9_spill] sm:$0xff] %v6535_v28 }
  0xde   :  { %2017 = vrot.lane.b32.xlu0 %v6521_v22, %s6158_s10  ;;  %2023 = vrot.lane.b32.xlu1 %v6526_v24, %s6158_s10 }
  0xe1   :  { %v6543_v29 = vpop.f32.mrb[4].mxu0  ;;  %v6545_v30 = vpop.f32.mrb[4].mxu1 }
  0xe2   :  { %10380 = vst [vmem:[#allocation10_spill] sm:$0xff] %v6543_v29  ;;  %10381 = vst [vmem:[#allocation11_spill] sm:$0xff] %v6545_v30  ;;  %2217 = vrot.lane.b32.xlu0 %v6517_v21, %s6158_s10  ;;  %2223 = vrot.lane.b32.xlu1 %v6528_v25, %s6158_s10  ;;  %v6551_v31 = vpop.f32.mrb[5].mxu0  ;;  %v6553_v32 = vpop.f32.mrb[5].mxu1 }
  0xe3   :  { %10382 = vst [vmem:[#allocation12_spill] sm:$0xff] %v6551_v31  ;;  %10383 = vst [vmem:[#allocation13_spill] sm:$0xff] %v6553_v32  ;;  %v6555_v33 = vpop.f32.mrb[6].mxu0  ;;  %v6557_v34 = vpop.f32.mrb[6].mxu1 }
  0xe4   :  { %10384 = vst [vmem:[#allocation14_spill] sm:$0xff] %v6555_v33  ;;  %10385 = vst [vmem:[#allocation15_spill] sm:$0xff] %v6557_v34  ;;  %v6559_v35 = vpop.f32.mrb[7].mxu0  ;;  %v6561_v36 = vpop.f32.mrb[7].mxu1 }
  0xe5   :  { %10386 = vst [vmem:[#allocation16_spill] sm:$0xff] %v6559_v35  ;;  %10387 = vst [vmem:[#allocation17_spill] sm:$0xff] %v6561_v36 }
  0xe6   :  { %2219 = vrot.lane.b32.xlu1 %v6535_v28, %s6158_s10  ;;  %2019 = vrot.lane.b32.xlu0 %v6533_v27, %s6158_s10 }
  0xe9   :  { %v6574_v39 = vpop.f32.mrb[8].mxu0  ;;  %v6576_v40 = vpop.f32.mrb[8].mxu1 }
  0xea   :  { %10388 = vst [vmem:[#allocation18_spill] sm:$0xff] %v6574_v39  ;;  %10389 = vst [vmem:[#allocation19_spill] sm:$0xff] %v6576_v40  ;;  %2029 = vrot.lane.b32.xlu0 %v6543_v29, %s6158_s10  ;;  %2031 = vrot.lane.b32.xlu1 %v6555_v33, %s6158_s10  ;;  %v6583_v41 = vpop.f32.mrb[9].mxu0  ;;  %v6585_v42 = vpop.f32.mrb[9].mxu1 }
  0xeb   :  { %10390 = vst [vmem:[#allocation20_spill] sm:$0xff] %v6583_v41  ;;  %10391 = vst [vmem:[#allocation21_spill] sm:$0xff] %v6585_v42  ;;  %v6590_v44 = vpop.f32.mrb[10].mxu0  ;;  %v6592_v45 = vpop.f32.mrb[10].mxu1 }
  0xec   :  { %10392 = vst [vmem:[#allocation22_spill] sm:$0xff] %v6590_v44  ;;  %10393 = vst [vmem:[#allocation23_spill] sm:$0xff] %v6592_v45  ;;  %v6597_v47 = vpop.f32.mrb[11].mxu0  ;;  %v6599_v48 = vpop.f32.mrb[11].mxu1 }
  0xed   :  { %10394 = vst [vmem:[#allocation24_spill] sm:$0xff] %v6597_v47  ;;  %10395 = vst [vmem:[#allocation25_spill] sm:$0xff] %v6599_v48 }
  0xee   :  { %2229 = vrot.lane.b32.xlu0 %v6545_v30, %s6158_s10  ;;  %2231 = vrot.lane.b32.xlu1 %v6557_v34, %s6158_s10 }
  0xf1   :  { %v6607_v49 = vpop.f32.mrb[12].mxu0  ;;  %v6609_v50 = vpop.f32.mrb[12].mxu1 }
  0xf2   :  { %10396 = vst [vmem:[#allocation26_spill] sm:$0xff] %v6607_v49  ;;  %10397 = vst [vmem:[#allocation27_spill] sm:$0xff] %v6609_v50  ;;  %2025 = vrot.lane.b32.xlu0 %v6551_v31, %s6158_s10  ;;  %2027 = vrot.lane.b32.xlu1 %v6559_v35, %s6158_s10  ;;  %v6615_v51 = vpop.f32.mrb[13].mxu0  ;;  %v6617_v52 = vpop.f32.mrb[13].mxu1 }
  0xf3   :  { %10398 = vst [vmem:[#allocation28_spill] sm:$0xff] %v6615_v51  ;;  %10399 = vst [vmem:[#allocation29_spill] sm:$0xff] %v6617_v52  ;;  %v6619_v53 = vpop.f32.mrb[14].mxu0  ;;  %v6621_v54 = vpop.f32.mrb[14].mxu1 }
  0xf4   :  { %10400 = vst [vmem:[#allocation30_spill] sm:$0xff] %v6619_v53  ;;  %10401 = vst [vmem:[#allocation31_spill] sm:$0xff] %v6621_v54  ;;  %v6623_v55 = vpop.f32.mrb[15].mxu0  ;;  %v6625_v56 = vpop.f32.mrb[15].mxu1 }
  0xf5   :  { %10402 = vst [vmem:[#allocation32_spill] sm:$0xff] %v6623_v55  ;;  %10403 = vst [vmem:[#allocation33_spill] sm:$0xff] %v6625_v56 }
  0xf6   :  { %2225 = vrot.lane.b32.xlu0 %v6553_v32, %s6158_s10  ;;  %2227 = vrot.lane.b32.xlu1 %v6561_v36, %s6158_s10 }
  0xf9   :  { %v6638_v59 = vpop.f32.mrb[16].mxu0  ;;  %v6640_v60 = vpop.f32.mrb[16].mxu1 }
  0xfa   :  { %10404 = vst [vmem:[#allocation34_spill] sm:$0xff] %v6638_v59  ;;  %10405 = vst [vmem:[#allocation35_spill] sm:$0xff] %v6640_v60  ;;  %2037 = vrot.lane.b32.xlu0 %v6574_v39, %s6158_s10  ;;  %2039 = vrot.lane.b32.xlu1 %v6590_v44, %s6158_s10  ;;  %v6647_v61 = vpop.f32.mrb[17].mxu0  ;;  %v6649_v62 = vpop.f32.mrb[17].mxu1 }
  0xfb   :  { %10406 = vst [vmem:[#allocation36_spill] sm:$0xff] %v6647_v61  ;;  %10407 = vst [vmem:[#allocation37_spill] sm:$0xff] %v6649_v62  ;;  %v6654_v0 = vpop.f32.mrb[18].mxu0  ;;  %v6656_v1 = vpop.f32.mrb[18].mxu1 }
  0xfc   :  { %10408 = vst [vmem:[#allocation38_spill] sm:$0xff] %v6654_v0  ;;  %10409 = vst [vmem:[#allocation39_spill] sm:$0xff] %v6656_v1  ;;  %v6661_v3 = vpop.f32.mrb[19].mxu0  ;;  %v6663_v4 = vpop.f32.mrb[19].mxu1 }
  0xfd   :  { %10410 = vst [vmem:[#allocation40_spill] sm:$0xff] %v6661_v3  ;;  %10411 = vst [vmem:[#allocation41_spill] sm:$0xff] %v6663_v4 }
  0xfe   :  { %2237 = vrot.lane.b32.xlu0 %v6576_v40, %s6158_s10  ;;  %2239 = vrot.lane.b32.xlu1 %v6592_v45, %s6158_s10 }
 0x101   :  { %v6671_v5 = vpop.f32.mrb[20].mxu0  ;;  %v6673_v6 = vpop.f32.mrb[20].mxu1 }
 0x102   :  { %10412 = vst [vmem:[#allocation42_spill] sm:$0xff] %v6671_v5  ;;  %10413 = vst [vmem:[#allocation43_spill] sm:$0xff] %v6673_v6  ;;  %2033 = vrot.lane.b32.xlu0 %v6583_v41, %s6158_s10  ;;  %2035 = vrot.lane.b32.xlu1 %v6597_v47, %s6158_s10  ;;  %v6679_v7 = vpop.f32.mrb[21].mxu0  ;;  %v6681_v8 = vpop.f32.mrb[21].mxu1 }
 0x103   :  { %10414 = vst [vmem:[#allocation44_spill] sm:$0xff] %v6679_v7  ;;  %10415 = vst [vmem:[#allocation45_spill] sm:$0xff] %v6681_v8  ;;  %v6683_v9 = vpop.f32.mrb[22].mxu0  ;;  %v6685_v10 = vpop.f32.mrb[22].mxu1 }
 0x104   :  { %10416 = vst [vmem:[#allocation46_spill] sm:$0xff] %v6683_v9  ;;  %10417 = vst [vmem:[#allocation47_spill] sm:$0xff] %v6685_v10  ;;  %v6687_v11 = vpop.f32.mrb[23].mxu0  ;;  %v6689_v12 = vpop.f32.mrb[23].mxu1 }
 0x105   :  { %10418 = vst [vmem:[#allocation48_spill] sm:$0xff] %v6687_v11  ;;  %10419 = vst [vmem:[#allocation49_spill] sm:$0xff] %v6689_v12 }
 0x106   :  { %2233 = vrot.lane.b32.xlu0 %v6585_v42, %s6158_s10  ;;  %2235 = vrot.lane.b32.xlu1 %v6599_v48, %s6158_s10 }
 0x109   :  { %v6702_v15 = vpop.f32.mrb[24].mxu0  ;;  %v6704_v16 = vpop.f32.mrb[24].mxu1 }
 0x10a   :  { %10420 = vst [vmem:[#allocation50_spill] sm:$0xff] %v6702_v15  ;;  %10421 = vst [vmem:[#allocation51_spill] sm:$0xff] %v6704_v16  ;;  %2045 = vrot.lane.b32.xlu0 %v6607_v49, %s6158_s10  ;;  %2047 = vrot.lane.b32.xlu1 %v6619_v53, %s6158_s10  ;;  %v6711_v17 = vpop.f32.mrb[25].mxu0  ;;  %v6713_v18 = vpop.f32.mrb[25].mxu1 }
 0x10b   :  { %10422 = vst [vmem:[#allocation52_spill] sm:$0xff] %v6711_v17  ;;  %10423 = vst [vmem:[#allocation53_spill] sm:$0xff] %v6713_v18  ;;  %v6718_v26 = vpop.f32.mrb[26].mxu0  ;;  %v6720_v37 = vpop.f32.mrb[26].mxu1 }
 0x10c   :  { %10424 = vst [vmem:[#allocation54_spill] sm:$0xff] %v6718_v26  ;;  %10425 = vst [vmem:[#allocation55_spill] sm:$0xff] %v6720_v37  ;;  %v6725_v43 = vpop.f32.mrb[27].mxu0  ;;  %v6727_v46 = vpop.f32.mrb[27].mxu1 }
 0x10d   :  { %10426 = vst [vmem:[#allocation56_spill] sm:$0xff] %v6725_v43  ;;  %10427 = vst [vmem:[#allocation57_spill] sm:$0xff] %v6727_v46 }
 0x10e   :  { %2245 = vrot.lane.b32.xlu0 %v6609_v50, %s6158_s10  ;;  %2247 = vrot.lane.b32.xlu1 %v6621_v54, %s6158_s10  ;;  %v6153_v54 = vld [vmem:[%s10124_s0 + $0x180] sm:$0xff]   ;;  %v6154_v50 = vld [vmem:[%s10124_s0 + $0x188] sm:$0xff]   ;;  %s6159_s0 = smov 64  }
 0x10f   :  { %5952 = vmatprep.mubr.msk.bf16.mxu0 %vm709_vm0, %v6153_v54 }
 0x110   :  { %5953 = vmatmul.mubr.msk.bf16.gmra.mrb[96].mxu0 %vm709_vm0, %v6154_v50 }
 0x111   :  { %v6735_v57 = vpop.f32.mrb[28].mxu0  ;;  %v6737_v58 = vpop.f32.mrb[28].mxu1 }
 0x112   :  { %10428 = vst [vmem:[#allocation58_spill] sm:$0xff] %v6735_v57  ;;  %10429 = vst [vmem:[#allocation59_spill] sm:$0xff] %v6737_v58  ;;  %2041 = vrot.lane.b32.xlu0 %v6615_v51, %s6158_s10  ;;  %2043 = vrot.lane.b32.xlu1 %v6623_v55, %s6158_s10  ;;  %v6743_v63 = vpop.f32.mrb[29].mxu0  ;;  %v6745_v2 = vpop.f32.mrb[29].mxu1 }
 0x113   :  { %10430 = vst [vmem:[#allocation60_spill] sm:$0xff] %v6743_v63  ;;  %10431 = vst [vmem:[#allocation61_spill] sm:$0xff] %v6745_v2  ;;  %v6747_v13 = vpop.f32.mrb[30].mxu0  ;;  %v6749_v14 = vpop.f32.mrb[30].mxu1 }
 0x114   :  { %10432 = vst [vmem:[#allocation62_spill] sm:$0xff] %v6747_v13  ;;  %10433 = vst [vmem:[#allocation63_spill] sm:$0xff] %v6749_v14  ;;  %v6751_v23 = vpop.f32.mrb[31].mxu0  ;;  %v6753_v38 = vpop.f32.mrb[31].mxu1 }
 0x115   :  { %10434 = vst [vmem:[#allocation64_spill] sm:$0xff] %v6751_v23  ;;  %10435 = vst [vmem:[#allocation65_spill] sm:$0xff] %v6753_v38 }
 0x116   :  { %2241 = vrot.lane.b32.xlu0 %v6617_v52, %s6158_s10  ;;  %2243 = vrot.lane.b32.xlu1 %v6625_v56, %s6158_s10 }
 0x119   :  { %v6766_v45 = vpop.f32.mrb[32].mxu0  ;;  %v6768_v40 = vpop.f32.mrb[32].mxu1 }
 0x11a   :  { %10436 = vst [vmem:[#allocation66_spill] sm:$0xff] %v6766_v45  ;;  %10437 = vst [vmem:[#allocation67_spill] sm:$0xff] %v6768_v40  ;;  %2053 = vrot.lane.b32.xlu0 %v6638_v59, %s6158_s10  ;;  %2055 = vrot.lane.b32.xlu1 %v6654_v0, %s6158_s10  ;;  %v6775_v56 = vpop.f32.mrb[33].mxu0  ;;  %v6777_v52 = vpop.f32.mrb[33].mxu1 }
 0x11b   :  { %10438 = vst [vmem:[#allocation68_spill] sm:$0xff] %v6775_v56  ;;  %10439 = vst [vmem:[#allocation69_spill] sm:$0xff] %v6777_v52  ;;  %v6779_v48 = vpop.f32.mrb[34].mxu0  ;;  %v6781_v42 = vpop.f32.mrb[34].mxu1 }
 0x11c   :  { %10440 = vst [vmem:[#allocation70_spill] sm:$0xff] %v6779_v48  ;;  %10441 = vst [vmem:[#allocation71_spill] sm:$0xff] %v6781_v42  ;;  %v6783_v54 = vpop.f32.mrb[35].mxu0  ;;  %v6785_v34 = vpop.f32.mrb[35].mxu1 }
 0x11d   :  { %10442 = vst [vmem:[#allocation72_spill] sm:$0xff] %v6783_v54  ;;  %10443 = vst [vmem:[#allocation73_spill] sm:$0xff] %v6785_v34 }
 0x11e   :  { %2253 = vrot.lane.b32.xlu0 %v6640_v60, %s6158_s10  ;;  %2255 = vrot.lane.b32.xlu1 %v6656_v1, %s6158_s10 }
 0x121   :  { %v6791_v50 = vpop.f32.mrb[36].mxu0  ;;  %v6793_v30 = vpop.f32.mrb[36].mxu1 }
 0x122   :  { %10444 = vst [vmem:[#allocation74_spill] sm:$0xff] %v6791_v50  ;;  %10445 = vst [vmem:[#allocation75_spill] sm:$0xff] %v6793_v30  ;;  %2049 = vrot.lane.b32.xlu0 %v6647_v61, %s6158_s10  ;;  %2051 = vrot.lane.b32.xlu1 %v6661_v3, %s6158_s10  ;;  %v6799_v36 = vpop.f32.mrb[37].mxu0  ;;  %v6801_v32 = vpop.f32.mrb[37].mxu1 }
 0x123   :  { %10446 = vst [vmem:[#allocation76_spill] sm:$0xff] %v6799_v36  ;;  %10447 = vst [vmem:[#allocation77_spill] sm:$0xff] %v6801_v32  ;;  %v6803_v25 = vpop.f32.mrb[38].mxu0  ;;  %v6805_v60 = vpop.f32.mrb[38].mxu1 }
 0x124   :  { %10448 = vst [vmem:[#allocation78_spill] sm:$0xff] %v6803_v25  ;;  %10449 = vst [vmem:[#allocation79_spill] sm:$0xff] %v6805_v60  ;;  %v6807_v20 = vpop.f32.mrb[39].mxu0  ;;  %v6809_v1 = vpop.f32.mrb[39].mxu1 }
 0x125   :  { %10450 = vst [vmem:[#allocation80_spill] sm:$0xff] %v6807_v20  ;;  %10451 = vst [vmem:[#allocation81_spill] sm:$0xff] %v6809_v1 }
 0x126   :  { %2249 = vrot.lane.b32.xlu0 %v6649_v62, %s6158_s10  ;;  %2251 = vrot.lane.b32.xlu1 %v6663_v4, %s6158_s10 }
 0x129   :  { %v6815_v28 = vpop.f32.mrb[40].mxu0  ;;  %v6817_v21 = vpop.f32.mrb[40].mxu1 }
 0x12a   :  { %10452 = vst [vmem:[#allocation82_spill] sm:$0xff] %v6815_v28  ;;  %10453 = vst [vmem:[#allocation83_spill] sm:$0xff] %v6817_v21  ;;  %2061 = vrot.lane.b32.xlu0 %v6671_v5, %s6158_s10  ;;  %2063 = vrot.lane.b32.xlu1 %v6683_v9, %s6158_s10  ;;  %v6823_v0 = vpop.f32.mrb[41].mxu0  ;;  %v6825_v59 = vpop.f32.mrb[41].mxu1 }
 0x12b   :  { %10454 = vst [vmem:[#allocation84_spill] sm:$0xff] %v6823_v0  ;;  %10455 = vst [vmem:[#allocation85_spill] sm:$0xff] %v6825_v59  ;;  %v6827_v3 = vpop.f32.mrb[42].mxu0  ;;  %v6829_v62 = vpop.f32.mrb[42].mxu1 }
 0x12c   :  { %10456 = vst [vmem:[#allocation86_spill] sm:$0xff] %v6827_v3  ;;  %10457 = vst [vmem:[#allocation87_spill] sm:$0xff] %v6829_v62  ;;  %v6831_v61 = vpop.f32.mrb[43].mxu0  ;;  %v6833_v4 = vpop.f32.mrb[43].mxu1 }
 0x12d   :  { %10458 = vst [vmem:[#allocation88_spill] sm:$0xff] %v6831_v61  ;;  %10459 = vst [vmem:[#allocation89_spill] sm:$0xff] %v6833_v4 }
 0x12e   :  { %2261 = vrot.lane.b32.xlu0 %v6673_v6, %s6158_s10  ;;  %2263 = vrot.lane.b32.xlu1 %v6685_v10, %s6158_s10 }
 0x131   :  { %v6839_v5 = vpop.f32.mrb[44].mxu0  ;;  %v6841_v9 = vpop.f32.mrb[44].mxu1 }
 0x132   :  { %10460 = vst [vmem:[#allocation90_spill] sm:$0xff] %v6839_v5  ;;  %10461 = vst [vmem:[#allocation91_spill] sm:$0xff] %v6841_v9  ;;  %2057 = vrot.lane.b32.xlu0 %v6679_v7, %s6158_s10  ;;  %2059 = vrot.lane.b32.xlu1 %v6687_v11, %s6158_s10  ;;  %v6847_v53 = vpop.f32.mrb[45].mxu0  ;;  %v6849_v49 = vpop.f32.mrb[45].mxu1 }
 0x133   :  { %10462 = vst [vmem:[#allocation92_spill] sm:$0xff] %v6847_v53  ;;  %10463 = vst [vmem:[#allocation93_spill] sm:$0xff] %v6849_v49  ;;  %v6851_v55 = vpop.f32.mrb[46].mxu0  ;;  %v6853_v6 = vpop.f32.mrb[46].mxu1 }
 0x134   :  { %10464 = vst [vmem:[#allocation94_spill] sm:$0xff] %v6851_v55  ;;  %10465 = vst [vmem:[#allocation95_spill] sm:$0xff] %v6853_v6  ;;  %v6855_v51 = vpop.f32.mrb[47].mxu0  ;;  %v6857_v10 = vpop.f32.mrb[47].mxu1 }
 0x135   :  { %10466 = vst [vmem:[#allocation96_spill] sm:$0xff] %v6855_v51  ;;  %10467 = vst [vmem:[#allocation97_spill] sm:$0xff] %v6857_v10 }
 0x136   :  { %2257 = vrot.lane.b32.xlu0 %v6681_v8, %s6158_s10  ;;  %2259 = vrot.lane.b32.xlu1 %v6689_v12, %s6158_s10 }
 0x139   :  { %v6863_v7 = vpop.f32.mrb[48].mxu0  ;;  %v6865_v11 = vpop.f32.mrb[48].mxu1 }
 0x13a   :  { %10468 = vst [vmem:[#allocation98_spill] sm:$0xff] %v6863_v7  ;;  %10469 = vst [vmem:[#allocation99_spill] sm:$0xff] %v6865_v11  ;;  %2069 = vrot.lane.b32.xlu0 %v6702_v15, %s6158_s10  ;;  %2071 = vrot.lane.b32.xlu1 %v6718_v26, %s6158_s10  ;;  %v6871_v47 = vpop.f32.mrb[49].mxu0  ;;  %v6873_v41 = vpop.f32.mrb[49].mxu1 }
 0x13b   :  { %10470 = vst [vmem:[#allocation100_spill] sm:$0xff] %v6871_v47  ;;  %10471 = vst [vmem:[#allocation101_spill] sm:$0xff] %v6873_v41  ;;  %v6875_v44 = vpop.f32.mrb[50].mxu0  ;;  %v6877_v8 = vpop.f32.mrb[50].mxu1 }
 0x13c   :  { %10472 = vst [vmem:[#allocation102_spill] sm:$0xff] %v6875_v44  ;;  %10473 = vst [vmem:[#allocation103_spill] sm:$0xff] %v6877_v8  ;;  %v6879_v39 = vpop.f32.mrb[51].mxu0  ;;  %v6881_v12 = vpop.f32.mrb[51].mxu1 }
 0x13d   :  { %10474 = vst [vmem:[#allocation104_spill] sm:$0xff] %v6879_v39  ;;  %10475 = vst [vmem:[#allocation105_spill] sm:$0xff] %v6881_v12 }
 0x13e   :  { %2269 = vrot.lane.b32.xlu0 %v6704_v16, %s6158_s10  ;;  %2271 = vrot.lane.b32.xlu1 %v6720_v37, %s6158_s10 }
 0x141   :  { %v6887_v15 = vpop.f32.mrb[52].mxu0  ;;  %v6889_v26 = vpop.f32.mrb[52].mxu1 }
 0x142   :  { %10476 = vst [vmem:[#allocation106_spill] sm:$0xff] %v6887_v15  ;;  %10477 = vst [vmem:[#allocation107_spill] sm:$0xff] %v6889_v26  ;;  %2065 = vrot.lane.b32.xlu0 %v6711_v17, %s6158_s10  ;;  %2067 = vrot.lane.b32.xlu1 %v6725_v43, %s6158_s10  ;;  %v6895_v35 = vpop.f32.mrb[53].mxu0  ;;  %v6897_v31 = vpop.f32.mrb[53].mxu1 }
 0x143   :  { %10478 = vst [vmem:[#allocation108_spill] sm:$0xff] %v6895_v35  ;;  %10479 = vst [vmem:[#allocation109_spill] sm:$0xff] %v6897_v31  ;;  %v6899_v33 = vpop.f32.mrb[54].mxu0  ;;  %v6901_v16 = vpop.f32.mrb[54].mxu1 }
 0x144   :  { %10480 = vst [vmem:[#allocation110_spill] sm:$0xff] %v6899_v33  ;;  %10481 = vst [vmem:[#allocation111_spill] sm:$0xff] %v6901_v16  ;;  %v6903_v29 = vpop.f32.mrb[55].mxu0  ;;  %v6905_v37 = vpop.f32.mrb[55].mxu1 }
 0x145   :  { %10482 = vst [vmem:[#allocation112_spill] sm:$0xff] %v6903_v29  ;;  %10483 = vst [vmem:[#allocation113_spill] sm:$0xff] %v6905_v37 }
 0x146   :  { %2265 = vrot.lane.b32.xlu0 %v6713_v18, %s6158_s10  ;;  %2267 = vrot.lane.b32.xlu1 %v6727_v46, %s6158_s10 }
 0x149   :  { %v6911_v17 = vpop.f32.mrb[56].mxu0  ;;  %v6913_v43 = vpop.f32.mrb[56].mxu1 }
 0x14a   :  { %10484 = vst [vmem:[#allocation114_spill] sm:$0xff] %v6911_v17  ;;  %10485 = vst [vmem:[#allocation115_spill] sm:$0xff] %v6913_v43  ;;  %2077 = vrot.lane.b32.xlu0 %v6735_v57, %s6158_s10  ;;  %2079 = vrot.lane.b32.xlu1 %v6747_v13, %s6158_s10  ;;  %v6919_v27 = vpop.f32.mrb[57].mxu0  ;;  %v6921_v22 = vpop.f32.mrb[57].mxu1 }
 0x14b   :  { %10486 = vst [vmem:[#allocation116_spill] sm:$0xff] %v6919_v27  ;;  %10487 = vst [vmem:[#allocation117_spill] sm:$0xff] %v6921_v22  ;;  %v6923_v24 = vpop.f32.mrb[58].mxu0  ;;  %v6925_v18 = vpop.f32.mrb[58].mxu1 }
 0x14c   :  { %10488 = vst [vmem:[#allocation118_spill] sm:$0xff] %v6923_v24  ;;  %10489 = vst [vmem:[#allocation119_spill] sm:$0xff] %v6925_v18  ;;  %v6927_v19 = vpop.permute.xlu0 %2221  ;;  %v6929_v46 = vpop.permute.xlu1 %2021 }
 0x14d   :  { %10490 = vst [vmem:[#allocation120_spill] sm:$0xff] %v6927_v19  ;;  %10491 = vst [vmem:[#allocation121_spill] sm:$0xff] %v6929_v46  ;;  %v6931_v17 = vpop.f32.mrb[59].mxu0  ;;  %v6933_v43 = vpop.f32.mrb[59].mxu1 }
 0x14e   :  { %10492 = vst [vmem:[#allocation122_spill] sm:$0xff] %v6931_v17  ;;  %10493 = vst [vmem:[#allocation123_spill] sm:$0xff] %v6933_v43  ;;  %2277 = vrot.lane.b32.xlu0 %v6737_v58, %s6158_s10  ;;  %2279 = vrot.lane.b32.xlu1 %v6749_v14, %s6158_s10 }
 0x150   :  { %v6939_v13 = vpop.permute.xlu0 %2017  ;;  %v6941_v57 = vpop.permute.xlu1 %2023 }
 0x151   :  { %10494 = vst [vmem:[#allocation124_spill] sm:$0xff] %v6939_v13  ;;  %10495 = vst [vmem:[#allocation125_spill] sm:$0xff] %v6941_v57  ;;  %v6943_v22 = vpop.f32.mrb[60].mxu0  ;;  %v6945_v27 = vpop.f32.mrb[60].mxu1 }
 0x152   :  { %10496 = vst [vmem:[#allocation126_spill] sm:$0xff] %v6943_v22  ;;  %10497 = vst [vmem:[#allocation127_spill] sm:$0xff] %v6945_v27  ;;  %2073 = vrot.lane.b32.xlu0 %v6743_v63, %s6158_s10  ;;  %2075 = vrot.lane.b32.xlu1 %v6751_v23, %s6158_s10  ;;  %v6951_v19 = vpop.f32.mrb[61].mxu0  ;;  %v6953_v58 = vpop.f32.mrb[61].mxu1 }
 0x153   :  { %10498 = vst [vmem:[#allocation128_spill] sm:$0xff] %v6951_v19  ;;  %10499 = vst [vmem:[#allocation129_spill] sm:$0xff] %v6953_v58  ;;  %v6955_v46 = vpop.f32.mrb[62].mxu0  ;;  %v6957_v14 = vpop.f32.mrb[62].mxu1 }
 0x154   :  { %10500 = vst [vmem:[#allocation130_spill] sm:$0xff] %v6955_v46  ;;  %10501 = vst [vmem:[#allocation131_spill] sm:$0xff] %v6957_v14  ;;  %v6959_v13 = vpop.permute.xlu0 %2217  ;;  %v6961_v57 = vpop.permute.xlu1 %2223 }
 0x155   :  { %10502 = vst [vmem:[#allocation132_spill] sm:$0xff] %v6959_v13  ;;  %10503 = vst [vmem:[#allocation133_spill] sm:$0xff] %v6961_v57  ;;  %v6963_v22 = vpop.f32.mrb[63].mxu0  ;;  %v6965_v27 = vpop.f32.mrb[63].mxu1 }
 0x156   :  { %10504 = vst [vmem:[#allocation134_spill] sm:$0xff] %v6963_v22  ;;  %10505 = vst [vmem:[#allocation135_spill] sm:$0xff] %v6965_v27  ;;  %2273 = vrot.lane.b32.xlu0 %v6745_v2, %s6158_s10  ;;  %2275 = vrot.lane.b32.xlu1 %v6753_v38, %s6158_s10 }
 0x158   :  { %v6971_v23 = vpop.permute.xlu1 %2219  ;;  %v6973_v63 = vpop.permute.xlu0 %2019 }
 0x159   :  { %10506 = vst [vmem:[#allocation136_spill] sm:$0xff] %v6971_v23 }
 0x15a   :  { %2085 = vrot.lane.b32.xlu0 %v6766_v45, %s6158_s10  ;;  %2087 = vrot.lane.b32.xlu1 %v6779_v48, %s6158_s10  ;;  %v6999_v45 = vpop.f32.mrb[64].mxu0 }
 0x15b   :  { %10509 = vst [vmem:[#allocation139_spill] sm:$0xff] %v6999_v45 }
 0x15c   :  { %v6979_v57 = vpop.permute.xlu0 %2029  ;;  %v6981_v13 = vpop.permute.xlu1 %2031 }
 0x15e   :  { %2285 = vrot.lane.b32.xlu0 %v6768_v40, %s6158_s10  ;;  %2287 = vrot.lane.b32.xlu1 %v6781_v42, %s6158_s10  ;;  %v7005_v42 = vpop.f32.mrb[65].mxu0 }
 0x15f   :  { %10510 = vst [vmem:[#allocation140_spill] sm:$0xff] %v7005_v42  ;;  %v7007_v40 = vpop.f32.mrb[66].mxu0 }
 0x160   :  { %v6987_v38 = vpop.permute.xlu0 %2229  ;;  %v6989_v2 = vpop.permute.xlu1 %2231  ;;  %10511 = vst [vmem:[#allocation141_spill] sm:$0xff] %v7007_v40 }
 0x161   :  { %10507 = vst [vmem:[#allocation137_spill] sm:$0xff] %v6987_v38  ;;  %10508 = vst [vmem:[#allocation138_spill] sm:$0xff] %v6989_v2 }
 0x162   :  { %2081 = vrot.lane.b32.xlu0 %v6775_v56, %s6158_s10  ;;  %2083 = vrot.lane.b32.xlu1 %v6783_v54, %s6158_s10  ;;  %v7013_v54 = vpop.f32.mrb[67].mxu0  ;;  %v7015_v56 = vpop.f32.mrb[64].mxu1 }
 0x163   :  { %10514 = vst [vmem:[#allocation144_spill] sm:$0xff] %v7013_v54  ;;  %10515 = vst [vmem:[#allocation145_spill] sm:$0xff] %v7015_v56 }
 0x164   :  { %v6995_v23 = vpop.permute.xlu0 %2025  ;;  %v6997_v48 = vpop.permute.xlu1 %2027 }
 0x166   :  { %2281 = vrot.lane.b32.xlu0 %v6777_v52, %s6158_s10  ;;  %2283 = vrot.lane.b32.xlu1 %v6785_v34, %s6158_s10  ;;  %v7021_v52 = vpop.f32.mrb[65].mxu1 }
 0x167   :  { %10516 = vst [vmem:[#allocation146_spill] sm:$0xff] %v7021_v52  ;;  %v7023_v34 = vpop.f32.mrb[66].mxu1 }
 0x168   :  { %v7009_v2 = vpop.permute.xlu0 %2225  ;;  %v7011_v38 = vpop.permute.xlu1 %2227  ;;  %10517 = vst [vmem:[#allocation147_spill] sm:$0xff] %v7023_v34 }
 0x169   :  { %10512 = vst [vmem:[#allocation142_spill] sm:$0xff] %v7009_v2  ;;  %10513 = vst [vmem:[#allocation143_spill] sm:$0xff] %v7011_v38  ;;  %v7029_v2 = vpop.f32.mrb[67].mxu1 }
 0x16a   :  { %2093 = vrot.lane.b32.xlu0 %v6791_v50, %s6158_s10  ;;  %2095 = vrot.lane.b32.xlu1 %v6803_v25, %s6158_s10  ;;  %10519 = vst [vmem:[#allocation149_spill] sm:$0xff] %v7029_v2 }
 0x16c   :  { %v7025_v42 = vpop.permute.xlu0 %2037  ;;  %v7027_v40 = vpop.permute.xlu1 %2039 }
 0x16d   :  { %10518 = vst [vmem:[#allocation148_spill] sm:$0xff] %v7027_v40 }
 0x16e   :  { %2293 = vrot.lane.b32.xlu0 %v6793_v30, %s6158_s10  ;;  %2295 = vrot.lane.b32.xlu1 %v6805_v60, %s6158_s10 }
 0x170   :  { %v7035_v38 = vpop.permute.xlu0 %2237  ;;  %v7037_v50 = vpop.permute.xlu1 %2239 }
 0x171   :  { %10520 = vst [vmem:[#allocation150_spill] sm:$0xff] %v7035_v38  ;;  %10521 = vst [vmem:[#allocation151_spill] sm:$0xff] %v7037_v50 }
 0x172   :  { %2089 = vrot.lane.b32.xlu0 %v6799_v36, %s6158_s10  ;;  %2091 = vrot.lane.b32.xlu1 %v6807_v20, %s6158_s10  ;;  %v7063_v20 = vpop.f32.mrb[68].mxu0 }
 0x174   :  { %v7043_v25 = vpop.permute.xlu0 %2033  ;;  %v7045_v40 = vpop.permute.xlu1 %2035 }
 0x176   :  { %2289 = vrot.lane.b32.xlu0 %v6801_v32, %s6158_s10  ;;  %2291 = vrot.lane.b32.xlu1 %v6809_v1, %s6158_s10  ;;  %v7069_v1 = vpop.f32.mrb[69].mxu0 }
 0x177   :  { %v7071_v32 = vpop.f32.mrb[70].mxu0 }
 0x178   :  { %v7051_v60 = vpop.permute.xlu0 %2233  ;;  %v7053_v30 = vpop.permute.xlu1 %2235 }
 0x179   :  { %10522 = vst [vmem:[#allocation152_spill] sm:$0xff] %v7051_v60  ;;  %10523 = vst [vmem:[#allocation153_spill] sm:$0xff] %v7053_v30 }
 0x17a   :  { %2101 = vrot.lane.b32.xlu0 %v6815_v28, %s6158_s10  ;;  %2103 = vrot.lane.b32.xlu1 %v6827_v3, %s6158_s10  ;;  %v7077_v3 = vpop.f32.mrb[71].mxu0  ;;  %v7079_v28 = vpop.f32.mrb[68].mxu1 }
 0x17b   :  { %10528 = vst [vmem:[#allocation158_spill] sm:$0xff] %v7079_v28 }
 0x17c   :  { %v7059_v50 = vpop.permute.xlu0 %2045  ;;  %v7061_v38 = vpop.permute.xlu1 %2047 }
 0x17d   :  { %10524 = vst [vmem:[#allocation154_spill] sm:$0xff] %v7059_v50  ;;  %10525 = vst [vmem:[#allocation155_spill] sm:$0xff] %v7061_v38 }
 0x17e   :  { %2301 = vrot.lane.b32.xlu0 %v6817_v21, %s6158_s10  ;;  %2303 = vrot.lane.b32.xlu1 %v6829_v62, %s6158_s10  ;;  %v7085_v21 = vpop.f32.mrb[69].mxu1 }
 0x17f   :  { %10529 = vst [vmem:[#allocation159_spill] sm:$0xff] %v7085_v21  ;;  %v7087_v62 = vpop.f32.mrb[70].mxu1 }
 0x180   :  { %v7073_v30 = vpop.permute.xlu0 %2245  ;;  %v7075_v60 = vpop.permute.xlu1 %2247  ;;  %10530 = vst [vmem:[#allocation160_spill] sm:$0xff] %v7087_v62 }
 0x181   :  { %10526 = vst [vmem:[#allocation156_spill] sm:$0xff] %v7073_v30  ;;  %10527 = vst [vmem:[#allocation157_spill] sm:$0xff] %v7075_v60  ;;  %v7093_v30 = vpop.f32.mrb[71].mxu1 }
 0x182   :  { %2097 = vrot.lane.b32.xlu0 %v6823_v0, %s6158_s10  ;;  %2099 = vrot.lane.b32.xlu1 %v6831_v61, %s6158_s10  ;;  %10533 = vst [vmem:[#allocation163_spill] sm:$0xff] %v7093_v30 }
 0x184   :  { %v7089_v36 = vpop.permute.xlu0 %2041  ;;  %v7091_v38 = vpop.permute.xlu1 %2043 }
 0x185   :  { %10531 = vst [vmem:[#allocation161_spill] sm:$0xff] %v7089_v36  ;;  %10532 = vst [vmem:[#allocation162_spill] sm:$0xff] %v7091_v38  ;;  %v7111_v38 = vpop.f32.mrb[72].mxu0 }
 0x186   :  { %2297 = vrot.lane.b32.xlu0 %v6825_v59, %s6158_s10  ;;  %2299 = vrot.lane.b32.xlu1 %v6833_v4, %s6158_s10  ;;  %v7117_v4 = vpop.f32.mrb[73].mxu0 }
 0x187   :  { %v7119_v59 = vpop.f32.mrb[74].mxu0 }
 0x188   :  { %v7099_v60 = vpop.permute.xlu0 %2241  ;;  %v7101_v0 = vpop.permute.xlu1 %2243 }
 0x189   :  { %10534 = vst [vmem:[#allocation164_spill] sm:$0xff] %v7099_v60  ;;  %10535 = vst [vmem:[#allocation165_spill] sm:$0xff] %v7101_v0 }
 0x18a   :  { %2109 = vrot.lane.b32.xlu0 %v6839_v5, %s6158_s10  ;;  %2111 = vrot.lane.b32.xlu1 %v6851_v55, %s6158_s10  ;;  %v7125_v55 = vpop.f32.mrb[75].mxu0  ;;  %v7127_v5 = vpop.f32.mrb[72].mxu1 }
 0x18b   :  { %10540 = vst [vmem:[#allocation170_spill] sm:$0xff] %v7127_v5 }
 0x18c   :  { %v7107_v61 = vpop.permute.xlu0 %2053  ;;  %v7109_v50 = vpop.permute.xlu1 %2055 }
 0x18d   :  { %10536 = vst [vmem:[#allocation166_spill] sm:$0xff] %v7107_v61  ;;  %10537 = vst [vmem:[#allocation167_spill] sm:$0xff] %v7109_v50 }
 0x18e   :  { %2309 = vrot.lane.b32.xlu0 %v6841_v9, %s6158_s10  ;;  %2311 = vrot.lane.b32.xlu1 %v6853_v6, %s6158_s10  ;;  %v7133_v9 = vpop.f32.mrb[73].mxu1 }
 0x18f   :  { %10541 = vst [vmem:[#allocation171_spill] sm:$0xff] %v7133_v9  ;;  %v7135_v6 = vpop.f32.mrb[74].mxu1 }
 0x190   :  { %v7121_v0 = vpop.permute.xlu0 %2253  ;;  %v7123_v60 = vpop.permute.xlu1 %2255  ;;  %10542 = vst [vmem:[#allocation172_spill] sm:$0xff] %v7135_v6 }
 0x191   :  { %10538 = vst [vmem:[#allocation168_spill] sm:$0xff] %v7121_v0  ;;  %10539 = vst [vmem:[#allocation169_spill] sm:$0xff] %v7123_v60  ;;  %v7141_v0 = vpop.f32.mrb[75].mxu1 }
 0x192   :  { %2105 = vrot.lane.b32.xlu0 %v6847_v53, %s6158_s10  ;;  %2107 = vrot.lane.b32.xlu1 %v6855_v51, %s6158_s10  ;;  %10545 = vst [vmem:[#allocation175_spill] sm:$0xff] %v7141_v0 }
 0x194   :  { %v7137_v50 = vpop.permute.xlu0 %2049  ;;  %v7139_v61 = vpop.permute.xlu1 %2051 }
 0x195   :  { %10543 = vst [vmem:[#allocation173_spill] sm:$0xff] %v7137_v50  ;;  %10544 = vst [vmem:[#allocation174_spill] sm:$0xff] %v7139_v61  ;;  %v7159_v50 = vpop.f32.mrb[76].mxu0 }
 0x196   :  { %2305 = vrot.lane.b32.xlu0 %v6849_v49, %s6158_s10  ;;  %2307 = vrot.lane.b32.xlu1 %v6857_v10, %s6158_s10  ;;  %10550 = vst [vmem:[#allocation180_spill] sm:$0xff] %v7159_v50  ;;  %v7165_v10 = vpop.f32.mrb[77].mxu0 }
 0x197   :  { %v7167_v49 = vpop.f32.mrb[78].mxu0 }
 0x198   :  { %v7147_v60 = vpop.permute.xlu0 %2249  ;;  %v7149_v53 = vpop.permute.xlu1 %2251  ;;  %10551 = vst [vmem:[#allocation181_spill] sm:$0xff] %v7167_v49 }
 0x199   :  { %10546 = vst [vmem:[#allocation176_spill] sm:$0xff] %v7147_v60  ;;  %10547 = vst [vmem:[#allocation177_spill] sm:$0xff] %v7149_v53 }
 0x19a   :  { %2117 = vrot.lane.b32.xlu0 %v6863_v7, %s6158_s10  ;;  %2119 = vrot.lane.b32.xlu1 %v6875_v44, %s6158_s10  ;;  %v7173_v44 = vpop.f32.mrb[79].mxu0  ;;  %v7175_v7 = vpop.f32.mrb[76].mxu1 }
 0x19b   :  { %10554 = vst [vmem:[#allocation184_spill] sm:$0xff] %v7173_v44  ;;  %10555 = vst [vmem:[#allocation185_spill] sm:$0xff] %v7175_v7 }
 0x19c   :  { %v7155_v51 = vpop.permute.xlu0 %2061  ;;  %v7157_v61 = vpop.permute.xlu1 %2063 }
 0x19d   :  { %10548 = vst [vmem:[#allocation178_spill] sm:$0xff] %v7155_v51  ;;  %10549 = vst [vmem:[#allocation179_spill] sm:$0xff] %v7157_v61 }
 0x19e   :  { %2317 = vrot.lane.b32.xlu0 %v6865_v11, %s6158_s10  ;;  %2319 = vrot.lane.b32.xlu1 %v6877_v8, %s6158_s10  ;;  %v7181_v11 = vpop.f32.mrb[77].mxu1 }
 0x19f   :  { %10556 = vst [vmem:[#allocation186_spill] sm:$0xff] %v7181_v11  ;;  %v7183_v8 = vpop.f32.mrb[78].mxu1 }
 0x1a0   :  { %v7169_v53 = vpop.permute.xlu0 %2261  ;;  %v7171_v60 = vpop.permute.xlu1 %2263  ;;  %10557 = vst [vmem:[#allocation187_spill] sm:$0xff] %v7183_v8 }
 0x1a1   :  { %10552 = vst [vmem:[#allocation182_spill] sm:$0xff] %v7169_v53  ;;  %10553 = vst [vmem:[#allocation183_spill] sm:$0xff] %v7171_v60  ;;  %v7189_v53 = vpop.f32.mrb[79].mxu1 }
 0x1a2   :  { %2113 = vrot.lane.b32.xlu0 %v6871_v47, %s6158_s10  ;;  %2115 = vrot.lane.b32.xlu1 %v6879_v39, %s6158_s10  ;;  %10560 = vst [vmem:[#allocation190_spill] sm:$0xff] %v7189_v53 }
 0x1a4   :  { %v7185_v61 = vpop.permute.xlu0 %2057  ;;  %v7187_v51 = vpop.permute.xlu1 %2059 }
 0x1a5   :  { %10558 = vst [vmem:[#allocation188_spill] sm:$0xff] %v7185_v61  ;;  %10559 = vst [vmem:[#allocation189_spill] sm:$0xff] %v7187_v51  ;;  %v7207_v61 = vpop.f32.mrb[80].mxu0 }
 0x1a6   :  { %2313 = vrot.lane.b32.xlu0 %v6873_v41, %s6158_s10  ;;  %2315 = vrot.lane.b32.xlu1 %v6881_v12, %s6158_s10  ;;  %10565 = vst [vmem:[#allocation195_spill] sm:$0xff] %v7207_v61  ;;  %v7213_v12 = vpop.f32.mrb[81].mxu0 }
 0x1a7   :  { %10566 = vst [vmem:[#allocation196_spill] sm:$0xff] %v7213_v12  ;;  %v7215_v41 = vpop.f32.mrb[82].mxu0 }
 0x1a8   :  { %v7195_v60 = vpop.permute.xlu0 %2257  ;;  %v7197_v47 = vpop.permute.xlu1 %2259  ;;  %10567 = vst [vmem:[#allocation197_spill] sm:$0xff] %v7215_v41 }
 0x1a9   :  { %10561 = vst [vmem:[#allocation191_spill] sm:$0xff] %v7195_v60  ;;  %10562 = vst [vmem:[#allocation192_spill] sm:$0xff] %v7197_v47 }
 0x1aa   :  { %2125 = vrot.lane.b32.xlu0 %v6887_v15, %s6158_s10  ;;  %2127 = vrot.lane.b32.xlu1 %v6899_v33, %s6158_s10  ;;  %v7221_v33 = vpop.f32.mrb[83].mxu0  ;;  %v7223_v15 = vpop.f32.mrb[80].mxu1 }
 0x1ab   :  { %10570 = vst [vmem:[#allocation200_spill] sm:$0xff] %v7221_v33  ;;  %10571 = vst [vmem:[#allocation201_spill] sm:$0xff] %v7223_v15  ;;  %v7255_v36 = vpop.f32.mrb[84].mxu0 }
 0x1ac   :  { %v7203_v39 = vpop.permute.xlu0 %2069  ;;  %v7205_v51 = vpop.permute.xlu1 %2071  ;;  %10582 = vst [vmem:[#allocation211_spill] sm:$0xff] %v7255_v36 }
 0x1ad   :  { %10563 = vst [vmem:[#allocation193_spill] sm:$0xff] %v7203_v39  ;;  %10564 = vst [vmem:[#allocation194_spill] sm:$0xff] %v7205_v51 }
 0x1ae   :  { %2325 = vrot.lane.b32.xlu0 %v6889_v26, %s6158_s10  ;;  %2327 = vrot.lane.b32.xlu1 %v6901_v16, %s6158_s10  ;;  %v7229_v26 = vpop.f32.mrb[81].mxu1 }
 0x1af   :  { %10572 = vst [vmem:[#allocation202_spill] sm:$0xff] %v7229_v26  ;;  %v7231_v16 = vpop.f32.mrb[82].mxu1 }
 0x1b0   :  { %v7217_v47 = vpop.permute.xlu0 %2269  ;;  %v7219_v60 = vpop.permute.xlu1 %2271  ;;  %10573 = vst [vmem:[#allocation203_spill] sm:$0xff] %v7231_v16 }
 0x1b1   :  { %10568 = vst [vmem:[#allocation198_spill] sm:$0xff] %v7217_v47  ;;  %10569 = vst [vmem:[#allocation199_spill] sm:$0xff] %v7219_v60  ;;  %v7237_v47 = vpop.f32.mrb[83].mxu1 }
 0x1b2   :  { %2121 = vrot.lane.b32.xlu0 %v6895_v35, %s6158_s10  ;;  %2123 = vrot.lane.b32.xlu1 %v6903_v29, %s6158_s10  ;;  %10576 = vst [vmem:[#allocation206_spill] sm:$0xff] %v7237_v47  ;;  %v10579_v29 = vld [vmem:[#allocation114_spill] sm:$0xff] }
 0x1b4   :  { %v7233_v51 = vpop.permute.xlu0 %2065  ;;  %v7235_v39 = vpop.permute.xlu1 %2067 }
 0x1b5   :  { %10574 = vst [vmem:[#allocation204_spill] sm:$0xff] %v7233_v51  ;;  %10575 = vst [vmem:[#allocation205_spill] sm:$0xff] %v7235_v39 }
 0x1b6   :  { %2321 = vrot.lane.b32.xlu0 %v6897_v31, %s6158_s10  ;;  %2323 = vrot.lane.b32.xlu1 %v6905_v37, %s6158_s10  ;;  %v10583_v31 = vld [vmem:[#allocation115_spill] sm:$0xff]  ;;  %v7261_v37 = vpop.f32.mrb[85].mxu0 }
 0x1b7   :  { %10584 = vst [vmem:[#allocation212_spill] sm:$0xff] %v7261_v37 }
 0x1b8   :  { %v7243_v60 = vpop.permute.xlu0 %2265  ;;  %v7245_v35 = vpop.permute.xlu1 %2267 }
 0x1b9   :  { %10577 = vst [vmem:[#allocation207_spill] sm:$0xff] %v7243_v60  ;;  %10578 = vst [vmem:[#allocation208_spill] sm:$0xff] %v7245_v35  ;;  %v7263_v35 = vpop.f32.mrb[86].mxu0 }
 0x1ba   :  { %2133 = vrot.lane.b32.xlu0 %v10579_v29, %s6158_s10  ;;  %2135 = vrot.lane.b32.xlu1 %v6923_v24, %s6158_s10  ;;  %10585 = vst [vmem:[#allocation213_spill] sm:$0xff] %v7263_v35  ;;  %v7269_v24 = vpop.f32.mrb[87].mxu0 }
 0x1bb   :  { %10588 = vst [vmem:[#allocation216_spill] sm:$0xff] %v7269_v24  ;;  %v10598_v24 = vld [vmem:[#allocation2_spill] sm:$0xff] }
 0x1bc   :  { %v7251_v51 = vpop.permute.xlu0 %2077  ;;  %v7253_v39 = vpop.permute.xlu1 %2079 }
 0x1bd   :  { %10580 = vst [vmem:[#allocation209_spill] sm:$0xff] %v7251_v51  ;;  %10581 = vst [vmem:[#allocation210_spill] sm:$0xff] %v7253_v39  ;;  %v7271_v51 = vpop.f32.mrb[84].mxu1  ;;  %v10590_v39 = vld [vmem:[#allocation116_spill] sm:$0xff] }
 0x1be   :  { %2333 = vrot.lane.b32.xlu0 %v10583_v31, %s6158_s10  ;;  %2335 = vrot.lane.b32.xlu1 %v6925_v18, %s6158_s10  ;;  %10589 = vst [vmem:[#allocation217_spill] sm:$0xff] %v7271_v51  ;;  %v7277_v31 = vpop.f32.mrb[85].mxu1 }
 0x1bf   :  { %10591 = vst [vmem:[#allocation218_spill] sm:$0xff] %v7277_v31  ;;  %v7279_v18 = vpop.f32.mrb[86].mxu1  ;;  %v10600_v31 = vld [vmem:[#allocation6_spill] sm:$0xff] }
 0x1c0   :  { %v7265_v60 = vpop.permute.xlu0 %2277  ;;  %v7267_v29 = vpop.permute.xlu1 %2279  ;;  %10592 = vst [vmem:[#allocation219_spill] sm:$0xff] %v7279_v18 }
 0x1c1   :  { %10586 = vst [vmem:[#allocation214_spill] sm:$0xff] %v7265_v60  ;;  %10587 = vst [vmem:[#allocation215_spill] sm:$0xff] %v7267_v29  ;;  %v7285_v60 = vpop.f32.mrb[87].mxu1  ;;  %v10596_v29 = vld [vmem:[#allocation117_spill] sm:$0xff] }
 0x1c2   :  { %2129 = vrot.lane.b32.xlu0 %v10590_v39, %s6158_s10  ;;  %2131 = vrot.lane.b32.xlu1 %v6931_v17, %s6158_s10  ;;  %10595 = vst [vmem:[#allocation222_spill] sm:$0xff] %v7285_v60  ;;  %v10597_v39 = vld [vmem:[#allocation121_spill] sm:$0xff] }
 0x1c3   :  { %v7293_v51 = vmax.f32 %v10598_v24, %v10597_v39  ;;  %v10599_v17 = vld [vmem:[#allocation125_spill] sm:$0xff]  ;;  %v10605_v24 = vld [vmem:[#allocation8_spill] sm:$0xff] }
 0x1c4   :  { %v7281_v37 = vpop.permute.xlu0 %2073  ;;  %v7283_v35 = vpop.permute.xlu1 %2075  ;;  %v7297_v36 = vmax.f32 %v10600_v31, %v10599_v17  ;;  %v7313_v39 = vmax.f32 %v10605_v24, %v6973_v63 }
 0x1c5   :  { %10593 = vst [vmem:[#allocation220_spill] sm:$0xff] %v7281_v37  ;;  %10594 = vst [vmem:[#allocation221_spill] sm:$0xff] %v7283_v35 }
 0x1c6   :  { %2329 = vrot.lane.b32.xlu0 %v10596_v29, %s6158_s10  ;;  %2331 = vrot.lane.b32.xlu1 %v6933_v43, %s6158_s10  ;;  %v10603_v43 = vld [vmem:[#allocation124_spill] sm:$0xff]  ;;  %v10604_v29 = vld [vmem:[#allocation5_spill] sm:$0xff] }
 0x1c7   :  { %v7309_v35 = vmax.f32 %v10604_v29, %v10603_v43 }
 0x1c8   :  { %v7299_v18 = vpop.permute.xlu0 %2273  ;;  %v7301_v37 = vpop.permute.xlu1 %2275 }
 0x1c9   :  { %10601 = vst [vmem:[#allocation121_spill] sm:$0xff] %v7299_v18  ;;  %10602 = vst [vmem:[#allocation2_spill] sm:$0xff] %v7301_v37  ;;  %v7319_v37 = vpop.f32.mrb[88].mxu0 }
 0x1ca   :  { %3001 = vrot.lane.b32.xlu0 %v7293_v51, %s6159_s0  ;;  %3003 = vrot.lane.b32.xlu1 %v7297_v36, %s6159_s0  ;;  %10608 = vst [vmem:[#allocation124_spill] sm:$0xff] %v7319_v37  ;;  %v7325_v18 = vpop.f32.mrb[89].mxu0 }
 0x1cb   :  { %10609 = vst [vmem:[#allocation5_spill] sm:$0xff] %v7325_v18  ;;  %v7327_v29 = vpop.f32.mrb[90].mxu0 }
 0x1cc   :  { %v7315_v31 = vpop.permute.xlu0 %2085  ;;  %v7317_v17 = vpop.permute.xlu1 %2087  ;;  %10610 = vst [vmem:[#allocation8_spill] sm:$0xff] %v7327_v29 }
 0x1cd   :  { %10606 = vst [vmem:[#allocation125_spill] sm:$0xff] %v7315_v31  ;;  %10607 = vst [vmem:[#allocation6_spill] sm:$0xff] %v7317_v17  ;;  %v7333_v24 = vpop.f32.mrb[91].mxu0  ;;  %v7335_v31 = vpop.f32.mrb[88].mxu1  ;;  %v10615_v17 = vld [vmem:[#allocation126_spill] sm:$0xff] }
 0x1ce   :  { %2997 = vrot.lane.b32.xlu0 %v7309_v35, %s6159_s0  ;;  %2999 = vrot.lane.b32.xlu1 %v7313_v39, %s6159_s0  ;;  %10613 = vst [vmem:[#allocation225_spill] sm:$0xff] %v7333_v24  ;;  %10614 = vst [vmem:[#allocation226_spill] sm:$0xff] %v7335_v31  ;;  %v7341_v37 = vpop.f32.mrb[89].mxu1 }
 0x1cf   :  { %10616 = vst [vmem:[#allocation227_spill] sm:$0xff] %v7341_v37  ;;  %v7343_v60 = vpop.f32.mrb[90].mxu1 }
 0x1d0   :  { %v7329_v43 = vpop.permute.xlu0 %2285  ;;  %v7331_v63 = vpop.permute.xlu1 %2287  ;;  %10617 = vst [vmem:[#allocation228_spill] sm:$0xff] %v7343_v60 }
 0x1d1   :  { %10611 = vst [vmem:[#allocation223_spill] sm:$0xff] %v7329_v43  ;;  %10612 = vst [vmem:[#allocation224_spill] sm:$0xff] %v7331_v63  ;;  %v7349_v43 = vpop.f32.mrb[91].mxu1  ;;  %v10621_v63 = vld [vmem:[#allocation127_spill] sm:$0xff] }
 0x1d2   :  { %2141 = vrot.lane.b32.xlu0 %v10615_v17, %s6158_s10  ;;  %2143 = vrot.lane.b32.xlu1 %v6955_v46, %s6158_s10  ;;  %10620 = vst [vmem:[#allocation231_spill] sm:$0xff] %v7349_v43 }
 0x1d4   :  { %v7345_v18 = vpop.permute.xlu0 %2081  ;;  %v7347_v29 = vpop.permute.xlu1 %2083 }
 0x1d5   :  { %10618 = vst [vmem:[#allocation229_spill] sm:$0xff] %v7345_v18  ;;  %10619 = vst [vmem:[#allocation230_spill] sm:$0xff] %v7347_v29  ;;  %v7367_v18 = vpop.f32.mrb[92].mxu0 }
 0x1d6   :  { %2341 = vrot.lane.b32.xlu0 %v10621_v63, %s6158_s10  ;;  %2343 = vrot.lane.b32.xlu1 %v6957_v14, %s6158_s10  ;;  %10626 = vst [vmem:[#allocation236_spill] sm:$0xff] %v7367_v18  ;;  %v7373_v14 = vpop.f32.mrb[93].mxu0  ;;  %v7391_v18 = vpop.f32.mrb[92].mxu1 }
 0x1d7   :  { %10627 = vst [vmem:[#allocation237_spill] sm:$0xff] %v7373_v14  ;;  %v7375_v63 = vpop.f32.mrb[94].mxu0  ;;  %10634 = vst [vmem:[#allocation240_spill] sm:$0xff] %v7391_v18 }
 0x1d8   :  { %v7355_v17 = vpop.permute.xlu0 %2281  ;;  %v7357_v24 = vpop.permute.xlu1 %2283  ;;  %10628 = vst [vmem:[#allocation238_spill] sm:$0xff] %v7375_v63 }
 0x1d9   :  { %10622 = vst [vmem:[#allocation232_spill] sm:$0xff] %v7355_v17  ;;  %10623 = vst [vmem:[#allocation233_spill] sm:$0xff] %v7357_v24  ;;  %v10629_v24 = vld [vmem:[#allocation10_spill] sm:$0xff] }
 0x1da   :  { %2137 = vrot.lane.b32.xlu0 %v6951_v19, %s6158_s10  ;;  %2139 = vrot.lane.b32.xlu1 %v6963_v22, %s6158_s10  ;;  %v7379_v17 = vmax.f32 %v10629_v24, %v6979_v57  ;;  %v10630_v22 = vld [vmem:[#allocation14_spill] sm:$0xff]  ;;  %v7397_v57 = vpop.f32.mrb[93].mxu1 }
 0x1db   :  { %v7383_v19 = vmax.f32 %v10630_v22, %v6981_v13  ;;  %10635 = vst [vmem:[#allocation241_spill] sm:$0xff] %v7397_v57  ;;  %v7399_v24 = vpop.f32.mrb[94].mxu1  ;;  %v10637_v22 = vld [vmem:[#allocation12_spill] sm:$0xff] }
 0x1dc   :  { %v7363_v46 = vpop.permute.xlu0 %2093  ;;  %v7365_v29 = vpop.permute.xlu1 %2095  ;;  %10636 = vst [vmem:[#allocation242_spill] sm:$0xff] %v7399_v24  ;;  %v7403_v13 = vmax.f32 %v10637_v22, %v6995_v23 }
 0x1dd   :  { %10624 = vst [vmem:[#allocation234_spill] sm:$0xff] %v7363_v46  ;;  %10625 = vst [vmem:[#allocation235_spill] sm:$0xff] %v7365_v29  ;;  %v7413_v14 = vpop.f32.mrb[95].mxu1 }
 0x1de   :  { %2337 = vrot.lane.b32.xlu0 %v6953_v58, %s6158_s10  ;;  %2339 = vrot.lane.b32.xlu1 %v6965_v27, %s6158_s10  ;;  %v7389_v58 = vpop.f32.mrb[95].mxu0  ;;  %v10638_v27 = vld [vmem:[#allocation16_spill] sm:$0xff]  ;;  %10641 = vst [vmem:[#allocation243_spill] sm:$0xff] %v7413_v14 }
 0x1df   :  { %10633 = vst [vmem:[#allocation239_spill] sm:$0xff] %v7389_v58 }
 0x1e0   :  { %v7385_v29 = vpop.permute.xlu0 %2293  ;;  %v7387_v46 = vpop.permute.xlu1 %2295 }
 0x1e1   :  { %10631 = vst [vmem:[#allocation10_spill] sm:$0xff] %v7385_v29  ;;  %10632 = vst [vmem:[#allocation14_spill] sm:$0xff] %v7387_v46  ;;  %v7407_v46 = vmax.f32 %v10638_v27, %v6997_v48  ;;  %v10644_v27 = vld [vmem:[#allocation141_spill] sm:$0xff] }
 0x1e2   :  { %3009 = vrot.lane.b32.xlu0 %v7379_v17, %s6159_s0  ;;  %3011 = vrot.lane.b32.xlu1 %v7383_v19, %s6159_s0 }
 0x1e4   :  { %v7409_v29 = vpop.permute.xlu0 %2089  ;;  %v7411_v58 = vpop.permute.xlu1 %2091 }
 0x1e5   :  { %10639 = vst [vmem:[#allocation12_spill] sm:$0xff] %v7409_v29  ;;  %10640 = vst [vmem:[#allocation16_spill] sm:$0xff] %v7411_v58  ;;  %v7431_v58 = vpop.f32.mrb[96].mxu0 }
 0x1e6   :  { %3005 = vrot.lane.b32.xlu0 %v7403_v13, %s6159_s0  ;;  %3007 = vrot.lane.b32.xlu1 %v7407_v46, %s6159_s0  ;;  %10647 = vst [vmem:[#allocation248_spill] sm:$0xff] %v7431_v58 }
 0x1e8   :  { %v7419_v57 = vpop.permute.xlu0 %2289  ;;  %v7421_v23 = vpop.permute.xlu1 %2291 }
 0x1e9   :  { %10642 = vst [vmem:[#allocation244_spill] sm:$0xff] %v7419_v57  ;;  %10643 = vst [vmem:[#allocation245_spill] sm:$0xff] %v7421_v23  ;;  %v7437_v57 = vpop.f32.mrb[97].mxu0 }
 0x1ea   :  { %2149 = vrot.lane.b32.xlu0 %v6999_v45, %s6158_s10  ;;  %2151 = vrot.lane.b32.xlu1 %v10644_v27, %s6158_s10  ;;  %10648 = vst [vmem:[#allocation249_spill] sm:$0xff] %v7437_v57  ;;  %v7439_v23 = vpop.f32.mrb[98].mxu0 }
 0x1eb   :  { %10649 = vst [vmem:[#allocation250_spill] sm:$0xff] %v7439_v23  ;;  %v7445_v27 = vpop.f32.mrb[99].mxu0 }
 0x1ec   :  { %v7427_v48 = vpop.permute.xlu0 %2101  ;;  %v7429_v22 = vpop.permute.xlu1 %2103  ;;  %10652 = vst [vmem:[#allocation253_spill] sm:$0xff] %v7445_v27  ;;  %v10656_v27 = vld [vmem:[#allocation22_spill] sm:$0xff] }
 0x1ed   :  { %10645 = vst [vmem:[#allocation246_spill] sm:$0xff] %v7427_v48  ;;  %10646 = vst [vmem:[#allocation247_spill] sm:$0xff] %v7429_v22  ;;  %v10653_v22 = vld [vmem:[#allocation140_spill] sm:$0xff] }
 0x1ee   :  { %2349 = vrot.lane.b32.xlu0 %v7015_v56, %s6158_s10  ;;  %2351 = vrot.lane.b32.xlu1 %v7023_v34, %s6158_s10  ;;  %v10654_v34 = vld [vmem:[#allocation18_spill] sm:$0xff] }
 0x1f0   :  { %v7441_v45 = vpop.permute.xlu0 %2301  ;;  %v7443_v29 = vpop.permute.xlu1 %2303 }
 0x1f1   :  { %10650 = vst [vmem:[#allocation251_spill] sm:$0xff] %v7441_v45  ;;  %10651 = vst [vmem:[#allocation252_spill] sm:$0xff] %v7443_v29  ;;  %v7461_v29 = vmax.f32 %v10654_v34, %v7025_v42  ;;  %v10655_v45 = vld [vmem:[#allocation148_spill] sm:$0xff] }
 0x1f2   :  { %2145 = vrot.lane.b32.xlu0 %v10653_v22, %s6158_s10  ;;  %2147 = vrot.lane.b32.xlu1 %v7013_v54, %s6158_s10  ;;  %v7465_v22 = vmax.f32 %v10656_v27, %v10655_v45  ;;  %v10660_v34 = vld [vmem:[#allocation24_spill] sm:$0xff] }
 0x1f3   :  { %v7481_v42 = vmax.f32 %v10660_v34, %v7045_v40 }
 0x1f4   :  { %v7451_v56 = vpop.permute.xlu0 %2097  ;;  %v7453_v48 = vpop.permute.xlu1 %2099 }
 0x1f6   :  { %2345 = vrot.lane.b32.xlu0 %v7021_v52, %s6158_s10  ;;  %2347 = vrot.lane.b32.xlu1 %v7029_v2, %s6158_s10  ;;  %v10659_v2 = vld [vmem:[#allocation20_spill] sm:$0xff] }
 0x1f7   :  { %v7477_v52 = vmax.f32 %v10659_v2, %v7043_v25 }
 0x1f8   :  { %v7467_v57 = vpop.permute.xlu0 %2297  ;;  %v7469_v54 = vpop.permute.xlu1 %2299 }
 0x1f9   :  { %10657 = vst [vmem:[#allocation18_spill] sm:$0xff] %v7467_v57  ;;  %10658 = vst [vmem:[#allocation148_spill] sm:$0xff] %v7469_v54 }
 0x1fa   :  { %3017 = vrot.lane.b32.xlu0 %v7461_v29, %s6159_s0  ;;  %3019 = vrot.lane.b32.xlu1 %v7465_v22, %s6159_s0 }
 0x1fc   :  { %v7483_v45 = vpop.permute.xlu0 %2109  ;;  %v7485_v27 = vpop.permute.xlu1 %2111 }
 0x1fe   :  { %3013 = vrot.lane.b32.xlu0 %v7477_v52, %s6159_s0  ;;  %3015 = vrot.lane.b32.xlu1 %v7481_v42, %s6159_s0 }
 0x200   :  { %v7491_v54 = vpop.permute.xlu0 %2309  ;;  %v7493_v57 = vpop.permute.xlu1 %2311 }
 0x201   :  { %10661 = vst [vmem:[#allocation22_spill] sm:$0xff] %v7491_v54  ;;  %10662 = vst [vmem:[#allocation20_spill] sm:$0xff] %v7493_v57 }
 0x202   :  { %2157 = vrot.lane.b32.xlu0 %v7063_v20, %s6158_s10  ;;  %2159 = vrot.lane.b32.xlu1 %v7071_v32, %s6158_s10 }
 0x204   :  { %v7499_v25 = vpop.permute.xlu0 %2105  ;;  %v7501_v40 = vpop.permute.xlu1 %2107 }
 0x206   :  { %2357 = vrot.lane.b32.xlu0 %v7079_v28, %s6158_s10  ;;  %2359 = vrot.lane.b32.xlu1 %v7087_v62, %s6158_s10 }
 0x208   :  { %v7507_v2 = vpop.permute.xlu0 %2305  ;;  %v7509_v34 = vpop.permute.xlu1 %2307 }
 0x209   :  { %10663 = vst [vmem:[#allocation24_spill] sm:$0xff] %v7507_v2  ;;  %10664 = vst [vmem:[#allocation254_spill] sm:$0xff] %v7509_v34 }
 0x20a   :  { %2153 = vrot.lane.b32.xlu0 %v7069_v1, %s6158_s10  ;;  %2155 = vrot.lane.b32.xlu1 %v7077_v3, %s6158_s10 }
 0x20c   :  { %v7515_v57 = vpop.permute.xlu0 %2117  ;;  %v7517_v54 = vpop.permute.xlu1 %2119 }
 0x20e   :  { %2353 = vrot.lane.b32.xlu0 %v7085_v21, %s6158_s10  ;;  %2355 = vrot.lane.b32.xlu1 %v7093_v30, %s6158_s10 }
 0x210   :  { %v7523_v62 = vpop.permute.xlu0 %2317  ;;  %v7525_v28 = vpop.permute.xlu1 %2319 }
 0x211   :  { %10665 = vst [vmem:[#allocation255_spill] sm:$0xff] %v7523_v62  ;;  %10666 = vst [vmem:[#allocation256_spill] sm:$0xff] %v7525_v28 }
 0x212   :  { %2165 = vrot.lane.b32.xlu0 %v7111_v38, %s6158_s10  ;;  %2167 = vrot.lane.b32.xlu1 %v7119_v59, %s6158_s10 }
 0x214   :  { %v7531_v34 = vpop.permute.xlu0 %2113  ;;  %v7533_v2 = vpop.permute.xlu1 %2115 }
 0x216   :  { %2365 = vrot.lane.b32.xlu0 %v7127_v5, %s6158_s10  ;;  %2367 = vrot.lane.b32.xlu1 %v7135_v6, %s6158_s10 }
 0x218   :  { %v7539_v30 = vpop.permute.xlu0 %2313  ;;  %v7541_v21 = vpop.permute.xlu1 %2315 }
 0x219   :  { %10667 = vst [vmem:[#allocation257_spill] sm:$0xff] %v7539_v30  ;;  %10668 = vst [vmem:[#allocation258_spill] sm:$0xff] %v7541_v21 }
 0x21a   :  { %2161 = vrot.lane.b32.xlu0 %v7117_v4, %s6158_s10  ;;  %2163 = vrot.lane.b32.xlu1 %v7125_v55, %s6158_s10 }
 0x21c   :  { %v7547_v28 = vpop.permute.xlu0 %2125  ;;  %v7549_v62 = vpop.permute.xlu1 %2127 }
 0x21e   :  { %2361 = vrot.lane.b32.xlu0 %v7133_v9, %s6158_s10  ;;  %2363 = vrot.lane.b32.xlu1 %v7141_v0, %s6158_s10 }
 0x220   :  { %v7555_v6 = vpop.permute.xlu0 %2325  ;;  %v7557_v5 = vpop.permute.xlu1 %2327 }
 0x221   :  { %10669 = vst [vmem:[#allocation259_spill] sm:$0xff] %v7555_v6  ;;  %10670 = vst [vmem:[#allocation260_spill] sm:$0xff] %v7557_v5 }
 0x222   :  { %2173 = vrot.lane.b32.xlu0 %v7159_v50, %s6158_s10  ;;  %2175 = vrot.lane.b32.xlu1 %v7167_v49, %s6158_s10 }
 0x224   :  { %v7563_v21 = vpop.permute.xlu0 %2121  ;;  %v7565_v30 = vpop.permute.xlu1 %2123 }
 0x226   :  { %2373 = vrot.lane.b32.xlu0 %v7175_v7, %s6158_s10  ;;  %2375 = vrot.lane.b32.xlu1 %v7183_v8, %s6158_s10 }
 0x228   :  { %v7571_v0 = vpop.permute.xlu0 %2321  ;;  %v7573_v9 = vpop.permute.xlu1 %2323 }
 0x229   :  { %10671 = vst [vmem:[#allocation261_spill] sm:$0xff] %v7571_v0  ;;  %10672 = vst [vmem:[#allocation262_spill] sm:$0xff] %v7573_v9 }
 0x22a   :  { %2169 = vrot.lane.b32.xlu0 %v7165_v10, %s6158_s10  ;;  %2171 = vrot.lane.b32.xlu1 %v7173_v44, %s6158_s10 }
 0x22c   :  { %v7579_v5 = vpop.permute.xlu0 %2133  ;;  %v7581_v6 = vpop.permute.xlu1 %2135 }
 0x22e   :  { %2369 = vrot.lane.b32.xlu0 %v7181_v11, %s6158_s10  ;;  %2371 = vrot.lane.b32.xlu1 %v7189_v53, %s6158_s10 }
 0x230   :  { %v7587_v8 = vpop.permute.xlu0 %2333  ;;  %v7589_v7 = vpop.permute.xlu1 %2335 }
 0x231   :  { %10673 = vst [vmem:[#allocation263_spill] sm:$0xff] %v7587_v8  ;;  %10674 = vst [vmem:[#allocation264_spill] sm:$0xff] %v7589_v7  ;;  %v7614_v7 = vld [vmem:[%s10125_s2] ss:$0 sm:$0xff] }
 0x232   :  { %2181 = vrot.lane.b32.xlu0 %v7207_v61, %s6158_s10  ;;  %2183 = vrot.lane.b32.xlu1 %v7215_v41, %s6158_s10 }
 0x234   :  { %v7595_v9 = vpop.permute.xlu0 %2129  ;;  %v7597_v0 = vpop.permute.xlu1 %2131 }
 0x236   :  { %2381 = vrot.lane.b32.xlu0 %v7223_v15, %s6158_s10  ;;  %2383 = vrot.lane.b32.xlu1 %v7231_v16, %s6158_s10 }
 0x238   :  { %v7603_v53 = vpop.permute.xlu0 %2329  ;;  %v7605_v11 = vpop.permute.xlu1 %2331 }
 0x239   :  { %10675 = vst [vmem:[#allocation265_spill] sm:$0xff] %v7603_v53  ;;  %10676 = vst [vmem:[#allocation266_spill] sm:$0xff] %v7605_v11 }
 0x23a   :  { %2177 = vrot.lane.b32.xlu0 %v7213_v12, %s6158_s10  ;;  %2179 = vrot.lane.b32.xlu1 %v7221_v33, %s6158_s10 }
 0x23c   :  { %v3002_v8 = vpop.permute.xlu0 %3001  ;;  %v3004_v15 = vpop.permute.xlu1 %3003 }
 0x23d   :  { %v3587_v41 = vmax.f32 %v7293_v51, %v3002_v8  ;;  %v3588_v16 = vmax.f32 %v7297_v36, %v3004_v15  ;;  %v10677_v36 = vld [vmem:[#allocation211_spill] sm:$0xff]  ;;  %v10678_v8 = vld [vmem:[#allocation213_spill] sm:$0xff] }
 0x23e   :  { %2377 = vrot.lane.b32.xlu0 %v7229_v26, %s6158_s10  ;;  %2379 = vrot.lane.b32.xlu1 %v7237_v47, %s6158_s10 }
 0x23f   :  { %v3790_v11 = vadd.f32 %v7614_v7, %v3587_v41  ;;  %v3791_v53 = vadd.f32 %v7614_v7, %v3588_v16 }
 0x240   :  { %v2998_v61 = vpop.permute.xlu0 %2997  ;;  %v3000_v33 = vpop.permute.xlu1 %2999 }
 0x241   :  { %v3986_v12 = vmax.f32 %v3790_v11, 0.0  ;;  %v3987_v49 = vmax.f32 %v3791_v53, 0.0  ;;  %v3585_v50 = vmax.f32 %v7309_v35, %v2998_v61  ;;  %v3586_v51 = vmax.f32 %v7313_v39, %v3000_v33  ;;  %v10680_v61 = vld [vmem:[#allocation219_spill] sm:$0xff] }
 0x242   :  { %2189 = vrot.lane.b32.xlu0 %v10677_v36, %s6158_s10  ;;  %2191 = vrot.lane.b32.xlu1 %v10678_v8, %s6158_s10 }
 0x243   :  { %v5561_v15 = vpack.c.bf16 %v3986_v12, %v3986_v12  ;;  %v5562_v47 = vpack.c.bf16 %v3987_v49, %v3987_v49  ;;  %v3788_v41 = vadd.f32 %v7614_v7, %v3585_v50  ;;  %v3789_v16 = vadd.f32 %v7614_v7, %v3586_v51  ;;  %v10679_v49 = vld [vmem:[#allocation217_spill] sm:$0xff]  ;;  %v10684_v51 = vld [vmem:[#allocation216_spill] sm:$0xff] }
 0x244   :  { %v7632_v26 = vpop.permute.xlu0 %2141  ;;  %v7634_v53 = vpop.permute.xlu1 %2143 }
 0x245   :  { %4967 = vst.msk [vmem:[%s10126_s3 + $0x8] sm:$0xf] %vm4964_vm1, %v5561_v15  ;;  %4968 = vst.msk [vmem:[%s10126_s3 + $0xc] sm:$0xf] %vm4964_vm1, %v5562_v47  ;;  %v3984_v33 = vmax.f32 %v3788_v41, 0.0  ;;  %v3985_v35 = vmax.f32 %v3789_v16, 0.0 }
 0x246   :  { %2389 = vrot.lane.b32.xlu0 %v10679_v49, %s6158_s10  ;;  %2391 = vrot.lane.b32.xlu1 %v10680_v61, %s6158_s10  ;;  %v10683_v47 = vld [vmem:[#allocation212_spill] sm:$0xff]  ;;  %v10685_v16 = vld [vmem:[#allocation218_spill] sm:$0xff] }
 0x247   :  { %v5559_v11 = vpack.c.bf16 %v3984_v33, %v3984_v33  ;;  %v5560_v12 = vpack.c.bf16 %v3985_v35, %v3985_v35  ;;  %v10686_v33 = vld [vmem:[#allocation222_spill] sm:$0xff]  ;;  %v10690_v61 = vld [vmem:[#allocation8_spill] sm:$0xff] }
 0x248   :  { %v7648_v50 = vpop.permute.xlu0 %2341  ;;  %v7650_v39 = vpop.permute.xlu1 %2343 }
 0x249   :  { %10681 = vst [vmem:[#allocation267_spill] sm:$0xff] %v7648_v50  ;;  %10682 = vst [vmem:[#allocation268_spill] sm:$0xff] %v7650_v39 }
 0x24a   :  { %4965 = vst.msk [vmem:[%s10126_s3] sm:$0xf] %vm4964_vm1, %v5559_v11  ;;  %4966 = vst.msk [vmem:[%s10126_s3 + $0x4] sm:$0xf] %vm4964_vm1, %v5560_v12  ;;  %2185 = vrot.lane.b32.xlu0 %v10683_v47, %s6158_s10  ;;  %2187 = vrot.lane.b32.xlu1 %v10684_v51, %s6158_s10  ;;  %v10689_v12 = vld [vmem:[#allocation124_spill] sm:$0xff] }
 0x24c   :  { %v7664_v15 = vpop.permute.xlu0 %2137  ;;  %v7666_v41 = vpop.permute.xlu1 %2139 }
 0x24e   :  { %2385 = vrot.lane.b32.xlu0 %v10685_v16, %s6158_s10  ;;  %2387 = vrot.lane.b32.xlu1 %v10686_v33, %s6158_s10 }
 0x250   :  { %v7672_v35 = vpop.permute.xlu0 %2337  ;;  %v7674_v11 = vpop.permute.xlu1 %2339 }
 0x251   :  { %10687 = vst [vmem:[#allocation269_spill] sm:$0xff] %v7672_v35  ;;  %10688 = vst [vmem:[#allocation270_spill] sm:$0xff] %v7674_v11 }
 0x252   :  { %2197 = vrot.lane.b32.xlu0 %v10689_v12, %s6158_s10  ;;  %2199 = vrot.lane.b32.xlu1 %v10690_v61, %s6158_s10 }
 0x254   :  { %v3010_v49 = vpop.permute.xlu0 %3009  ;;  %v3012_v39 = vpop.permute.xlu1 %3011 }
 0x255   :  { %v3591_v50 = vmax.f32 %v7379_v17, %v3010_v49  ;;  %v3592_v8 = vmax.f32 %v7383_v19, %v3012_v39  ;;  %v10691_v19 = vld [vmem:[#allocation5_spill] sm:$0xff] }
 0x256   :  { %2397 = vrot.lane.b32.xlu0 %v7335_v31, %s6158_s10  ;;  %2399 = vrot.lane.b32.xlu1 %v7343_v60, %s6158_s10  ;;  %v10692_v49 = vld [vmem:[#allocation225_spill] sm:$0xff] }
 0x257   :  { %v3794_v33 = vadd.f32 %v7614_v7, %v3591_v50  ;;  %v3795_v16 = vadd.f32 %v7614_v7, %v3592_v8 }
 0x258   :  { %v3006_v11 = vpop.permute.xlu0 %3005  ;;  %v3008_v35 = vpop.permute.xlu1 %3007 }
 0x259   :  { %v3990_v12 = vmax.f32 %v3794_v33, 0.0  ;;  %v3991_v61 = vmax.f32 %v3795_v16, 0.0  ;;  %v3589_v36 = vmax.f32 %v7403_v13, %v3006_v11  ;;  %v3590_v17 = vmax.f32 %v7407_v46, %v3008_v35 }
 0x25a   :  { %2193 = vrot.lane.b32.xlu0 %v10691_v19, %s6158_s10  ;;  %2195 = vrot.lane.b32.xlu1 %v10692_v49, %s6158_s10  ;;  %v10734_v49 = vld [vmem:[#allocation42_spill] sm:$0xff] }
 0x25b   :  { %v5565_v39 = vpack.c.bf16 %v3990_v12, %v3990_v12  ;;  %v5566_v60 = vpack.c.bf16 %v3991_v61, %v3991_v61  ;;  %v3792_v50 = vadd.f32 %v7614_v7, %v3589_v36  ;;  %v3793_v8 = vadd.f32 %v7614_v7, %v3590_v17 }
 0x25c   :  { %v7696_v31 = vpop.permute.xlu0 %2149  ;;  %v7698_v33 = vpop.permute.xlu1 %2151 }
 0x25d   :  { %4971 = vst.msk [vmem:[%s10126_s3 + $0x18] sm:$0xf] %vm4964_vm1, %v5565_v39  ;;  %4972 = vst.msk [vmem:[%s10126_s3 + $0x1c] sm:$0xf] %vm4964_vm1, %v5566_v60  ;;  %v3988_v46 = vmax.f32 %v3792_v50, 0.0  ;;  %v3989_v13 = vmax.f32 %v3793_v8, 0.0 }
 0x25e   :  { %2393 = vrot.lane.b32.xlu0 %v7341_v37, %s6158_s10  ;;  %2395 = vrot.lane.b32.xlu1 %v7349_v43, %s6158_s10  ;;  %v10695_v60 = vld [vmem:[#allocation236_spill] sm:$0xff]  ;;  %v10698_v50 = vld [vmem:[#allocation237_spill] sm:$0xff]  ;;  %v10699_v8 = vld [vmem:[#allocation239_spill] sm:$0xff] }
 0x25f   :  { %v5563_v36 = vpack.c.bf16 %v3988_v46, %v3988_v46  ;;  %v5564_v61 = vpack.c.bf16 %v3989_v13, %v3989_v13 }
 0x260   :  { %v7712_v16 = vpop.permute.xlu0 %2349  ;;  %v7714_v35 = vpop.permute.xlu1 %2351 }
 0x261   :  { %10693 = vst [vmem:[#allocation271_spill] sm:$0xff] %v7712_v16  ;;  %10694 = vst [vmem:[#allocation272_spill] sm:$0xff] %v7714_v35 }
 0x262   :  { %4969 = vst.msk [vmem:[%s10126_s3 + $0x10] sm:$0xf] %vm4964_vm1, %v5563_v36  ;;  %4970 = vst.msk [vmem:[%s10126_s3 + $0x14] sm:$0xf] %vm4964_vm1, %v5564_v61  ;;  %2205 = vrot.lane.b32.xlu0 %v10695_v60, %s6158_s10  ;;  %2207 = vrot.lane.b32.xlu1 %v7375_v63, %s6158_s10 }
 0x264   :  { %v7728_v11 = vpop.permute.xlu0 %2145  ;;  %v7730_v12 = vpop.permute.xlu1 %2147 }
 0x266   :  { %2405 = vrot.lane.b32.xlu0 %v7391_v18, %s6158_s10  ;;  %2407 = vrot.lane.b32.xlu1 %v7399_v24, %s6158_s10  ;;  %v10700_v18 = vld [vmem:[#allocation241_spill] sm:$0xff] }
 0x268   :  { %v7736_v17 = vpop.permute.xlu0 %2345  ;;  %v7738_v39 = vpop.permute.xlu1 %2347 }
 0x269   :  { %10696 = vst [vmem:[#allocation273_spill] sm:$0xff] %v7736_v17  ;;  %10697 = vst [vmem:[#allocation274_spill] sm:$0xff] %v7738_v39 }
 0x26a   :  { %2201 = vrot.lane.b32.xlu0 %v10698_v50, %s6158_s10  ;;  %2203 = vrot.lane.b32.xlu1 %v10699_v8, %s6158_s10  ;;  %v10733_v50 = vld [vmem:[#allocation178_spill] sm:$0xff] }
 0x26b   :  { %v7866_v19 = vmax.f32 %v10734_v49, %v10733_v50  ;;  %v10742_v49 = vld [vmem:[#allocation205_spill] sm:$0xff]  ;;  %v10743_v50 = vld [vmem:[#allocation56_spill] sm:$0xff] }
 0x26c   :  { %v3018_v46 = vpop.permute.xlu0 %3017  ;;  %v3020_v13 = vpop.permute.xlu1 %3019 }
 0x26d   :  { %v3595_v36 = vmax.f32 %v7461_v29, %v3018_v46  ;;  %v3596_v61 = vmax.f32 %v7465_v22, %v3020_v13 }
 0x26e   :  { %2401 = vrot.lane.b32.xlu0 %v10700_v18, %s6158_s10  ;;  %2403 = vrot.lane.b32.xlu1 %v7413_v14, %s6158_s10  ;;  %v10706_v14 = vld [vmem:[#allocation32_spill] sm:$0xff] }
 0x26f   :  { %v3798_v24 = vadd.f32 %v7614_v7, %v3595_v36  ;;  %v3799_v43 = vadd.f32 %v7614_v7, %v3596_v61 }
 0x270   :  { %v3014_v37 = vpop.permute.xlu0 %3013  ;;  %v3016_v35 = vpop.permute.xlu1 %3015 }
 0x271   :  { %v3994_v16 = vmax.f32 %v3798_v24, 0.0  ;;  %v3995_v39 = vmax.f32 %v3799_v43, 0.0  ;;  %v3593_v17 = vmax.f32 %v7477_v52, %v3014_v37  ;;  %v3594_v29 = vmax.f32 %v7481_v42, %v3016_v35  ;;  %v10701_v43 = vld [vmem:[#allocation249_spill] sm:$0xff] }
 0x272   :  { %2213 = vrot.lane.b32.xlu0 %v7431_v58, %s6158_s10  ;;  %2215 = vrot.lane.b32.xlu1 %v7439_v23, %s6158_s10  ;;  %v10702_v42 = vld [vmem:[#allocation253_spill] sm:$0xff]  ;;  %v10719_v58 = vld [vmem:[#allocation166_spill] sm:$0xff] }
 0x273   :  { %v5569_v22 = vpack.c.bf16 %v3994_v16, %v3994_v16  ;;  %v5570_v46 = vpack.c.bf16 %v3995_v39, %v3995_v39  ;;  %v3796_v13 = vadd.f32 %v7614_v7, %v3593_v17  ;;  %v3797_v36 = vadd.f32 %v7614_v7, %v3594_v29  ;;  %v10703_v17 = vld [vmem:[#allocation161_spill] sm:$0xff]  ;;  %v10704_v39 = vld [vmem:[#allocation28_spill] sm:$0xff] }
 0x274   :  { %v7760_v61 = vpop.permute.xlu0 %2157  ;;  %v7762_v24 = vpop.permute.xlu1 %2159  ;;  %v7778_v29 = vmax.f32 %v10704_v39, %v10703_v17 }
 0x275   :  { %4975 = vst.msk [vmem:[%s10126_s3 + $0x28] sm:$0xf] %vm4964_vm1, %v5569_v22  ;;  %4976 = vst.msk [vmem:[%s10126_s3 + $0x2c] sm:$0xf] %vm4964_vm1, %v5570_v46  ;;  %v3992_v52 = vmax.f32 %v3796_v13, 0.0  ;;  %v3993_v37 = vmax.f32 %v3797_v36, 0.0 }
 0x276   :  { %2209 = vrot.lane.b32.xlu0 %v10701_v43, %s6158_s10  ;;  %2211 = vrot.lane.b32.xlu1 %v10702_v42, %s6158_s10  ;;  %v10705_v22 = vld [vmem:[#allocation162_spill] sm:$0xff] }
 0x277   :  { %v5567_v16 = vpack.c.bf16 %v3992_v52, %v3992_v52  ;;  %v5568_v35 = vpack.c.bf16 %v3993_v37, %v3993_v37  ;;  %v7782_v18 = vmax.f32 %v10706_v14, %v10705_v22  ;;  %v10709_v14 = vld [vmem:[#allocation154_spill] sm:$0xff]  ;;  %v10711_v52 = vld [vmem:[#allocation155_spill] sm:$0xff]  ;;  %v10714_v22 = vld [vmem:[#allocation36_spill] sm:$0xff] }
 0x278   :  { %v7784_v23 = vpop.permute.xlu0 %2357  ;;  %v7786_v46 = vpop.permute.xlu1 %2359  ;;  %v10710_v13 = vld [vmem:[#allocation26_spill] sm:$0xff] }
 0x279   :  { %10707 = vst [vmem:[#allocation161_spill] sm:$0xff] %v7784_v23  ;;  %10708 = vst [vmem:[#allocation28_spill] sm:$0xff] %v7786_v46  ;;  %v7802_v36 = vmax.f32 %v10710_v13, %v10709_v14  ;;  %v10712_v37 = vld [vmem:[#allocation30_spill] sm:$0xff]  ;;  %v10716_v13 = vld [vmem:[#allocation40_spill] sm:$0xff] }
 0x27a   :  { %4973 = vst.msk [vmem:[%s10126_s3 + $0x20] sm:$0xf] %vm4964_vm1, %v5567_v16  ;;  %4974 = vst.msk [vmem:[%s10126_s3 + $0x24] sm:$0xf] %vm4964_vm1, %v5568_v35  ;;  %3021 = vrot.lane.b32.xlu0 %v7778_v29, %s6159_s0  ;;  %3023 = vrot.lane.b32.xlu1 %v7782_v18, %s6159_s0  ;;  %v7806_v17 = vmax.f32 %v10712_v37, %v10711_v52  ;;  %v10713_v35 = vld [vmem:[#allocation173_spill] sm:$0xff]  ;;  %v10715_v14 = vld [vmem:[#allocation174_spill] sm:$0xff] }
 0x27b   :  { %v7818_v46 = vmax.f32 %v10714_v22, %v10713_v35  ;;  %v7822_v23 = vmax.f32 %v10716_v13, %v10715_v14  ;;  %v10720_v42 = vld [vmem:[#allocation34_spill] sm:$0xff]  ;;  %v10722_v35 = vld [vmem:[#allocation167_spill] sm:$0xff]  ;;  %10735 = vst [vmem:[#allocation174_spill] sm:$0xff] %v7866_v19 }
 0x27c   :  { %v7808_v16 = vpop.permute.xlu0 %2153  ;;  %v7810_v39 = vpop.permute.xlu1 %2155  ;;  %v7834_v43 = vmax.f32 %v10720_v42, %v10719_v58  ;;  %v10723_v22 = vld [vmem:[#allocation38_spill] sm:$0xff]  ;;  %v10728_v58 = vld [vmem:[#allocation189_spill] sm:$0xff]  ;;  %v10729_v42 = vld [vmem:[#allocation48_spill] sm:$0xff] }
 0x27d   :  { %v7838_v63 = vmax.f32 %v10723_v22, %v10722_v35  ;;  %v7854_v8 = vmax.f32 %v10729_v42, %v10728_v58 }
 0x27e   :  { %3025 = vrot.lane.b32.xlu0 %v7802_v36, %s6159_s0  ;;  %3027 = vrot.lane.b32.xlu1 %v7806_v17, %s6159_s0  ;;  %10721 = vst [vmem:[#allocation154_spill] sm:$0xff] %v7834_v43 }
 0x27f   :  { %10724 = vst [vmem:[#allocation26_spill] sm:$0xff] %v7838_v63  ;;  %10730 = vst [vmem:[#allocation30_spill] sm:$0xff] %v7854_v8 }
 0x280   :  { %v7824_v52 = vpop.permute.xlu0 %2353  ;;  %v7826_v37 = vpop.permute.xlu1 %2355 }
 0x281   :  { %10717 = vst [vmem:[#allocation162_spill] sm:$0xff] %v7824_v52  ;;  %10718 = vst [vmem:[#allocation32_spill] sm:$0xff] %v7826_v37  ;;  %v10725_v37 = vld [vmem:[#allocation188_spill] sm:$0xff] }
 0x282   :  { %3029 = vrot.lane.b32.xlu0 %v7818_v46, %s6159_s0  ;;  %3031 = vrot.lane.b32.xlu1 %v7822_v23, %s6159_s0  ;;  %v10726_v52 = vld [vmem:[#allocation44_spill] sm:$0xff] }
 0x283   :  { %v7850_v60 = vmax.f32 %v10726_v52, %v10725_v37  ;;  %v10736_v52 = vld [vmem:[#allocation179_spill] sm:$0xff]  ;;  %v10737_v37 = vld [vmem:[#allocation46_spill] sm:$0xff] }
 0x284   :  { %v7840_v14 = vpop.permute.xlu0 %2165  ;;  %v7842_v13 = vpop.permute.xlu1 %2167  ;;  %v7870_v51 = vmax.f32 %v10737_v37, %v10736_v52 }
 0x285   :  { %10727 = vst [vmem:[#allocation155_spill] sm:$0xff] %v7850_v60 }
 0x286   :  { %3033 = vrot.lane.b32.xlu0 %v7834_v43, %s6159_s0  ;;  %3035 = vrot.lane.b32.xlu1 %v7838_v63, %s6159_s0  ;;  %10738 = vst [vmem:[#allocation40_spill] sm:$0xff] %v7870_v51 }
 0x288   :  { %v7856_v35 = vpop.permute.xlu0 %2365  ;;  %v7858_v22 = vpop.permute.xlu1 %2367 }
 0x289   :  { %10731 = vst [vmem:[#allocation173_spill] sm:$0xff] %v7856_v35  ;;  %10732 = vst [vmem:[#allocation36_spill] sm:$0xff] %v7858_v22  ;;  %v10739_v22 = vld [vmem:[#allocation204_spill] sm:$0xff] }
 0x28a   :  { %3037 = vrot.lane.b32.xlu0 %v7850_v60, %s6159_s0  ;;  %3039 = vrot.lane.b32.xlu1 %v7854_v8, %s6159_s0  ;;  %v10740_v35 = vld [vmem:[#allocation52_spill] sm:$0xff]  ;;  %v7886_v8 = vmax.f32 %v10743_v50, %v10742_v49 }
 0x28b   :  { %v7882_v47 = vmax.f32 %v10740_v35, %v10739_v22  ;;  %v10750_v35 = vld [vmem:[#allocation194_spill] sm:$0xff] }
 0x28c   :  { %v7872_v58 = vpop.permute.xlu0 %2161  ;;  %v7874_v42 = vpop.permute.xlu1 %2163  ;;  %10744 = vst [vmem:[#allocation34_spill] sm:$0xff] %v7886_v8  ;;  %v10751_v22 = vld [vmem:[#allocation54_spill] sm:$0xff] }
 0x28d   :  { %10741 = vst [vmem:[#allocation166_spill] sm:$0xff] %v7882_v47  ;;  %v7902_v63 = vmax.f32 %v10751_v22, %v10750_v35 }
 0x28e   :  { %3041 = vrot.lane.b32.xlu0 %v7866_v19, %s6159_s0  ;;  %3043 = vrot.lane.b32.xlu1 %v7870_v51, %s6159_s0  ;;  %v10747_v19 = vld [vmem:[#allocation193_spill] sm:$0xff]  ;;  %v10748_v51 = vld [vmem:[#allocation50_spill] sm:$0xff] }
 0x28f   :  { %v7898_v60 = vmax.f32 %v10748_v51, %v10747_v19  ;;  %10752 = vst [vmem:[#allocation44_spill] sm:$0xff] %v7902_v63  ;;  %v10758_v51 = vld [vmem:[#allocation221_spill] sm:$0xff]  ;;  %v10759_v19 = vld [vmem:[#allocation64_spill] sm:$0xff] }
 0x290   :  { %v7888_v52 = vpop.permute.xlu0 %2361  ;;  %v7890_v37 = vpop.permute.xlu1 %2363 }
 0x291   :  { %10745 = vst [vmem:[#allocation167_spill] sm:$0xff] %v7888_v52  ;;  %10746 = vst [vmem:[#allocation38_spill] sm:$0xff] %v7890_v37  ;;  %v10755_v37 = vld [vmem:[#allocation220_spill] sm:$0xff] }
 0x292   :  { %3045 = vrot.lane.b32.xlu0 %v7882_v47, %s6159_s0  ;;  %3047 = vrot.lane.b32.xlu1 %v7886_v8, %s6159_s0  ;;  %10749 = vst [vmem:[#allocation188_spill] sm:$0xff] %v7898_v60  ;;  %v10756_v52 = vld [vmem:[#allocation60_spill] sm:$0xff]  ;;  %v7918_v47 = vmax.f32 %v10759_v19, %v10758_v51 }
 0x293   :  { %v7914_v8 = vmax.f32 %v10756_v52, %v10755_v37  ;;  %v10766_v52 = vld [vmem:[#allocation210_spill] sm:$0xff] }
 0x294   :  { %v7904_v49 = vpop.permute.xlu0 %2173  ;;  %v7906_v50 = vpop.permute.xlu1 %2175  ;;  %10760 = vst [vmem:[#allocation42_spill] sm:$0xff] %v7918_v47  ;;  %v10767_v37 = vld [vmem:[#allocation62_spill] sm:$0xff] }
 0x295   :  { %10753 = vst [vmem:[#allocation189_spill] sm:$0xff] %v7904_v49  ;;  %10754 = vst [vmem:[#allocation48_spill] sm:$0xff] %v7906_v50  ;;  %v7934_v49 = vmax.f32 %v10767_v37, %v10766_v52 }
 0x296   :  { %3049 = vrot.lane.b32.xlu0 %v7898_v60, %s6159_s0  ;;  %3051 = vrot.lane.b32.xlu1 %v7902_v63, %s6159_s0  ;;  %10757 = vst [vmem:[#allocation178_spill] sm:$0xff] %v7914_v8  ;;  %v10763_v60 = vld [vmem:[#allocation209_spill] sm:$0xff]  ;;  %v10764_v63 = vld [vmem:[#allocation58_spill] sm:$0xff] }
 0x297   :  { %v7930_v50 = vmax.f32 %v10764_v63, %v10763_v60  ;;  %10768 = vst [vmem:[#allocation52_spill] sm:$0xff] %v7934_v49  ;;  %v10772_v63 = vld [vmem:[#allocation230_spill] sm:$0xff]  ;;  %v10773_v60 = vld [vmem:[#allocation72_spill] sm:$0xff] }
 0x298   :  { %v7920_v35 = vpop.permute.xlu0 %2373  ;;  %v7922_v22 = vpop.permute.xlu1 %2375 }
 0x299   :  { %10761 = vst [vmem:[#allocation179_spill] sm:$0xff] %v7920_v35  ;;  %10762 = vst [vmem:[#allocation46_spill] sm:$0xff] %v7922_v22  ;;  %v10769_v22 = vld [vmem:[#allocation229_spill] sm:$0xff]  ;;  %v10770_v35 = vld [vmem:[#allocation68_spill] sm:$0xff] }
 0x29a   :  { %3053 = vrot.lane.b32.xlu0 %v7914_v8, %s6159_s0  ;;  %3055 = vrot.lane.b32.xlu1 %v7918_v47, %s6159_s0  ;;  %10765 = vst [vmem:[#allocation204_spill] sm:$0xff] %v7930_v50  ;;  %v7946_v47 = vmax.f32 %v10770_v35, %v10769_v22  ;;  %v7950_v8 = vmax.f32 %v10773_v60, %v10772_v63  ;;  %v10780_v35 = vld [vmem:[#allocation6_spill] sm:$0xff] }
 0x29b   :  { %v10781_v22 = vld [vmem:[#allocation70_spill] sm:$0xff] }
 0x29c   :  { %v7936_v51 = vpop.permute.xlu0 %2169  ;;  %v7938_v19 = vpop.permute.xlu1 %2171  ;;  %10771 = vst [vmem:[#allocation205_spill] sm:$0xff] %v7946_v47  ;;  %10774 = vst [vmem:[#allocation56_spill] sm:$0xff] %v7950_v8  ;;  %v7966_v44 = vmax.f32 %v10781_v22, %v10780_v35 }
 0x29e   :  { %3057 = vrot.lane.b32.xlu0 %v7930_v50, %s6159_s0  ;;  %3059 = vrot.lane.b32.xlu1 %v7934_v49, %s6159_s0  ;;  %v10777_v50 = vld [vmem:[#allocation125_spill] sm:$0xff]  ;;  %v10778_v49 = vld [vmem:[#allocation66_spill] sm:$0xff]  ;;  %10782 = vst [vmem:[#allocation54_spill] sm:$0xff] %v7966_v44 }
 0x29f   :  { %v7962_v43 = vmax.f32 %v10778_v49, %v10777_v50  ;;  %v10788_v49 = vld [vmem:[#allocation16_spill] sm:$0xff] }
 0x2a0   :  { %v7952_v52 = vpop.permute.xlu0 %2369  ;;  %v7954_v37 = vpop.permute.xlu1 %2371  ;;  %v10789_v50 = vld [vmem:[#allocation80_spill] sm:$0xff] }
 0x2a1   :  { %10775 = vst [vmem:[#allocation193_spill] sm:$0xff] %v7952_v52  ;;  %10776 = vst [vmem:[#allocation50_spill] sm:$0xff] %v7954_v37  ;;  %v10785_v37 = vld [vmem:[#allocation12_spill] sm:$0xff] }
 0x2a2   :  { %3061 = vrot.lane.b32.xlu0 %v7946_v47, %s6159_s0  ;;  %3063 = vrot.lane.b32.xlu1 %v7950_v8, %s6159_s0  ;;  %10779 = vst [vmem:[#allocation194_spill] sm:$0xff] %v7962_v43  ;;  %v10786_v52 = vld [vmem:[#allocation76_spill] sm:$0xff]  ;;  %v7982_v47 = vmax.f32 %v10789_v50, %v10788_v49 }
 0x2a3   :  { %v7978_v8 = vmax.f32 %v10786_v52, %v10785_v37  ;;  %v10796_v52 = vld [vmem:[#allocation235_spill] sm:$0xff]  ;;  %v10797_v37 = vld [vmem:[#allocation78_spill] sm:$0xff] }
 0x2a4   :  { %v7968_v63 = vpop.permute.xlu0 %2181  ;;  %v7970_v60 = vpop.permute.xlu1 %2183  ;;  %10790 = vst [vmem:[#allocation64_spill] sm:$0xff] %v7982_v47 }
 0x2a5   :  { %10783 = vst [vmem:[#allocation220_spill] sm:$0xff] %v7968_v63  ;;  %10784 = vst [vmem:[#allocation60_spill] sm:$0xff] %v7970_v60  ;;  %v7998_v63 = vmax.f32 %v10797_v37, %v10796_v52 }
 0x2a6   :  { %3065 = vrot.lane.b32.xlu0 %v7962_v43, %s6159_s0  ;;  %3067 = vrot.lane.b32.xlu1 %v7966_v44, %s6159_s0  ;;  %10787 = vst [vmem:[#allocation221_spill] sm:$0xff] %v7978_v8  ;;  %v10793_v43 = vld [vmem:[#allocation234_spill] sm:$0xff] }
 0x2a7   :  { %v10794_v44 = vld [vmem:[#allocation74_spill] sm:$0xff]  ;;  %10798 = vst [vmem:[#allocation62_spill] sm:$0xff] %v7998_v63 }
 0x2a8   :  { %v7984_v35 = vpop.permute.xlu0 %2381  ;;  %v7986_v22 = vpop.permute.xlu1 %2383  ;;  %v7994_v60 = vmax.f32 %v10794_v44, %v10793_v43  ;;  %v10800_v44 = vld [vmem:[#allocation88_spill] sm:$0xff] }
 0x2a9   :  { %10791 = vst [vmem:[#allocation209_spill] sm:$0xff] %v7984_v35  ;;  %10792 = vst [vmem:[#allocation58_spill] sm:$0xff] %v7986_v22  ;;  %v10799_v22 = vld [vmem:[#allocation84_spill] sm:$0xff]  ;;  %v8014_v43 = vmax.f32 %v10800_v44, %v7453_v48 }
 0x2aa   :  { %3069 = vrot.lane.b32.xlu0 %v7978_v8, %s6159_s0  ;;  %3071 = vrot.lane.b32.xlu1 %v7982_v47, %s6159_s0  ;;  %10795 = vst [vmem:[#allocation210_spill] sm:$0xff] %v7994_v60  ;;  %v8010_v35 = vmax.f32 %v10799_v22, %v7451_v56  ;;  %v10806_v56 = vld [vmem:[#allocation247_spill] sm:$0xff]  ;;  %v10807_v22 = vld [vmem:[#allocation86_spill] sm:$0xff] }
 0x2ab   :  { %v8030_v8 = vmax.f32 %v10807_v22, %v10806_v56 }
 0x2ac   :  { %v8000_v49 = vpop.permute.xlu0 %2177  ;;  %v8002_v50 = vpop.permute.xlu1 %2179 }
 0x2ad   :  { %10808 = vst [vmem:[#allocation72_spill] sm:$0xff] %v8030_v8 }
 0x2ae   :  { %3073 = vrot.lane.b32.xlu0 %v7994_v60, %s6159_s0  ;;  %3075 = vrot.lane.b32.xlu1 %v7998_v63, %s6159_s0  ;;  %v10803_v60 = vld [vmem:[#allocation246_spill] sm:$0xff] }
 0x2af   :  { %v10804_v63 = vld [vmem:[#allocation82_spill] sm:$0xff] }
 0x2b0   :  { %v8016_v52 = vpop.permute.xlu0 %2377  ;;  %v8018_v37 = vpop.permute.xlu1 %2379  ;;  %v8026_v47 = vmax.f32 %v10804_v63, %v10803_v60  ;;  %v10810_v63 = vld [vmem:[#allocation96_spill] sm:$0xff] }
 0x2b1   :  { %10801 = vst [vmem:[#allocation229_spill] sm:$0xff] %v8016_v52  ;;  %10802 = vst [vmem:[#allocation68_spill] sm:$0xff] %v8018_v37  ;;  %v10809_v37 = vld [vmem:[#allocation92_spill] sm:$0xff]  ;;  %v8046_v60 = vmax.f32 %v10810_v63, %v7501_v40 }
 0x2b2   :  { %3077 = vrot.lane.b32.xlu0 %v8010_v35, %s6159_s0  ;;  %3079 = vrot.lane.b32.xlu1 %v8014_v43, %s6159_s0  ;;  %10805 = vst [vmem:[#allocation230_spill] sm:$0xff] %v8026_v47  ;;  %v8042_v52 = vmax.f32 %v10809_v37, %v7499_v25  ;;  %v10815_v25 = vld [vmem:[#allocation94_spill] sm:$0xff] }
 0x2b3   :  { %v8062_v37 = vmax.f32 %v10815_v25, %v7485_v27 }
 0x2b4   :  { %v8032_v48 = vpop.permute.xlu0 %2189  ;;  %v8034_v44 = vpop.permute.xlu1 %2191 }
 0x2b5   :  { %10816 = vst [vmem:[#allocation70_spill] sm:$0xff] %v8062_v37 }
 0x2b6   :  { %3081 = vrot.lane.b32.xlu0 %v8026_v47, %s6159_s0  ;;  %3083 = vrot.lane.b32.xlu1 %v8030_v8, %s6159_s0  ;;  %v10813_v8 = vld [vmem:[#allocation90_spill] sm:$0xff] }
 0x2b7   :  { %v8058_v47 = vmax.f32 %v10813_v8, %v7483_v45  ;;  %v10818_v45 = vld [vmem:[#allocation104_spill] sm:$0xff] }
 0x2b8   :  { %v8048_v56 = vpop.permute.xlu0 %2389  ;;  %v8050_v22 = vpop.permute.xlu1 %2391  ;;  %v8078_v8 = vmax.f32 %v10818_v45, %v7533_v2 }
 0x2b9   :  { %10811 = vst [vmem:[#allocation125_spill] sm:$0xff] %v8048_v56  ;;  %10812 = vst [vmem:[#allocation66_spill] sm:$0xff] %v8050_v22  ;;  %v10817_v22 = vld [vmem:[#allocation100_spill] sm:$0xff] }
 0x2ba   :  { %3085 = vrot.lane.b32.xlu0 %v8042_v52, %s6159_s0  ;;  %3087 = vrot.lane.b32.xlu1 %v8046_v60, %s6159_s0  ;;  %10814 = vst [vmem:[#allocation6_spill] sm:$0xff] %v8058_v47  ;;  %v8074_v56 = vmax.f32 %v10817_v22, %v7531_v34  ;;  %v10823_v34 = vld [vmem:[#allocation102_spill] sm:$0xff] }
 0x2bb   :  { %v8094_v22 = vmax.f32 %v10823_v34, %v7517_v54 }
 0x2bc   :  { %v8064_v40 = vpop.permute.xlu0 %2185  ;;  %v8066_v63 = vpop.permute.xlu1 %2187 }
 0x2bd   :  { %10824 = vst [vmem:[#allocation80_spill] sm:$0xff] %v8094_v22 }
 0x2be   :  { %3089 = vrot.lane.b32.xlu0 %v8058_v47, %s6159_s0  ;;  %3091 = vrot.lane.b32.xlu1 %v8062_v37, %s6159_s0  ;;  %v10821_v37 = vld [vmem:[#allocation98_spill] sm:$0xff] }
 0x2bf   :  { %v8090_v47 = vmax.f32 %v10821_v37, %v7515_v57  ;;  %v10826_v57 = vld [vmem:[#allocation112_spill] sm:$0xff] }
 0x2c0   :  { %v8080_v27 = vpop.permute.xlu0 %2385  ;;  %v8082_v25 = vpop.permute.xlu1 %2387  ;;  %v8110_v37 = vmax.f32 %v10826_v57, %v7565_v30 }
 0x2c1   :  { %10819 = vst [vmem:[#allocation12_spill] sm:$0xff] %v8080_v27  ;;  %10820 = vst [vmem:[#allocation76_spill] sm:$0xff] %v8082_v25  ;;  %v10825_v25 = vld [vmem:[#allocation108_spill] sm:$0xff] }
 0x2c2   :  { %3093 = vrot.lane.b32.xlu0 %v8074_v56, %s6159_s0  ;;  %3095 = vrot.lane.b32.xlu1 %v8078_v8, %s6159_s0  ;;  %10822 = vst [vmem:[#allocation16_spill] sm:$0xff] %v8090_v47  ;;  %v8106_v27 = vmax.f32 %v10825_v25, %v7563_v21  ;;  %v10831_v21 = vld [vmem:[#allocation110_spill] sm:$0xff] }
 0x2c3   :  { %v8126_v25 = vmax.f32 %v10831_v21, %v7549_v62 }
 0x2c4   :  { %v8096_v2 = vpop.permute.xlu0 %2197  ;;  %v8098_v45 = vpop.permute.xlu1 %2199 }
 0x2c5   :  { %10832 = vst [vmem:[#allocation78_spill] sm:$0xff] %v8126_v25 }
 0x2c6   :  { %3097 = vrot.lane.b32.xlu0 %v8090_v47, %s6159_s0  ;;  %3099 = vrot.lane.b32.xlu1 %v8094_v22, %s6159_s0  ;;  %v10829_v22 = vld [vmem:[#allocation106_spill] sm:$0xff] }
 0x2c7   :  { %v8122_v47 = vmax.f32 %v10829_v22, %v7547_v28  ;;  %v10834_v28 = vld [vmem:[#allocation122_spill] sm:$0xff] }
 0x2c8   :  { %v8112_v54 = vpop.permute.xlu0 %2397  ;;  %v8114_v34 = vpop.permute.xlu1 %2399  ;;  %v8142_v22 = vmax.f32 %v10834_v28, %v7597_v0 }
 0x2c9   :  { %10827 = vst [vmem:[#allocation234_spill] sm:$0xff] %v8112_v54  ;;  %10828 = vst [vmem:[#allocation74_spill] sm:$0xff] %v8114_v34  ;;  %v10833_v34 = vld [vmem:[#allocation116_spill] sm:$0xff] }
 0x2ca   :  { %3101 = vrot.lane.b32.xlu0 %v8106_v27, %s6159_s0  ;;  %3103 = vrot.lane.b32.xlu1 %v8110_v37, %s6159_s0  ;;  %10830 = vst [vmem:[#allocation235_spill] sm:$0xff] %v8122_v47  ;;  %v8138_v54 = vmax.f32 %v10833_v34, %v7595_v9  ;;  %v10839_v9 = vld [vmem:[#allocation118_spill] sm:$0xff] }
 0x2cb   :  { %v8158_v34 = vmax.f32 %v10839_v9, %v7581_v6 }
 0x2cc   :  { %v8128_v30 = vpop.permute.xlu0 %2193  ;;  %v8130_v57 = vpop.permute.xlu1 %2195 }
 0x2cd   :  { %10840 = vst [vmem:[#allocation82_spill] sm:$0xff] %v8158_v34 }
 0x2ce   :  { %3105 = vrot.lane.b32.xlu0 %v8122_v47, %s6159_s0  ;;  %3107 = vrot.lane.b32.xlu1 %v8126_v25, %s6159_s0  ;;  %v10837_v25 = vld [vmem:[#allocation114_spill] sm:$0xff] }
 0x2cf   :  { %v8154_v47 = vmax.f32 %v10837_v25, %v7579_v5  ;;  %v10842_v5 = vld [vmem:[#allocation134_spill] sm:$0xff] }
 0x2d0   :  { %v8144_v62 = vpop.permute.xlu0 %2393  ;;  %v8146_v21 = vpop.permute.xlu1 %2395  ;;  %v8174_v25 = vmax.f32 %v10842_v5, %v7666_v41 }
 0x2d1   :  { %10835 = vst [vmem:[#allocation84_spill] sm:$0xff] %v8144_v62  ;;  %10836 = vst [vmem:[#allocation88_spill] sm:$0xff] %v8146_v21  ;;  %v10841_v21 = vld [vmem:[#allocation128_spill] sm:$0xff] }
 0x2d2   :  { %3109 = vrot.lane.b32.xlu0 %v8138_v54, %s6159_s0  ;;  %3111 = vrot.lane.b32.xlu1 %v8142_v22, %s6159_s0  ;;  %10838 = vst [vmem:[#allocation246_spill] sm:$0xff] %v8154_v47  ;;  %v8170_v62 = vmax.f32 %v10841_v21, %v7664_v15  ;;  %v10847_v15 = vld [vmem:[#allocation130_spill] sm:$0xff] }
 0x2d3   :  { %v8190_v21 = vmax.f32 %v10847_v15, %v7634_v53 }
 0x2d4   :  { %v8160_v0 = vpop.permute.xlu0 %2205  ;;  %v8162_v28 = vpop.permute.xlu1 %2207 }
 0x2d5   :  { %10848 = vst [vmem:[#allocation96_spill] sm:$0xff] %v8190_v21 }
 0x2d6   :  { %3113 = vrot.lane.b32.xlu0 %v8154_v47, %s6159_s0  ;;  %3115 = vrot.lane.b32.xlu1 %v8158_v34, %s6159_s0  ;;  %v10845_v34 = vld [vmem:[#allocation126_spill] sm:$0xff] }
 0x2d7   :  { %v8186_v47 = vmax.f32 %v10845_v34, %v7632_v26  ;;  %v10850_v26 = vld [vmem:[#allocation144_spill] sm:$0xff] }
 0x2d8   :  { %v8176_v6 = vpop.permute.xlu0 %2405  ;;  %v8178_v9 = vpop.permute.xlu1 %2407  ;;  %v8206_v34 = vmax.f32 %v10850_v26, %v7730_v12 }
 0x2d9   :  { %10843 = vst [vmem:[#allocation247_spill] sm:$0xff] %v8176_v6  ;;  %10844 = vst [vmem:[#allocation86_spill] sm:$0xff] %v8178_v9  ;;  %v10849_v9 = vld [vmem:[#allocation140_spill] sm:$0xff] }
 0x2da   :  { %3117 = vrot.lane.b32.xlu0 %v8170_v62, %s6159_s0  ;;  %3119 = vrot.lane.b32.xlu1 %v8174_v25, %s6159_s0  ;;  %10846 = vst [vmem:[#allocation92_spill] sm:$0xff] %v8186_v47  ;;  %v8202_v6 = vmax.f32 %v10849_v9, %v7728_v11  ;;  %v10854_v11 = vld [vmem:[#allocation141_spill] sm:$0xff] }
 0x2db   :  { %v8222_v9 = vmax.f32 %v10854_v11, %v7698_v33  ;;  %v8250_v11 = vmax.f32 %v7063_v20, %v7760_v61  ;;  %v8270_v61 = vmax.f32 %v7125_v55, %v7874_v42  ;;  %v8282_v42 = vmax.f32 %v7111_v38, %v7840_v14 }
 0x2dc   :  { %v8192_v41 = vpop.permute.xlu0 %2201  ;;  %v8194_v5 = vpop.permute.xlu1 %2203 }
 0x2de   :  { %3121 = vrot.lane.b32.xlu0 %v8186_v47, %s6159_s0  ;;  %3123 = vrot.lane.b32.xlu1 %v8190_v21, %s6159_s0  ;;  %v10853_v21 = vld [vmem:[#allocation139_spill] sm:$0xff] }
 0x2df   :  { %v8218_v47 = vmax.f32 %v10853_v21, %v7696_v31  ;;  %v8238_v31 = vmax.f32 %v7077_v3, %v7810_v39 }
 0x2e0   :  { %v8208_v53 = vpop.permute.xlu0 %2401  ;;  %v8210_v15 = vpop.permute.xlu1 %2403 }
 0x2e1   :  { %10851 = vst [vmem:[#allocation90_spill] sm:$0xff] %v8208_v53  ;;  %10852 = vst [vmem:[#allocation94_spill] sm:$0xff] %v8210_v15  ;;  %v8234_v15 = vmax.f32 %v7069_v1, %v7808_v16  ;;  %v8254_v1 = vmax.f32 %v7071_v32, %v7762_v24  ;;  %v8266_v32 = vmax.f32 %v7117_v4, %v7872_v58 }
 0x2e2   :  { %3125 = vrot.lane.b32.xlu0 %v8202_v6, %s6159_s0  ;;  %3127 = vrot.lane.b32.xlu1 %v8206_v34, %s6159_s0  ;;  %10855 = vst [vmem:[#allocation100_spill] sm:$0xff] %v8238_v31 }
 0x2e3   :  { %10856 = vst [vmem:[#allocation104_spill] sm:$0xff] %v8254_v1 }
 0x2e4   :  { %v8224_v12 = vpop.permute.xlu0 %2213  ;;  %v8226_v26 = vpop.permute.xlu1 %2215 }
 0x2e6   :  { %3129 = vrot.lane.b32.xlu0 %v8218_v47, %s6159_s0  ;;  %3131 = vrot.lane.b32.xlu1 %v8222_v9, %s6159_s0 }
 0x2e8   :  { %v8240_v33 = vpop.permute.xlu0 %2209  ;;  %v8242_v21 = vpop.permute.xlu1 %2211 }
 0x2ea   :  { %3133 = vrot.lane.b32.xlu0 %v8234_v15, %s6159_s0  ;;  %3135 = vrot.lane.b32.xlu1 %v8238_v31, %s6159_s0 }
 0x2ec   :  { %v3022_v3 = vpop.permute.xlu0 %3021  ;;  %v3024_v16 = vpop.permute.xlu1 %3023 }
 0x2ed   :  { %v3597_v39 = vmax.f32 %v7778_v29, %v3022_v3  ;;  %v3598_v53 = vmax.f32 %v7782_v18, %v3024_v16 }
 0x2ee   :  { %3137 = vrot.lane.b32.xlu0 %v8250_v11, %s6159_s0  ;;  %3139 = vrot.lane.b32.xlu1 %v8254_v1, %s6159_s0 }
 0x2ef   :  { %v3800_v31 = vadd.f32 %v7614_v7, %v3597_v39  ;;  %v3801_v20 = vadd.f32 %v7614_v7, %v3598_v53 }
 0x2f0   :  { %v3026_v24 = vpop.permute.xlu0 %3025  ;;  %v3028_v18 = vpop.permute.xlu1 %3027 }
 0x2f1   :  { %v3996_v29 = vmax.f32 %v3800_v31, 0.0  ;;  %v3997_v3 = vmax.f32 %v3801_v20, 0.0  ;;  %v3599_v16 = vmax.f32 %v7802_v36, %v3026_v24  ;;  %v3600_v1 = vmax.f32 %v7806_v17, %v3028_v18 }
 0x2f2   :  { %3141 = vrot.lane.b32.xlu0 %v8266_v32, %s6159_s0  ;;  %3143 = vrot.lane.b32.xlu1 %v8270_v61, %s6159_s0  ;;  %v8286_v36 = vmax.f32 %v7119_v59, %v7842_v13  ;;  %v8306_v18 = vmax.f32 %v7165_v10, %v7936_v51  ;;  %v10858_v10 = vld [vmem:[#allocation154_spill] sm:$0xff] }
 0x2f3   :  { %v5571_v4 = vpack.c.bf16 %v3996_v29, %v3996_v29  ;;  %v5572_v58 = vpack.c.bf16 %v3997_v3, %v3997_v3  ;;  %v3802_v53 = vadd.f32 %v7614_v7, %v3599_v16  ;;  %v3803_v55 = vadd.f32 %v7614_v7, %v3600_v1 }
 0x2f4   :  { %v3030_v17 = vpop.permute.xlu0 %3029  ;;  %v3032_v31 = vpop.permute.xlu1 %3031 }
 0x2f5   :  { %4977 = vst.msk [vmem:[%s10126_s3 + $0x30] sm:$0xf] %vm4964_vm1, %v5571_v4  ;;  %4978 = vst.msk [vmem:[%s10126_s3 + $0x34] sm:$0xf] %vm4964_vm1, %v5572_v58  ;;  %v3998_v1 = vmax.f32 %v3802_v53, 0.0  ;;  %v3999_v39 = vmax.f32 %v3803_v55, 0.0  ;;  %v3601_v38 = vmax.f32 %v7818_v46, %v3030_v17  ;;  %v3602_v14 = vmax.f32 %v7822_v23, %v3032_v31 }
 0x2f6   :  { %3145 = vrot.lane.b32.xlu0 %v8282_v42, %s6159_s0  ;;  %3147 = vrot.lane.b32.xlu1 %v8286_v36, %s6159_s0  ;;  %v10857_v46 = vld [vmem:[#allocation184_spill] sm:$0xff]  ;;  %v10859_v58 = vld [vmem:[#allocation26_spill] sm:$0xff] }
 0x2f7   :  { %v5573_v59 = vpack.c.bf16 %v3998_v1, %v3998_v1  ;;  %v5574_v13 = vpack.c.bf16 %v3999_v39, %v3999_v39  ;;  %v3804_v20 = vadd.f32 %v7614_v7, %v3601_v38  ;;  %v3805_v24 = vadd.f32 %v7614_v7, %v3602_v14  ;;  %v10860_v1 = vld [vmem:[#allocation189_spill] sm:$0xff]  ;;  %v10861_v39 = vld [vmem:[#allocation180_spill] sm:$0xff] }
 0x2f8   :  { %v8310_v29 = vmax.f32 %v10857_v46, %v7938_v19  ;;  %v3034_v23 = vpop.permute.xlu0 %3033  ;;  %v3036_v3 = vpop.permute.xlu1 %3035  ;;  %v8330_v38 = vmax.f32 %v10861_v39, %v10860_v1  ;;  %v10862_v14 = vld [vmem:[#allocation48_spill] sm:$0xff] }
 0x2f9   :  { %4979 = vst.msk [vmem:[%s10126_s3 + $0x38] sm:$0xf] %vm4964_vm1, %v5573_v59  ;;  %4980 = vst.msk [vmem:[%s10126_s3 + $0x3c] sm:$0xf] %vm4964_vm1, %v5574_v13  ;;  %v4000_v16 = vmax.f32 %v3804_v20, 0.0  ;;  %v4001_v4 = vmax.f32 %v3805_v24, 0.0  ;;  %v3603_v51 = vmax.f32 %v10858_v10, %v3034_v23  ;;  %v3604_v53 = vmax.f32 %v10859_v58, %v3036_v3 }
 0x2fa   :  { %3149 = vrot.lane.b32.xlu0 %v8306_v18, %s6159_s0  ;;  %3151 = vrot.lane.b32.xlu1 %v8310_v29, %s6159_s0  ;;  %v10863_v59 = vld [vmem:[#allocation181_spill] sm:$0xff]  ;;  %v10864_v3 = vld [vmem:[#allocation155_spill] sm:$0xff] }
 0x2fb   :  { %v5575_v19 = vpack.c.bf16 %v4000_v16, %v4000_v16  ;;  %v5576_v55 = vpack.c.bf16 %v4001_v4, %v4001_v4  ;;  %v3806_v17 = vadd.f32 %v7614_v7, %v3603_v51  ;;  %v3807_v31 = vadd.f32 %v7614_v7, %v3604_v53  ;;  %v10865_v4 = vld [vmem:[#allocation30_spill] sm:$0xff] }
 0x2fc   :  { %v8334_v13 = vmax.f32 %v10863_v59, %v10862_v14  ;;  %v3038_v20 = vpop.permute.xlu0 %3037  ;;  %v3040_v24 = vpop.permute.xlu1 %3039 }
 0x2fd   :  { %4981 = vst.msk [vmem:[%s10126_s3 + $0x40] sm:$0xf] %vm4964_vm1, %v5575_v19  ;;  %4982 = vst.msk [vmem:[%s10126_s3 + $0x44] sm:$0xf] %vm4964_vm1, %v5576_v55  ;;  %v4002_v46 = vmax.f32 %v3806_v17, 0.0  ;;  %v4003_v23 = vmax.f32 %v3807_v31, 0.0  ;;  %v3605_v16 = vmax.f32 %v10864_v3, %v3038_v20  ;;  %v3606_v10 = vmax.f32 %v10865_v4, %v3040_v24 }
 0x2fe   :  { %3153 = vrot.lane.b32.xlu0 %v8330_v38, %s6159_s0  ;;  %3155 = vrot.lane.b32.xlu1 %v8334_v13, %s6159_s0  ;;  %v10866_v55 = vld [vmem:[#allocation196_spill] sm:$0xff] }
 0x2ff   :  { %v5577_v51 = vpack.c.bf16 %v4002_v46, %v4002_v46  ;;  %v5578_v58 = vpack.c.bf16 %v4003_v23, %v4003_v23  ;;  %v3808_v53 = vadd.f32 %v7614_v7, %v3605_v16  ;;  %v3809_v19 = vadd.f32 %v7614_v7, %v3606_v10  ;;  %v10867_v31 = vld [vmem:[#allocation200_spill] sm:$0xff] }
 0x300   :  { %v8354_v17 = vmax.f32 %v10866_v55, %v8000_v49  ;;  %v8358_v1 = vmax.f32 %v10867_v31, %v8002_v50  ;;  %v3042_v39 = vpop.permute.xlu0 %3041  ;;  %v3044_v14 = vpop.permute.xlu1 %3043  ;;  %v10868_v49 = vld [vmem:[#allocation174_spill] sm:$0xff]  ;;  %v10869_v46 = vld [vmem:[#allocation40_spill] sm:$0xff] }
 0x301   :  { %4983 = vst.msk [vmem:[%s10126_s3 + $0x48] sm:$0xf] %vm4964_vm1, %v5577_v51  ;;  %4984 = vst.msk [vmem:[%s10126_s3 + $0x4c] sm:$0xf] %vm4964_vm1, %v5578_v58  ;;  %v4004_v59 = vmax.f32 %v3808_v53, 0.0  ;;  %v4005_v20 = vmax.f32 %v3809_v19, 0.0  ;;  %v3607_v24 = vmax.f32 %v10868_v49, %v3042_v39  ;;  %v3608_v23 = vmax.f32 %v10869_v46, %v3044_v14 }
 0x302   :  { %3157 = vrot.lane.b32.xlu0 %v8354_v17, %s6159_s0  ;;  %3159 = vrot.lane.b32.xlu1 %v8358_v1, %s6159_s0  ;;  %v10870_v10 = vld [vmem:[#allocation220_spill] sm:$0xff]  ;;  %v10871_v51 = vld [vmem:[#allocation195_spill] sm:$0xff]  ;;  %v10873_v19 = vld [vmem:[#allocation197_spill] sm:$0xff] }
 0x303   :  { %v5579_v50 = vpack.c.bf16 %v4004_v59, %v4004_v59  ;;  %v5580_v3 = vpack.c.bf16 %v4005_v20, %v4005_v20  ;;  %v3810_v16 = vadd.f32 %v7614_v7, %v3607_v24  ;;  %v3811_v4 = vadd.f32 %v7614_v7, %v3608_v23  ;;  %v10872_v53 = vld [vmem:[#allocation60_spill] sm:$0xff]  ;;  %v10874_v20 = vld [vmem:[#allocation166_spill] sm:$0xff] }
 0x304   :  { %v8378_v58 = vmax.f32 %v10871_v51, %v10870_v10  ;;  %v8382_v55 = vmax.f32 %v10873_v19, %v10872_v53  ;;  %v3046_v31 = vpop.permute.xlu0 %3045  ;;  %v3048_v39 = vpop.permute.xlu1 %3047  ;;  %v10875_v24 = vld [vmem:[#allocation34_spill] sm:$0xff] }
 0x305   :  { %4985 = vst.msk [vmem:[%s10126_s3 + $0x50] sm:$0xf] %vm4964_vm1, %v5579_v50  ;;  %4986 = vst.msk [vmem:[%s10126_s3 + $0x54] sm:$0xf] %vm4964_vm1, %v5580_v3  ;;  %v4006_v14 = vmax.f32 %v3810_v16, 0.0  ;;  %v4007_v59 = vmax.f32 %v3811_v4, 0.0  ;;  %v3609_v49 = vmax.f32 %v10874_v20, %v3046_v31  ;;  %v3610_v46 = vmax.f32 %v10875_v24, %v3048_v39 }
 0x306   :  { %3161 = vrot.lane.b32.xlu0 %v8378_v58, %s6159_s0  ;;  %3163 = vrot.lane.b32.xlu1 %v8382_v55, %s6159_s0  ;;  %v10876_v3 = vld [vmem:[#allocation212_spill] sm:$0xff] }
 0x307   :  { %v5581_v23 = vpack.c.bf16 %v4006_v14, %v4006_v14  ;;  %v5582_v10 = vpack.c.bf16 %v4007_v59, %v4007_v59  ;;  %v3812_v50 = vadd.f32 %v7614_v7, %v3609_v49  ;;  %v3813_v51 = vadd.f32 %v7614_v7, %v3610_v46  ;;  %v10877_v4 = vld [vmem:[#allocation216_spill] sm:$0xff] }
 0x308   :  { %v8402_v16 = vmax.f32 %v10876_v3, %v8064_v40  ;;  %v8406_v53 = vmax.f32 %v10877_v4, %v8066_v63  ;;  %v3050_v19 = vpop.permute.xlu0 %3049  ;;  %v3052_v31 = vpop.permute.xlu1 %3051  ;;  %v10878_v40 = vld [vmem:[#allocation188_spill] sm:$0xff] }
 0x309   :  { %4987 = vst.msk [vmem:[%s10126_s3 + $0x58] sm:$0xf] %vm4964_vm1, %v5581_v23  ;;  %4988 = vst.msk [vmem:[%s10126_s3 + $0x5c] sm:$0xf] %vm4964_vm1, %v5582_v10  ;;  %v4008_v39 = vmax.f32 %v3812_v50, 0.0  ;;  %v4009_v14 = vmax.f32 %v3813_v51, 0.0  ;;  %v3611_v59 = vmax.f32 %v10878_v40, %v3050_v19 }
 0x30a   :  { %v10879_v20 = vld [vmem:[#allocation44_spill] sm:$0xff]  ;;  %3165 = vrot.lane.b32.xlu0 %v8402_v16, %s6159_s0  ;;  %3167 = vrot.lane.b32.xlu1 %v8406_v53, %s6159_s0  ;;  %v10880_v10 = vld [vmem:[#allocation211_spill] sm:$0xff]  ;;  %v10881_v51 = vld [vmem:[#allocation213_spill] sm:$0xff] }
 0x30b   :  { %v3612_v49 = vmax.f32 %v10879_v20, %v3052_v31  ;;  %v5583_v63 = vpack.c.bf16 %v4008_v39, %v4008_v39  ;;  %v5584_v24 = vpack.c.bf16 %v4009_v14, %v4009_v14  ;;  %v3814_v46 = vadd.f32 %v7614_v7, %v3611_v59  ;;  %v10883_v40 = vld [vmem:[#allocation42_spill] sm:$0xff] }
 0x30c   :  { %v8426_v50 = vmax.f32 %v10880_v10, %v8032_v48  ;;  %v8430_v3 = vmax.f32 %v10881_v51, %v8034_v44  ;;  %v3054_v4 = vpop.permute.xlu0 %3053  ;;  %v3056_v19 = vpop.permute.xlu1 %3055  ;;  %v10882_v48 = vld [vmem:[#allocation178_spill] sm:$0xff] }
 0x30d   :  { %v3815_v23 = vadd.f32 %v7614_v7, %v3612_v49  ;;  %4989 = vst.msk [vmem:[%s10126_s3 + $0x60] sm:$0xf] %vm4964_vm1, %v5583_v63  ;;  %4990 = vst.msk [vmem:[%s10126_s3 + $0x64] sm:$0xf] %vm4964_vm1, %v5584_v24  ;;  %v4010_v31 = vmax.f32 %v3814_v46, 0.0  ;;  %v3613_v14 = vmax.f32 %v10882_v48, %v3054_v4  ;;  %v3614_v59 = vmax.f32 %v10883_v40, %v3056_v19  ;;  %v10884_v24 = vld [vmem:[#allocation5_spill] sm:$0xff] }
 0x30e   :  { %3169 = vrot.lane.b32.xlu0 %v8426_v50, %s6159_s0  ;;  %3171 = vrot.lane.b32.xlu1 %v8430_v3, %s6159_s0  ;;  %v8450_v46 = vmax.f32 %v10884_v24, %v8128_v30  ;;  %v10886_v30 = vld [vmem:[#allocation204_spill] sm:$0xff] }
 0x30f   :  { %v4011_v39 = vmax.f32 %v3815_v23, 0.0  ;;  %v5585_v44 = vpack.c.bf16 %v4010_v31, %v4010_v31  ;;  %v3816_v49 = vadd.f32 %v7614_v7, %v3613_v14  ;;  %v3817_v63 = vadd.f32 %v7614_v7, %v3614_v59  ;;  %v10885_v23 = vld [vmem:[#allocation225_spill] sm:$0xff]  ;;  %v10887_v48 = vld [vmem:[#allocation52_spill] sm:$0xff] }
 0x310   :  { %v8454_v10 = vmax.f32 %v10885_v23, %v8130_v57  ;;  %v3058_v51 = vpop.permute.xlu0 %3057  ;;  %v3060_v4 = vpop.permute.xlu1 %3059 }
 0x311   :  { %v5586_v20 = vpack.c.bf16 %v4011_v39, %v4011_v39  ;;  %4991 = vst.msk [vmem:[%s10126_s3 + $0x68] sm:$0xf] %vm4964_vm1, %v5585_v44  ;;  %v4012_v19 = vmax.f32 %v3816_v49, 0.0  ;;  %v4013_v31 = vmax.f32 %v3817_v63, 0.0  ;;  %v3615_v39 = vmax.f32 %v10886_v30, %v3058_v51  ;;  %v10889_v63 = vld [vmem:[#allocation8_spill] sm:$0xff] }
 0x312   :  { %v3616_v14 = vmax.f32 %v10887_v48, %v3060_v4  ;;  %3173 = vrot.lane.b32.xlu0 %v8450_v46, %s6159_s0  ;;  %3175 = vrot.lane.b32.xlu1 %v8454_v10, %s6159_s0  ;;  %v8478_v24 = vmax.f32 %v10889_v63, %v8098_v45  ;;  %v10891_v30 = vld [vmem:[#allocation56_spill] sm:$0xff] }
 0x313   :  { %4992 = vst.msk [vmem:[%s10126_s3 + $0x6c] sm:$0xf] %vm4964_vm1, %v5586_v20  ;;  %v5587_v57 = vpack.c.bf16 %v4012_v19, %v4012_v19  ;;  %v5588_v40 = vpack.c.bf16 %v4013_v31, %v4013_v31  ;;  %v3818_v59 = vadd.f32 %v7614_v7, %v3615_v39  ;;  %v10888_v20 = vld [vmem:[#allocation124_spill] sm:$0xff] }
 0x314   :  { %v3819_v44 = vadd.f32 %v7614_v7, %v3616_v14  ;;  %v8474_v49 = vmax.f32 %v10888_v20, %v8096_v2  ;;  %v3062_v23 = vpop.permute.xlu0 %3061  ;;  %v3064_v51 = vpop.permute.xlu1 %3063  ;;  %v10890_v2 = vld [vmem:[#allocation205_spill] sm:$0xff] }
 0x315   :  { %4993 = vst.msk [vmem:[%s10126_s3 + $0x70] sm:$0xf] %vm4964_vm1, %v5587_v57  ;;  %4994 = vst.msk [vmem:[%s10126_s3 + $0x74] sm:$0xf] %vm4964_vm1, %v5588_v40  ;;  %v4014_v4 = vmax.f32 %v3818_v59, 0.0  ;;  %v3617_v31 = vmax.f32 %v10890_v2, %v3062_v23  ;;  %v3618_v39 = vmax.f32 %v10891_v30, %v3064_v51  ;;  %v10892_v40 = vld [vmem:[#allocation237_spill] sm:$0xff] }
 0x316   :  { %v4015_v19 = vmax.f32 %v3819_v44, 0.0  ;;  %3177 = vrot.lane.b32.xlu0 %v8474_v49, %s6159_s0  ;;  %3179 = vrot.lane.b32.xlu1 %v8478_v24, %s6159_s0  ;;  %v8498_v59 = vmax.f32 %v10892_v40, %v8192_v41  ;;  %v10893_v44 = vld [vmem:[#allocation239_spill] sm:$0xff]  ;;  %v10894_v41 = vld [vmem:[#allocation194_spill] sm:$0xff] }
 0x317   :  { %v5589_v45 = vpack.c.bf16 %v4014_v4, %v4014_v4  ;;  %v3820_v14 = vadd.f32 %v7614_v7, %v3617_v31  ;;  %v3821_v57 = vadd.f32 %v7614_v7, %v3618_v39  ;;  %v8502_v20 = vmax.f32 %v10893_v44, %v8194_v5  ;;  %v10895_v2 = vld [vmem:[#allocation54_spill] sm:$0xff] }
 0x318   :  { %v5590_v48 = vpack.c.bf16 %v4015_v19, %v4015_v19  ;;  %v3066_v63 = vpop.permute.xlu0 %3065  ;;  %v3068_v23 = vpop.permute.xlu1 %3067 }
 0x319   :  { %4995 = vst.msk [vmem:[%s10126_s3 + $0x78] sm:$0xf] %vm4964_vm1, %v5589_v45  ;;  %v4016_v51 = vmax.f32 %v3820_v14, 0.0  ;;  %v4017_v4 = vmax.f32 %v3821_v57, 0.0  ;;  %v3619_v19 = vmax.f32 %v10894_v41, %v3066_v63  ;;  %v3620_v31 = vmax.f32 %v10895_v2, %v3068_v23  ;;  %v10897_v57 = vld [vmem:[#allocation238_spill] sm:$0xff]  ;;  %v10899_v41 = vld [vmem:[#allocation64_spill] sm:$0xff] }
 0x31a   :  { %4996 = vst.msk [vmem:[%s10126_s3 + $0x7c] sm:$0xf] %vm4964_vm1, %v5590_v48  ;;  %3181 = vrot.lane.b32.xlu0 %v8498_v59, %s6159_s0  ;;  %3183 = vrot.lane.b32.xlu1 %v8502_v20, %s6159_s0  ;;  %v10896_v48 = vld [vmem:[#allocation236_spill] sm:$0xff]  ;;  %v8526_v40 = vmax.f32 %v10897_v57, %v8162_v28 }
 0x31b   :  { %v5591_v5 = vpack.c.bf16 %v4016_v51, %v4016_v51  ;;  %v5592_v30 = vpack.c.bf16 %v4017_v4, %v4017_v4  ;;  %v3822_v39 = vadd.f32 %v7614_v7, %v3619_v19  ;;  %v3823_v45 = vadd.f32 %v7614_v7, %v3620_v31 }
 0x31c   :  { %v8522_v14 = vmax.f32 %v10896_v48, %v8160_v0  ;;  %v3070_v44 = vpop.permute.xlu0 %3069  ;;  %v3072_v63 = vpop.permute.xlu1 %3071  ;;  %v10898_v0 = vld [vmem:[#allocation221_spill] sm:$0xff] }
 0x31d   :  { %4997 = vst.msk [vmem:[%s10126_s3 + $0x80] sm:$0xf] %vm4964_vm1, %v5591_v5  ;;  %4998 = vst.msk [vmem:[%s10126_s3 + $0x84] sm:$0xf] %vm4964_vm1, %v5592_v30  ;;  %v4018_v23 = vmax.f32 %v3822_v39, 0.0  ;;  %v4019_v51 = vmax.f32 %v3823_v45, 0.0  ;;  %v3621_v4 = vmax.f32 %v10898_v0, %v3070_v44  ;;  %v3622_v19 = vmax.f32 %v10899_v41, %v3072_v63 }
 0x31e   :  { %3185 = vrot.lane.b32.xlu0 %v8522_v14, %s6159_s0  ;;  %3187 = vrot.lane.b32.xlu1 %v8526_v40, %s6159_s0  ;;  %v10900_v30 = vld [vmem:[#allocation249_spill] sm:$0xff]  ;;  %v10903_v0 = vld [vmem:[#allocation62_spill] sm:$0xff] }
 0x31f   :  { %v5593_v28 = vpack.c.bf16 %v4018_v23, %v4018_v23  ;;  %v5594_v2 = vpack.c.bf16 %v4019_v51, %v4019_v51  ;;  %v3824_v31 = vadd.f32 %v7614_v7, %v3621_v4  ;;  %v3825_v5 = vadd.f32 %v7614_v7, %v3622_v19  ;;  %v10901_v45 = vld [vmem:[#allocation253_spill] sm:$0xff] }
 0x320   :  { %v8546_v39 = vmax.f32 %v10900_v30, %v8240_v33  ;;  %v8550_v48 = vmax.f32 %v10901_v45, %v8242_v21  ;;  %v3074_v57 = vpop.permute.xlu0 %3073  ;;  %v3076_v44 = vpop.permute.xlu1 %3075  ;;  %v10902_v33 = vld [vmem:[#allocation210_spill] sm:$0xff] }
 0x321   :  { %4999 = vst.msk [vmem:[%s10126_s3 + $0x88] sm:$0xf] %vm4964_vm1, %v5593_v28  ;;  %5000 = vst.msk [vmem:[%s10126_s3 + $0x8c] sm:$0xf] %vm4964_vm1, %v5594_v2  ;;  %v4020_v63 = vmax.f32 %v3824_v31, 0.0  ;;  %v4021_v23 = vmax.f32 %v3825_v5, 0.0  ;;  %v3623_v51 = vmax.f32 %v10902_v33, %v3074_v57  ;;  %v3624_v4 = vmax.f32 %v10903_v0, %v3076_v44 }
 0x322   :  { %3189 = vrot.lane.b32.xlu0 %v8546_v39, %s6159_s0  ;;  %3191 = vrot.lane.b32.xlu1 %v8550_v48, %s6159_s0  ;;  %v8570_v28 = vld [vmem:[%s10125_s2] ss:$0 sm:$0xff]  ;;  %v10904_v31 = vld [vmem:[#allocation248_spill] sm:$0xff] }
 0x323   :  { %v5595_v21 = vpack.c.bf16 %v4020_v63, %v4020_v63  ;;  %v5596_v41 = vpack.c.bf16 %v4021_v23, %v4021_v23  ;;  %v3826_v19 = vadd.f32 %v7614_v7, %v3623_v51  ;;  %v3827_v2 = vadd.f32 %v8570_v28, %v3624_v4  ;;  %v10905_v30 = vld [vmem:[#allocation250_spill] sm:$0xff]  ;;  %v10906_v4 = vld [vmem:[#allocation132_spill] sm:$0xff] }
 0x324   :  { %v8575_v5 = vmax.f32 %v10904_v31, %v8224_v12  ;;  %v8579_v45 = vmax.f32 %v10905_v30, %v8226_v26  ;;  %v3078_v57 = vpop.permute.xlu0 %3077  ;;  %v3080_v44 = vpop.permute.xlu1 %3079 }
 0x325   :  { %5001 = vst.msk [vmem:[%s10126_s3 + $0x90] sm:$0xf] %vm4964_vm1, %v5595_v21  ;;  %5002 = vst.msk [vmem:[%s10126_s3 + $0x94] sm:$0xf] %vm4964_vm1, %v5596_v41  ;;  %v4022_v7 = vmax.f32 %v3826_v19, 0.0  ;;  %v4023_v63 = vmax.f32 %v3827_v2, 0.0  ;;  %v3625_v12 = vmax.f32 %v8010_v35, %v3078_v57  ;;  %v3626_v23 = vmax.f32 %v8014_v43, %v3080_v44 }
 0x326   :  { %3193 = vrot.lane.b32.xlu0 %v8575_v5, %s6159_s0  ;;  %3195 = vrot.lane.b32.xlu1 %v8579_v45, %s6159_s0  ;;  %v10907_v21 = vld [vmem:[#allocation4_spill] sm:$0xff]  ;;  %v10909_v35 = vld [vmem:[#allocation9_spill] sm:$0xff]  ;;  %v10910_v44 = vld [vmem:[#allocation230_spill] sm:$0xff] }
 0x327   :  { %v5597_v26 = vpack.c.bf16 %v4022_v7, %v4022_v7  ;;  %v5598_v33 = vpack.c.bf16 %v4023_v63, %v4023_v63  ;;  %v3828_v51 = vadd.f32 %v8570_v28, %v3625_v12  ;;  %v3829_v0 = vadd.f32 %v8570_v28, %v3626_v23  ;;  %v10908_v19 = vld [vmem:[#allocation136_spill] sm:$0xff] }
 0x328   :  { %v8599_v41 = vmax.f32 %v10907_v21, %v10906_v4  ;;  %v8603_v2 = vmax.f32 %v10909_v35, %v10908_v19  ;;  %v3082_v43 = vpop.permute.xlu0 %3081  ;;  %v3084_v31 = vpop.permute.xlu1 %3083  ;;  %v10911_v63 = vld [vmem:[#allocation72_spill] sm:$0xff]  ;;  %v10915_v35 = vld [vmem:[#allocation7_spill] sm:$0xff] }
 0x329   :  { %5003 = vst.msk [vmem:[%s10126_s3 + $0x98] sm:$0xf] %vm4964_vm1, %v5597_v26  ;;  %5004 = vst.msk [vmem:[%s10126_s3 + $0x9c] sm:$0xf] %vm4964_vm1, %v5598_v33  ;;  %v4024_v30 = vmax.f32 %v3828_v51, 0.0  ;;  %v4025_v57 = vmax.f32 %v3829_v0, 0.0  ;;  %v3627_v7 = vmax.f32 %v10910_v44, %v3082_v43  ;;  %v3628_v12 = vmax.f32 %v10911_v63, %v3084_v31 }
 0x32a   :  { %3197 = vrot.lane.b32.xlu0 %v8599_v41, %s6159_s0  ;;  %3199 = vrot.lane.b32.xlu1 %v8603_v2, %s6159_s0  ;;  %v10912_v19 = vld [vmem:[#allocation120_spill] sm:$0xff]  ;;  %v10913_v33 = vld [vmem:[#allocation3_spill] sm:$0xff]  ;;  %v10914_v0 = vld [vmem:[#allocation133_spill] sm:$0xff] }
 0x32b   :  { %v5599_v23 = vpack.c.bf16 %v4024_v30, %v4024_v30  ;;  %v5600_v4 = vpack.c.bf16 %v4025_v57, %v4025_v57  ;;  %v3830_v26 = vadd.f32 %v8570_v28, %v3627_v7  ;;  %v3831_v21 = vadd.f32 %v8570_v28, %v3628_v12 }
 0x32c   :  { %v8623_v51 = vmax.f32 %v10913_v33, %v10912_v19  ;;  %v8627_v43 = vmax.f32 %v10915_v35, %v10914_v0  ;;  %v3086_v31 = vpop.permute.xlu0 %3085  ;;  %v3088_v44 = vpop.permute.xlu1 %3087  ;;  %v10917_v0 = vld [vmem:[#allocation142_spill] sm:$0xff] }
 0x32d   :  { %5005 = vst.msk [vmem:[%s10126_s3 + $0xa0] sm:$0xf] %vm4964_vm1, %v5599_v23  ;;  %5006 = vst.msk [vmem:[%s10126_s3 + $0xa4] sm:$0xf] %vm4964_vm1, %v5600_v4  ;;  %v4026_v30 = vmax.f32 %v3830_v26, 0.0  ;;  %v4027_v57 = vmax.f32 %v3831_v21, 0.0  ;;  %v3629_v7 = vmax.f32 %v8042_v52, %v3086_v31  ;;  %v3630_v63 = vmax.f32 %v8046_v60, %v3088_v44 }
 0x32e   :  { %10916 = vst [vmem:[#allocation98_spill] sm:$0xff] %v8627_v43  ;;  %3201 = vrot.lane.b32.xlu0 %v8623_v51, %s6159_s0  ;;  %3203 = vrot.lane.b32.xlu1 %v8627_v43, %s6159_s0  ;;  %v10918_v4 = vld [vmem:[#allocation13_spill] sm:$0xff]  ;;  %v10919_v21 = vld [vmem:[#allocation143_spill] sm:$0xff] }
 0x32f   :  { %v5601_v12 = vpack.c.bf16 %v4026_v30, %v4026_v30  ;;  %v5602_v19 = vpack.c.bf16 %v4027_v57, %v4027_v57  ;;  %v3832_v23 = vadd.f32 %v8570_v28, %v3629_v7  ;;  %v3833_v33 = vadd.f32 %v8570_v28, %v3630_v63  ;;  %v10920_v52 = vld [vmem:[#allocation17_spill] sm:$0xff]  ;;  %v10921_v57 = vld [vmem:[#allocation6_spill] sm:$0xff] }
 0x330   :  { %v8647_v26 = vmax.f32 %v10918_v4, %v10917_v0  ;;  %v8651_v35 = vmax.f32 %v10920_v52, %v10919_v21  ;;  %v3090_v60 = vpop.permute.xlu0 %3089  ;;  %v3092_v31 = vpop.permute.xlu1 %3091  ;;  %v10922_v63 = vld [vmem:[#allocation70_spill] sm:$0xff]  ;;  %v10923_v43 = vld [vmem:[#allocation137_spill] sm:$0xff] }
 0x331   :  { %5007 = vst.msk [vmem:[%s10126_s3 + $0xa8] sm:$0xf] %vm4964_vm1, %v5601_v12  ;;  %5008 = vst.msk [vmem:[%s10126_s3 + $0xac] sm:$0xf] %vm4964_vm1, %v5602_v19  ;;  %v4028_v44 = vmax.f32 %v3832_v23, 0.0  ;;  %v4029_v30 = vmax.f32 %v3833_v33, 0.0  ;;  %v3631_v7 = vmax.f32 %v10921_v57, %v3090_v60  ;;  %v3632_v0 = vmax.f32 %v10922_v63, %v3092_v31 }
 0x332   :  { %3205 = vrot.lane.b32.xlu0 %v8647_v26, %s6159_s0  ;;  %3207 = vrot.lane.b32.xlu1 %v8651_v35, %s6159_s0  ;;  %v10924_v19 = vld [vmem:[#allocation11_spill] sm:$0xff]  ;;  %v10926_v33 = vld [vmem:[#allocation138_spill] sm:$0xff] }
 0x333   :  { %v5603_v4 = vpack.c.bf16 %v4028_v44, %v4028_v44  ;;  %v5604_v21 = vpack.c.bf16 %v4029_v30, %v4029_v30  ;;  %v3834_v12 = vadd.f32 %v8570_v28, %v3631_v7  ;;  %v3835_v52 = vadd.f32 %v8570_v28, %v3632_v0  ;;  %v10927_v60 = vld [vmem:[#allocation15_spill] sm:$0xff] }
 0x334   :  { %v8671_v23 = vmax.f32 %v10924_v19, %v10923_v43  ;;  %v8675_v57 = vmax.f32 %v10927_v60, %v10926_v33  ;;  %v3094_v31 = vpop.permute.xlu0 %3093  ;;  %v3096_v63 = vpop.permute.xlu1 %3095  ;;  %v10929_v60 = vld [vmem:[#allocation152_spill] sm:$0xff] }
 0x335   :  { %5009 = vst.msk [vmem:[%s10126_s3 + $0xb0] sm:$0xf] %vm4964_vm1, %v5603_v4  ;;  %5010 = vst.msk [vmem:[%s10126_s3 + $0xb4] sm:$0xf] %vm4964_vm1, %v5604_v21  ;;  %v4030_v44 = vmax.f32 %v3834_v12, 0.0  ;;  %v4031_v30 = vmax.f32 %v3835_v52, 0.0  ;;  %v3633_v43 = vmax.f32 %v8074_v56, %v3094_v31  ;;  %v3634_v7 = vmax.f32 %v8078_v8, %v3096_v63 }
 0x336   :  { %10925 = vst [vmem:[#allocation102_spill] sm:$0xff] %v8671_v23  ;;  %10928 = vst [vmem:[#allocation108_spill] sm:$0xff] %v8675_v57  ;;  %3209 = vrot.lane.b32.xlu0 %v8671_v23, %s6159_s0  ;;  %3211 = vrot.lane.b32.xlu1 %v8675_v57, %s6159_s0  ;;  %v10930_v21 = vld [vmem:[#allocation21_spill] sm:$0xff]  ;;  %v10935_v23 = vld [vmem:[#allocation150_spill] sm:$0xff] }
 0x337   :  { %v5605_v0 = vpack.c.bf16 %v4030_v44, %v4030_v44  ;;  %v5606_v19 = vpack.c.bf16 %v4031_v30, %v4031_v30  ;;  %v3836_v4 = vadd.f32 %v8570_v28, %v3633_v43  ;;  %v3837_v33 = vadd.f32 %v8570_v28, %v3634_v7  ;;  %v10931_v52 = vld [vmem:[#allocation153_spill] sm:$0xff]  ;;  %v10933_v43 = vld [vmem:[#allocation16_spill] sm:$0xff] }
 0x338   :  { %v8695_v12 = vmax.f32 %v10930_v21, %v10929_v60  ;;  %v10932_v56 = vld [vmem:[#allocation25_spill] sm:$0xff]  ;;  %v3098_v8 = vpop.permute.xlu0 %3097  ;;  %v3100_v63 = vpop.permute.xlu1 %3099  ;;  %v10934_v60 = vld [vmem:[#allocation80_spill] sm:$0xff] }
 0x339   :  { %v8699_v31 = vmax.f32 %v10932_v56, %v10931_v52  ;;  %5011 = vst.msk [vmem:[%s10126_s3 + $0xb8] sm:$0xf] %vm4964_vm1, %v5605_v0  ;;  %5012 = vst.msk [vmem:[%s10126_s3 + $0xbc] sm:$0xf] %vm4964_vm1, %v5606_v19  ;;  %v4032_v44 = vmax.f32 %v3836_v4, 0.0  ;;  %v4033_v30 = vmax.f32 %v3837_v33, 0.0  ;;  %v3635_v7 = vmax.f32 %v10933_v43, %v3098_v8 }
 0x33a   :  { %v3636_v21 = vmax.f32 %v10934_v60, %v3100_v63  ;;  %3213 = vrot.lane.b32.xlu0 %v8695_v12, %s6159_s0  ;;  %v10936_v19 = vld [vmem:[#allocation19_spill] sm:$0xff] }
 0x33b   :  { %3215 = vrot.lane.b32.xlu1 %v8699_v31, %s6159_s0  ;;  %v5607_v52 = vpack.c.bf16 %v4032_v44, %v4032_v44  ;;  %v5608_v56 = vpack.c.bf16 %v4033_v30, %v4033_v30  ;;  %v3838_v0 = vadd.f32 %v8570_v28, %v3635_v7  ;;  %v8719_v4 = vmax.f32 %v10936_v19, %v10935_v23  ;;  %v10938_v33 = vld [vmem:[#allocation151_spill] sm:$0xff] }
 0x33c   :  { %v3839_v57 = vadd.f32 %v8570_v28, %v3636_v21  ;;  %v10939_v8 = vld [vmem:[#allocation23_spill] sm:$0xff]  ;;  %v3102_v63 = vpop.permute.xlu0 %3101  ;;  %v3104_v60 = vpop.permute.xlu1 %3103 }
 0x33d   :  { %10937 = vst [vmem:[#allocation112_spill] sm:$0xff] %v8719_v4  ;;  %v8723_v43 = vmax.f32 %v10939_v8, %v10938_v33  ;;  %5013 = vst.msk [vmem:[%s10126_s3 + $0xc0] sm:$0xf] %vm4964_vm1, %v5607_v52  ;;  %v4034_v44 = vmax.f32 %v3838_v0, 0.0  ;;  %v3637_v23 = vmax.f32 %v8106_v27, %v3102_v63  ;;  %v3638_v7 = vmax.f32 %v8110_v37, %v3104_v60  ;;  %v10941_v8 = vld [vmem:[#allocation164_spill] sm:$0xff]  ;;  %v10944_v27 = vld [vmem:[#allocation33_spill] sm:$0xff] }
 0x33e   :  { %5014 = vst.msk [vmem:[%s10126_s3 + $0xc4] sm:$0xf] %vm4964_vm1, %v5608_v56  ;;  %v4035_v30 = vmax.f32 %v3839_v57, 0.0  ;;  %3217 = vrot.lane.b32.xlu0 %v8719_v4, %s6159_s0  ;;  %v10942_v56 = vld [vmem:[#allocation29_spill] sm:$0xff]  ;;  %v10947_v4 = vld [vmem:[#allocation156_spill] sm:$0xff] }
 0x33f   :  { %10940 = vst [vmem:[#allocation106_spill] sm:$0xff] %v8723_v43  ;;  %3219 = vrot.lane.b32.xlu1 %v8723_v43, %s6159_s0  ;;  %v5609_v21 = vpack.c.bf16 %v4034_v44, %v4034_v44  ;;  %v3840_v52 = vadd.f32 %v8570_v28, %v3637_v23  ;;  %v3841_v33 = vadd.f32 %v8570_v28, %v3638_v7  ;;  %v10943_v57 = vld [vmem:[#allocation165_spill] sm:$0xff]  ;;  %v10945_v23 = vld [vmem:[#allocation235_spill] sm:$0xff] }
 0x340   :  { %v5610_v19 = vpack.c.bf16 %v4035_v30, %v4035_v30  ;;  %v8743_v0 = vmax.f32 %v10942_v56, %v10941_v8  ;;  %v8747_v63 = vmax.f32 %v10944_v27, %v10943_v57  ;;  %v3106_v37 = vpop.permute.xlu0 %3105  ;;  %v3108_v60 = vpop.permute.xlu1 %3107  ;;  %v10946_v8 = vld [vmem:[#allocation78_spill] sm:$0xff] }
 0x341   :  { %5015 = vst.msk [vmem:[%s10126_s3 + $0xc8] sm:$0xf] %vm4964_vm1, %v5609_v21  ;;  %v4036_v44 = vmax.f32 %v3840_v52, 0.0  ;;  %v4037_v30 = vmax.f32 %v3841_v33, 0.0  ;;  %v3639_v7 = vmax.f32 %v10945_v23, %v3106_v37  ;;  %v3640_v56 = vmax.f32 %v10946_v8, %v3108_v60  ;;  %v10950_v33 = vld [vmem:[#allocation157_spill] sm:$0xff]  ;;  %v10951_v37 = vld [vmem:[#allocation31_spill] sm:$0xff] }
 0x342   :  { %5016 = vst.msk [vmem:[%s10126_s3 + $0xcc] sm:$0xf] %vm4964_vm1, %v5610_v19  ;;  %3221 = vrot.lane.b32.xlu0 %v8743_v0, %s6159_s0  ;;  %v10948_v19 = vld [vmem:[#allocation27_spill] sm:$0xff]  ;;  %v8771_v23 = vmax.f32 %v10951_v37, %v10950_v33  ;;  %v10953_v37 = vld [vmem:[#allocation176_spill] sm:$0xff] }
 0x343   :  { %3223 = vrot.lane.b32.xlu1 %v8747_v63, %s6159_s0  ;;  %v5611_v57 = vpack.c.bf16 %v4036_v44, %v4036_v44  ;;  %v5612_v27 = vpack.c.bf16 %v4037_v30, %v4037_v30  ;;  %v3842_v21 = vadd.f32 %v8570_v28, %v3639_v7  ;;  %v3843_v43 = vadd.f32 %v8570_v28, %v3640_v56 }
 0x344   :  { %v8767_v52 = vmax.f32 %v10948_v19, %v10947_v4  ;;  %10952 = vst [vmem:[#allocation116_spill] sm:$0xff] %v8771_v23  ;;  %v3110_v60 = vpop.permute.xlu0 %3109  ;;  %v3112_v8 = vpop.permute.xlu1 %3111 }
 0x345   :  { %5017 = vst.msk [vmem:[%s10126_s3 + $0xd0] sm:$0xf] %vm4964_vm1, %v5611_v57  ;;  %5018 = vst.msk [vmem:[%s10126_s3 + $0xd4] sm:$0xf] %vm4964_vm1, %v5612_v27  ;;  %v4038_v44 = vmax.f32 %v3842_v21, 0.0  ;;  %v4039_v30 = vmax.f32 %v3843_v43, 0.0  ;;  %v3641_v4 = vmax.f32 %v8138_v54, %v3110_v60  ;;  %v3642_v7 = vmax.f32 %v8142_v22, %v3112_v8 }
 0x346   :  { %10949 = vst [vmem:[#allocation110_spill] sm:$0xff] %v8767_v52  ;;  %3225 = vrot.lane.b32.xlu0 %v8767_v52, %s6159_s0  ;;  %v10954_v27 = vld [vmem:[#allocation37_spill] sm:$0xff]  ;;  %v10959_v52 = vld [vmem:[#allocation168_spill] sm:$0xff] }
 0x347   :  { %3227 = vrot.lane.b32.xlu1 %v8771_v23, %s6159_s0  ;;  %v5613_v56 = vpack.c.bf16 %v4038_v44, %v4038_v44  ;;  %v5614_v19 = vpack.c.bf16 %v4039_v30, %v4039_v30  ;;  %v3844_v57 = vadd.f32 %v8570_v28, %v3641_v4  ;;  %v3845_v33 = vadd.f32 %v8570_v28, %v3642_v7  ;;  %v10955_v43 = vld [vmem:[#allocation177_spill] sm:$0xff]  ;;  %v10957_v4 = vld [vmem:[#allocation246_spill] sm:$0xff] }
 0x348   :  { %v8791_v21 = vmax.f32 %v10954_v27, %v10953_v37  ;;  %v10956_v54 = vld [vmem:[#allocation41_spill] sm:$0xff]  ;;  %v3114_v22 = vpop.permute.xlu0 %3113  ;;  %v3116_v8 = vpop.permute.xlu1 %3115  ;;  %v10958_v37 = vld [vmem:[#allocation82_spill] sm:$0xff] }
 0x349   :  { %v8795_v60 = vmax.f32 %v10956_v54, %v10955_v43  ;;  %5019 = vst.msk [vmem:[%s10126_s3 + $0xd8] sm:$0xf] %vm4964_vm1, %v5613_v56  ;;  %5020 = vst.msk [vmem:[%s10126_s3 + $0xdc] sm:$0xf] %vm4964_vm1, %v5614_v19  ;;  %v4040_v44 = vmax.f32 %v3844_v57, 0.0  ;;  %v4041_v30 = vmax.f32 %v3845_v33, 0.0  ;;  %v3643_v7 = vmax.f32 %v10957_v4, %v3114_v22 }
 0x34a   :  { %v3644_v27 = vmax.f32 %v10958_v37, %v3116_v8  ;;  %3229 = vrot.lane.b32.xlu0 %v8791_v21, %s6159_s0  ;;  %v10960_v19 = vld [vmem:[#allocation35_spill] sm:$0xff]  ;;  %v10962_v33 = vld [vmem:[#allocation169_spill] sm:$0xff] }
 0x34b   :  { %3231 = vrot.lane.b32.xlu1 %v8795_v60, %s6159_s0  ;;  %v5615_v43 = vpack.c.bf16 %v4040_v44, %v4040_v44  ;;  %v5616_v54 = vpack.c.bf16 %v4041_v30, %v4041_v30  ;;  %v3846_v56 = vadd.f32 %v8570_v28, %v3643_v7  ;;  %v8815_v57 = vmax.f32 %v10960_v19, %v10959_v52  ;;  %v10963_v22 = vld [vmem:[#allocation39_spill] sm:$0xff] }
 0x34c   :  { %v3847_v23 = vadd.f32 %v8570_v28, %v3644_v27  ;;  %v8819_v4 = vmax.f32 %v10963_v22, %v10962_v33  ;;  %v3118_v8 = vpop.permute.xlu0 %3117  ;;  %v3120_v37 = vpop.permute.xlu1 %3119  ;;  %v10965_v22 = vld [vmem:[#allocation191_spill] sm:$0xff] }
 0x34d   :  { %10961 = vst [vmem:[#allocation122_spill] sm:$0xff] %v8815_v57  ;;  %5021 = vst.msk [vmem:[%s10126_s3 + $0xe0] sm:$0xf] %vm4964_vm1, %v5615_v43  ;;  %v4042_v44 = vmax.f32 %v3846_v56, 0.0  ;;  %v3645_v52 = vmax.f32 %v8170_v62, %v3118_v8  ;;  %v3646_v7 = vmax.f32 %v8174_v25, %v3120_v37  ;;  %v10968_v62 = vld [vmem:[#allocation49_spill] sm:$0xff] }
 0x34e   :  { %10964 = vst [vmem:[#allocation114_spill] sm:$0xff] %v8819_v4  ;;  %5022 = vst.msk [vmem:[%s10126_s3 + $0xe4] sm:$0xf] %vm4964_vm1, %v5616_v54  ;;  %v4043_v30 = vmax.f32 %v3847_v23, 0.0  ;;  %3233 = vrot.lane.b32.xlu0 %v8815_v57, %s6159_s0  ;;  %v10966_v54 = vld [vmem:[#allocation45_spill] sm:$0xff]  ;;  %v10967_v23 = vld [vmem:[#allocation192_spill] sm:$0xff] }
 0x34f   :  { %3235 = vrot.lane.b32.xlu1 %v8819_v4, %s6159_s0  ;;  %v5617_v27 = vpack.c.bf16 %v4042_v44, %v4042_v44  ;;  %v3848_v43 = vadd.f32 %v8570_v28, %v3645_v52  ;;  %v3849_v33 = vadd.f32 %v8570_v28, %v3646_v7  ;;  %v8839_v56 = vmax.f32 %v10966_v54, %v10965_v22  ;;  %v10969_v52 = vld [vmem:[#allocation92_spill] sm:$0xff]  ;;  %v10971_v57 = vld [vmem:[#allocation182_spill] sm:$0xff] }
 0x350   :  { %v5618_v19 = vpack.c.bf16 %v4043_v30, %v4043_v30  ;;  %v8843_v8 = vmax.f32 %v10968_v62, %v10967_v23  ;;  %v3122_v25 = vpop.permute.xlu0 %3121  ;;  %v3124_v37 = vpop.permute.xlu1 %3123  ;;  %v10970_v22 = vld [vmem:[#allocation96_spill] sm:$0xff] }
 0x351   :  { %5023 = vst.msk [vmem:[%s10126_s3 + $0xe8] sm:$0xf] %vm4964_vm1, %v5617_v27  ;;  %v4044_v44 = vmax.f32 %v3848_v43, 0.0  ;;  %v4045_v30 = vmax.f32 %v3849_v33, 0.0  ;;  %v3647_v7 = vmax.f32 %v10969_v52, %v3122_v25  ;;  %v3648_v54 = vmax.f32 %v10970_v22, %v3124_v37  ;;  %v10973_v33 = vld [vmem:[#allocation183_spill] sm:$0xff] }
 0x352   :  { %5024 = vst.msk [vmem:[%s10126_s3 + $0xec] sm:$0xf] %vm4964_vm1, %v5618_v19  ;;  %3237 = vrot.lane.b32.xlu0 %v8839_v56, %s6159_s0  ;;  %v10972_v19 = vld [vmem:[#allocation43_spill] sm:$0xff] }
 0x353   :  { %3239 = vrot.lane.b32.xlu1 %v8843_v8, %s6159_s0  ;;  %v5619_v23 = vpack.c.bf16 %v4044_v44, %v4044_v44  ;;  %v5620_v62 = vpack.c.bf16 %v4045_v30, %v4045_v30  ;;  %v3850_v27 = vadd.f32 %v8570_v28, %v3647_v7  ;;  %v3851_v4 = vadd.f32 %v8570_v28, %v3648_v54  ;;  %v10974_v25 = vld [vmem:[#allocation47_spill] sm:$0xff] }
 0x354   :  { %v8863_v43 = vmax.f32 %v10972_v19, %v10971_v57  ;;  %v8867_v52 = vmax.f32 %v10974_v25, %v10973_v33  ;;  %v3126_v37 = vpop.permute.xlu0 %3125  ;;  %v3128_v22 = vpop.permute.xlu1 %3127  ;;  %v10975_v25 = vld [vmem:[#allocation207_spill] sm:$0xff] }
 0x355   :  { %5025 = vst.msk [vmem:[%s10126_s3 + $0xf0] sm:$0xf] %vm4964_vm1, %v5619_v23  ;;  %5026 = vst.msk [vmem:[%s10126_s3 + $0xf4] sm:$0xf] %vm4964_vm1, %v5620_v62  ;;  %v4046_v44 = vmax.f32 %v3850_v27, 0.0  ;;  %v4047_v30 = vmax.f32 %v3851_v4, 0.0  ;;  %v3649_v57 = vmax.f32 %v8202_v6, %v3126_v37  ;;  %v3650_v7 = vmax.f32 %v8206_v34, %v3128_v22 }
 0x356   :  { %3241 = vrot.lane.b32.xlu0 %v8863_v43, %s6159_s0  ;;  %v10976_v62 = vld [vmem:[#allocation53_spill] sm:$0xff]  ;;  %v10977_v4 = vld [vmem:[#allocation208_spill] sm:$0xff] }
 0x357   :  { %3243 = vrot.lane.b32.xlu1 %v8867_v52, %s6159_s0  ;;  %v5621_v54 = vpack.c.bf16 %v4046_v44, %v4046_v44  ;;  %v5622_v19 = vpack.c.bf16 %v4047_v30, %v4047_v30  ;;  %v3852_v23 = vadd.f32 %v8570_v28, %v3649_v57  ;;  %v3853_v33 = vadd.f32 %v8570_v28, %v3650_v7  ;;  %v10978_v6 = vld [vmem:[#allocation57_spill] sm:$0xff] }
 0x358   :  { %v8887_v27 = vmax.f32 %v10976_v62, %v10975_v25  ;;  %v8891_v37 = vmax.f32 %v10978_v6, %v10977_v4  ;;  %v3130_v34 = vpop.permute.xlu0 %3129  ;;  %v3132_v22 = vpop.permute.xlu1 %3131  ;;  %v10980_v6 = vld [vmem:[#allocation198_spill] sm:$0xff] }
 0x359   :  { %5027 = vst.msk [vmem:[%s10126_s3 + $0xf8] sm:$0xf] %vm4964_vm1, %v5621_v54  ;;  %5028 = vst.msk [vmem:[%s10126_s3 + $0xfc] sm:$0xf] %vm4964_vm1, %v5622_v19  ;;  %v4048_v44 = vmax.f32 %v3852_v23, 0.0  ;;  %v4049_v30 = vmax.f32 %v3853_v33, 0.0  ;;  %v3651_v57 = vmax.f32 %v8218_v47, %v3130_v34  ;;  %v3652_v7 = vmax.f32 %v8222_v9, %v3132_v22 }
 0x35a   :  { %10979 = vst [vmem:[#allocation118_spill] sm:$0xff] %v8891_v37  ;;  %3245 = vrot.lane.b32.xlu0 %v8887_v27, %s6159_s0  ;;  %v10981_v19 = vld [vmem:[#allocation51_spill] sm:$0xff] }
 0x35b   :  { %3247 = vrot.lane.b32.xlu1 %v8891_v37, %s6159_s0  ;;  %v5623_v25 = vpack.c.bf16 %v4048_v44, %v4048_v44  ;;  %v5624_v62 = vpack.c.bf16 %v4049_v30, %v4049_v30  ;;  %v3854_v54 = vadd.f32 %v8570_v28, %v3651_v57  ;;  %v3855_v4 = vadd.f32 %v8570_v28, %v3652_v7  ;;  %v10982_v33 = vld [vmem:[#allocation199_spill] sm:$0xff]  ;;  %v10985_v7 = vld [vmem:[#allocation100_spill] sm:$0xff]  ;;  %v10986_v37 = vld [vmem:[#allocation121_spill] sm:$0xff] }
 0x35c   :  { %v8911_v23 = vmax.f32 %v10981_v19, %v10980_v6  ;;  %v10983_v47 = vld [vmem:[#allocation55_spill] sm:$0xff]  ;;  %v3134_v9 = vpop.permute.xlu0 %3133  ;;  %v3136_v22 = vpop.permute.xlu1 %3135 }
 0x35d   :  { %v8915_v34 = vmax.f32 %v10983_v47, %v10982_v33  ;;  %5029 = vst.msk [vmem:[%s10126_s3 + $0x100] sm:$0xf] %vm4964_vm1, %v5623_v25  ;;  %5030 = vst.msk [vmem:[%s10126_s3 + $0x104] sm:$0xf] %vm4964_vm1, %v5624_v62  ;;  %v4050_v44 = vmax.f32 %v3854_v54, 0.0  ;;  %v4051_v30 = vmax.f32 %v3855_v4, 0.0  ;;  %v3653_v57 = vmax.f32 %v8234_v15, %v3134_v9 }
 0x35e   :  { %v3654_v6 = vmax.f32 %v10985_v7, %v3136_v22  ;;  %3249 = vrot.lane.b32.xlu0 %v8911_v23, %s6159_s0  ;;  %v10987_v62 = vld [vmem:[#allocation61_spill] sm:$0xff]  ;;  %v10988_v4 = vld [vmem:[#allocation2_spill] sm:$0xff] }
 0x35f   :  { %10984 = vst [vmem:[#allocation128_spill] sm:$0xff] %v8915_v34  ;;  %3251 = vrot.lane.b32.xlu1 %v8915_v34, %s6159_s0  ;;  %v5625_v19 = vpack.c.bf16 %v4050_v44, %v4050_v44  ;;  %v5626_v33 = vpack.c.bf16 %v4051_v30, %v4051_v30  ;;  %v3856_v25 = vadd.f32 %v8570_v28, %v3653_v57  ;;  %v10989_v15 = vld [vmem:[#allocation65_spill] sm:$0xff]  ;;  %v10990_v57 = vld [vmem:[#allocation104_spill] sm:$0xff]  ;;  %v10991_v34 = vld [vmem:[#allocation214_spill] sm:$0xff] }
 0x360   :  { %v3857_v47 = vadd.f32 %v8570_v28, %v3654_v6  ;;  %v8935_v54 = vmax.f32 %v10987_v62, %v10986_v37  ;;  %v8939_v9 = vmax.f32 %v10989_v15, %v10988_v4  ;;  %v3138_v22 = vpop.permute.xlu0 %3137  ;;  %v3140_v7 = vpop.permute.xlu1 %3139 }
 0x361   :  { %5031 = vst.msk [vmem:[%s10126_s3 + $0x108] sm:$0xf] %vm4964_vm1, %v5625_v19  ;;  %5032 = vst.msk [vmem:[%s10126_s3 + $0x10c] sm:$0xf] %vm4964_vm1, %v5626_v33  ;;  %v4052_v44 = vmax.f32 %v3856_v25, 0.0  ;;  %v3655_v37 = vmax.f32 %v8250_v11, %v3138_v22  ;;  %v3656_v6 = vmax.f32 %v10990_v57, %v3140_v7  ;;  %v10992_v33 = vld [vmem:[#allocation59_spill] sm:$0xff] }
 0x362   :  { %v4053_v30 = vmax.f32 %v3857_v47, 0.0  ;;  %3253 = vrot.lane.b32.xlu0 %v8935_v54, %s6159_s0  ;;  %v8959_v25 = vmax.f32 %v10992_v33, %v10991_v34  ;;  %v10993_v47 = vld [vmem:[#allocation215_spill] sm:$0xff] }
 0x363   :  { %3255 = vrot.lane.b32.xlu1 %v8939_v9, %s6159_s0  ;;  %v5627_v62 = vpack.c.bf16 %v4052_v44, %v4052_v44  ;;  %v3858_v19 = vadd.f32 %v8570_v28, %v3655_v37  ;;  %v3859_v15 = vadd.f32 %v8570_v28, %v3656_v6  ;;  %v10994_v11 = vld [vmem:[#allocation63_spill] sm:$0xff] }
 0x364   :  { %v5628_v4 = vpack.c.bf16 %v4053_v30, %v4053_v30  ;;  %v8963_v22 = vmax.f32 %v10994_v11, %v10993_v47  ;;  %v3142_v7 = vpop.permute.xlu0 %3141  ;;  %v3144_v57 = vpop.permute.xlu1 %3143  ;;  %v10995_v11 = vld [vmem:[#allocation232_spill] sm:$0xff] }
 0x365   :  { %5033 = vst.msk [vmem:[%s10126_s3 + $0x110] sm:$0xf] %vm4964_vm1, %v5627_v62  ;;  %v4054_v44 = vmax.f32 %v3858_v19, 0.0  ;;  %v4055_v30 = vmax.f32 %v3859_v15, 0.0  ;;  %v3657_v34 = vmax.f32 %v8266_v32, %v3142_v7  ;;  %v3658_v37 = vmax.f32 %v8270_v61, %v3144_v57  ;;  %v10997_v15 = vld [vmem:[#allocation233_spill] sm:$0xff] }
 0x366   :  { %5034 = vst.msk [vmem:[%s10126_s3 + $0x114] sm:$0xf] %vm4964_vm1, %v5628_v4  ;;  %3257 = vrot.lane.b32.xlu0 %v8959_v25, %s6159_s0  ;;  %v10996_v4 = vld [vmem:[#allocation69_spill] sm:$0xff] }
 0x367   :  { %3259 = vrot.lane.b32.xlu1 %v8963_v22, %s6159_s0  ;;  %v5629_v6 = vpack.c.bf16 %v4054_v44, %v4054_v44  ;;  %v5630_v33 = vpack.c.bf16 %v4055_v30, %v4055_v30  ;;  %v3860_v62 = vadd.f32 %v8570_v28, %v3657_v34  ;;  %v3861_v47 = vadd.f32 %v8570_v28, %v3658_v37  ;;  %v10998_v32 = vld [vmem:[#allocation73_spill] sm:$0xff] }
 0x368   :  { %v8983_v19 = vmax.f32 %v10996_v4, %v10995_v11  ;;  %v8987_v7 = vmax.f32 %v10998_v32, %v10997_v15  ;;  %v3146_v61 = vpop.permute.xlu0 %3145  ;;  %v3148_v57 = vpop.permute.xlu1 %3147  ;;  %v10999_v32 = vld [vmem:[#allocation223_spill] sm:$0xff] }
 0x369   :  { %5035 = vst.msk [vmem:[%s10126_s3 + $0x118] sm:$0xf] %vm4964_vm1, %v5629_v6  ;;  %5036 = vst.msk [vmem:[%s10126_s3 + $0x11c] sm:$0xf] %vm4964_vm1, %v5630_v33  ;;  %v4056_v44 = vmax.f32 %v3860_v62, 0.0  ;;  %v4057_v30 = vmax.f32 %v3861_v47, 0.0  ;;  %v3659_v34 = vmax.f32 %v8282_v42, %v3146_v61  ;;  %v3660_v37 = vmax.f32 %v8286_v36, %v3148_v57 }
 0x36a   :  { %3261 = vrot.lane.b32.xlu0 %v8983_v19, %s6159_s0  ;;  %v11000_v33 = vld [vmem:[#allocation67_spill] sm:$0xff]  ;;  %v11001_v47 = vld [vmem:[#allocation224_spill] sm:$0xff] }
 0x36b   :  { %3263 = vrot.lane.b32.xlu1 %v8987_v7, %s6159_s0  ;;  %v5631_v11 = vpack.c.bf16 %v4056_v44, %v4056_v44  ;;  %v5632_v4 = vpack.c.bf16 %v4057_v30, %v4057_v30  ;;  %v3862_v6 = vadd.f32 %v8570_v28, %v3659_v34  ;;  %v3863_v15 = vadd.f32 %v8570_v28, %v3660_v37  ;;  %v11002_v42 = vld [vmem:[#allocation71_spill] sm:$0xff] }
 0x36c   :  { %v9007_v62 = vmax.f32 %v11000_v33, %v10999_v32  ;;  %v9011_v61 = vmax.f32 %v11002_v42, %v11001_v47  ;;  %v3150_v36 = vpop.permute.xlu0 %3149  ;;  %v3152_v57 = vpop.permute.xlu1 %3151  ;;  %v11003_v42 = vld [vmem:[#allocation244_spill] sm:$0xff] }
 0x36d   :  { %5037 = vst.msk [vmem:[%s10126_s3 + $0x120] sm:$0xf] %vm4964_vm1, %v5631_v11  ;;  %5038 = vst.msk [vmem:[%s10126_s3 + $0x124] sm:$0xf] %vm4964_vm1, %v5632_v4  ;;  %v4058_v44 = vmax.f32 %v3862_v6, 0.0  ;;  %v4059_v30 = vmax.f32 %v3863_v15, 0.0  ;;  %v3661_v34 = vmax.f32 %v8306_v18, %v3150_v36  ;;  %v3662_v37 = vmax.f32 %v8310_v29, %v3152_v57 }
 0x36e   :  { %3265 = vrot.lane.b32.xlu0 %v9007_v62, %s6159_s0  ;;  %v11004_v4 = vld [vmem:[#allocation77_spill] sm:$0xff] }
 0x36f   :  { %3267 = vrot.lane.b32.xlu1 %v9011_v61, %s6159_s0  ;;  %v5633_v32 = vpack.c.bf16 %v4058_v44, %v4058_v44  ;;  %v5634_v33 = vpack.c.bf16 %v4059_v30, %v4059_v30  ;;  %v3864_v11 = vadd.f32 %v8570_v28, %v3661_v34  ;;  %v3865_v47 = vadd.f32 %v8570_v28, %v3662_v37  ;;  %v11005_v15 = vld [vmem:[#allocation245_spill] sm:$0xff] }
 0x370   :  { %v9031_v6 = vmax.f32 %v11004_v4, %v11003_v42  ;;  %v11006_v18 = vld [vmem:[#allocation81_spill] sm:$0xff]  ;;  %v3154_v29 = vpop.permute.xlu0 %3153  ;;  %v3156_v57 = vpop.permute.xlu1 %3155 }
 0x371   :  { %v9035_v36 = vmax.f32 %v11006_v18, %v11005_v15  ;;  %5039 = vst.msk [vmem:[%s10126_s3 + $0x128] sm:$0xf] %vm4964_vm1, %v5633_v32  ;;  %5040 = vst.msk [vmem:[%s10126_s3 + $0x12c] sm:$0xf] %vm4964_vm1, %v5634_v33  ;;  %v4060_v44 = vmax.f32 %v3864_v11, 0.0  ;;  %v4061_v30 = vmax.f32 %v3865_v47, 0.0  ;;  %v3663_v34 = vmax.f32 %v8330_v38, %v3154_v29 }
 0x372   :  { %v3664_v37 = vmax.f32 %v8334_v13, %v3156_v57  ;;  %3269 = vrot.lane.b32.xlu0 %v9031_v6, %s6159_s0  ;;  %v11007_v18 = vld [vmem:[#allocation10_spill] sm:$0xff]  ;;  %v11008_v33 = vld [vmem:[#allocation75_spill] sm:$0xff] }
 0x373   :  { %3271 = vrot.lane.b32.xlu1 %v9035_v36, %s6159_s0  ;;  %v5635_v42 = vpack.c.bf16 %v4060_v44, %v4060_v44  ;;  %v5636_v4 = vpack.c.bf16 %v4061_v30, %v4061_v30  ;;  %v3866_v32 = vadd.f32 %v8570_v28, %v3663_v34  ;;  %v9055_v11 = vmax.f32 %v11008_v33, %v11007_v18  ;;  %v11009_v47 = vld [vmem:[#allocation14_spill] sm:$0xff]  ;;  %v11010_v38 = vld [vmem:[#allocation79_spill] sm:$0xff] }
 0x374   :  { %v3867_v15 = vadd.f32 %v8570_v28, %v3664_v37  ;;  %v9059_v29 = vmax.f32 %v11010_v38, %v11009_v47  ;;  %v3158_v13 = vpop.permute.xlu0 %3157  ;;  %v3160_v57 = vpop.permute.xlu1 %3159  ;;  %v11011_v38 = vld [vmem:[#allocation18_spill] sm:$0xff] }
 0x375   :  { %5041 = vst.msk [vmem:[%s10126_s3 + $0x130] sm:$0xf] %vm4964_vm1, %v5635_v42  ;;  %5042 = vst.msk [vmem:[%s10126_s3 + $0x134] sm:$0xf] %vm4964_vm1, %v5636_v4  ;;  %v4062_v44 = vmax.f32 %v3866_v32, 0.0  ;;  %v3665_v34 = vmax.f32 %v8354_v17, %v3158_v13  ;;  %v3666_v37 = vmax.f32 %v8358_v1, %v3160_v57  ;;  %v11012_v4 = vld [vmem:[#allocation85_spill] sm:$0xff] }
 0x376   :  { %v4063_v30 = vmax.f32 %v3867_v15, 0.0  ;;  %3273 = vrot.lane.b32.xlu0 %v9055_v11, %s6159_s0  ;;  %v9079_v32 = vmax.f32 %v11012_v4, %v11011_v38  ;;  %v11013_v15 = vld [vmem:[#allocation148_spill] sm:$0xff]  ;;  %v11014_v17 = vld [vmem:[#allocation89_spill] sm:$0xff] }
 0x377   :  { %3275 = vrot.lane.b32.xlu1 %v9059_v29, %s6159_s0  ;;  %v5637_v18 = vpack.c.bf16 %v4062_v44, %v4062_v44  ;;  %v3868_v42 = vadd.f32 %v8570_v28, %v3665_v34  ;;  %v3869_v47 = vadd.f32 %v8570_v28, %v3666_v37  ;;  %v9083_v13 = vmax.f32 %v11014_v17, %v11013_v15  ;;  %v11015_v17 = vld [vmem:[#allocation251_spill] sm:$0xff] }
 0x378   :  { %v5638_v33 = vpack.c.bf16 %v4063_v30, %v4063_v30  ;;  %v3162_v1 = vpop.permute.xlu0 %3161  ;;  %v3164_v57 = vpop.permute.xlu1 %3163 }
 0x379   :  { %5043 = vst.msk [vmem:[%s10126_s3 + $0x138] sm:$0xf] %vm4964_vm1, %v5637_v18  ;;  %v4064_v44 = vmax.f32 %v3868_v42, 0.0  ;;  %v4065_v30 = vmax.f32 %v3869_v47, 0.0  ;;  %v3667_v34 = vmax.f32 %v8378_v58, %v3162_v1  ;;  %v3668_v37 = vmax.f32 %v8382_v55, %v3164_v57  ;;  %v11017_v47 = vld [vmem:[#allocation252_spill] sm:$0xff]  ;;  %v11018_v58 = vld [vmem:[#allocation87_spill] sm:$0xff] }
 0x37a   :  { %5044 = vst.msk [vmem:[%s10126_s3 + $0x13c] sm:$0xf] %vm4964_vm1, %v5638_v33  ;;  %3277 = vrot.lane.b32.xlu0 %v9079_v32, %s6159_s0  ;;  %v11016_v33 = vld [vmem:[#allocation83_spill] sm:$0xff]  ;;  %v9107_v1 = vmax.f32 %v11018_v58, %v11017_v47  ;;  %v11019_v58 = vld [vmem:[#allocation24_spill] sm:$0xff] }
 0x37b   :  { %3279 = vrot.lane.b32.xlu1 %v9083_v13, %s6159_s0  ;;  %v5639_v38 = vpack.c.bf16 %v4064_v44, %v4064_v44  ;;  %v5640_v4 = vpack.c.bf16 %v4065_v30, %v4065_v30  ;;  %v3870_v18 = vadd.f32 %v8570_v28, %v3667_v34  ;;  %v3871_v15 = vadd.f32 %v8570_v28, %v3668_v37 }
 0x37c   :  { %v9103_v42 = vmax.f32 %v11016_v33, %v11015_v17  ;;  %v3166_v55 = vpop.permute.xlu0 %3165  ;;  %v3168_v57 = vpop.permute.xlu1 %3167 }
 0x37d   :  { %5045 = vst.msk [vmem:[%s10126_s3 + $0x140] sm:$0xf] %vm4964_vm1, %v5639_v38  ;;  %5046 = vst.msk [vmem:[%s10126_s3 + $0x144] sm:$0xf] %vm4964_vm1, %v5640_v4  ;;  %v4066_v44 = vmax.f32 %v3870_v18, 0.0  ;;  %v4067_v30 = vmax.f32 %v3871_v15, 0.0  ;;  %v3669_v34 = vmax.f32 %v8402_v16, %v3166_v55  ;;  %v3670_v37 = vmax.f32 %v8406_v53, %v3168_v57 }
 0x37e   :  { %3281 = vrot.lane.b32.xlu0 %v9103_v42, %s6159_s0  ;;  %v11020_v4 = vld [vmem:[#allocation93_spill] sm:$0xff]  ;;  %v11021_v15 = vld [vmem:[#allocation254_spill] sm:$0xff] }
 0x37f   :  { %3283 = vrot.lane.b32.xlu1 %v9107_v1, %s6159_s0  ;;  %v5641_v17 = vpack.c.bf16 %v4066_v44, %v4066_v44  ;;  %v5642_v33 = vpack.c.bf16 %v4067_v30, %v4067_v30  ;;  %v3872_v38 = vadd.f32 %v8570_v28, %v3669_v34  ;;  %v3873_v47 = vadd.f32 %v8570_v28, %v3670_v37  ;;  %v11022_v16 = vld [vmem:[#allocation97_spill] sm:$0xff] }
 0x380   :  { %v9127_v18 = vmax.f32 %v11020_v4, %v11019_v58  ;;  %v9131_v55 = vmax.f32 %v11022_v16, %v11021_v15  ;;  %v3170_v53 = vpop.permute.xlu0 %3169  ;;  %v3172_v57 = vpop.permute.xlu1 %3171  ;;  %v11023_v16 = vld [vmem:[#allocation22_spill] sm:$0xff] }
 0x381   :  { %5047 = vst.msk [vmem:[%s10126_s3 + $0x148] sm:$0xf] %vm4964_vm1, %v5641_v17  ;;  %5048 = vst.msk [vmem:[%s10126_s3 + $0x14c] sm:$0xf] %vm4964_vm1, %v5642_v33  ;;  %v4068_v44 = vmax.f32 %v3872_v38, 0.0  ;;  %v4069_v30 = vmax.f32 %v3873_v47, 0.0  ;;  %v3671_v34 = vmax.f32 %v8426_v50, %v3170_v53  ;;  %v3672_v37 = vmax.f32 %v8430_v3, %v3172_v57 }
 0x382   :  { %3285 = vrot.lane.b32.xlu0 %v9127_v18, %s6159_s0  ;;  %v11024_v33 = vld [vmem:[#allocation91_spill] sm:$0xff]  ;;  %v11025_v47 = vld [vmem:[#allocation20_spill] sm:$0xff] }
 0x383   :  { %3287 = vrot.lane.b32.xlu1 %v9131_v55, %s6159_s0  ;;  %v5643_v58 = vpack.c.bf16 %v4068_v44, %v4068_v44  ;;  %v5644_v4 = vpack.c.bf16 %v4069_v30, %v4069_v30  ;;  %v3874_v17 = vadd.f32 %v8570_v28, %v3671_v34  ;;  %v3875_v15 = vadd.f32 %v8570_v28, %v3672_v37  ;;  %v11026_v50 = vld [vmem:[#allocation95_spill] sm:$0xff] }
 0x384   :  { %v9151_v38 = vmax.f32 %v11024_v33, %v11023_v16  ;;  %v9155_v53 = vmax.f32 %v11026_v50, %v11025_v47  ;;  %v3174_v3 = vpop.permute.xlu0 %3173  ;;  %v3176_v57 = vpop.permute.xlu1 %3175  ;;  %v11027_v50 = vld [vmem:[#allocation257_spill] sm:$0xff] }
 0x385   :  { %5049 = vst.msk [vmem:[%s10126_s3 + $0x150] sm:$0xf] %vm4964_vm1, %v5643_v58  ;;  %5050 = vst.msk [vmem:[%s10126_s3 + $0x154] sm:$0xf] %vm4964_vm1, %v5644_v4  ;;  %v4070_v44 = vmax.f32 %v3874_v17, 0.0  ;;  %v4071_v30 = vmax.f32 %v3875_v15, 0.0  ;;  %v3673_v34 = vmax.f32 %v8450_v46, %v3174_v3  ;;  %v3674_v37 = vmax.f32 %v8454_v10, %v3176_v57 }
 0x386   :  { %3289 = vrot.lane.b32.xlu0 %v9151_v38, %s6159_s0  ;;  %v11028_v4 = vld [vmem:[#allocation101_spill] sm:$0xff]  ;;  %v11029_v15 = vld [vmem:[#allocation258_spill] sm:$0xff] }
 0x387   :  { %3291 = vrot.lane.b32.xlu1 %v9155_v53, %s6159_s0  ;;  %v5645_v16 = vpack.c.bf16 %v4070_v44, %v4070_v44  ;;  %v5646_v33 = vpack.c.bf16 %v4071_v30, %v4071_v30  ;;  %v3876_v58 = vadd.f32 %v8570_v28, %v3673_v34  ;;  %v3877_v47 = vadd.f32 %v8570_v28, %v3674_v37  ;;  %v11030_v46 = vld [vmem:[#allocation105_spill] sm:$0xff] }
 0x388   :  { %v9175_v17 = vmax.f32 %v11028_v4, %v11027_v50  ;;  %v9179_v3 = vmax.f32 %v11030_v46, %v11029_v15  ;;  %v3178_v10 = vpop.permute.xlu0 %3177  ;;  %v3180_v57 = vpop.permute.xlu1 %3179  ;;  %v11031_v46 = vld [vmem:[#allocation255_spill] sm:$0xff] }
 0x389   :  { %5051 = vst.msk [vmem:[%s10126_s3 + $0x158] sm:$0xf] %vm4964_vm1, %v5645_v16  ;;  %5052 = vst.msk [vmem:[%s10126_s3 + $0x15c] sm:$0xf] %vm4964_vm1, %v5646_v33  ;;  %v4072_v44 = vmax.f32 %v3876_v58, 0.0  ;;  %v4073_v30 = vmax.f32 %v3877_v47, 0.0  ;;  %v3675_v34 = vmax.f32 %v8474_v49, %v3178_v10  ;;  %v3676_v37 = vmax.f32 %v8478_v24, %v3180_v57 }
 0x38a   :  { %3293 = vrot.lane.b32.xlu0 %v9175_v17, %s6159_s0  ;;  %v11032_v33 = vld [vmem:[#allocation99_spill] sm:$0xff]  ;;  %v11033_v47 = vld [vmem:[#allocation256_spill] sm:$0xff] }
 0x38b   :  { %3295 = vrot.lane.b32.xlu1 %v9179_v3, %s6159_s0  ;;  %v5647_v50 = vpack.c.bf16 %v4072_v44, %v4072_v44  ;;  %v5648_v4 = vpack.c.bf16 %v4073_v30, %v4073_v30  ;;  %v3878_v16 = vadd.f32 %v8570_v28, %v3675_v34  ;;  %v3879_v15 = vadd.f32 %v8570_v28, %v3676_v37  ;;  %v11034_v49 = vld [vmem:[#allocation103_spill] sm:$0xff] }
 0x38c   :  { %v9199_v58 = vmax.f32 %v11032_v33, %v11031_v46  ;;  %v9203_v10 = vmax.f32 %v11034_v49, %v11033_v47  ;;  %v3182_v24 = vpop.permute.xlu0 %3181  ;;  %v3184_v57 = vpop.permute.xlu1 %3183  ;;  %v11035_v49 = vld [vmem:[#allocation261_spill] sm:$0xff] }
 0x38d   :  { %5053 = vst.msk [vmem:[%s10126_s3 + $0x160] sm:$0xf] %vm4964_vm1, %v5647_v50  ;;  %5054 = vst.msk [vmem:[%s10126_s3 + $0x164] sm:$0xf] %vm4964_vm1, %v5648_v4  ;;  %v4074_v44 = vmax.f32 %v3878_v16, 0.0  ;;  %v4075_v30 = vmax.f32 %v3879_v15, 0.0  ;;  %v3677_v34 = vmax.f32 %v8498_v59, %v3182_v24  ;;  %v3678_v37 = vmax.f32 %v8502_v20, %v3184_v57 }
 0x38e   :  { %3297 = vrot.lane.b32.xlu0 %v9199_v58, %s6159_s0  ;;  %v11036_v4 = vld [vmem:[#allocation109_spill] sm:$0xff]  ;;  %v11037_v15 = vld [vmem:[#allocation262_spill] sm:$0xff] }
 0x38f   :  { %3299 = vrot.lane.b32.xlu1 %v9203_v10, %s6159_s0  ;;  %v5649_v46 = vpack.c.bf16 %v4074_v44, %v4074_v44  ;;  %v5650_v33 = vpack.c.bf16 %v4075_v30, %v4075_v30  ;;  %v3880_v50 = vadd.f32 %v8570_v28, %v3677_v34  ;;  %v3881_v47 = vadd.f32 %v8570_v28, %v3678_v37  ;;  %v11038_v59 = vld [vmem:[#allocation113_spill] sm:$0xff] }
 0x390   :  { %v9223_v16 = vmax.f32 %v11036_v4, %v11035_v49  ;;  %v9227_v24 = vmax.f32 %v11038_v59, %v11037_v15  ;;  %v3186_v20 = vpop.permute.xlu0 %3185  ;;  %v3188_v57 = vpop.permute.xlu1 %3187  ;;  %v11039_v59 = vld [vmem:[#allocation259_spill] sm:$0xff] }
 0x391   :  { %5055 = vst.msk [vmem:[%s10126_s3 + $0x168] sm:$0xf] %vm4964_vm1, %v5649_v46  ;;  %5056 = vst.msk [vmem:[%s10126_s3 + $0x16c] sm:$0xf] %vm4964_vm1, %v5650_v33  ;;  %v4076_v44 = vmax.f32 %v3880_v50, 0.0  ;;  %v4077_v30 = vmax.f32 %v3881_v47, 0.0  ;;  %v3679_v34 = vmax.f32 %v8522_v14, %v3186_v20  ;;  %v3680_v37 = vmax.f32 %v8526_v40, %v3188_v57 }
 0x392   :  { %3301 = vrot.lane.b32.xlu0 %v9223_v16, %s6159_s0  ;;  %v11040_v33 = vld [vmem:[#allocation107_spill] sm:$0xff]  ;;  %v11041_v47 = vld [vmem:[#allocation260_spill] sm:$0xff] }
 0x393   :  { %3303 = vrot.lane.b32.xlu1 %v9227_v24, %s6159_s0  ;;  %v5651_v49 = vpack.c.bf16 %v4076_v44, %v4076_v44  ;;  %v5652_v4 = vpack.c.bf16 %v4077_v30, %v4077_v30  ;;  %v3882_v46 = vadd.f32 %v8570_v28, %v3679_v34  ;;  %v3883_v15 = vadd.f32 %v8570_v28, %v3680_v37  ;;  %v11042_v14 = vld [vmem:[#allocation111_spill] sm:$0xff] }
 0x394   :  { %v9247_v50 = vmax.f32 %v11040_v33, %v11039_v59  ;;  %v9251_v20 = vmax.f32 %v11042_v14, %v11041_v47  ;;  %v3190_v40 = vpop.permute.xlu0 %3189  ;;  %v3192_v57 = vpop.permute.xlu1 %3191  ;;  %v11043_v14 = vld [vmem:[#allocation265_spill] sm:$0xff] }
 0x395   :  { %5057 = vst.msk [vmem:[%s10126_s3 + $0x170] sm:$0xf] %vm4964_vm1, %v5651_v49  ;;  %5058 = vst.msk [vmem:[%s10126_s3 + $0x174] sm:$0xf] %vm4964_vm1, %v5652_v4  ;;  %v4078_v44 = vmax.f32 %v3882_v46, 0.0  ;;  %v4079_v30 = vmax.f32 %v3883_v15, 0.0  ;;  %v3681_v34 = vmax.f32 %v8546_v39, %v3190_v40  ;;  %v3682_v37 = vmax.f32 %v8550_v48, %v3192_v57 }
 0x396   :  { %3305 = vrot.lane.b32.xlu0 %v9247_v50, %s6159_s0  ;;  %v11044_v4 = vld [vmem:[#allocation117_spill] sm:$0xff]  ;;  %v11045_v15 = vld [vmem:[#allocation266_spill] sm:$0xff]  ;;  %v11046_v39 = vld [vmem:[#allocation123_spill] sm:$0xff] }
 0x397   :  { %3307 = vrot.lane.b32.xlu1 %v9251_v20, %s6159_s0  ;;  %v5653_v59 = vpack.c.bf16 %v4078_v44, %v4078_v44  ;;  %v5654_v33 = vpack.c.bf16 %v4079_v30, %v4079_v30  ;;  %v3884_v49 = vadd.f32 %v8570_v28, %v3681_v34  ;;  %v3885_v47 = vadd.f32 %v8570_v28, %v3682_v37 }
 0x398   :  { %v9271_v46 = vmax.f32 %v11044_v4, %v11043_v14  ;;  %v9275_v40 = vmax.f32 %v11046_v39, %v11045_v15  ;;  %v3194_v48 = vpop.permute.xlu0 %3193  ;;  %v3196_v57 = vpop.permute.xlu1 %3195  ;;  %v11047_v39 = vld [vmem:[#allocation263_spill] sm:$0xff] }
 0x399   :  { %5059 = vst.msk [vmem:[%s10126_s3 + $0x178] sm:$0xf] %vm4964_vm1, %v5653_v59  ;;  %5060 = vst.msk [vmem:[%s10126_s3 + $0x17c] sm:$0xf] %vm4964_vm1, %v5654_v33  ;;  %v4080_v44 = vmax.f32 %v3884_v49, 0.0  ;;  %v4081_v30 = vmax.f32 %v3885_v47, 0.0  ;;  %v3683_v34 = vmax.f32 %v8575_v5, %v3194_v48  ;;  %v3684_v37 = vmax.f32 %v8579_v45, %v3196_v57 }
 0x39a   :  { %3309 = vrot.lane.b32.xlu0 %v9271_v46, %s6159_s0  ;;  %v11048_v33 = vld [vmem:[#allocation115_spill] sm:$0xff]  ;;  %v11049_v47 = vld [vmem:[#allocation264_spill] sm:$0xff] }
 0x39b   :  { %3311 = vrot.lane.b32.xlu1 %v9275_v40, %s6159_s0  ;;  %v5655_v14 = vpack.c.bf16 %v4080_v44, %v4080_v44  ;;  %v5656_v4 = vpack.c.bf16 %v4081_v30, %v4081_v30  ;;  %v3886_v59 = vadd.f32 %v8570_v28, %v3683_v34  ;;  %v3887_v15 = vadd.f32 %v8570_v28, %v3684_v37  ;;  %v11050_v5 = vld [vmem:[#allocation119_spill] sm:$0xff] }
 0x39c   :  { %v9295_v49 = vmax.f32 %v11048_v33, %v11047_v39  ;;  %v9299_v48 = vmax.f32 %v11050_v5, %v11049_v47  ;;  %v3198_v45 = vpop.permute.xlu0 %3197  ;;  %v3200_v57 = vpop.permute.xlu1 %3199  ;;  %v11051_v5 = vld [vmem:[#allocation269_spill] sm:$0xff] }
 0x39d   :  { %5061 = vst.msk [vmem:[%s10126_s3 + $0x180] sm:$0xf] %vm4964_vm1, %v5655_v14  ;;  %5062 = vst.msk [vmem:[%s10126_s3 + $0x184] sm:$0xf] %vm4964_vm1, %v5656_v4  ;;  %v4082_v44 = vmax.f32 %v3886_v59, 0.0  ;;  %v4083_v30 = vmax.f32 %v3887_v15, 0.0  ;;  %v3685_v34 = vmax.f32 %v8599_v41, %v3198_v45  ;;  %v3686_v37 = vmax.f32 %v8603_v2, %v3200_v57 }
 0x39e   :  { %3313 = vrot.lane.b32.xlu0 %v9295_v49, %s6159_s0  ;;  %v11052_v4 = vld [vmem:[#allocation129_spill] sm:$0xff]  ;;  %v11053_v15 = vld [vmem:[#allocation270_spill] sm:$0xff]  ;;  %v11054_v41 = vld [vmem:[#allocation135_spill] sm:$0xff] }
 0x39f   :  { %3315 = vrot.lane.b32.xlu1 %v9299_v48, %s6159_s0  ;;  %v5657_v39 = vpack.c.bf16 %v4082_v44, %v4082_v44  ;;  %v5658_v33 = vpack.c.bf16 %v4083_v30, %v4083_v30  ;;  %v3888_v14 = vadd.f32 %v8570_v28, %v3685_v34  ;;  %v3889_v47 = vadd.f32 %v8570_v28, %v3686_v37  ;;  %v11056_v37 = vld [vmem:[#allocation98_spill] sm:$0xff] }
 0x3a0   :  { %v9319_v59 = vmax.f32 %v11052_v4, %v11051_v5  ;;  %v9323_v45 = vmax.f32 %v11054_v41, %v11053_v15  ;;  %v3202_v2 = vpop.permute.xlu0 %3201  ;;  %v3204_v57 = vpop.permute.xlu1 %3203 }
 0x3a1   :  { %5063 = vst.msk [vmem:[%s10126_s3 + $0x188] sm:$0xf] %vm4964_vm1, %v5657_v39  ;;  %5064 = vst.msk [vmem:[%s10126_s3 + $0x18c] sm:$0xf] %vm4964_vm1, %v5658_v33  ;;  %v4084_v44 = vmax.f32 %v3888_v14, 0.0  ;;  %v4085_v30 = vmax.f32 %v3889_v47, 0.0  ;;  %v3687_v34 = vmax.f32 %v8623_v51, %v3202_v2  ;;  %v3688_v5 = vmax.f32 %v11056_v37, %v3204_v57 }
 0x3a2   :  { %11055 = vst [vmem:[#allocation134_spill] sm:$0xff] %v9323_v45  ;;  %3317 = vrot.lane.b32.xlu0 %v9319_v59, %s6159_s0  ;;  %v9343_v33 = vld [vmem:[%s10125_s2] ss:$0 sm:$0xff]  ;;  %v11057_v51 = vld [vmem:[#allocation267_spill] sm:$0xff]  ;;  %v11060_v2 = vld [vmem:[#allocation268_spill] sm:$0xff] }
 0x3a3   :  { %3319 = vrot.lane.b32.xlu1 %v9323_v45, %s6159_s0  ;;  %v5659_v4 = vpack.c.bf16 %v4084_v44, %v4084_v44  ;;  %v5660_v15 = vpack.c.bf16 %v4085_v30, %v4085_v30  ;;  %v3890_v39 = vadd.f32 %v8570_v28, %v3687_v34  ;;  %v3891_v14 = vadd.f32 %v9343_v33, %v3688_v5  ;;  %v11058_v47 = vld [vmem:[#allocation127_spill] sm:$0xff] }
 0x3a4   :  { %v9348_v41 = vmax.f32 %v11058_v47, %v11057_v51  ;;  %v11061_v57 = vld [vmem:[#allocation131_spill] sm:$0xff]  ;;  %v3206_v45 = vpop.permute.xlu0 %3205  ;;  %v3208_v44 = vpop.permute.xlu1 %3207 }
 0x3a5   :  { %v9352_v37 = vmax.f32 %v11061_v57, %v11060_v2  ;;  %5065 = vst.msk [vmem:[%s10126_s3 + $0x190] sm:$0xf] %vm4964_vm1, %v5659_v4  ;;  %5066 = vst.msk [vmem:[%s10126_s3 + $0x194] sm:$0xf] %vm4964_vm1, %v5660_v15  ;;  %v4086_v28 = vmax.f32 %v3890_v39, 0.0  ;;  %v4087_v30 = vmax.f32 %v3891_v14, 0.0  ;;  %v3689_v34 = vmax.f32 %v8647_v26, %v3206_v45 }
 0x3a6   :  { %11059 = vst [vmem:[#allocation126_spill] sm:$0xff] %v9348_v41  ;;  %v3690_v5 = vmax.f32 %v8651_v35, %v3208_v44  ;;  %3321 = vrot.lane.b32.xlu0 %v9348_v41, %s6159_s0  ;;  %v11063_v57 = vld [vmem:[#allocation273_spill] sm:$0xff]  ;;  %v11064_v15 = vld [vmem:[#allocation146_spill] sm:$0xff]  ;;  %v11069_v41 = vld [vmem:[#allocation271_spill] sm:$0xff] }
 0x3a7   :  { %11062 = vst [vmem:[#allocation130_spill] sm:$0xff] %v9352_v37  ;;  %3323 = vrot.lane.b32.xlu1 %v9352_v37, %s6159_s0  ;;  %v5661_v51 = vpack.c.bf16 %v4086_v28, %v4086_v28  ;;  %v5662_v47 = vpack.c.bf16 %v4087_v30, %v4087_v30  ;;  %v3892_v4 = vadd.f32 %v9343_v33, %v3689_v34  ;;  %v11065_v14 = vld [vmem:[#allocation274_spill] sm:$0xff]  ;;  %v11066_v26 = vld [vmem:[#allocation149_spill] sm:$0xff] }
 0x3a8   :  { %v3893_v2 = vadd.f32 %v9343_v33, %v3690_v5  ;;  %v9372_v39 = vmax.f32 %v11064_v15, %v11063_v57  ;;  %v9376_v45 = vmax.f32 %v11066_v26, %v11065_v14  ;;  %v3210_v35 = vpop.permute.xlu0 %3209  ;;  %v3212_v44 = vpop.permute.xlu1 %3211  ;;  %v11067_v34 = vld [vmem:[#allocation102_spill] sm:$0xff]  ;;  %v11068_v57 = vld [vmem:[#allocation108_spill] sm:$0xff] }
 0x3a9   :  { %5067 = vst.msk [vmem:[%s10126_s3 + $0x198] sm:$0xf] %vm4964_vm1, %v5661_v51  ;;  %5068 = vst.msk [vmem:[%s10126_s3 + $0x19c] sm:$0xf] %vm4964_vm1, %v5662_v47  ;;  %v4088_v28 = vmax.f32 %v3892_v4, 0.0  ;;  %v3691_v5 = vmax.f32 %v11067_v34, %v3210_v35  ;;  %v3692_v15 = vmax.f32 %v11068_v57, %v3212_v44  ;;  %v11070_v47 = vld [vmem:[#allocation145_spill] sm:$0xff] }
 0x3aa   :  { %v4089_v30 = vmax.f32 %v3893_v2, 0.0  ;;  %3325 = vrot.lane.b32.xlu0 %v9372_v39, %s6159_s0  ;;  %v9396_v4 = vmax.f32 %v11070_v47, %v11069_v41  ;;  %v11072_v2 = vld [vmem:[#allocation272_spill] sm:$0xff]  ;;  %v11073_v35 = vld [vmem:[#allocation147_spill] sm:$0xff] }
 0x3ab   :  { %3327 = vrot.lane.b32.xlu1 %v9376_v45, %s6159_s0  ;;  %v5663_v14 = vpack.c.bf16 %v4088_v28, %v4088_v28  ;;  %v3894_v51 = vadd.f32 %v9343_v33, %v3691_v5  ;;  %v3895_v37 = vadd.f32 %v9343_v33, %v3692_v15  ;;  %v9400_v34 = vmax.f32 %v11073_v35, %v11072_v2  ;;  %v11075_v35 = vld [vmem:[#allocation162_spill] sm:$0xff] }
 0x3ac   :  { %v5664_v26 = vpack.c.bf16 %v4089_v30, %v4089_v30  ;;  %11071 = vst [vmem:[#allocation140_spill] sm:$0xff] %v9396_v4  ;;  %v3214_v44 = vpop.permute.xlu0 %3213 }
 0x3ad   :  { %11074 = vst [vmem:[#allocation144_spill] sm:$0xff] %v9400_v34  ;;  %v3216_v57 = vpop.permute.xlu1 %3215  ;;  %5069 = vst.msk [vmem:[%s10126_s3 + $0x1a0] sm:$0xf] %vm4964_vm1, %v5663_v14  ;;  %v4090_v28 = vmax.f32 %v3894_v51, 0.0  ;;  %v4091_v30 = vmax.f32 %v3895_v37, 0.0  ;;  %v3693_v41 = vmax.f32 %v8695_v12, %v3214_v44  ;;  %v11077_v37 = vld [vmem:[#allocation32_spill] sm:$0xff] }
 0x3ae   :  { %5070 = vst.msk [vmem:[%s10126_s3 + $0x1a4] sm:$0xf] %vm4964_vm1, %v5664_v26  ;;  %v3694_v5 = vmax.f32 %v8699_v31, %v3216_v57  ;;  %3329 = vrot.lane.b32.xlu0 %v9396_v4, %s6159_s0  ;;  %v11076_v26 = vld [vmem:[#allocation159_spill] sm:$0xff]  ;;  %v11081_v4 = vld [vmem:[#allocation161_spill] sm:$0xff] }
 0x3af   :  { %3331 = vrot.lane.b32.xlu1 %v9400_v34, %s6159_s0  ;;  %v5665_v15 = vpack.c.bf16 %v4090_v28, %v4090_v28  ;;  %v5666_v47 = vpack.c.bf16 %v4091_v30, %v4091_v30  ;;  %v3896_v14 = vadd.f32 %v9343_v33, %v3693_v41  ;;  %v9420_v51 = vmax.f32 %v11076_v26, %v11075_v35  ;;  %v11078_v12 = vld [vmem:[#allocation163_spill] sm:$0xff]  ;;  %v11079_v41 = vld [vmem:[#allocation112_spill] sm:$0xff]  ;;  %v11080_v35 = vld [vmem:[#allocation106_spill] sm:$0xff] }
 0x3b0   :  { %v3897_v2 = vadd.f32 %v9343_v33, %v3694_v5  ;;  %v9424_v44 = vmax.f32 %v11078_v12, %v11077_v37  ;;  %v3218_v31 = vpop.permute.xlu0 %3217 }
 0x3b1   :  { %v3220_v57 = vpop.permute.xlu1 %3219  ;;  %5071 = vst.msk [vmem:[%s10126_s3 + $0x1a8] sm:$0xf] %vm4964_vm1, %v5665_v15  ;;  %5072 = vst.msk [vmem:[%s10126_s3 + $0x1ac] sm:$0xf] %vm4964_vm1, %v5666_v47  ;;  %v4092_v28 = vmax.f32 %v3896_v14, 0.0  ;;  %v3695_v5 = vmax.f32 %v11079_v41, %v3218_v31  ;;  %v11082_v47 = vld [vmem:[#allocation158_spill] sm:$0xff] }
 0x3b2   :  { %v4093_v30 = vmax.f32 %v3897_v2, 0.0  ;;  %v3696_v26 = vmax.f32 %v11080_v35, %v3220_v57  ;;  %3333 = vrot.lane.b32.xlu0 %v9420_v51, %s6159_s0  ;;  %v9444_v14 = vmax.f32 %v11082_v47, %v11081_v4  ;;  %v11084_v2 = vld [vmem:[#allocation28_spill] sm:$0xff] }
 0x3b3   :  { %3335 = vrot.lane.b32.xlu1 %v9424_v44, %s6159_s0  ;;  %v5667_v37 = vpack.c.bf16 %v4092_v28, %v4092_v28  ;;  %v3898_v15 = vadd.f32 %v9343_v33, %v3695_v5  ;;  %v11085_v31 = vld [vmem:[#allocation160_spill] sm:$0xff] }
 0x3b4   :  { %v5668_v12 = vpack.c.bf16 %v4093_v30, %v4093_v30  ;;  %v3899_v34 = vadd.f32 %v9343_v33, %v3696_v26  ;;  %11083 = vst [vmem:[#allocation139_spill] sm:$0xff] %v9444_v14  ;;  %v9448_v41 = vmax.f32 %v11085_v31, %v11084_v2  ;;  %v3222_v57 = vpop.permute.xlu0 %3221  ;;  %v11087_v31 = vld [vmem:[#allocation167_spill] sm:$0xff] }
 0x3b5   :  { %v3224_v35 = vpop.permute.xlu1 %3223  ;;  %5073 = vst.msk [vmem:[%s10126_s3 + $0x1b0] sm:$0xf] %vm4964_vm1, %v5667_v37  ;;  %v4094_v28 = vmax.f32 %v3898_v15, 0.0  ;;  %v3697_v4 = vmax.f32 %v8743_v0, %v3222_v57  ;;  %v11090_v0 = vld [vmem:[#allocation175_spill] sm:$0xff] }
 0x3b6   :  { %11086 = vst [vmem:[#allocation141_spill] sm:$0xff] %v9448_v41  ;;  %5074 = vst.msk [vmem:[%s10126_s3 + $0x1b4] sm:$0xf] %vm4964_vm1, %v5668_v12  ;;  %v4095_v30 = vmax.f32 %v3899_v34, 0.0  ;;  %v3698_v5 = vmax.f32 %v8747_v63, %v3224_v35  ;;  %3337 = vrot.lane.b32.xlu0 %v9444_v14, %s6159_s0  ;;  %v11088_v12 = vld [vmem:[#allocation171_spill] sm:$0xff]  ;;  %v11089_v34 = vld [vmem:[#allocation38_spill] sm:$0xff] }
 0x3b7   :  { %3339 = vrot.lane.b32.xlu1 %v9448_v41, %s6159_s0  ;;  %v5669_v26 = vpack.c.bf16 %v4094_v28, %v4094_v28  ;;  %v3900_v37 = vadd.f32 %v9343_v33, %v3697_v4  ;;  %v9468_v15 = vmax.f32 %v11088_v12, %v11087_v31  ;;  %v9472_v57 = vmax.f32 %v11090_v0, %v11089_v34  ;;  %v11091_v4 = vld [vmem:[#allocation110_spill] sm:$0xff]  ;;  %v11092_v31 = vld [vmem:[#allocation116_spill] sm:$0xff]  ;;  %v11093_v14 = vld [vmem:[#allocation173_spill] sm:$0xff] }
 0x3b8   :  { %v5670_v47 = vpack.c.bf16 %v4095_v30, %v4095_v30  ;;  %v3901_v2 = vadd.f32 %v9343_v33, %v3698_v5  ;;  %v3226_v63 = vpop.permute.xlu0 %3225 }
 0x3b9   :  { %v3228_v35 = vpop.permute.xlu1 %3227  ;;  %5075 = vst.msk [vmem:[%s10126_s3 + $0x1b8] sm:$0xf] %vm4964_vm1, %v5669_v26  ;;  %v4096_v28 = vmax.f32 %v3900_v37, 0.0  ;;  %v3699_v5 = vmax.f32 %v11091_v4, %v3226_v63  ;;  %v11097_v63 = vld [vmem:[#allocation172_spill] sm:$0xff] }
 0x3ba   :  { %5076 = vst.msk [vmem:[%s10126_s3 + $0x1bc] sm:$0xf] %vm4964_vm1, %v5670_v47  ;;  %v4097_v30 = vmax.f32 %v3901_v2, 0.0  ;;  %v3700_v12 = vmax.f32 %v11092_v31, %v3228_v35  ;;  %3341 = vrot.lane.b32.xlu0 %v9468_v15, %s6159_s0  ;;  %v11094_v47 = vld [vmem:[#allocation170_spill] sm:$0xff]  ;;  %v11096_v2 = vld [vmem:[#allocation36_spill] sm:$0xff] }
 0x3bb   :  { %3343 = vrot.lane.b32.xlu1 %v9472_v57, %s6159_s0  ;;  %v5671_v34 = vpack.c.bf16 %v4096_v28, %v4096_v28  ;;  %v3902_v26 = vadd.f32 %v9343_v33, %v3699_v5  ;;  %v9492_v37 = vmax.f32 %v11094_v47, %v11093_v14  ;;  %v9496_v4 = vmax.f32 %v11097_v63, %v11096_v2  ;;  %v11099_v63 = vld [vmem:[#allocation193_spill] sm:$0xff] }
 0x3bc   :  { %v5672_v0 = vpack.c.bf16 %v4097_v30, %v4097_v30  ;;  %v3903_v41 = vadd.f32 %v9343_v33, %v3700_v12  ;;  %v3230_v35 = vpop.permute.xlu0 %3229 }
 0x3bd   :  { %11095 = vst [vmem:[#allocation184_spill] sm:$0xff] %v9492_v37  ;;  %11098 = vst [vmem:[#allocation154_spill] sm:$0xff] %v9496_v4  ;;  %v3232_v31 = vpop.permute.xlu1 %3231  ;;  %v4098_v28 = vmax.f32 %v3902_v26, 0.0  ;;  %v3701_v14 = vmax.f32 %v8791_v21, %v3230_v35  ;;  %v11102_v21 = vld [vmem:[#allocation190_spill] sm:$0xff] }
 0x3be   :  { %5077 = vst.msk [vmem:[%s10126_s3 + $0x1c0] sm:$0xf] %vm4964_vm1, %v5671_v34  ;;  %5078 = vst.msk [vmem:[%s10126_s3 + $0x1c4] sm:$0xf] %vm4964_vm1, %v5672_v0  ;;  %v4099_v30 = vmax.f32 %v3903_v41, 0.0  ;;  %v3702_v5 = vmax.f32 %v8795_v60, %v3232_v31  ;;  %3345 = vrot.lane.b32.xlu0 %v9492_v37, %s6159_s0  ;;  %v11100_v0 = vld [vmem:[#allocation186_spill] sm:$0xff] }
 0x3bf   :  { %3347 = vrot.lane.b32.xlu1 %v9496_v4, %s6159_s0  ;;  %v5673_v12 = vpack.c.bf16 %v4098_v28, %v4098_v28  ;;  %v3904_v34 = vadd.f32 %v9343_v33, %v3701_v14  ;;  %v9516_v26 = vmax.f32 %v11100_v0, %v11099_v63  ;;  %v11101_v41 = vld [vmem:[#allocation50_spill] sm:$0xff]  ;;  %v11105_v37 = vld [vmem:[#allocation179_spill] sm:$0xff] }
 0x3c0   :  { %v5674_v47 = vpack.c.bf16 %v4099_v30, %v4099_v30  ;;  %v3905_v2 = vadd.f32 %v9343_v33, %v3702_v5  ;;  %v9520_v35 = vmax.f32 %v11102_v21, %v11101_v41  ;;  %v3234_v60 = vpop.permute.xlu0 %3233  ;;  %v11103_v14 = vld [vmem:[#allocation122_spill] sm:$0xff] }
 0x3c1   :  { %v3236_v31 = vpop.permute.xlu1 %3235  ;;  %5079 = vst.msk [vmem:[%s10126_s3 + $0x1c8] sm:$0xf] %vm4964_vm1, %v5673_v12  ;;  %v4100_v28 = vmax.f32 %v3904_v34, 0.0  ;;  %v3703_v5 = vmax.f32 %v11103_v14, %v3234_v60  ;;  %v11104_v63 = vld [vmem:[#allocation114_spill] sm:$0xff]  ;;  %v11108_v60 = vld [vmem:[#allocation187_spill] sm:$0xff] }
 0x3c2   :  { %5080 = vst.msk [vmem:[%s10126_s3 + $0x1cc] sm:$0xf] %vm4964_vm1, %v5674_v47  ;;  %v4101_v30 = vmax.f32 %v3905_v2, 0.0  ;;  %v3704_v0 = vmax.f32 %v11104_v63, %v3236_v31  ;;  %3349 = vrot.lane.b32.xlu0 %v9516_v26, %s6159_s0  ;;  %v11106_v47 = vld [vmem:[#allocation185_spill] sm:$0xff]  ;;  %v11107_v2 = vld [vmem:[#allocation46_spill] sm:$0xff] }
 0x3c3   :  { %3351 = vrot.lane.b32.xlu1 %v9520_v35, %s6159_s0  ;;  %v5675_v41 = vpack.c.bf16 %v4100_v28, %v4100_v28  ;;  %v3906_v12 = vadd.f32 %v9343_v33, %v3703_v5  ;;  %v9540_v34 = vmax.f32 %v11106_v47, %v11105_v37  ;;  %v9544_v14 = vmax.f32 %v11108_v60, %v11107_v2  ;;  %v11109_v60 = vld [vmem:[#allocation229_spill] sm:$0xff] }
 0x3c4   :  { %v5676_v21 = vpack.c.bf16 %v4101_v30, %v4101_v30  ;;  %v3907_v4 = vadd.f32 %v9343_v33, %v3704_v0  ;;  %v3238_v31 = vpop.permute.xlu0 %3237 }
 0x3c5   :  { %v3240_v63 = vpop.permute.xlu1 %3239  ;;  %5081 = vst.msk [vmem:[%s10126_s3 + $0x1d0] sm:$0xf] %vm4964_vm1, %v5675_v41  ;;  %v4102_v28 = vmax.f32 %v3906_v12, 0.0  ;;  %v3705_v37 = vmax.f32 %v8839_v56, %v3238_v31  ;;  %v11112_v56 = vld [vmem:[#allocation206_spill] sm:$0xff] }
 0x3c6   :  { %5082 = vst.msk [vmem:[%s10126_s3 + $0x1d4] sm:$0xf] %vm4964_vm1, %v5676_v21  ;;  %v4103_v30 = vmax.f32 %v3907_v4, 0.0  ;;  %v3706_v5 = vmax.f32 %v8843_v8, %v3240_v63  ;;  %3353 = vrot.lane.b32.xlu0 %v9540_v34, %s6159_s0  ;;  %v11110_v21 = vld [vmem:[#allocation202_spill] sm:$0xff]  ;;  %v11111_v4 = vld [vmem:[#allocation68_spill] sm:$0xff] }
 0x3c7   :  { %3355 = vrot.lane.b32.xlu1 %v9544_v14, %s6159_s0  ;;  %v5677_v0 = vpack.c.bf16 %v4102_v28, %v4102_v28  ;;  %v3908_v41 = vadd.f32 %v9343_v33, %v3705_v37  ;;  %v9564_v12 = vmax.f32 %v11110_v21, %v11109_v60  ;;  %v9568_v31 = vmax.f32 %v11112_v56, %v11111_v4  ;;  %v11114_v56 = vld [vmem:[#allocation209_spill] sm:$0xff] }
 0x3c8   :  { %v5678_v47 = vpack.c.bf16 %v4103_v30, %v4103_v30  ;;  %v3909_v2 = vadd.f32 %v9343_v33, %v3706_v5  ;;  %v3242_v8 = vpop.permute.xlu0 %3241 }
 0x3c9   :  { %11113 = vst [vmem:[#allocation26_spill] sm:$0xff] %v9568_v31  ;;  %v3244_v63 = vpop.permute.xlu1 %3243  ;;  %5083 = vst.msk [vmem:[%s10126_s3 + $0x1d8] sm:$0xf] %vm4964_vm1, %v5677_v0  ;;  %v4104_v28 = vmax.f32 %v3908_v41, 0.0  ;;  %v3707_v37 = vmax.f32 %v8863_v43, %v3242_v8  ;;  %v11117_v43 = vld [vmem:[#allocation203_spill] sm:$0xff] }
 0x3ca   :  { %5084 = vst.msk [vmem:[%s10126_s3 + $0x1dc] sm:$0xf] %vm4964_vm1, %v5678_v47  ;;  %v4105_v30 = vmax.f32 %v3909_v2, 0.0  ;;  %v3708_v5 = vmax.f32 %v8867_v52, %v3244_v63  ;;  %3357 = vrot.lane.b32.xlu0 %v9564_v12, %s6159_s0  ;;  %v11115_v47 = vld [vmem:[#allocation201_spill] sm:$0xff]  ;;  %v11116_v2 = vld [vmem:[#allocation58_spill] sm:$0xff] }
 0x3cb   :  { %3359 = vrot.lane.b32.xlu1 %v9568_v31, %s6159_s0  ;;  %v5679_v60 = vpack.c.bf16 %v4104_v28, %v4104_v28  ;;  %v3910_v0 = vadd.f32 %v9343_v33, %v3707_v37  ;;  %v9588_v41 = vmax.f32 %v11115_v47, %v11114_v56  ;;  %v9592_v8 = vmax.f32 %v11117_v43, %v11116_v2  ;;  %v11120_v31 = vld [vmem:[#allocation12_spill] sm:$0xff] }
 0x3cc   :  { %v5680_v21 = vpack.c.bf16 %v4105_v30, %v4105_v30  ;;  %v3911_v4 = vadd.f32 %v9343_v33, %v3708_v5  ;;  %v3246_v52 = vpop.permute.xlu0 %3245  ;;  %v11119_v5 = vld [vmem:[#allocation118_spill] sm:$0xff] }
 0x3cd   :  { %11118 = vst [vmem:[#allocation189_spill] sm:$0xff] %v9592_v8  ;;  %v3248_v63 = vpop.permute.xlu1 %3247  ;;  %5085 = vst.msk [vmem:[%s10126_s3 + $0x1e0] sm:$0xf] %vm4964_vm1, %v5679_v60  ;;  %v4106_v28 = vmax.f32 %v3910_v0, 0.0  ;;  %v3709_v37 = vmax.f32 %v8887_v27, %v3246_v52  ;;  %v11123_v27 = vld [vmem:[#allocation222_spill] sm:$0xff] }
 0x3ce   :  { %5086 = vst.msk [vmem:[%s10126_s3 + $0x1e4] sm:$0xf] %vm4964_vm1, %v5680_v21  ;;  %v4107_v30 = vmax.f32 %v3911_v4, 0.0  ;;  %v3710_v56 = vmax.f32 %v11119_v5, %v3248_v63  ;;  %3361 = vrot.lane.b32.xlu0 %v9588_v41, %s6159_s0  ;;  %v11121_v21 = vld [vmem:[#allocation218_spill] sm:$0xff]  ;;  %v11122_v4 = vld [vmem:[#allocation76_spill] sm:$0xff] }
 0x3cf   :  { %3363 = vrot.lane.b32.xlu1 %v9592_v8, %s6159_s0  ;;  %v5681_v47 = vpack.c.bf16 %v4106_v28, %v4106_v28  ;;  %v3912_v60 = vadd.f32 %v9343_v33, %v3709_v37  ;;  %v9612_v0 = vmax.f32 %v11121_v21, %v11120_v31  ;;  %v9616_v52 = vmax.f32 %v11123_v27, %v11122_v4  ;;  %v11124_v37 = vld [vmem:[#allocation128_spill] sm:$0xff]  ;;  %v11125_v8 = vld [vmem:[#allocation125_spill] sm:$0xff] }
 0x3d0   :  { %v5682_v2 = vpack.c.bf16 %v4107_v30, %v4107_v30  ;;  %v3913_v43 = vadd.f32 %v9343_v33, %v3710_v56  ;;  %v3250_v63 = vpop.permute.xlu0 %3249 }
 0x3d1   :  { %v3252_v5 = vpop.permute.xlu1 %3251  ;;  %5087 = vst.msk [vmem:[%s10126_s3 + $0x1e8] sm:$0xf] %vm4964_vm1, %v5681_v47  ;;  %v4108_v28 = vmax.f32 %v3912_v60, 0.0  ;;  %v3711_v31 = vmax.f32 %v8911_v23, %v3250_v63  ;;  %v11128_v23 = vld [vmem:[#allocation219_spill] sm:$0xff] }
 0x3d2   :  { %5088 = vst.msk [vmem:[%s10126_s3 + $0x1ec] sm:$0xf] %vm4964_vm1, %v5682_v2  ;;  %v4109_v30 = vmax.f32 %v3913_v43, 0.0  ;;  %v3712_v56 = vmax.f32 %v11124_v37, %v3252_v5  ;;  %3365 = vrot.lane.b32.xlu0 %v9612_v0, %s6159_s0  ;;  %v11126_v2 = vld [vmem:[#allocation217_spill] sm:$0xff]  ;;  %v11127_v43 = vld [vmem:[#allocation66_spill] sm:$0xff] }
 0x3d3   :  { %3367 = vrot.lane.b32.xlu1 %v9616_v52, %s6159_s0  ;;  %v5683_v21 = vpack.c.bf16 %v4108_v28, %v4108_v28  ;;  %v3914_v47 = vadd.f32 %v9343_v33, %v3711_v31  ;;  %v9636_v60 = vmax.f32 %v11126_v2, %v11125_v8  ;;  %v9640_v63 = vmax.f32 %v11128_v23, %v11127_v43  ;;  %v11129_v23 = vld [vmem:[#allocation84_spill] sm:$0xff] }
 0x3d4   :  { %v5684_v4 = vpack.c.bf16 %v4109_v30, %v4109_v30  ;;  %v3915_v27 = vadd.f32 %v9343_v33, %v3712_v56  ;;  %v3254_v5 = vpop.permute.xlu0 %3253 }
 0x3d5   :  { %v3256_v37 = vpop.permute.xlu1 %3255  ;;  %5089 = vst.msk [vmem:[%s10126_s3 + $0x1f0] sm:$0xf] %vm4964_vm1, %v5683_v21  ;;  %v4110_v28 = vmax.f32 %v3914_v47, 0.0  ;;  %v3713_v8 = vmax.f32 %v8935_v54, %v3254_v5  ;;  %v11132_v54 = vld [vmem:[#allocation231_spill] sm:$0xff] }
 0x3d6   :  { %5090 = vst.msk [vmem:[%s10126_s3 + $0x1f4] sm:$0xf] %vm4964_vm1, %v5684_v4  ;;  %v4111_v30 = vmax.f32 %v3915_v27, 0.0  ;;  %v3714_v31 = vmax.f32 %v8939_v9, %v3256_v37  ;;  %3369 = vrot.lane.b32.xlu0 %v9636_v60, %s6159_s0  ;;  %v11130_v4 = vld [vmem:[#allocation227_spill] sm:$0xff]  ;;  %v11131_v27 = vld [vmem:[#allocation88_spill] sm:$0xff] }
 0x3d7   :  { %3371 = vrot.lane.b32.xlu1 %v9640_v63, %s6159_s0  ;;  %v5685_v56 = vpack.c.bf16 %v4110_v28, %v4110_v28  ;;  %v3916_v21 = vadd.f32 %v9343_v33, %v3713_v8  ;;  %v9660_v47 = vmax.f32 %v11130_v4, %v11129_v23  ;;  %v9664_v5 = vmax.f32 %v11132_v54, %v11131_v27  ;;  %v11133_v54 = vld [vmem:[#allocation234_spill] sm:$0xff] }
 0x3d8   :  { %v5686_v2 = vpack.c.bf16 %v4111_v30, %v4111_v30  ;;  %v3917_v43 = vadd.f32 %v9343_v33, %v3714_v31  ;;  %v3258_v9 = vpop.permute.xlu0 %3257 }
 0x3d9   :  { %v3260_v37 = vpop.permute.xlu1 %3259  ;;  %5091 = vst.msk [vmem:[%s10126_s3 + $0x1f8] sm:$0xf] %vm4964_vm1, %v5685_v56  ;;  %v4112_v28 = vmax.f32 %v3916_v21, 0.0  ;;  %v3715_v8 = vmax.f32 %v8959_v25, %v3258_v9  ;;  %v11136_v25 = vld [vmem:[#allocation228_spill] sm:$0xff] }
 0x3da   :  { %5092 = vst.msk [vmem:[%s10126_s3 + $0x1fc] sm:$0xf] %vm4964_vm1, %v5686_v2  ;;  %v4113_v30 = vmax.f32 %v3917_v43, 0.0  ;;  %v3716_v31 = vmax.f32 %v8963_v22, %v3260_v37  ;;  %3373 = vrot.lane.b32.xlu0 %v9660_v47, %s6159_s0  ;;  %v11134_v2 = vld [vmem:[#allocation226_spill] sm:$0xff] }
 0x3db   :  { %3375 = vrot.lane.b32.xlu1 %v9664_v5, %s6159_s0  ;;  %v5687_v23 = vpack.c.bf16 %v4112_v28, %v4112_v28  ;;  %v3918_v56 = vadd.f32 %v9343_v33, %v3715_v8  ;;  %v9684_v21 = vmax.f32 %v11134_v2, %v11133_v54  ;;  %v11135_v43 = vld [vmem:[#allocation74_spill] sm:$0xff] }
 0x3dc   :  { %v5688_v4 = vpack.c.bf16 %v4113_v30, %v4113_v30  ;;  %v3919_v27 = vadd.f32 %v9343_v33, %v3716_v31  ;;  %v9688_v9 = vmax.f32 %v11136_v25, %v11135_v43  ;;  %v3262_v22 = vpop.permute.xlu0 %3261  ;;  %v11137_v25 = vld [vmem:[#allocation90_spill] sm:$0xff] }
 0x3dd   :  { %v3264_v37 = vpop.permute.xlu1 %3263  ;;  %5093 = vst.msk [vmem:[%s10126_s3 + $0x200] sm:$0xf] %vm4964_vm1, %v5687_v23  ;;  %v4114_v28 = vmax.f32 %v3918_v56, 0.0  ;;  %v3717_v8 = vmax.f32 %v8983_v19, %v3262_v22  ;;  %v11140_v19 = vld [vmem:[#allocation243_spill] sm:$0xff] }
 0x3de   :  { %5094 = vst.msk [vmem:[%s10126_s3 + $0x204] sm:$0xf] %vm4964_vm1, %v5688_v4  ;;  %v4115_v30 = vmax.f32 %v3919_v27, 0.0  ;;  %v3718_v31 = vmax.f32 %v8987_v7, %v3264_v37  ;;  %3377 = vrot.lane.b32.xlu0 %v9684_v21, %s6159_s0  ;;  %v11138_v4 = vld [vmem:[#allocation241_spill] sm:$0xff]  ;;  %v11139_v27 = vld [vmem:[#allocation94_spill] sm:$0xff] }
 0x3df   :  { %3379 = vrot.lane.b32.xlu1 %v9688_v9, %s6159_s0  ;;  %v5689_v54 = vpack.c.bf16 %v4114_v28, %v4114_v28  ;;  %v3920_v23 = vadd.f32 %v9343_v33, %v3717_v8  ;;  %v9708_v56 = vmax.f32 %v11138_v4, %v11137_v25  ;;  %v9712_v22 = vmax.f32 %v11140_v19, %v11139_v27  ;;  %v11141_v19 = vld [vmem:[#allocation247_spill] sm:$0xff] }
 0x3e0   :  { %v5690_v2 = vpack.c.bf16 %v4115_v30, %v4115_v30  ;;  %v3921_v43 = vadd.f32 %v9343_v33, %v3718_v31  ;;  %v3266_v7 = vpop.permute.xlu0 %3265 }
 0x3e1   :  { %v3268_v37 = vpop.permute.xlu1 %3267  ;;  %5095 = vst.msk [vmem:[%s10126_s3 + $0x208] sm:$0xf] %vm4964_vm1, %v5689_v54  ;;  %v4116_v28 = vmax.f32 %v3920_v23, 0.0  ;;  %v3719_v8 = vmax.f32 %v9007_v62, %v3266_v7  ;;  %v11144_v62 = vld [vmem:[#allocation242_spill] sm:$0xff] }
 0x3e2   :  { %5096 = vst.msk [vmem:[%s10126_s3 + $0x20c] sm:$0xf] %vm4964_vm1, %v5690_v2  ;;  %v4117_v30 = vmax.f32 %v3921_v43, 0.0  ;;  %v3720_v31 = vmax.f32 %v9011_v61, %v3268_v37  ;;  %3381 = vrot.lane.b32.xlu0 %v9708_v56, %s6159_s0  ;;  %v11142_v2 = vld [vmem:[#allocation240_spill] sm:$0xff]  ;;  %v11143_v43 = vld [vmem:[#allocation86_spill] sm:$0xff] }
 0x3e3   :  { %3383 = vrot.lane.b32.xlu1 %v9712_v22, %s6159_s0  ;;  %v5691_v25 = vpack.c.bf16 %v4116_v28, %v4116_v28  ;;  %v3922_v54 = vadd.f32 %v9343_v33, %v3719_v8  ;;  %v9732_v23 = vmax.f32 %v11142_v2, %v11141_v19  ;;  %v9736_v7 = vmax.f32 %v11144_v62, %v11143_v43 }
 0x3e4   :  { %v5692_v4 = vpack.c.bf16 %v4117_v30, %v4117_v30  ;;  %v3923_v27 = vadd.f32 %v9343_v33, %v3720_v31  ;;  %v3270_v61 = vpop.permute.xlu0 %3269 }
 0x3e5   :  { %v3272_v37 = vpop.permute.xlu1 %3271  ;;  %5097 = vst.msk [vmem:[%s10126_s3 + $0x210] sm:$0xf] %vm4964_vm1, %v5691_v25  ;;  %v4118_v28 = vmax.f32 %v3922_v54, 0.0  ;;  %v3721_v8 = vmax.f32 %v9031_v6, %v3270_v61 }
 0x3e6   :  { %5098 = vst.msk [vmem:[%s10126_s3 + $0x214] sm:$0xf] %vm4964_vm1, %v5692_v4  ;;  %v4119_v30 = vmax.f32 %v3923_v27, 0.0  ;;  %v3722_v31 = vmax.f32 %v9035_v36, %v3272_v37  ;;  %3385 = vrot.lane.b32.xlu0 %v9732_v23, %s6159_s0 }
 0x3e7   :  { %3387 = vrot.lane.b32.xlu1 %v9736_v7, %s6159_s0  ;;  %v5693_v19 = vpack.c.bf16 %v4118_v28, %v4118_v28  ;;  %v3924_v25 = vadd.f32 %v9343_v33, %v3721_v8 }
 0x3e8   :  { %v5694_v2 = vpack.c.bf16 %v4119_v30, %v4119_v30  ;;  %v3925_v43 = vadd.f32 %v9343_v33, %v3722_v31  ;;  %v3274_v62 = vpop.permute.xlu0 %3273 }
 0x3e9   :  { %v3276_v4 = vpop.permute.xlu1 %3275  ;;  %5099 = vst.msk [vmem:[%s10126_s3 + $0x218] sm:$0xf] %vm4964_vm1, %v5693_v19  ;;  %v4120_v6 = vmax.f32 %v3924_v25, 0.0  ;;  %v3723_v54 = vmax.f32 %v9055_v11, %v3274_v62 }
 0x3ea   :  { %5100 = vst.msk [vmem:[%s10126_s3 + $0x21c] sm:$0xf] %vm4964_vm1, %v5694_v2  ;;  %v4121_v36 = vmax.f32 %v3925_v43, 0.0  ;;  %v3724_v27 = vmax.f32 %v9059_v29, %v3276_v4 }
 0x3eb   :  { %v5695_v61 = vpack.c.bf16 %v4120_v6, %v4120_v6  ;;  %v3926_v28 = vadd.f32 %v9343_v33, %v3723_v54 }
 0x3ec   :  { %v5696_v37 = vpack.c.bf16 %v4121_v36, %v4121_v36  ;;  %v3927_v30 = vadd.f32 %v9343_v33, %v3724_v27  ;;  %v3278_v8 = vpop.permute.xlu0 %3277 }
 0x3ed   :  { %v3280_v31 = vpop.permute.xlu1 %3279  ;;  %5101 = vst.msk [vmem:[%s10126_s3 + $0x220] sm:$0xf] %vm4964_vm1, %v5695_v61  ;;  %v4122_v11 = vmax.f32 %v3926_v28, 0.0  ;;  %v3725_v19 = vmax.f32 %v9079_v32, %v3278_v8 }
 0x3ee   :  { %5102 = vst.msk [vmem:[%s10126_s3 + $0x224] sm:$0xf] %vm4964_vm1, %v5696_v37  ;;  %v4123_v29 = vmax.f32 %v3927_v30, 0.0  ;;  %v3726_v2 = vmax.f32 %v9083_v13, %v3280_v31 }
 0x3ef   :  { %v5697_v25 = vpack.c.bf16 %v4122_v11, %v4122_v11  ;;  %v3928_v62 = vadd.f32 %v9343_v33, %v3725_v19 }
 0x3f0   :  { %v5698_v43 = vpack.c.bf16 %v4123_v29, %v4123_v29  ;;  %v3929_v4 = vadd.f32 %v9343_v33, %v3726_v2  ;;  %v3282_v6 = vpop.permute.xlu0 %3281 }
 0x3f1   :  { %v3284_v36 = vpop.permute.xlu1 %3283  ;;  %5103 = vst.msk [vmem:[%s10126_s3 + $0x228] sm:$0xf] %vm4964_vm1, %v5697_v25  ;;  %v4124_v32 = vmax.f32 %v3928_v62, 0.0  ;;  %v3727_v54 = vmax.f32 %v9103_v42, %v3282_v6 }
 0x3f2   :  { %5104 = vst.msk [vmem:[%s10126_s3 + $0x22c] sm:$0xf] %vm4964_vm1, %v5698_v43  ;;  %v4125_v13 = vmax.f32 %v3929_v4, 0.0  ;;  %v3728_v27 = vmax.f32 %v9107_v1, %v3284_v36 }
 0x3f3   :  { %v5699_v61 = vpack.c.bf16 %v4124_v32, %v4124_v32  ;;  %v3930_v28 = vadd.f32 %v9343_v33, %v3727_v54 }
 0x3f4   :  { %v5700_v37 = vpack.c.bf16 %v4125_v13, %v4125_v13  ;;  %v3931_v30 = vadd.f32 %v9343_v33, %v3728_v27  ;;  %v3286_v8 = vpop.permute.xlu0 %3285 }
 0x3f5   :  { %v3288_v31 = vpop.permute.xlu1 %3287  ;;  %5105 = vst.msk [vmem:[%s10126_s3 + $0x230] sm:$0xf] %vm4964_vm1, %v5699_v61  ;;  %v4126_v42 = vmax.f32 %v3930_v28, 0.0  ;;  %v3729_v11 = vmax.f32 %v9127_v18, %v3286_v8 }
 0x3f6   :  { %5106 = vst.msk [vmem:[%s10126_s3 + $0x234] sm:$0xf] %vm4964_vm1, %v5700_v37  ;;  %v4127_v1 = vmax.f32 %v3931_v30, 0.0  ;;  %v3730_v29 = vmax.f32 %v9131_v55, %v3288_v31 }
 0x3f7   :  { %v5701_v19 = vpack.c.bf16 %v4126_v42, %v4126_v42  ;;  %v3932_v25 = vadd.f32 %v9343_v33, %v3729_v11 }
 0x3f8   :  { %v5702_v2 = vpack.c.bf16 %v4127_v1, %v4127_v1  ;;  %v3933_v43 = vadd.f32 %v9343_v33, %v3730_v29  ;;  %v3290_v62 = vpop.permute.xlu0 %3289 }
 0x3f9   :  { %v3292_v4 = vpop.permute.xlu1 %3291  ;;  %5107 = vst.msk [vmem:[%s10126_s3 + $0x238] sm:$0xf] %vm4964_vm1, %v5701_v19  ;;  %v4128_v18 = vmax.f32 %v3932_v25, 0.0  ;;  %v3731_v6 = vmax.f32 %v9151_v38, %v3290_v62 }
 0x3fa   :  { %5108 = vst.msk [vmem:[%s10126_s3 + $0x23c] sm:$0xf] %vm4964_vm1, %v5702_v2  ;;  %v4129_v55 = vmax.f32 %v3933_v43, 0.0  ;;  %v3732_v36 = vmax.f32 %v9155_v53, %v3292_v4 }
 0x3fb   :  { %v5703_v32 = vpack.c.bf16 %v4128_v18, %v4128_v18  ;;  %v3934_v54 = vadd.f32 %v9343_v33, %v3731_v6 }
 0x3fc   :  { %v5704_v13 = vpack.c.bf16 %v4129_v55, %v4129_v55  ;;  %v3935_v27 = vadd.f32 %v9343_v33, %v3732_v36  ;;  %v3294_v61 = vpop.permute.xlu0 %3293 }
 0x3fd   :  { %v3296_v37 = vpop.permute.xlu1 %3295  ;;  %5109 = vst.msk [vmem:[%s10126_s3 + $0x240] sm:$0xf] %vm4964_vm1, %v5703_v32  ;;  %v4130_v38 = vmax.f32 %v3934_v54, 0.0  ;;  %v3733_v28 = vmax.f32 %v9175_v17, %v3294_v61 }
 0x3fe   :  { %5110 = vst.msk [vmem:[%s10126_s3 + $0x244] sm:$0xf] %vm4964_vm1, %v5704_v13  ;;  %v4131_v53 = vmax.f32 %v3935_v27, 0.0  ;;  %v3734_v30 = vmax.f32 %v9179_v3, %v3296_v37 }
 0x3ff   :  { %v5705_v8 = vpack.c.bf16 %v4130_v38, %v4130_v38  ;;  %v3936_v42 = vadd.f32 %v9343_v33, %v3733_v28 }
 0x400   :  { %v5706_v31 = vpack.c.bf16 %v4131_v53, %v4131_v53  ;;  %v3937_v1 = vadd.f32 %v9343_v33, %v3734_v30  ;;  %v3298_v11 = vpop.permute.xlu0 %3297 }
 0x401   :  { %v3300_v29 = vpop.permute.xlu1 %3299  ;;  %5111 = vst.msk [vmem:[%s10126_s3 + $0x248] sm:$0xf] %vm4964_vm1, %v5705_v8  ;;  %v4132_v17 = vmax.f32 %v3936_v42, 0.0  ;;  %v3735_v19 = vmax.f32 %v9199_v58, %v3298_v11 }
 0x402   :  { %5112 = vst.msk [vmem:[%s10126_s3 + $0x24c] sm:$0xf] %vm4964_vm1, %v5706_v31  ;;  %v4133_v3 = vmax.f32 %v3937_v1, 0.0  ;;  %v3736_v2 = vmax.f32 %v9203_v10, %v3300_v29 }
 0x403   :  { %v5707_v25 = vpack.c.bf16 %v4132_v17, %v4132_v17  ;;  %v3938_v62 = vadd.f32 %v9343_v33, %v3735_v19 }
 0x404   :  { %v5708_v43 = vpack.c.bf16 %v4133_v3, %v4133_v3  ;;  %v3939_v4 = vadd.f32 %v9343_v33, %v3736_v2  ;;  %v3302_v18 = vpop.permute.xlu0 %3301 }
 0x405   :  { %v3304_v55 = vpop.permute.xlu1 %3303  ;;  %5113 = vst.msk [vmem:[%s10126_s3 + $0x250] sm:$0xf] %vm4964_vm1, %v5707_v25  ;;  %v4134_v58 = vmax.f32 %v3938_v62, 0.0  ;;  %v3737_v6 = vmax.f32 %v9223_v16, %v3302_v18 }
 0x406   :  { %5114 = vst.msk [vmem:[%s10126_s3 + $0x254] sm:$0xf] %vm4964_vm1, %v5708_v43  ;;  %v4135_v10 = vmax.f32 %v3939_v4, 0.0  ;;  %v3738_v36 = vmax.f32 %v9227_v24, %v3304_v55 }
 0x407   :  { %v5709_v32 = vpack.c.bf16 %v4134_v58, %v4134_v58  ;;  %v3940_v54 = vadd.f32 %v9343_v33, %v3737_v6 }
 0x408   :  { %v5710_v13 = vpack.c.bf16 %v4135_v10, %v4135_v10  ;;  %v3941_v27 = vadd.f32 %v9343_v33, %v3738_v36  ;;  %v3306_v61 = vpop.permute.xlu0 %3305 }
 0x409   :  { %v3308_v37 = vpop.permute.xlu1 %3307  ;;  %5115 = vst.msk [vmem:[%s10126_s3 + $0x258] sm:$0xf] %vm4964_vm1, %v5709_v32  ;;  %v4136_v16 = vmax.f32 %v3940_v54, 0.0  ;;  %v3739_v38 = vmax.f32 %v9247_v50, %v3306_v61 }
 0x40a   :  { %5116 = vst.msk [vmem:[%s10126_s3 + $0x25c] sm:$0xf] %vm4964_vm1, %v5710_v13  ;;  %v4137_v24 = vmax.f32 %v3941_v27, 0.0  ;;  %v3740_v53 = vmax.f32 %v9251_v20, %v3308_v37  ;;  %v11145_v13 = vld [vmem:[#allocation134_spill] sm:$0xff] }
 0x40b   :  { %v5711_v28 = vpack.c.bf16 %v4136_v16, %v4136_v16  ;;  %v3942_v8 = vadd.f32 %v9343_v33, %v3739_v38 }
 0x40c   :  { %v5712_v30 = vpack.c.bf16 %v4137_v24, %v4137_v24  ;;  %v3943_v31 = vadd.f32 %v9343_v33, %v3740_v53  ;;  %v3310_v42 = vpop.permute.xlu0 %3309 }
 0x40d   :  { %v3312_v1 = vpop.permute.xlu1 %3311  ;;  %5117 = vst.msk [vmem:[%s10126_s3 + $0x260] sm:$0xf] %vm4964_vm1, %v5711_v28  ;;  %v4138_v50 = vmax.f32 %v3942_v8, 0.0  ;;  %v3741_v11 = vmax.f32 %v9271_v46, %v3310_v42  ;;  %v11146_v28 = vld [vmem:[#allocation126_spill] sm:$0xff] }
 0x40e   :  { %5118 = vst.msk [vmem:[%s10126_s3 + $0x264] sm:$0xf] %vm4964_vm1, %v5712_v30  ;;  %v4139_v20 = vmax.f32 %v3943_v31, 0.0  ;;  %v3742_v29 = vmax.f32 %v9275_v40, %v3312_v1  ;;  %v11147_v8 = vld [vmem:[#allocation130_spill] sm:$0xff] }
 0x40f   :  { %v5713_v17 = vpack.c.bf16 %v4138_v50, %v4138_v50  ;;  %v3944_v19 = vadd.f32 %v9343_v33, %v3741_v11 }
 0x410   :  { %v5714_v3 = vpack.c.bf16 %v4139_v20, %v4139_v20  ;;  %v3945_v2 = vadd.f32 %v9343_v33, %v3742_v29  ;;  %v3314_v25 = vpop.permute.xlu0 %3313 }
 0x411   :  { %v3316_v43 = vpop.permute.xlu1 %3315  ;;  %5119 = vst.msk [vmem:[%s10126_s3 + $0x268] sm:$0xf] %vm4964_vm1, %v5713_v17  ;;  %v4140_v46 = vmax.f32 %v3944_v19, 0.0  ;;  %v3743_v62 = vmax.f32 %v9295_v49, %v3314_v25 }
 0x412   :  { %5120 = vst.msk [vmem:[%s10126_s3 + $0x26c] sm:$0xf] %vm4964_vm1, %v5714_v3  ;;  %v4141_v40 = vmax.f32 %v3945_v2, 0.0  ;;  %v3744_v4 = vmax.f32 %v9299_v48, %v3316_v43 }
 0x413   :  { %v5715_v18 = vpack.c.bf16 %v4140_v46, %v4140_v46  ;;  %v3946_v58 = vadd.f32 %v9343_v33, %v3743_v62 }
 0x414   :  { %v5716_v55 = vpack.c.bf16 %v4141_v40, %v4141_v40  ;;  %v3947_v10 = vadd.f32 %v9343_v33, %v3744_v4  ;;  %v3318_v6 = vpop.permute.xlu0 %3317 }
 0x415   :  { %v3320_v36 = vpop.permute.xlu1 %3319  ;;  %5121 = vst.msk [vmem:[%s10126_s3 + $0x270] sm:$0xf] %vm4964_vm1, %v5715_v18  ;;  %v4142_v49 = vmax.f32 %v3946_v58, 0.0  ;;  %v3745_v32 = vmax.f32 %v9319_v59, %v3318_v6  ;;  %v11148_v18 = vld [vmem:[#allocation140_spill] sm:$0xff] }
 0x416   :  { %5122 = vst.msk [vmem:[%s10126_s3 + $0x274] sm:$0xf] %vm4964_vm1, %v5716_v55  ;;  %v4143_v48 = vmax.f32 %v3947_v10, 0.0  ;;  %v3746_v54 = vmax.f32 %v11145_v13, %v3320_v36  ;;  %v11149_v58 = vld [vmem:[#allocation144_spill] sm:$0xff] }
 0x417   :  { %v5717_v27 = vpack.c.bf16 %v4142_v49, %v4142_v49  ;;  %v3948_v37 = vadd.f32 %v9343_v33, %v3745_v32 }
 0x418   :  { %v5718_v61 = vpack.c.bf16 %v4143_v48, %v4143_v48  ;;  %v3949_v16 = vadd.f32 %v9343_v33, %v3746_v54  ;;  %v3322_v24 = vpop.permute.xlu0 %3321 }
 0x419   :  { %v3324_v38 = vpop.permute.xlu1 %3323  ;;  %5123 = vst.msk [vmem:[%s10126_s3 + $0x278] sm:$0xf] %vm4964_vm1, %v5717_v27  ;;  %v4144_v59 = vmax.f32 %v3948_v37, 0.0  ;;  %v3747_v30 = vmax.f32 %v11146_v28, %v3322_v24 }
 0x41a   :  { %5124 = vst.msk [vmem:[%s10126_s3 + $0x27c] sm:$0xf] %vm4964_vm1, %v5718_v61  ;;  %v4145_v53 = vmax.f32 %v3949_v16, 0.0  ;;  %v3748_v31 = vmax.f32 %v11147_v8, %v3324_v38 }
 0x41b   :  { %v5719_v42 = vpack.c.bf16 %v4144_v59, %v4144_v59  ;;  %v3950_v50 = vadd.f32 %v9343_v33, %v3747_v30  ;;  %v11150_v30 = vld [vmem:[#allocation139_spill] sm:$0xff] }
 0x41c   :  { %v5720_v1 = vpack.c.bf16 %v4145_v53, %v4145_v53  ;;  %v3951_v20 = vadd.f32 %v9343_v33, %v3748_v31  ;;  %v3326_v11 = vpop.permute.xlu0 %3325  ;;  %v11151_v31 = vld [vmem:[#allocation141_spill] sm:$0xff] }
 0x41d   :  { %v3328_v29 = vpop.permute.xlu1 %3327  ;;  %5125 = vst.msk [vmem:[%s10126_s3 + $0x280] sm:$0xf] %vm4964_vm1, %v5719_v42  ;;  %v4146_v17 = vmax.f32 %v3950_v50, 0.0  ;;  %v3749_v19 = vmax.f32 %v9372_v39, %v3326_v11 }
 0x41e   :  { %5126 = vst.msk [vmem:[%s10126_s3 + $0x284] sm:$0xf] %vm4964_vm1, %v5720_v1  ;;  %v4147_v3 = vmax.f32 %v3951_v20, 0.0  ;;  %v3750_v2 = vmax.f32 %v9376_v45, %v3328_v29 }
 0x41f   :  { %v5721_v25 = vpack.c.bf16 %v4146_v17, %v4146_v17  ;;  %v3952_v46 = vadd.f32 %v9343_v33, %v3749_v19 }
 0x420   :  { %v5722_v43 = vpack.c.bf16 %v4147_v3, %v4147_v3  ;;  %v3953_v40 = vadd.f32 %v9343_v33, %v3750_v2  ;;  %v3330_v62 = vpop.permute.xlu0 %3329 }
 0x421   :  { %v3332_v4 = vpop.permute.xlu1 %3331  ;;  %5127 = vst.msk [vmem:[%s10126_s3 + $0x288] sm:$0xf] %vm4964_vm1, %v5721_v25  ;;  %v4148_v39 = vmax.f32 %v3952_v46, 0.0  ;;  %v3751_v55 = vmax.f32 %v11148_v18, %v3330_v62 }
 0x422   :  { %5128 = vst.msk [vmem:[%s10126_s3 + $0x28c] sm:$0xf] %vm4964_vm1, %v5722_v43  ;;  %v4149_v45 = vmax.f32 %v3953_v40, 0.0  ;;  %v3752_v10 = vmax.f32 %v11149_v58, %v3332_v4 }
 0x423   :  { %v5723_v6 = vpack.c.bf16 %v4148_v39, %v4148_v39  ;;  %v3954_v49 = vadd.f32 %v9343_v33, %v3751_v55  ;;  %v11153_v55 = vld [vmem:[#allocation154_spill] sm:$0xff] }
 0x424   :  { %v5724_v36 = vpack.c.bf16 %v4149_v45, %v4149_v45  ;;  %v3955_v48 = vadd.f32 %v9343_v33, %v3752_v10  ;;  %v3334_v32 = vpop.permute.xlu0 %3333  ;;  %v11152_v45 = vld [vmem:[#allocation184_spill] sm:$0xff] }
 0x425   :  { %v3336_v13 = vpop.permute.xlu1 %3335  ;;  %5129 = vst.msk [vmem:[%s10126_s3 + $0x290] sm:$0xf] %vm4964_vm1, %v5723_v6  ;;  %v4150_v54 = vmax.f32 %v3954_v49, 0.0  ;;  %v3753_v61 = vmax.f32 %v9420_v51, %v3334_v32 }
 0x426   :  { %5130 = vst.msk [vmem:[%s10126_s3 + $0x294] sm:$0xf] %vm4964_vm1, %v5724_v36  ;;  %v4151_v27 = vmax.f32 %v3955_v48, 0.0  ;;  %v3754_v37 = vmax.f32 %v9424_v44, %v3336_v13 }
 0x427   :  { %v5725_v16 = vpack.c.bf16 %v4150_v54, %v4150_v54  ;;  %v3956_v38 = vadd.f32 %v9343_v33, %v3753_v61 }
 0x428   :  { %v5726_v24 = vpack.c.bf16 %v4151_v27, %v4151_v27  ;;  %v3957_v59 = vadd.f32 %v9343_v33, %v3754_v37  ;;  %v3338_v53 = vpop.permute.xlu0 %3337 }
 0x429   :  { %v3340_v28 = vpop.permute.xlu1 %3339  ;;  %5131 = vst.msk [vmem:[%s10126_s3 + $0x298] sm:$0xf] %vm4964_vm1, %v5725_v16  ;;  %v4152_v51 = vmax.f32 %v3956_v38, 0.0  ;;  %v3755_v8 = vmax.f32 %v11150_v30, %v3338_v53  ;;  %v9996_v38 = vld [vmem:[%s10125_s2] ss:$0 sm:$0xff] }
 0x42a   :  { %5132 = vst.msk [vmem:[%s10126_s3 + $0x29c] sm:$0xf] %vm4964_vm1, %v5726_v24  ;;  %v4153_v44 = vmax.f32 %v3957_v59, 0.0  ;;  %v3756_v42 = vmax.f32 %v11151_v31, %v3340_v28 }
 0x42b   :  { %v5727_v1 = vpack.c.bf16 %v4152_v51, %v4152_v51  ;;  %v3958_v20 = vadd.f32 %v9343_v33, %v3755_v8 }
 0x42c   :  { %v5728_v50 = vpack.c.bf16 %v4153_v44, %v4153_v44  ;;  %v3959_v11 = vadd.f32 %v9343_v33, %v3756_v42  ;;  %v3342_v29 = vpop.permute.xlu0 %3341 }
 0x42d   :  { %v3344_v17 = vpop.permute.xlu1 %3343  ;;  %5133 = vst.msk [vmem:[%s10126_s3 + $0x2a0] sm:$0xf] %vm4964_vm1, %v5727_v1  ;;  %v4154_v3 = vmax.f32 %v3958_v20, 0.0  ;;  %v3757_v2 = vmax.f32 %v9468_v15, %v3342_v29  ;;  %v11154_v20 = vld [vmem:[#allocation26_spill] sm:$0xff] }
 0x42e   :  { %5134 = vst.msk [vmem:[%s10126_s3 + $0x2a4] sm:$0xf] %vm4964_vm1, %v5728_v50  ;;  %v4155_v19 = vmax.f32 %v3959_v11, 0.0  ;;  %v3758_v25 = vmax.f32 %v9472_v57, %v3344_v17 }
 0x42f   :  { %v5729_v43 = vpack.c.bf16 %v4154_v3, %v4154_v3  ;;  %v3960_v40 = vadd.f32 %v9343_v33, %v3757_v2 }
 0x430   :  { %v5730_v46 = vpack.c.bf16 %v4155_v19, %v4155_v19  ;;  %v3961_v62 = vadd.f32 %v9343_v33, %v3758_v25  ;;  %v3346_v4 = vpop.permute.xlu0 %3345 }
 0x431   :  { %v3348_v39 = vpop.permute.xlu1 %3347  ;;  %5135 = vst.msk [vmem:[%s10126_s3 + $0x2a8] sm:$0xf] %vm4964_vm1, %v5729_v43  ;;  %v4156_v15 = vmax.f32 %v3960_v40, 0.0  ;;  %v3759_v18 = vmax.f32 %v11152_v45, %v3346_v4  ;;  %v11155_v40 = vld [vmem:[#allocation189_spill] sm:$0xff] }
 0x432   :  { %5136 = vst.msk [vmem:[%s10126_s3 + $0x2ac] sm:$0xf] %vm4964_vm1, %v5730_v46  ;;  %v4157_v57 = vmax.f32 %v3961_v62, 0.0  ;;  %v3760_v58 = vmax.f32 %v11153_v55, %v3348_v39 }
 0x433   :  { %v5731_v10 = vpack.c.bf16 %v4156_v15, %v4156_v15  ;;  %v3962_v36 = vadd.f32 %v9343_v33, %v3759_v18 }
 0x434   :  { %v5732_v6 = vpack.c.bf16 %v4157_v57, %v4157_v57  ;;  %v3963_v49 = vadd.f32 %v9343_v33, %v3760_v58  ;;  %v3350_v48 = vpop.permute.xlu0 %3349 }
 0x435   :  { %v3352_v32 = vpop.permute.xlu1 %3351  ;;  %5137 = vst.msk [vmem:[%s10126_s3 + $0x2b0] sm:$0xf] %vm4964_vm1, %v5731_v10  ;;  %v4158_v13 = vmax.f32 %v3962_v36, 0.0  ;;  %v3761_v27 = vmax.f32 %v9516_v26, %v3350_v48 }
 0x436   :  { %5138 = vst.msk [vmem:[%s10126_s3 + $0x2b4] sm:$0xf] %vm4964_vm1, %v5732_v6  ;;  %v4159_v54 = vmax.f32 %v3963_v49, 0.0  ;;  %v3762_v61 = vmax.f32 %v9520_v35, %v3352_v32 }
 0x437   :  { %v5733_v37 = vpack.c.bf16 %v4158_v13, %v4158_v13  ;;  %v3964_v24 = vadd.f32 %v9343_v33, %v3761_v27 }
 0x438   :  { %v5734_v16 = vpack.c.bf16 %v4159_v54, %v4159_v54  ;;  %v3965_v59 = vadd.f32 %v9996_v38, %v3762_v61  ;;  %v3354_v53 = vpop.permute.xlu0 %3353 }
 0x439   :  { %v3356_v28 = vpop.permute.xlu1 %3355  ;;  %5139 = vst.msk [vmem:[%s10126_s3 + $0x2b8] sm:$0xf] %vm4964_vm1, %v5733_v37  ;;  %v4160_v33 = vmax.f32 %v3964_v24, 0.0  ;;  %v3763_v35 = vmax.f32 %v9540_v34, %v3354_v53 }
 0x43a   :  { %5140 = vst.msk [vmem:[%s10126_s3 + $0x2bc] sm:$0xf] %vm4964_vm1, %v5734_v16  ;;  %v4161_v26 = vmax.f32 %v3965_v59, 0.0  ;;  %v3764_v51 = vmax.f32 %v9544_v14, %v3356_v28 }
 0x43b   :  { %v5735_v44 = vpack.c.bf16 %v4160_v33, %v4160_v33  ;;  %v3966_v8 = vadd.f32 %v9996_v38, %v3763_v35 }
 0x43c   :  { %v5736_v30 = vpack.c.bf16 %v4161_v26, %v4161_v26  ;;  %v3967_v31 = vadd.f32 %v9996_v38, %v3764_v51  ;;  %v3358_v42 = vpop.permute.xlu0 %3357 }
 0x43d   :  { %v3360_v1 = vpop.permute.xlu1 %3359  ;;  %5141 = vst.msk [vmem:[%s10126_s3 + $0x2c0] sm:$0xf] %vm4964_vm1, %v5735_v44  ;;  %v4162_v34 = vmax.f32 %v3966_v8, 0.0  ;;  %v3765_v50 = vmax.f32 %v9564_v12, %v3358_v42 }
 0x43e   :  { %5142 = vst.msk [vmem:[%s10126_s3 + $0x2c4] sm:$0xf] %vm4964_vm1, %v5736_v30  ;;  %v4163_v14 = vmax.f32 %v3967_v31, 0.0  ;;  %v3766_v11 = vmax.f32 %v11154_v20, %v3360_v1 }
 0x43f   :  { %v5737_v29 = vpack.c.bf16 %v4162_v34, %v4162_v34  ;;  %v3968_v3 = vadd.f32 %v9996_v38, %v3765_v50 }
 0x440   :  { %v5738_v17 = vpack.c.bf16 %v4163_v14, %v4163_v14  ;;  %v3969_v19 = vadd.f32 %v9996_v38, %v3766_v11  ;;  %v3362_v2 = vpop.permute.xlu0 %3361 }
 0x441   :  { %v3364_v25 = vpop.permute.xlu1 %3363  ;;  %5143 = vst.msk [vmem:[%s10126_s3 + $0x2c8] sm:$0xf] %vm4964_vm1, %v5737_v29  ;;  %v4164_v12 = vmax.f32 %v3968_v3, 0.0  ;;  %v3767_v46 = vmax.f32 %v9588_v41, %v3362_v2 }
 0x442   :  { %5144 = vst.msk [vmem:[%s10126_s3 + $0x2cc] sm:$0xf] %vm4964_vm1, %v5738_v17  ;;  %v4165_v43 = vmax.f32 %v3969_v19, 0.0  ;;  %v3768_v62 = vmax.f32 %v11155_v40, %v3364_v25 }
 0x443   :  { %v5739_v4 = vpack.c.bf16 %v4164_v12, %v4164_v12  ;;  %v3970_v15 = vadd.f32 %v9996_v38, %v3767_v46 }
 0x444   :  { %v5740_v39 = vpack.c.bf16 %v4165_v43, %v4165_v43  ;;  %v3971_v57 = vadd.f32 %v9996_v38, %v3768_v62  ;;  %v3366_v45 = vpop.permute.xlu0 %3365 }
 0x445   :  { %v3368_v18 = vpop.permute.xlu1 %3367  ;;  %5145 = vst.msk [vmem:[%s10126_s3 + $0x2d0] sm:$0xf] %vm4964_vm1, %v5739_v4  ;;  %v4166_v41 = vmax.f32 %v3970_v15, 0.0  ;;  %v3769_v58 = vmax.f32 %v9612_v0, %v3366_v45 }
 0x446   :  { %5146 = vst.msk [vmem:[%s10126_s3 + $0x2d4] sm:$0xf] %vm4964_vm1, %v5740_v39  ;;  %v4167_v55 = vmax.f32 %v3971_v57, 0.0  ;;  %v3770_v10 = vmax.f32 %v9616_v52, %v3368_v18 }
 0x447   :  { %v5741_v6 = vpack.c.bf16 %v4166_v41, %v4166_v41  ;;  %v3972_v49 = vadd.f32 %v9996_v38, %v3769_v58 }
 0x448   :  { %v5742_v36 = vpack.c.bf16 %v4167_v55, %v4167_v55  ;;  %v3973_v48 = vadd.f32 %v9996_v38, %v3770_v10  ;;  %v3370_v32 = vpop.permute.xlu0 %3369 }
 0x449   :  { %v3372_v13 = vpop.permute.xlu1 %3371  ;;  %5147 = vst.msk [vmem:[%s10126_s3 + $0x2d8] sm:$0xf] %vm4964_vm1, %v5741_v6  ;;  %v4168_v0 = vmax.f32 %v3972_v49, 0.0  ;;  %v3771_v54 = vmax.f32 %v9636_v60, %v3370_v32 }
 0x44a   :  { %5148 = vst.msk [vmem:[%s10126_s3 + $0x2dc] sm:$0xf] %vm4964_vm1, %v5742_v36  ;;  %v4169_v52 = vmax.f32 %v3973_v48, 0.0  ;;  %v3772_v27 = vmax.f32 %v9640_v63, %v3372_v13 }
 0x44b   :  { %v5743_v61 = vpack.c.bf16 %v4168_v0, %v4168_v0  ;;  %v3974_v16 = vadd.f32 %v9996_v38, %v3771_v54 }
 0x44c   :  { %v5744_v37 = vpack.c.bf16 %v4169_v52, %v4169_v52  ;;  %v3975_v24 = vadd.f32 %v9996_v38, %v3772_v27  ;;  %v3374_v59 = vpop.permute.xlu0 %3373 }
 0x44d   :  { %v3376_v53 = vpop.permute.xlu1 %3375  ;;  %5149 = vst.msk [vmem:[%s10126_s3 + $0x2e0] sm:$0xf] %vm4964_vm1, %v5743_v61  ;;  %v4170_v60 = vmax.f32 %v3974_v16, 0.0  ;;  %v3773_v28 = vmax.f32 %v9660_v47, %v3374_v59 }
 0x44e   :  { %5150 = vst.msk [vmem:[%s10126_s3 + $0x2e4] sm:$0xf] %vm4964_vm1, %v5744_v37  ;;  %v4171_v63 = vmax.f32 %v3975_v24, 0.0  ;;  %v3774_v33 = vmax.f32 %v9664_v5, %v3376_v53 }
 0x44f   :  { %v5745_v26 = vpack.c.bf16 %v4170_v60, %v4170_v60  ;;  %v3976_v51 = vadd.f32 %v9996_v38, %v3773_v28 }
 0x450   :  { %v5746_v35 = vpack.c.bf16 %v4171_v63, %v4171_v63  ;;  %v3977_v44 = vadd.f32 %v9996_v38, %v3774_v33  ;;  %v3378_v30 = vpop.permute.xlu0 %3377 }
 0x451   :  { %v3380_v8 = vpop.permute.xlu1 %3379  ;;  %5151 = vst.msk [vmem:[%s10126_s3 + $0x2e8] sm:$0xf] %vm4964_vm1, %v5745_v26  ;;  %v4172_v47 = vmax.f32 %v3976_v51, 0.0  ;;  %v3775_v31 = vmax.f32 %v9684_v21, %v3378_v30 }
 0x452   :  { %5152 = vst.msk [vmem:[%s10126_s3 + $0x2ec] sm:$0xf] %vm4964_vm1, %v5746_v35  ;;  %v4173_v5 = vmax.f32 %v3977_v44, 0.0  ;;  %v3776_v42 = vmax.f32 %v9688_v9, %v3380_v8 }
 0x453   :  { %v5747_v1 = vpack.c.bf16 %v4172_v47, %v4172_v47  ;;  %v3978_v14 = vadd.f32 %v9996_v38, %v3775_v31 }
 0x454   :  { %v5748_v34 = vpack.c.bf16 %v4173_v5, %v4173_v5  ;;  %v3979_v50 = vadd.f32 %v9996_v38, %v3776_v42  ;;  %v3382_v20 = vpop.permute.xlu0 %3381 }
 0x455   :  { %v3384_v11 = vpop.permute.xlu1 %3383  ;;  %5153 = vst.msk [vmem:[%s10126_s3 + $0x2f0] sm:$0xf] %vm4964_vm1, %v5747_v1  ;;  %v4174_v21 = vmax.f32 %v3978_v14, 0.0  ;;  %v3777_v29 = vmax.f32 %v9708_v56, %v3382_v20 }
 0x456   :  { %5154 = vst.msk [vmem:[%s10126_s3 + $0x2f4] sm:$0xf] %vm4964_vm1, %v5748_v34  ;;  %v4175_v9 = vmax.f32 %v3979_v50, 0.0  ;;  %v3778_v17 = vmax.f32 %v9712_v22, %v3384_v11 }
 0x457   :  { %v5749_v3 = vpack.c.bf16 %v4174_v21, %v4174_v21  ;;  %v3980_v2 = vadd.f32 %v9996_v38, %v3777_v29 }
 0x458   :  { %v5750_v19 = vpack.c.bf16 %v4175_v9, %v4175_v9  ;;  %v3981_v25 = vadd.f32 %v9996_v38, %v3778_v17  ;;  %v3386_v12 = vpop.permute.xlu0 %3385 }
 0x459   :  { %v3388_v43 = vpop.permute.xlu1 %3387  ;;  %5155 = vst.msk [vmem:[%s10126_s3 + $0x2f8] sm:$0xf] %vm4964_vm1, %v5749_v3  ;;  %v4176_v56 = vmax.f32 %v3980_v2, 0.0  ;;  %v3779_v46 = vmax.f32 %v9732_v23, %v3386_v12 }
 0x45a   :  { %5156 = vst.msk [vmem:[%s10126_s3 + $0x2fc] sm:$0xf] %vm4964_vm1, %v5750_v19  ;;  %v4177_v22 = vmax.f32 %v3981_v25, 0.0  ;;  %v3780_v40 = vmax.f32 %v9736_v7, %v3388_v43 }
 0x45b   :  { %v5751_v62 = vpack.c.bf16 %v4176_v56, %v4176_v56  ;;  %v3982_v39 = vadd.f32 %v9996_v38, %v3779_v46 }
 0x45c   :  { %v5752_v4 = vpack.c.bf16 %v4177_v22, %v4177_v22  ;;  %v3983_v15 = vadd.f32 %v9996_v38, %v3780_v40 }
 0x45d   :  { %5157 = vst.msk [vmem:[%s10126_s3 + $0x300] sm:$0xf] %vm4964_vm1, %v5751_v62  ;;  %v4178_v57 = vmax.f32 %v3982_v39, 0.0 }
 0x45e   :  { %5158 = vst.msk [vmem:[%s10126_s3 + $0x304] sm:$0xf] %vm4964_vm1, %v5752_v4  ;;  %v4179_v23 = vmax.f32 %v3983_v15, 0.0 }
 0x45f   :  { %v5753_v45 = vpack.c.bf16 %v4178_v57, %v4178_v57 }
 0x460   :  { %v5754_v7 = vpack.c.bf16 %v4179_v23, %v4179_v23 }
 0x461   :  { %5159 = vst.msk [vmem:[%s10126_s3 + $0x308] sm:$0xf] %vm4964_vm1, %v5753_v45 }
 0x462   :  { %5160 = vst.msk [vmem:[%s10126_s3 + $0x30c] sm:$0xf] %vm4964_vm1, %v5754_v7 }

// kernel: forward.4
= control target key start
LH: loop header
LB: loop body
LE: loop exit
PB: predicated region body
PF: predicated region fallthrough
CT: control target
= control target key end

     0   :  { %vm2393_vm0 = vcmask 519168   ;;  %s4306_s1 = inlined_call_operand.vmem [shape: bf16[512,256], index: 1, kind: input, shape index: {}]   ;;  %s4307_s0 = inlined_call_operand.vmem [shape: bf16[392,512], index: 0, kind: input, shape index: {}]   ;;  %s4308_s2 = inlined_call_operand.vmem [shape: f32[1,64], index: 2, kind: input, shape index: {}]   ;;  %s4309_s3 = inlined_call_operand.vmem [shape: bf16[392,64], index: 3, kind: output, shape index: {}]  }
   0x1   :  { %v2809_v0 = vld [vmem:[%s4306_s1 + $0x4] ss:$8 sps:$4 sm:$0xff]   ;;  %v2813_v2 = vld [vmem:[%s4306_s1] ss:$8 sps:$4 sm:$0xff]   ;;  %v2815_v4 = vld [vmem:[%s4306_s1 + $0x14] ss:$8 sps:$4 sm:$0xff]  }
   0x2   :  { %v2811_v1 = vld [vmem:[%s4306_s1 + $0x104] ss:$8 sps:$4 sm:$0xff]   ;;  %990 = vmatprep.subr.bf16.mxu1 %v2809_v0  ;;  %v2814_v3 = vld [vmem:[%s4306_s1 + $0x100] ss:$8 sps:$4 sm:$0xff]   ;;  %v2817_v5 = vld [vmem:[%s4306_s1 + $0x114] ss:$8 sps:$4 sm:$0xff]  }
   0x3   :  { %1271 = vmatprep.subr.bf16.mxu0 %v2811_v1  ;;  %991 = vmatpush1.bf16.msra.mxu1 %v2813_v2  ;;  %v2819_v6 = vld [vmem:[%s4306_s1 + $0x10] ss:$8 sps:$4 sm:$0xff]   ;;  %v2821_v8 = vld [vmem:[%s4306_s1 + $0x24] ss:$8 sps:$4 sm:$0xff]   ;;  %v2825_v10 = vld [vmem:[%s4306_s1 + $0x20] ss:$8 sps:$4 sm:$0xff]  }
   0x4   :  { %1272 = vmatpush1.bf16.msra.mxu0 %v2814_v3  ;;  %992 = vmatprep.subr.bf16.mxu1 %v2815_v4  ;;  %v2820_v7 = vld [vmem:[%s4306_s1 + $0x110] ss:$8 sps:$4 sm:$0xff]   ;;  %v2823_v9 = vld [vmem:[%s4306_s1 + $0x124] ss:$8 sps:$4 sm:$0xff]   ;;  %v2826_v11 = vld [vmem:[%s4306_s1 + $0x120] ss:$8 sps:$4 sm:$0xff]  }
   0x5   :  { %1273 = vmatprep.subr.bf16.mxu0 %v2817_v5  ;;  %v2827_v12 = vld [vmem:[%s4306_s1 + $0x34] ss:$8 sps:$4 sm:$0xff]   ;;  %v2831_v14 = vld [vmem:[%s4306_s1 + $0x30] ss:$8 sps:$4 sm:$0xff]   ;;  %v2833_v16 = vld [vmem:[%s4306_s1 + $0x44] ss:$8 sps:$4 sm:$0xff]  }
   0x6   :  { %v2829_v13 = vld [vmem:[%s4306_s1 + $0x134] ss:$8 sps:$4 sm:$0xff]   ;;  %v2832_v15 = vld [vmem:[%s4306_s1 + $0x130] ss:$8 sps:$4 sm:$0xff]   ;;  %v2835_v17 = vld [vmem:[%s4306_s1 + $0x144] ss:$8 sps:$4 sm:$0xff]  }
   0x7   :  { %993 = vmatpush1.bf16.msra.mxu1 %v2819_v6  ;;  %v2837_v18 = vld [vmem:[%s4306_s1 + $0x40] ss:$8 sps:$4 sm:$0xff]   ;;  %v2839_v20 = vld [vmem:[%s4306_s1 + $0x54] ss:$8 sps:$4 sm:$0xff]   ;;  %v2843_v22 = vld [vmem:[%s4306_s1 + $0x50] ss:$8 sps:$4 sm:$0xff]  }
   0x8   :  { %1274 = vmatpush1.bf16.msra.mxu0 %v2820_v7  ;;  %994 = vmatprep.subr.bf16.mxu1 %v2821_v8  ;;  %v2838_v19 = vld [vmem:[%s4306_s1 + $0x140] ss:$8 sps:$4 sm:$0xff]   ;;  %v2841_v21 = vld [vmem:[%s4306_s1 + $0x154] ss:$8 sps:$4 sm:$0xff]   ;;  %v2844_v23 = vld [vmem:[%s4306_s1 + $0x150] ss:$8 sps:$4 sm:$0xff]  }
   0x9   :  { %1275 = vmatprep.subr.bf16.mxu0 %v2823_v9  ;;  %v2845_v24 = vld [vmem:[%s4306_s1 + $0x64] ss:$8 sps:$4 sm:$0xff]   ;;  %v2849_v26 = vld [vmem:[%s4306_s1 + $0x60] ss:$8 sps:$4 sm:$0xff]   ;;  %v2851_v28 = vld [vmem:[%s4306_s1 + $0x74] ss:$8 sps:$4 sm:$0xff]  }
   0xa   :  { %v2847_v25 = vld [vmem:[%s4306_s1 + $0x164] ss:$8 sps:$4 sm:$0xff]   ;;  %v2850_v27 = vld [vmem:[%s4306_s1 + $0x160] ss:$8 sps:$4 sm:$0xff]   ;;  %v2853_v29 = vld [vmem:[%s4306_s1 + $0x174] ss:$8 sps:$4 sm:$0xff]  }
   0xb   :  { %995 = vmatpush1.bf16.msra.mxu1 %v2825_v10  ;;  %v2855_v30 = vld [vmem:[%s4306_s1 + $0x70] ss:$8 sps:$4 sm:$0xff]   ;;  %v2857_v32 = vld [vmem:[%s4306_s1 + $0x84] ss:$8 sps:$4 sm:$0xff]   ;;  %v2861_v34 = vld [vmem:[%s4306_s1 + $0x80] ss:$8 sps:$4 sm:$0xff]  }
   0xc   :  { %1276 = vmatpush1.bf16.msra.mxu0 %v2826_v11  ;;  %996 = vmatprep.subr.bf16.mxu1 %v2827_v12  ;;  %v2856_v31 = vld [vmem:[%s4306_s1 + $0x170] ss:$8 sps:$4 sm:$0xff]   ;;  %v2859_v33 = vld [vmem:[%s4306_s1 + $0x184] ss:$8 sps:$4 sm:$0xff]   ;;  %v2862_v35 = vld [vmem:[%s4306_s1 + $0x180] ss:$8 sps:$4 sm:$0xff]  }
   0xd   :  { %1277 = vmatprep.subr.bf16.mxu0 %v2829_v13  ;;  %v2863_v36 = vld [vmem:[%s4306_s1 + $0x94] ss:$8 sps:$4 sm:$0xff]   ;;  %v2867_v38 = vld [vmem:[%s4306_s1 + $0x90] ss:$8 sps:$4 sm:$0xff]   ;;  %v2869_v40 = vld [vmem:[%s4306_s1 + $0xa4] ss:$8 sps:$4 sm:$0xff]  }
   0xe   :  { %v2865_v37 = vld [vmem:[%s4306_s1 + $0x194] ss:$8 sps:$4 sm:$0xff]   ;;  %v2868_v39 = vld [vmem:[%s4306_s1 + $0x190] ss:$8 sps:$4 sm:$0xff]   ;;  %v2871_v41 = vld [vmem:[%s4306_s1 + $0x1a4] ss:$8 sps:$4 sm:$0xff]  }
   0xf   :  { %997 = vmatpush1.bf16.msra.mxu1 %v2831_v14  ;;  %v2873_v42 = vld [vmem:[%s4306_s1 + $0xa0] ss:$8 sps:$4 sm:$0xff]   ;;  %v2875_v44 = vld [vmem:[%s4306_s1 + $0xb4] ss:$8 sps:$4 sm:$0xff]   ;;  %v2879_v46 = vld [vmem:[%s4306_s1 + $0xb0] ss:$8 sps:$4 sm:$0xff]  }
  0x10   :  { %1278 = vmatpush1.bf16.msra.mxu0 %v2832_v15  ;;  %998 = vmatprep.subr.bf16.mxu1 %v2833_v16  ;;  %v2874_v43 = vld [vmem:[%s4306_s1 + $0x1a0] ss:$8 sps:$4 sm:$0xff]   ;;  %v2877_v45 = vld [vmem:[%s4306_s1 + $0x1b4] ss:$8 sps:$4 sm:$0xff]   ;;  %v2880_v47 = vld [vmem:[%s4306_s1 + $0x1b0] ss:$8 sps:$4 sm:$0xff]  }
  0x11   :  { %1279 = vmatprep.subr.bf16.mxu0 %v2835_v17  ;;  %v2881_v48 = vld [vmem:[%s4306_s1 + $0xc4] ss:$8 sps:$4 sm:$0xff]   ;;  %v2885_v52 = vld [vmem:[%s4306_s1 + $0xc0] ss:$8 sps:$4 sm:$0xff]   ;;  %v2887_v54 = vld [vmem:[%s4306_s1 + $0xd4] ss:$8 sps:$4 sm:$0xff]  }
  0x12   :  { %v2907_v49 = vld [vmem:[%s4307_s0 + $0x4] ss:$16 sps:$4 sm:$0xff]   ;;  %v2910_v51 = vld [vmem:[%s4307_s0 + $0xc] ss:$16 sps:$4 sm:$0xff]   ;;  %v2886_v53 = vld [vmem:[%s4306_s1 + $0x1c0] ss:$8 sps:$4 sm:$0xff]  }
  0x13   :  { %999 = vmatpush1.bf16.msra.mxu1 %v2837_v18  ;;  %v2883_v50 = vld [vmem:[%s4306_s1 + $0x1c4] ss:$8 sps:$4 sm:$0xff]   ;;  %1022 = vmatprep.mubr.bf16.mxu1 %v2907_v49  ;;  %v2889_v55 = vld [vmem:[%s4306_s1 + $0x1d4] ss:$8 sps:$4 sm:$0xff]   ;;  %v2891_v56 = vld [vmem:[%s4306_s1 + $0xd0] ss:$8 sps:$4 sm:$0xff]  }
  0x14   :  { %1280 = vmatpush1.bf16.msra.mxu0 %v2838_v19  ;;  %1000 = vmatprep.subr.bf16.mxu1 %v2839_v20  ;;  %v2892_v57 = vld [vmem:[%s4306_s1 + $0x1d0] ss:$8 sps:$4 sm:$0xff]   ;;  %v2893_v58 = vld [vmem:[%s4306_s1 + $0xe4] ss:$8 sps:$4 sm:$0xff]   ;;  %v2897_v60 = vld [vmem:[%s4306_s1 + $0xe0] ss:$8 sps:$4 sm:$0xff]  }
  0x15   :  { %1281 = vmatprep.subr.bf16.mxu0 %v2841_v21  ;;  %1303 = vmatprep.mubr.bf16.mxu0 %v2910_v51  ;;  %v2895_v59 = vld [vmem:[%s4306_s1 + $0x1e4] ss:$8 sps:$4 sm:$0xff]   ;;  %v2898_v61 = vld [vmem:[%s4306_s1 + $0x1e0] ss:$8 sps:$4 sm:$0xff]   ;;  %v2899_v62 = vld [vmem:[%s4306_s1 + $0xf4] ss:$8 sps:$4 sm:$0xff]  }
  0x16   :  { %v2901_v63 = vld [vmem:[%s4306_s1 + $0x1f4] ss:$8 sps:$4 sm:$0xff]   ;;  %v2903_v0 = vld [vmem:[%s4306_s1 + $0xf0] ss:$8 sps:$4 sm:$0xff]  }
  0x17   :  { %1001 = vmatpush1.bf16.msra.mxu1 %v2843_v22  ;;  %v2904_v1 = vld [vmem:[%s4306_s1 + $0x1f0] ss:$8 sps:$4 sm:$0xff]   ;;  %v2911_v4 = vld [vmem:[%s4307_s0 + $0x24] ss:$16 sps:$4 sm:$0xff]   ;;  %v2913_v5 = vld [vmem:[%s4307_s0 + $0x2c] ss:$16 sps:$4 sm:$0xff]  }
  0x18   :  { %1282 = vmatpush1.bf16.msra.mxu0 %v2844_v23  ;;  %1002 = vmatprep.subr.bf16.mxu1 %v2845_v24  ;;  %v2905_v2 = vld [vmem:[%s4307_s0] ss:$16 sps:$4 sm:$0xff]   ;;  %v2908_v3 = vld [vmem:[%s4307_s0 + $0x8] ss:$16 sps:$4 sm:$0xff]   ;;  %v2917_v8 = vld [vmem:[%s4307_s0 + $0x44] ss:$16 sps:$4 sm:$0xff]  }
  0x19   :  { %1283 = vmatprep.subr.bf16.mxu0 %v2847_v25  ;;  %v2915_v6 = vld [vmem:[%s4307_s0 + $0x20] ss:$16 sps:$4 sm:$0xff]   ;;  %v2916_v7 = vld [vmem:[%s4307_s0 + $0x28] ss:$16 sps:$4 sm:$0xff]   ;;  %v2919_v9 = vld [vmem:[%s4307_s0 + $0x4c] ss:$16 sps:$4 sm:$0xff]  }
  0x1a   :  { %v2921_v10 = vld [vmem:[%s4307_s0 + $0x40] ss:$16 sps:$4 sm:$0xff]   ;;  %v2922_v11 = vld [vmem:[%s4307_s0 + $0x48] ss:$16 sps:$4 sm:$0xff]   ;;  %v2923_v12 = vld [vmem:[%s4307_s0 + $0x64] ss:$16 sps:$4 sm:$0xff]  }
  0x1b   :  { %1003 = vmatpush1.bf16.msra.mxu1 %v2849_v26  ;;  %v2925_v13 = vld [vmem:[%s4307_s0 + $0x6c] ss:$16 sps:$4 sm:$0xff]   ;;  %v2927_v14 = vld [vmem:[%s4307_s0 + $0x60] ss:$16 sps:$4 sm:$0xff]   ;;  %v2928_v15 = vld [vmem:[%s4307_s0 + $0x68] ss:$16 sps:$4 sm:$0xff]  }
  0x1c   :  { %1284 = vmatpush1.bf16.msra.mxu0 %v2850_v27  ;;  %1004 = vmatprep.subr.bf16.mxu1 %v2851_v28  ;;  %v2929_v16 = vld [vmem:[%s4307_s0 + $0x84] ss:$16 sps:$4 sm:$0xff]   ;;  %v2931_v17 = vld [vmem:[%s4307_s0 + $0x8c] ss:$16 sps:$4 sm:$0xff]   ;;  %v2933_v18 = vld [vmem:[%s4307_s0 + $0x80] ss:$16 sps:$4 sm:$0xff]  }
  0x1d   :  { %1285 = vmatprep.subr.bf16.mxu0 %v2853_v29  ;;  %v2934_v19 = vld [vmem:[%s4307_s0 + $0x88] ss:$16 sps:$4 sm:$0xff]   ;;  %v2935_v20 = vld [vmem:[%s4307_s0 + $0xa4] ss:$16 sps:$4 sm:$0xff]   ;;  %v2937_v21 = vld [vmem:[%s4307_s0 + $0xac] ss:$16 sps:$4 sm:$0xff]  }
  0x1e   :  { %v2939_v22 = vld [vmem:[%s4307_s0 + $0xa0] ss:$16 sps:$4 sm:$0xff]   ;;  %v2940_v23 = vld [vmem:[%s4307_s0 + $0xa8] ss:$16 sps:$4 sm:$0xff]   ;;  %v2941_v24 = vld [vmem:[%s4307_s0 + $0xc4] ss:$16 sps:$4 sm:$0xff]  }
  0x1f   :  { %1005 = vmatpush1.bf16.msra.mxu1 %v2855_v30  ;;  %v2943_v25 = vld [vmem:[%s4307_s0 + $0xcc] ss:$16 sps:$4 sm:$0xff]   ;;  %v2945_v26 = vld [vmem:[%s4307_s0 + $0xc0] ss:$16 sps:$4 sm:$0xff]   ;;  %v2946_v27 = vld [vmem:[%s4307_s0 + $0xc8] ss:$16 sps:$4 sm:$0xff]  }
  0x20   :  { %1286 = vmatpush1.bf16.msra.mxu0 %v2856_v31  ;;  %1006 = vmatprep.subr.bf16.mxu1 %v2857_v32  ;;  %v2947_v28 = vld [vmem:[%s4307_s0 + $0xe4] ss:$16 sps:$4 sm:$0xff]   ;;  %v2949_v29 = vld [vmem:[%s4307_s0 + $0xec] ss:$16 sps:$4 sm:$0xff]   ;;  %v2951_v30 = vld [vmem:[%s4307_s0 + $0xe0] ss:$16 sps:$4 sm:$0xff]  }
  0x21   :  { %1287 = vmatprep.subr.bf16.mxu0 %v2859_v33  ;;  %v2952_v31 = vld [vmem:[%s4307_s0 + $0xe8] ss:$16 sps:$4 sm:$0xff]   ;;  %v2953_v32 = vld [vmem:[%s4307_s0 + $0x104] ss:$16 sps:$4 sm:$0xff]   ;;  %v2955_v33 = vld [vmem:[%s4307_s0 + $0x10c] ss:$16 sps:$4 sm:$0xff]  }
  0x22   :  { %v2979_v49 = vld [vmem:[%s4307_s0 + $0x18c] ss:$16 sps:$4 sm:$0xff]   ;;  %v2982_v51 = vld [vmem:[%s4307_s0 + $0x188] ss:$16 sps:$4 sm:$0xff]  }
  0x23   :  { %1007 = vmatpush1.bf16.msra.mxu1 %v2861_v34  ;;  %v2957_v34 = vld [vmem:[%s4307_s0 + $0x100] ss:$16 sps:$4 sm:$0xff]  }
  0x24   :  { %1288 = vmatpush1.bf16.msra.mxu0 %v2862_v35  ;;  %1008 = vmatprep.subr.bf16.mxu1 %v2863_v36  ;;  %v2958_v35 = vld [vmem:[%s4307_s0 + $0x108] ss:$16 sps:$4 sm:$0xff]   ;;  %v2959_v36 = vld [vmem:[%s4307_s0 + $0x124] ss:$16 sps:$4 sm:$0xff]  }
  0x25   :  { %1289 = vmatprep.subr.bf16.mxu0 %v2865_v37  ;;  %v2961_v37 = vld [vmem:[%s4307_s0 + $0x12c] ss:$16 sps:$4 sm:$0xff]  }
  0x27   :  { %1009 = vmatpush1.bf16.msra.mxu1 %v2867_v38  ;;  %v2963_v38 = vld [vmem:[%s4307_s0 + $0x120] ss:$16 sps:$4 sm:$0xff]  }
  0x28   :  { %1290 = vmatpush1.bf16.msra.mxu0 %v2868_v39  ;;  %1010 = vmatprep.subr.bf16.mxu1 %v2869_v40  ;;  %v2964_v39 = vld [vmem:[%s4307_s0 + $0x128] ss:$16 sps:$4 sm:$0xff]   ;;  %v2965_v40 = vld [vmem:[%s4307_s0 + $0x144] ss:$16 sps:$4 sm:$0xff]  }
  0x29   :  { %1291 = vmatprep.subr.bf16.mxu0 %v2871_v41  ;;  %v2967_v41 = vld [vmem:[%s4307_s0 + $0x14c] ss:$16 sps:$4 sm:$0xff]  }
  0x2b   :  { %1011 = vmatpush1.bf16.msra.mxu1 %v2873_v42  ;;  %v2969_v42 = vld [vmem:[%s4307_s0 + $0x140] ss:$16 sps:$4 sm:$0xff]  }
  0x2c   :  { %1292 = vmatpush1.bf16.msra.mxu0 %v2874_v43  ;;  %1012 = vmatprep.subr.bf16.mxu1 %v2875_v44  ;;  %v2970_v43 = vld [vmem:[%s4307_s0 + $0x148] ss:$16 sps:$4 sm:$0xff]   ;;  %v2971_v44 = vld [vmem:[%s4307_s0 + $0x164] ss:$16 sps:$4 sm:$0xff]  }
  0x2d   :  { %1293 = vmatprep.subr.bf16.mxu0 %v2877_v45  ;;  %v2973_v45 = vld [vmem:[%s4307_s0 + $0x16c] ss:$16 sps:$4 sm:$0xff]  }
  0x2f   :  { %1013 = vmatpush1.bf16.msra.mxu1 %v2879_v46  ;;  %v2975_v46 = vld [vmem:[%s4307_s0 + $0x160] ss:$16 sps:$4 sm:$0xff]  }
  0x30   :  { %1294 = vmatpush1.bf16.msra.mxu0 %v2880_v47  ;;  %1014 = vmatprep.subr.bf16.mxu1 %v2881_v48  ;;  %v2976_v47 = vld [vmem:[%s4307_s0 + $0x168] ss:$16 sps:$4 sm:$0xff]   ;;  %v2977_v48 = vld [vmem:[%s4307_s0 + $0x184] ss:$16 sps:$4 sm:$0xff]  }
  0x31   :  { %1295 = vmatprep.subr.bf16.mxu0 %v2883_v50  ;;  %v2981_v50 = vld [vmem:[%s4307_s0 + $0x180] ss:$16 sps:$4 sm:$0xff]  }
  0x33   :  { %1015 = vmatpush1.bf16.msra.mxu1 %v2885_v52  ;;  %v2983_v52 = vld [vmem:[%s4307_s0 + $0x1a4] ss:$16 sps:$4 sm:$0xff]  }
  0x34   :  { %1296 = vmatpush1.bf16.msra.mxu0 %v2886_v53  ;;  %1016 = vmatprep.subr.bf16.mxu1 %v2887_v54  ;;  %v2985_v53 = vld [vmem:[%s4307_s0 + $0x1ac] ss:$16 sps:$4 sm:$0xff]   ;;  %v2987_v54 = vld [vmem:[%s4307_s0 + $0x1a0] ss:$16 sps:$4 sm:$0xff]  }
  0x35   :  { %1297 = vmatprep.subr.bf16.mxu0 %v2889_v55  ;;  %v2988_v55 = vld [vmem:[%s4307_s0 + $0x1a8] ss:$16 sps:$4 sm:$0xff]  }
  0x37   :  { %1017 = vmatpush1.bf16.msra.mxu1 %v2891_v56  ;;  %v2989_v56 = vld [vmem:[%s4307_s0 + $0x1c4] ss:$16 sps:$4 sm:$0xff]  }
  0x38   :  { %1298 = vmatpush1.bf16.msra.mxu0 %v2892_v57  ;;  %1018 = vmatprep.subr.bf16.mxu1 %v2893_v58  ;;  %v2991_v57 = vld [vmem:[%s4307_s0 + $0x1cc] ss:$16 sps:$4 sm:$0xff]   ;;  %v2993_v58 = vld [vmem:[%s4307_s0 + $0x1c0] ss:$16 sps:$4 sm:$0xff]  }
  0x39   :  { %1299 = vmatprep.subr.bf16.mxu0 %v2895_v59  ;;  %v2994_v59 = vld [vmem:[%s4307_s0 + $0x1c8] ss:$16 sps:$4 sm:$0xff]  }
  0x3b   :  { %1019 = vmatpush1.bf16.msra.mxu1 %v2897_v60  ;;  %v2995_v60 = vld [vmem:[%s4307_s0 + $0x1e4] ss:$16 sps:$4 sm:$0xff]  }
  0x3c   :  { %1300 = vmatpush1.bf16.msra.mxu0 %v2898_v61  ;;  %1020 = vmatprep.subr.bf16.mxu1 %v2899_v62  ;;  %v2997_v61 = vld [vmem:[%s4307_s0 + $0x1ec] ss:$16 sps:$4 sm:$0xff]   ;;  %v2999_v62 = vld [vmem:[%s4307_s0 + $0x1e0] ss:$16 sps:$4 sm:$0xff]  }
  0x3d   :  { %1301 = vmatprep.subr.bf16.mxu0 %v2901_v63  ;;  %v3000_v63 = vld [vmem:[%s4307_s0 + $0x1e8] ss:$16 sps:$4 sm:$0xff]  }
  0x3f   :  { %1021 = vmatpush1.bf16.msra.mxu1 %v2903_v0  ;;  %v3001_v0 = vld [vmem:[%s4307_s0 + $0x204] ss:$16 sps:$4 sm:$0xff]  }
  0x40   :  { %1302 = vmatpush1.bf16.msra.mxu0 %v2904_v1  ;;  %v3003_v1 = vld [vmem:[%s4307_s0 + $0x20c] ss:$16 sps:$4 sm:$0xff]  }
  0x42   :  { %1023 = vmatmul.mubr.bf16.vlgmr.msra.gmra.mrb[0].mxu1 %v2905_v2  ;;  %v3005_v2 = vld [vmem:[%s4307_s0 + $0x200] ss:$16 sps:$4 sm:$0xff]  }
  0x43   :  { %1304 = vmatmul.mubr.bf16.vlgmr.msra.gmra.mrb[0].mxu0 %v2908_v3  ;;  %1032 = vmatprep.mubr.bf16.mxu1 %v2911_v4  ;;  %v3006_v3 = vld [vmem:[%s4307_s0 + $0x208] ss:$16 sps:$4 sm:$0xff]   ;;  %v3007_v4 = vld [vmem:[%s4307_s0 + $0x224] ss:$16 sps:$4 sm:$0xff]  }
  0x44   :  { %1313 = vmatprep.mubr.bf16.mxu0 %v2913_v5  ;;  %v3009_v5 = vld [vmem:[%s4307_s0 + $0x22c] ss:$16 sps:$4 sm:$0xff]  }
  0x4a   :  { %1033 = vmatmul.mubr.bf16.gmra.mrb[4].mxu1 %v2915_v6  ;;  %v3011_v6 = vld [vmem:[%s4307_s0 + $0x220] ss:$16 sps:$4 sm:$0xff]  }
  0x4b   :  { %1314 = vmatmul.mubr.bf16.gmra.mrb[4].mxu0 %v2916_v7  ;;  %1042 = vmatprep.mubr.bf16.mxu1 %v2917_v8  ;;  %v3012_v7 = vld [vmem:[%s4307_s0 + $0x228] ss:$16 sps:$4 sm:$0xff]   ;;  %v3013_v8 = vld [vmem:[%s4307_s0 + $0x244] ss:$16 sps:$4 sm:$0xff]  }
  0x4c   :  { %1323 = vmatprep.mubr.bf16.mxu0 %v2919_v9  ;;  %v3015_v9 = vld [vmem:[%s4307_s0 + $0x24c] ss:$16 sps:$4 sm:$0xff]  }
  0x52   :  { %1043 = vmatmul.mubr.bf16.gmra.mrb[8].mxu1 %v2921_v10  ;;  %v3017_v10 = vld [vmem:[%s4307_s0 + $0x240] ss:$16 sps:$4 sm:$0xff]  }
  0x53   :  { %1324 = vmatmul.mubr.bf16.gmra.mrb[8].mxu0 %v2922_v11  ;;  %1052 = vmatprep.mubr.bf16.mxu1 %v2923_v12  ;;  %v3018_v11 = vld [vmem:[%s4307_s0 + $0x248] ss:$16 sps:$4 sm:$0xff]   ;;  %v3019_v12 = vld [vmem:[%s4307_s0 + $0x264] ss:$16 sps:$4 sm:$0xff]  }
  0x54   :  { %1333 = vmatprep.mubr.bf16.mxu0 %v2925_v13  ;;  %v3021_v13 = vld [vmem:[%s4307_s0 + $0x26c] ss:$16 sps:$4 sm:$0xff]  }
  0x5a   :  { %1053 = vmatmul.mubr.bf16.gmra.mrb[12].mxu1 %v2927_v14  ;;  %v3023_v14 = vld [vmem:[%s4307_s0 + $0x260] ss:$16 sps:$4 sm:$0xff]  }
  0x5b   :  { %1334 = vmatmul.mubr.bf16.gmra.mrb[12].mxu0 %v2928_v15  ;;  %1062 = vmatprep.mubr.bf16.mxu1 %v2929_v16  ;;  %v3024_v15 = vld [vmem:[%s4307_s0 + $0x268] ss:$16 sps:$4 sm:$0xff]   ;;  %v3025_v16 = vld [vmem:[%s4307_s0 + $0x284] ss:$16 sps:$4 sm:$0xff]  }
  0x5c   :  { %1343 = vmatprep.mubr.bf16.mxu0 %v2931_v17  ;;  %v3027_v17 = vld [vmem:[%s4307_s0 + $0x28c] ss:$16 sps:$4 sm:$0xff]  }
  0x62   :  { %1063 = vmatmul.mubr.bf16.gmra.mrb[16].mxu1 %v2933_v18  ;;  %v3029_v18 = vld [vmem:[%s4307_s0 + $0x280] ss:$16 sps:$4 sm:$0xff]  }
  0x63   :  { %1344 = vmatmul.mubr.bf16.gmra.mrb[16].mxu0 %v2934_v19  ;;  %1072 = vmatprep.mubr.bf16.mxu1 %v2935_v20  ;;  %v3030_v19 = vld [vmem:[%s4307_s0 + $0x288] ss:$16 sps:$4 sm:$0xff]   ;;  %v3031_v20 = vld [vmem:[%s4307_s0 + $0x2a4] ss:$16 sps:$4 sm:$0xff]  }
  0x64   :  { %1353 = vmatprep.mubr.bf16.mxu0 %v2937_v21  ;;  %v3033_v21 = vld [vmem:[%s4307_s0 + $0x2ac] ss:$16 sps:$4 sm:$0xff]  }
  0x6a   :  { %1073 = vmatmul.mubr.bf16.gmra.mrb[20].mxu1 %v2939_v22  ;;  %v3035_v22 = vld [vmem:[%s4307_s0 + $0x2a0] ss:$16 sps:$4 sm:$0xff]  }
  0x6b   :  { %1354 = vmatmul.mubr.bf16.gmra.mrb[20].mxu0 %v2940_v23  ;;  %1082 = vmatprep.mubr.bf16.mxu1 %v2941_v24  ;;  %v3036_v23 = vld [vmem:[%s4307_s0 + $0x2a8] ss:$16 sps:$4 sm:$0xff]   ;;  %v3037_v24 = vld [vmem:[%s4307_s0 + $0x2c4] ss:$16 sps:$4 sm:$0xff]  }
  0x6c   :  { %1363 = vmatprep.mubr.bf16.mxu0 %v2943_v25  ;;  %v3039_v25 = vld [vmem:[%s4307_s0 + $0x2cc] ss:$16 sps:$4 sm:$0xff]  }
  0x72   :  { %1083 = vmatmul.mubr.bf16.gmra.mrb[24].mxu1 %v2945_v26  ;;  %v3041_v26 = vld [vmem:[%s4307_s0 + $0x2c0] ss:$16 sps:$4 sm:$0xff]  }
  0x73   :  { %1364 = vmatmul.mubr.bf16.gmra.mrb[24].mxu0 %v2946_v27  ;;  %1092 = vmatprep.mubr.bf16.mxu1 %v2947_v28  ;;  %v3042_v27 = vld [vmem:[%s4307_s0 + $0x2c8] ss:$16 sps:$4 sm:$0xff]   ;;  %v3043_v28 = vld [vmem:[%s4307_s0 + $0x2e4] ss:$16 sps:$4 sm:$0xff]  }
  0x74   :  { %1373 = vmatprep.mubr.bf16.mxu0 %v2949_v29  ;;  %v3045_v29 = vld [vmem:[%s4307_s0 + $0x2ec] ss:$16 sps:$4 sm:$0xff]  }
  0x7a   :  { %1093 = vmatmul.mubr.bf16.gmra.mrb[28].mxu1 %v2951_v30  ;;  %v110_v30 = vld [vmem:[%s4307_s0 + $0x300] sm:$0xff] }
  0x7b   :  { %1374 = vmatmul.mubr.bf16.gmra.mrb[28].mxu0 %v2952_v31  ;;  %1102 = vmatprep.mubr.bf16.mxu1 %v2953_v32  ;;  %v111_v31 = vld [vmem:[%s4307_s0 + $0x308] sm:$0xff]  ;;  %v3047_v32 = vld [vmem:[%s4307_s0 + $0x2e0] ss:$16 sps:$4 sm:$0xff]  }
  0x7c   :  { %1383 = vmatprep.mubr.bf16.mxu0 %v2955_v33  ;;  %v3048_v33 = vld [vmem:[%s4307_s0 + $0x2e8] ss:$16 sps:$4 sm:$0xff]   ;;  %s3054_s0 = smov 64  }
  0x82   :  { %1103 = vmatmul.mubr.bf16.gmra.mrb[32].mxu1 %v2957_v34  ;;  %v2544_v34 = vcombine.high %v110_v30, %v110_v30 }
  0x83   :  { %1384 = vmatmul.mubr.bf16.gmra.mrb[32].mxu0 %v2958_v35  ;;  %1112 = vmatprep.mubr.bf16.mxu1 %v2959_v36  ;;  %v2546_v35 = vcombine.high %v111_v31, %v111_v31  ;;  %v2543_v36 = vcombine.low %v110_v30, %v110_v30 }
  0x84   :  { %1393 = vmatprep.mubr.bf16.mxu0 %v2961_v37  ;;  %v2545_v37 = vcombine.low %v111_v31, %v111_v31 }
  0x8a   :  { %1113 = vmatmul.mubr.bf16.gmra.mrb[36].mxu1 %v2963_v38 }
  0x8b   :  { %1394 = vmatmul.mubr.bf16.gmra.mrb[36].mxu0 %v2964_v39  ;;  %1122 = vmatprep.mubr.bf16.mxu1 %v2965_v40 }
  0x8c   :  { %1403 = vmatprep.mubr.bf16.mxu0 %v2967_v41 }
  0x92   :  { %1123 = vmatmul.mubr.bf16.gmra.mrb[40].mxu1 %v2969_v42 }
  0x93   :  { %1404 = vmatmul.mubr.bf16.gmra.mrb[40].mxu0 %v2970_v43  ;;  %1132 = vmatprep.mubr.bf16.mxu1 %v2971_v44 }
  0x94   :  { %1413 = vmatprep.mubr.bf16.mxu0 %v2973_v45 }
  0x9a   :  { %1133 = vmatmul.mubr.bf16.gmra.mrb[44].mxu1 %v2975_v46 }
  0x9b   :  { %1414 = vmatmul.mubr.bf16.gmra.mrb[44].mxu0 %v2976_v47  ;;  %1142 = vmatprep.mubr.bf16.mxu1 %v2977_v48 }
  0x9c   :  { %1423 = vmatprep.mubr.bf16.mxu0 %v2979_v49 }
  0xa2   :  { %1143 = vmatmul.mubr.bf16.gmra.mrb[48].mxu1 %v2981_v50 }
  0xa3   :  { %1424 = vmatmul.mubr.bf16.gmra.mrb[48].mxu0 %v2982_v51  ;;  %1152 = vmatprep.mubr.bf16.mxu1 %v2983_v52 }
  0xa4   :  { %1433 = vmatprep.mubr.bf16.mxu0 %v2985_v53 }
  0xaa   :  { %1153 = vmatmul.mubr.bf16.gmra.mrb[52].mxu1 %v2987_v54 }
  0xab   :  { %1434 = vmatmul.mubr.bf16.gmra.mrb[52].mxu0 %v2988_v55  ;;  %1162 = vmatprep.mubr.bf16.mxu1 %v2989_v56 }
  0xac   :  { %1443 = vmatprep.mubr.bf16.mxu0 %v2991_v57 }
  0xb2   :  { %1163 = vmatmul.mubr.bf16.gmra.mrb[56].mxu1 %v2993_v58 }
  0xb3   :  { %1444 = vmatmul.mubr.bf16.gmra.mrb[56].mxu0 %v2994_v59  ;;  %1172 = vmatprep.mubr.bf16.mxu1 %v2995_v60 }
  0xb4   :  { %1453 = vmatprep.mubr.bf16.mxu0 %v2997_v61 }
  0xba   :  { %1173 = vmatmul.mubr.bf16.gmra.mrb[60].mxu1 %v2999_v62 }
  0xbb   :  { %1454 = vmatmul.mubr.bf16.gmra.mrb[60].mxu0 %v3000_v63  ;;  %1182 = vmatprep.mubr.bf16.mxu1 %v3001_v0 }
  0xbc   :  { %1463 = vmatprep.mubr.bf16.mxu0 %v3003_v1 }
  0xc2   :  { %1183 = vmatmul.mubr.bf16.gmra.mrb[64].mxu1 %v3005_v2 }
  0xc3   :  { %1464 = vmatmul.mubr.bf16.gmra.mrb[64].mxu0 %v3006_v3  ;;  %1192 = vmatprep.mubr.bf16.mxu1 %v3007_v4 }
  0xc4   :  { %1473 = vmatprep.mubr.bf16.mxu0 %v3009_v5 }
  0xca   :  { %1193 = vmatmul.mubr.bf16.gmra.mrb[68].mxu1 %v3011_v6 }
  0xcb   :  { %1474 = vmatmul.mubr.bf16.gmra.mrb[68].mxu0 %v3012_v7  ;;  %1202 = vmatprep.mubr.bf16.mxu1 %v3013_v8 }
  0xcc   :  { %1483 = vmatprep.mubr.bf16.mxu0 %v3015_v9 }
  0xd2   :  { %1203 = vmatmul.mubr.bf16.gmra.mrb[72].mxu1 %v3017_v10 }
  0xd3   :  { %1484 = vmatmul.mubr.bf16.gmra.mrb[72].mxu0 %v3018_v11  ;;  %1212 = vmatprep.mubr.bf16.mxu1 %v3019_v12 }
  0xd4   :  { %1493 = vmatprep.mubr.bf16.mxu0 %v3021_v13 }
  0xda   :  { %1213 = vmatmul.mubr.bf16.gmra.mrb[76].mxu1 %v3023_v14 }
  0xdb   :  { %1494 = vmatmul.mubr.bf16.gmra.mrb[76].mxu0 %v3024_v15  ;;  %1222 = vmatprep.mubr.bf16.mxu1 %v3025_v16 }
  0xdc   :  { %1503 = vmatprep.mubr.bf16.mxu0 %v3027_v17 }
  0xe2   :  { %1223 = vmatmul.mubr.bf16.gmra.mrb[80].mxu1 %v3029_v18 }
  0xe3   :  { %1504 = vmatmul.mubr.bf16.gmra.mrb[80].mxu0 %v3030_v19  ;;  %1232 = vmatprep.mubr.bf16.mxu1 %v3031_v20 }
  0xe4   :  { %1513 = vmatprep.mubr.bf16.mxu0 %v3033_v21 }
  0xea   :  { %1233 = vmatmul.mubr.bf16.gmra.mrb[84].mxu1 %v3035_v22 }
  0xeb   :  { %1514 = vmatmul.mubr.bf16.gmra.mrb[84].mxu0 %v3036_v23  ;;  %1242 = vmatprep.mubr.bf16.mxu1 %v3037_v24 }
  0xec   :  { %1523 = vmatprep.mubr.bf16.mxu0 %v3039_v25 }
  0xf2   :  { %1243 = vmatmul.mubr.bf16.gmra.mrb[88].mxu1 %v3041_v26 }
  0xf3   :  { %1524 = vmatmul.mubr.bf16.gmra.mrb[88].mxu0 %v3042_v27  ;;  %1252 = vmatprep.mubr.bf16.mxu1 %v3043_v28 }
  0xf4   :  { %1533 = vmatprep.mubr.bf16.mxu0 %v3045_v29 }
  0xfa   :  { %1253 = vmatmul.mubr.bf16.gmra.mrb[92].mxu1 %v3047_v32 }
  0xfb   :  { %1534 = vmatmul.mubr.bf16.gmra.mrb[92].mxu0 %v3048_v33  ;;  %1262 = vmatprep.mubr.bf16.mxu1 %v2544_v34 }
  0xfc   :  { %1543 = vmatprep.mubr.bf16.mxu0 %v2546_v35 }
 0x102   :  { %1263 = vmatmul.mubr.bf16.gmra.mrb[96].mxu1 %v2543_v36 }
 0x103   :  { %1544 = vmatmul.mubr.bf16.gmra.mrb[96].mxu0 %v2545_v37 }
 0x115   :  { %v1024_v38 = vpop.f32.mrb[0].mxu1 }
 0x116   :  { %v1305_v39 = vpop.f32.mrb[0].mxu0  ;;  %v1026_v41 = vpop.f32.mrb[1].mxu1 }
 0x117   :  { %v3561_v40 = vadd.f32 %v1305_v39, %v1024_v38  ;;  %v1307_v42 = vpop.f32.mrb[1].mxu0  ;;  %v1028_v44 = vpop.f32.mrb[2].mxu1 }
 0x118   :  { %v3563_v43 = vadd.f32 %v1307_v42, %v1026_v41  ;;  %v1309_v45 = vpop.f32.mrb[2].mxu0  ;;  %v1030_v48 = vpop.f32.mrb[3].mxu1 }
 0x119   :  { %v3565_v46 = vadd.f32 %v1309_v45, %v1028_v44  ;;  %v1311_v47 = vpop.f32.mrb[3].mxu0  ;;  %1601 = vrot.lane.b32.xlu0 %v3561_v40, %s3054_s0 }
 0x11a   :  { %v3569_v49 = vadd.f32 %v1311_v47, %v1030_v48  ;;  %1846 = vrot.lane.b32.xlu1 %v3563_v43, %s3054_s0 }
 0x11d   :  { %1603 = vrot.lane.b32.xlu0 %v3565_v46, %s3054_s0  ;;  %v1034_v50 = vpop.f32.mrb[4].mxu1 }
 0x11e   :  { %v1315_v51 = vpop.f32.mrb[4].mxu0  ;;  %v1036_v53 = vpop.f32.mrb[5].mxu1 }
 0x11f   :  { %v3575_v52 = vadd.f32 %v1315_v51, %v1034_v50  ;;  %v1317_v54 = vpop.f32.mrb[5].mxu0  ;;  %v1038_v56 = vpop.f32.mrb[6].mxu1 }
 0x120   :  { %v3577_v55 = vadd.f32 %v1317_v54, %v1036_v53  ;;  %v1319_v57 = vpop.f32.mrb[6].mxu0  ;;  %v1040_v60 = vpop.f32.mrb[7].mxu1 }
 0x121   :  { %v3579_v58 = vadd.f32 %v1319_v57, %v1038_v56  ;;  %v1321_v59 = vpop.f32.mrb[7].mxu0  ;;  %1848 = vrot.lane.b32.xlu0 %v3569_v49, %s3054_s0  ;;  %1605 = vrot.lane.b32.xlu1 %v3575_v52, %s3054_s0 }
 0x122   :  { %v3585_v61 = vadd.f32 %v1321_v59, %v1040_v60 }
 0x125   :  { %1850 = vrot.lane.b32.xlu1 %v3577_v55, %s3054_s0  ;;  %1852 = vrot.lane.b32.xlu0 %v3585_v61, %s3054_s0  ;;  %v1044_v62 = vpop.f32.mrb[8].mxu1 }
 0x126   :  { %v1325_v63 = vpop.f32.mrb[8].mxu0  ;;  %v1046_v1 = vpop.f32.mrb[9].mxu1 }
 0x127   :  { %v3591_v0 = vadd.f32 %v1325_v63, %v1044_v62  ;;  %v1327_v2 = vpop.f32.mrb[9].mxu0  ;;  %v1048_v4 = vpop.f32.mrb[10].mxu1 }
 0x128   :  { %v3593_v3 = vadd.f32 %v1327_v2, %v1046_v1  ;;  %v1329_v5 = vpop.f32.mrb[10].mxu0  ;;  %v1050_v8 = vpop.f32.mrb[11].mxu1 }
 0x129   :  { %v3595_v6 = vadd.f32 %v1329_v5, %v1048_v4  ;;  %v1331_v7 = vpop.f32.mrb[11].mxu0  ;;  %1607 = vrot.lane.b32.xlu1 %v3579_v58, %s3054_s0  ;;  %1609 = vrot.lane.b32.xlu0 %v3591_v0, %s3054_s0 }
 0x12a   :  { %v3601_v9 = vadd.f32 %v1331_v7, %v1050_v8 }
 0x12d   :  { %1854 = vrot.lane.b32.xlu1 %v3593_v3, %s3054_s0  ;;  %1856 = vrot.lane.b32.xlu0 %v3601_v9, %s3054_s0  ;;  %v1054_v10 = vpop.f32.mrb[12].mxu1 }
 0x12e   :  { %v1335_v11 = vpop.f32.mrb[12].mxu0  ;;  %v1056_v13 = vpop.f32.mrb[13].mxu1 }
 0x12f   :  { %v3607_v12 = vadd.f32 %v1335_v11, %v1054_v10  ;;  %v1337_v14 = vpop.f32.mrb[13].mxu0  ;;  %v1058_v16 = vpop.f32.mrb[14].mxu1 }
 0x130   :  { %v3609_v15 = vadd.f32 %v1337_v14, %v1056_v13  ;;  %v1339_v17 = vpop.f32.mrb[14].mxu0  ;;  %v1060_v20 = vpop.f32.mrb[15].mxu1 }
 0x131   :  { %v3611_v18 = vadd.f32 %v1339_v17, %v1058_v16  ;;  %v1341_v19 = vpop.f32.mrb[15].mxu0  ;;  %1611 = vrot.lane.b32.xlu1 %v3595_v6, %s3054_s0  ;;  %1613 = vrot.lane.b32.xlu0 %v3607_v12, %s3054_s0 }
 0x132   :  { %v3617_v21 = vadd.f32 %v1341_v19, %v1060_v20 }
 0x135   :  { %1858 = vrot.lane.b32.xlu1 %v3609_v15, %s3054_s0  ;;  %1860 = vrot.lane.b32.xlu0 %v3617_v21, %s3054_s0  ;;  %v1064_v22 = vpop.f32.mrb[16].mxu1 }
 0x136   :  { %v1345_v23 = vpop.f32.mrb[16].mxu0  ;;  %v1066_v25 = vpop.f32.mrb[17].mxu1 }
 0x137   :  { %v3623_v24 = vadd.f32 %v1345_v23, %v1064_v22  ;;  %v1347_v26 = vpop.f32.mrb[17].mxu0  ;;  %v1068_v28 = vpop.f32.mrb[18].mxu1 }
 0x138   :  { %v3625_v27 = vadd.f32 %v1347_v26, %v1066_v25  ;;  %v1349_v29 = vpop.f32.mrb[18].mxu0  ;;  %v1070_v32 = vpop.f32.mrb[19].mxu1 }
 0x139   :  { %v3627_v30 = vadd.f32 %v1349_v29, %v1068_v28  ;;  %v1351_v31 = vpop.f32.mrb[19].mxu0  ;;  %1615 = vrot.lane.b32.xlu1 %v3611_v18, %s3054_s0  ;;  %1617 = vrot.lane.b32.xlu0 %v3623_v24, %s3054_s0 }
 0x13a   :  { %v3633_v33 = vadd.f32 %v1351_v31, %v1070_v32 }
 0x13d   :  { %1862 = vrot.lane.b32.xlu1 %v3625_v27, %s3054_s0  ;;  %1864 = vrot.lane.b32.xlu0 %v3633_v33, %s3054_s0  ;;  %v1074_v34 = vpop.f32.mrb[20].mxu1 }
 0x13e   :  { %v1355_v35 = vpop.f32.mrb[20].mxu0  ;;  %v1076_v37 = vpop.f32.mrb[21].mxu1 }
 0x13f   :  { %v3639_v36 = vadd.f32 %v1355_v35, %v1074_v34  ;;  %v1357_v38 = vpop.f32.mrb[21].mxu0  ;;  %v1078_v41 = vpop.f32.mrb[22].mxu1 }
 0x140   :  { %v3641_v39 = vadd.f32 %v1357_v38, %v1076_v37  ;;  %v1359_v42 = vpop.f32.mrb[22].mxu0  ;;  %v1080_v47 = vpop.f32.mrb[23].mxu1 }
 0x141   :  { %v3643_v44 = vadd.f32 %v1359_v42, %v1078_v41  ;;  %v1361_v45 = vpop.f32.mrb[23].mxu0  ;;  %1619 = vrot.lane.b32.xlu1 %v3627_v30, %s3054_s0  ;;  %1621 = vrot.lane.b32.xlu0 %v3639_v36, %s3054_s0 }
 0x142   :  { %v3649_v48 = vadd.f32 %v1361_v45, %v1080_v47 }
 0x145   :  { %1866 = vrot.lane.b32.xlu1 %v3641_v39, %s3054_s0  ;;  %1868 = vrot.lane.b32.xlu0 %v3649_v48, %s3054_s0  ;;  %v1084_v50 = vpop.f32.mrb[24].mxu1 }
 0x146   :  { %v1365_v51 = vpop.f32.mrb[24].mxu0  ;;  %v1086_v54 = vpop.f32.mrb[25].mxu1 }
 0x147   :  { %v3655_v53 = vadd.f32 %v1365_v51, %v1084_v50  ;;  %v1367_v56 = vpop.f32.mrb[25].mxu0  ;;  %v1088_v59 = vpop.f32.mrb[26].mxu1 }
 0x148   :  { %v3657_v57 = vadd.f32 %v1367_v56, %v1086_v54  ;;  %v1369_v60 = vpop.f32.mrb[26].mxu0  ;;  %v1090_v1 = vpop.f32.mrb[27].mxu1 }
 0x149   :  { %v3659_v62 = vadd.f32 %v1369_v60, %v1088_v59  ;;  %v1371_v63 = vpop.f32.mrb[27].mxu0  ;;  %1623 = vrot.lane.b32.xlu1 %v3643_v44, %s3054_s0  ;;  %1625 = vrot.lane.b32.xlu0 %v3655_v53, %s3054_s0 }
 0x14a   :  { %v3665_v2 = vadd.f32 %v1371_v63, %v1090_v1 }
 0x14d   :  { %1870 = vrot.lane.b32.xlu1 %v3657_v57, %s3054_s0  ;;  %1872 = vrot.lane.b32.xlu0 %v3665_v2, %s3054_s0  ;;  %v1094_v4 = vpop.f32.mrb[28].mxu1 }
 0x14e   :  { %v1375_v5 = vpop.f32.mrb[28].mxu0  ;;  %v1096_v8 = vpop.f32.mrb[29].mxu1 }
 0x14f   :  { %v3671_v7 = vadd.f32 %v1375_v5, %v1094_v4  ;;  %v1377_v10 = vpop.f32.mrb[29].mxu0  ;;  %v1098_v13 = vpop.f32.mrb[30].mxu1 }
 0x150   :  { %v3673_v11 = vadd.f32 %v1377_v10, %v1096_v8  ;;  %v1379_v14 = vpop.f32.mrb[30].mxu0  ;;  %v1100_v19 = vpop.f32.mrb[31].mxu1 }
 0x151   :  { %v3675_v16 = vadd.f32 %v1379_v14, %v1098_v13  ;;  %v1381_v17 = vpop.f32.mrb[31].mxu0  ;;  %1627 = vrot.lane.b32.xlu1 %v3659_v62, %s3054_s0  ;;  %1629 = vrot.lane.b32.xlu0 %v3671_v7, %s3054_s0 }
 0x152   :  { %v3681_v20 = vadd.f32 %v1381_v17, %v1100_v19 }
 0x155   :  { %1874 = vrot.lane.b32.xlu1 %v3673_v11, %s3054_s0  ;;  %1876 = vrot.lane.b32.xlu0 %v3681_v20, %s3054_s0  ;;  %v1104_v22 = vpop.f32.mrb[32].mxu1 }
 0x156   :  { %v1385_v23 = vpop.f32.mrb[32].mxu0  ;;  %v1106_v26 = vpop.f32.mrb[33].mxu1 }
 0x157   :  { %v3687_v25 = vadd.f32 %v1385_v23, %v1104_v22  ;;  %v1387_v28 = vpop.f32.mrb[33].mxu0  ;;  %v1108_v31 = vpop.f32.mrb[34].mxu1 }
 0x158   :  { %v3689_v29 = vadd.f32 %v1387_v28, %v1106_v26  ;;  %v1389_v32 = vpop.f32.mrb[34].mxu0  ;;  %v1110_v37 = vpop.f32.mrb[35].mxu1 }
 0x159   :  { %v3691_v34 = vadd.f32 %v1389_v32, %v1108_v31  ;;  %v1391_v35 = vpop.f32.mrb[35].mxu0  ;;  %1631 = vrot.lane.b32.xlu1 %v3675_v16, %s3054_s0  ;;  %1633 = vrot.lane.b32.xlu0 %v3687_v25, %s3054_s0 }
 0x15a   :  { %v3697_v38 = vadd.f32 %v1391_v35, %v1110_v37 }
 0x15d   :  { %1878 = vrot.lane.b32.xlu1 %v3689_v29, %s3054_s0  ;;  %1880 = vrot.lane.b32.xlu0 %v3697_v38, %s3054_s0  ;;  %v1114_v41 = vpop.f32.mrb[36].mxu1 }
 0x15e   :  { %v1395_v42 = vpop.f32.mrb[36].mxu0  ;;  %v1116_v47 = vpop.f32.mrb[37].mxu1 }
 0x15f   :  { %v3703_v45 = vadd.f32 %v1395_v42, %v1114_v41  ;;  %v1397_v50 = vpop.f32.mrb[37].mxu0  ;;  %v1118_v54 = vpop.f32.mrb[38].mxu1 }
 0x160   :  { %v3705_v51 = vadd.f32 %v1397_v50, %v1116_v47  ;;  %v1399_v56 = vpop.f32.mrb[38].mxu0  ;;  %v1120_v63 = vpop.f32.mrb[39].mxu1 }
 0x161   :  { %v3707_v59 = vadd.f32 %v1399_v56, %v1118_v54  ;;  %v1401_v60 = vpop.f32.mrb[39].mxu0  ;;  %1635 = vrot.lane.b32.xlu1 %v3691_v34, %s3054_s0  ;;  %1637 = vrot.lane.b32.xlu0 %v3703_v45, %s3054_s0 }
 0x162   :  { %v3713_v1 = vadd.f32 %v1401_v60, %v1120_v63 }
 0x165   :  { %1882 = vrot.lane.b32.xlu1 %v3705_v51, %s3054_s0  ;;  %1884 = vrot.lane.b32.xlu0 %v3713_v1, %s3054_s0  ;;  %v1124_v4 = vpop.f32.mrb[40].mxu1 }
 0x166   :  { %v1405_v5 = vpop.f32.mrb[40].mxu0  ;;  %v1126_v10 = vpop.f32.mrb[41].mxu1 }
 0x167   :  { %v3719_v8 = vadd.f32 %v1405_v5, %v1124_v4  ;;  %v1407_v13 = vpop.f32.mrb[41].mxu0  ;;  %v1128_v17 = vpop.f32.mrb[42].mxu1 }
 0x168   :  { %v3721_v14 = vadd.f32 %v1407_v13, %v1126_v10  ;;  %v1409_v19 = vpop.f32.mrb[42].mxu0  ;;  %v1130_v26 = vpop.f32.mrb[43].mxu1 }
 0x169   :  { %v3723_v22 = vadd.f32 %v1409_v19, %v1128_v17  ;;  %v1411_v23 = vpop.f32.mrb[43].mxu0  ;;  %1639 = vrot.lane.b32.xlu1 %v3707_v59, %s3054_s0  ;;  %1641 = vrot.lane.b32.xlu0 %v3719_v8, %s3054_s0 }
 0x16a   :  { %v3729_v28 = vadd.f32 %v1411_v23, %v1130_v26 }
 0x16d   :  { %1886 = vrot.lane.b32.xlu1 %v3721_v14, %s3054_s0  ;;  %1888 = vrot.lane.b32.xlu0 %v3729_v28, %s3054_s0  ;;  %v1134_v31 = vpop.f32.mrb[44].mxu1 }
 0x16e   :  { %v1415_v32 = vpop.f32.mrb[44].mxu0  ;;  %v1136_v37 = vpop.f32.mrb[45].mxu1 }
 0x16f   :  { %v3735_v35 = vadd.f32 %v1415_v32, %v1134_v31  ;;  %v1417_v41 = vpop.f32.mrb[45].mxu0  ;;  %v1138_v47 = vpop.f32.mrb[46].mxu1 }
 0x170   :  { %v3737_v42 = vadd.f32 %v1417_v41, %v1136_v37  ;;  %v1419_v50 = vpop.f32.mrb[46].mxu0  ;;  %v1140_v60 = vpop.f32.mrb[47].mxu1 }
 0x171   :  { %v3739_v54 = vadd.f32 %v1419_v50, %v1138_v47  ;;  %v1421_v56 = vpop.f32.mrb[47].mxu0  ;;  %1643 = vrot.lane.b32.xlu1 %v3723_v22, %s3054_s0  ;;  %1645 = vrot.lane.b32.xlu0 %v3735_v35, %s3054_s0 }
 0x172   :  { %v3745_v63 = vadd.f32 %v1421_v56, %v1140_v60 }
 0x175   :  { %1890 = vrot.lane.b32.xlu1 %v3737_v42, %s3054_s0  ;;  %1892 = vrot.lane.b32.xlu0 %v3745_v63, %s3054_s0  ;;  %v1144_v4 = vpop.f32.mrb[48].mxu1 }
 0x176   :  { %v1425_v5 = vpop.f32.mrb[48].mxu0  ;;  %v1146_v13 = vpop.f32.mrb[49].mxu1 }
 0x177   :  { %v3751_v10 = vadd.f32 %v1425_v5, %v1144_v4  ;;  %v1427_v17 = vpop.f32.mrb[49].mxu0  ;;  %v1148_v23 = vpop.f32.mrb[50].mxu1 }
 0x178   :  { %v3753_v19 = vadd.f32 %v1427_v17, %v1146_v13  ;;  %v1429_v26 = vpop.f32.mrb[50].mxu0  ;;  %v1150_v37 = vpop.f32.mrb[51].mxu1 }
 0x179   :  { %4326 = vst [vmem:[#allocation2_spill] sm:$0xff] %v3751_v10  ;;  %v3755_v31 = vadd.f32 %v1429_v26, %v1148_v23  ;;  %v1431_v32 = vpop.f32.mrb[51].mxu0  ;;  %1647 = vrot.lane.b32.xlu1 %v3739_v54, %s3054_s0  ;;  %1649 = vrot.lane.b32.xlu0 %v3751_v10, %s3054_s0 }
 0x17a   :  { %4327 = vst [vmem:[#allocation3_spill] sm:$0xff] %v3753_v19  ;;  %v3761_v41 = vadd.f32 %v1431_v32, %v1150_v37 }
 0x17b   :  { %4328 = vst [vmem:[#allocation4_spill] sm:$0xff] %v3755_v31 }
 0x17c   :  { %4329 = vst [vmem:[#allocation5_spill] sm:$0xff] %v3761_v41 }
 0x17d   :  { %1894 = vrot.lane.b32.xlu1 %v3753_v19, %s3054_s0  ;;  %1896 = vrot.lane.b32.xlu0 %v3761_v41, %s3054_s0  ;;  %v1154_v47 = vpop.f32.mrb[52].mxu1 }
 0x17e   :  { %v1435_v50 = vpop.f32.mrb[52].mxu0  ;;  %v1156_v60 = vpop.f32.mrb[53].mxu1 }
 0x17f   :  { %v3767_v56 = vadd.f32 %v1435_v50, %v1154_v47  ;;  %v1437_v4 = vpop.f32.mrb[53].mxu0  ;;  %v1158_v13 = vpop.f32.mrb[54].mxu1 }
 0x180   :  { %v3769_v5 = vadd.f32 %v1437_v4, %v1156_v60  ;;  %v1439_v17 = vpop.f32.mrb[54].mxu0  ;;  %v1160_v32 = vpop.f32.mrb[55].mxu1 }
 0x181   :  { %4330 = vst [vmem:[#allocation6_spill] sm:$0xff] %v3767_v56  ;;  %v3771_v23 = vadd.f32 %v1439_v17, %v1158_v13  ;;  %v1441_v26 = vpop.f32.mrb[55].mxu0  ;;  %1651 = vrot.lane.b32.xlu1 %v3755_v31, %s3054_s0  ;;  %1653 = vrot.lane.b32.xlu0 %v3767_v56, %s3054_s0 }
 0x182   :  { %4331 = vst [vmem:[#allocation7_spill] sm:$0xff] %v3769_v5  ;;  %v3777_v37 = vadd.f32 %v1441_v26, %v1160_v32 }
 0x183   :  { %4332 = vst [vmem:[#allocation8_spill] sm:$0xff] %v3771_v23 }
 0x184   :  { %4333 = vst [vmem:[#allocation9_spill] sm:$0xff] %v3777_v37 }
 0x185   :  { %1898 = vrot.lane.b32.xlu1 %v3769_v5, %s3054_s0  ;;  %1900 = vrot.lane.b32.xlu0 %v3777_v37, %s3054_s0  ;;  %v1164_v47 = vpop.f32.mrb[56].mxu1 }
 0x186   :  { %v1445_v50 = vpop.f32.mrb[56].mxu0  ;;  %v1166_v4 = vpop.f32.mrb[57].mxu1 }
 0x187   :  { %v3783_v60 = vadd.f32 %v1445_v50, %v1164_v47  ;;  %v1447_v13 = vpop.f32.mrb[57].mxu0  ;;  %v1168_v31 = vpop.f32.mrb[58].mxu1 }
 0x188   :  { %v3785_v17 = vadd.f32 %v1447_v13, %v1166_v4  ;;  %v1449_v41 = vpop.f32.mrb[58].mxu0  ;;  %v1170_v32 = vpop.f32.mrb[59].mxu1 }
 0x189   :  { %4334 = vst [vmem:[#allocation10_spill] sm:$0xff] %v3783_v60  ;;  %v3787_v56 = vadd.f32 %v1449_v41, %v1168_v31  ;;  %v1451_v26 = vpop.f32.mrb[59].mxu0  ;;  %1655 = vrot.lane.b32.xlu1 %v3771_v23, %s3054_s0  ;;  %1657 = vrot.lane.b32.xlu0 %v3783_v60, %s3054_s0  ;;  %v3804_v31 = vld [vmem:[%s4308_s2] ss:$0 sm:$0xff] }
 0x18a   :  { %4335 = vst [vmem:[#allocation11_spill] sm:$0xff] %v3785_v17  ;;  %v3793_v37 = vadd.f32 %v1451_v26, %v1170_v32 }
 0x18b   :  { %v1602_v47 = vpop.permute.xlu0 %1601 }
 0x18c   :  { %4336 = vst [vmem:[#allocation12_spill] sm:$0xff] %v3793_v37  ;;  %v1748_v50 = vmax.f32 %v3561_v40, %v1602_v47  ;;  %v1847_v5 = vpop.permute.xlu1 %1846 }
 0x18d   :  { %v1993_v4 = vmax.f32 %v3563_v43, %v1847_v5  ;;  %1902 = vrot.lane.b32.xlu1 %v3785_v17, %s3054_s0  ;;  %1904 = vrot.lane.b32.xlu0 %v3793_v37, %s3054_s0  ;;  %v1174_v41 = vpop.f32.mrb[60].mxu1 }
 0x18e   :  { %v1455_v13 = vpop.f32.mrb[60].mxu0  ;;  %v1176_v60 = vpop.f32.mrb[61].mxu1 }
 0x18f   :  { %v2042_v26 = vmax.f32 %v1748_v50, %v1993_v4  ;;  %v3806_v32 = vadd.f32 %v1455_v13, %v1174_v41  ;;  %v1457_v40 = vpop.f32.mrb[61].mxu0  ;;  %v1604_v47 = vpop.permute.xlu0 %1603 }
 0x190   :  { %v1459_v43 = vpop.f32.mrb[62].mxu0  ;;  %v3809_v17 = vadd.f32 %v1457_v40, %v1176_v60  ;;  %v1178_v23 = vpop.f32.mrb[62].mxu1  ;;  %v1749_v60 = vmax.f32 %v3565_v46, %v1604_v47 }
 0x191   :  { %4337 = vst [vmem:[#allocation13_spill] sm:$0xff] %v3806_v32  ;;  %v2098_v5 = vadd.f32 %v3804_v31, %v2042_v26  ;;  %v1461_v37 = vpop.f32.mrb[63].mxu0  ;;  %1659 = vrot.lane.b32.xlu1 %v3787_v56, %s3054_s0  ;;  %1661 = vrot.lane.b32.xlu0 %v3806_v32, %s3054_s0  ;;  %v3815_v19 = vadd.f32 %v1459_v43, %v1178_v23  ;;  %v1180_v50 = vpop.f32.mrb[63].mxu1 }
 0x192   :  { %4338 = vst [vmem:[#allocation14_spill] sm:$0xff] %v3809_v17  ;;  %v3817_v41 = vadd.f32 %v1461_v37, %v1180_v50 }
 0x193   :  { %4339 = vst [vmem:[#allocation15_spill] sm:$0xff] %v3815_v19  ;;  %v2147_v4 = vmax.f32 %v2098_v5, 0.0  ;;  %v1849_v13 = vpop.permute.xlu0 %1848  ;;  %v1606_v10 = vpop.permute.xlu1 %1605 }
 0x194   :  { %4340 = vst [vmem:[#allocation16_spill] sm:$0xff] %v3817_v41  ;;  %v1994_v26 = vmax.f32 %v3569_v49, %v1849_v13  ;;  %v1750_v5 = vmax.f32 %v3575_v52, %v1606_v10 }
 0x195   :  { %v2661_v40 = vpack.c.bf16 %v2147_v4, %v2147_v4  ;;  %1906 = vrot.lane.b32.xlu1 %v3809_v17, %s3054_s0  ;;  %1908 = vrot.lane.b32.xlu0 %v3817_v41, %s3054_s0  ;;  %v1184_v43 = vpop.f32.mrb[64].mxu1 }
 0x196   :  { %v2043_v23 = vmax.f32 %v1749_v60, %v1994_v26  ;;  %v1465_v32 = vpop.f32.mrb[64].mxu0  ;;  %v1186_v13 = vpop.f32.mrb[65].mxu1 }
 0x197   :  { %2394 = vst.msk [vmem:[%s4309_s3] sm:$0xf] %vm2393_vm0, %v2661_v40  ;;  %v3829_v37 = vadd.f32 %v1465_v32, %v1184_v43  ;;  %v1467_v46 = vpop.f32.mrb[65].mxu0  ;;  %v1851_v47 = vpop.permute.xlu1 %1850 }
 0x198   :  { %v2099_v49 = vadd.f32 %v3804_v31, %v2043_v23  ;;  %v1995_v50 = vmax.f32 %v3577_v55, %v1851_v47  ;;  %v1853_v4 = vpop.permute.xlu0 %1852  ;;  %v3834_v60 = vadd.f32 %v1467_v46, %v1186_v13  ;;  %v1188_v26 = vpop.f32.mrb[66].mxu1 }
 0x199   :  { %v1469_v41 = vpop.f32.mrb[66].mxu0  ;;  %1663 = vrot.lane.b32.xlu1 %v3815_v19, %s3054_s0  ;;  %1665 = vrot.lane.b32.xlu0 %v3829_v37, %s3054_s0  ;;  %v1190_v52 = vpop.f32.mrb[67].mxu1  ;;  %v1996_v13 = vmax.f32 %v3585_v61, %v1853_v4 }
 0x19a   :  { %v2148_v32 = vmax.f32 %v2099_v49, 0.0  ;;  %v2044_v40 = vmax.f32 %v1750_v5, %v1995_v50  ;;  %v3840_v43 = vadd.f32 %v1469_v41, %v1188_v26  ;;  %v1471_v23 = vpop.f32.mrb[67].mxu0 }
 0x19b   :  { %v3842_v10 = vadd.f32 %v1471_v23, %v1190_v52  ;;  %v1608_v55 = vpop.permute.xlu1 %1607 }
 0x19c   :  { %v2662_v47 = vpack.c.bf16 %v2148_v32, %v2148_v32  ;;  %v2100_v46 = vadd.f32 %v3804_v31, %v2044_v40  ;;  %v1751_v17 = vmax.f32 %v3579_v58, %v1608_v55  ;;  %v1610_v19 = vpop.permute.xlu0 %1609 }
 0x19d   :  { %4341 = vst [vmem:[#allocation17_spill] sm:$0xff] %v3842_v10  ;;  %1910 = vrot.lane.b32.xlu1 %v3834_v60, %s3054_s0  ;;  %1912 = vrot.lane.b32.xlu0 %v3842_v10, %s3054_s0  ;;  %v1194_v5 = vpop.f32.mrb[68].mxu1  ;;  %v1752_v40 = vmax.f32 %v3591_v0, %v1610_v19 }
 0x19e   :  { %2395 = vst.msk [vmem:[%s4309_s3 + $0x4] sm:$0xf] %vm2393_vm0, %v2662_v47  ;;  %v2149_v41 = vmax.f32 %v2100_v46, 0.0  ;;  %v2045_v49 = vmax.f32 %v1751_v17, %v1996_v13  ;;  %v1475_v50 = vpop.f32.mrb[68].mxu0  ;;  %v1196_v55 = vpop.f32.mrb[69].mxu1 }
 0x19f   :  { %v3855_v26 = vadd.f32 %v1475_v50, %v1194_v5  ;;  %v1477_v61 = vpop.f32.mrb[69].mxu0  ;;  %v1855_v58 = vpop.permute.xlu1 %1854 }
 0x1a0   :  { %v2663_v4 = vpack.c.bf16 %v2149_v41, %v2149_v41  ;;  %v2101_v32 = vadd.f32 %v3804_v31, %v2045_v49  ;;  %v1997_v23 = vmax.f32 %v3593_v3, %v1855_v58  ;;  %v1857_v52 = vpop.permute.xlu0 %1856  ;;  %v3860_v10 = vadd.f32 %v1477_v61, %v1196_v55  ;;  %v1198_v47 = vpop.f32.mrb[70].mxu1 }
 0x1a1   :  { %v1479_v46 = vpop.f32.mrb[70].mxu0  ;;  %1667 = vrot.lane.b32.xlu1 %v3840_v43, %s3054_s0  ;;  %1669 = vrot.lane.b32.xlu0 %v3855_v26, %s3054_s0  ;;  %v1200_v13 = vpop.f32.mrb[71].mxu1  ;;  %v1998_v61 = vmax.f32 %v3601_v9, %v1857_v52 }
 0x1a2   :  { %2396 = vst.msk [vmem:[%s4309_s3 + $0x8] sm:$0xf] %vm2393_vm0, %v2663_v4  ;;  %v2150_v0 = vmax.f32 %v2101_v32, 0.0  ;;  %v2046_v19 = vmax.f32 %v1752_v40, %v1997_v23  ;;  %v3870_v3 = vadd.f32 %v1479_v46, %v1198_v47  ;;  %v1481_v17 = vpop.f32.mrb[71].mxu0 }
 0x1a3   :  { %v3872_v41 = vadd.f32 %v1481_v17, %v1200_v13  ;;  %v1612_v49 = vpop.permute.xlu1 %1611 }
 0x1a4   :  { %v2664_v5 = vpack.c.bf16 %v2150_v0, %v2150_v0  ;;  %v2102_v50 = vadd.f32 %v3804_v31, %v2046_v19  ;;  %v1753_v58 = vmax.f32 %v3595_v6, %v1612_v49  ;;  %v1614_v55 = vpop.permute.xlu0 %1613 }
 0x1a5   :  { %1914 = vrot.lane.b32.xlu1 %v3860_v10, %s3054_s0  ;;  %1916 = vrot.lane.b32.xlu0 %v3872_v41, %s3054_s0  ;;  %v1204_v40 = vpop.f32.mrb[72].mxu1  ;;  %v1754_v0 = vmax.f32 %v3607_v12, %v1614_v55 }
 0x1a6   :  { %2397 = vst.msk [vmem:[%s4309_s3 + $0xc] sm:$0xf] %vm2393_vm0, %v2664_v5  ;;  %v2151_v4 = vmax.f32 %v2102_v50, 0.0  ;;  %v2047_v32 = vmax.f32 %v1753_v58, %v1998_v61  ;;  %v1485_v23 = vpop.f32.mrb[72].mxu0  ;;  %v1206_v13 = vpop.f32.mrb[73].mxu1 }
 0x1a7   :  { %v3885_v47 = vadd.f32 %v1485_v23, %v1204_v40  ;;  %v1487_v9 = vpop.f32.mrb[73].mxu0  ;;  %v1859_v6 = vpop.permute.xlu1 %1858 }
 0x1a8   :  { %v2665_v52 = vpack.c.bf16 %v2151_v4, %v2151_v4  ;;  %v2103_v46 = vadd.f32 %v3804_v31, %v2047_v32  ;;  %v1999_v19 = vmax.f32 %v3609_v15, %v1859_v6  ;;  %v1861_v17 = vpop.permute.xlu0 %1860  ;;  %v3890_v49 = vadd.f32 %v1487_v9, %v1206_v13  ;;  %v1208_v5 = vpop.f32.mrb[74].mxu1 }
 0x1a9   :  { %v1489_v50 = vpop.f32.mrb[74].mxu0  ;;  %1671 = vrot.lane.b32.xlu1 %v3870_v3, %s3054_s0  ;;  %1673 = vrot.lane.b32.xlu0 %v3885_v47, %s3054_s0  ;;  %v1210_v55 = vpop.f32.mrb[75].mxu1  ;;  %v2000_v9 = vmax.f32 %v3617_v21, %v1861_v17 }
 0x1aa   :  { %2398 = vst.msk [vmem:[%s4309_s3 + $0x10] sm:$0xf] %vm2393_vm0, %v2665_v52  ;;  %v2152_v12 = vmax.f32 %v2103_v46, 0.0  ;;  %v2048_v61 = vmax.f32 %v1754_v0, %v1999_v19  ;;  %v3900_v15 = vadd.f32 %v1489_v50, %v1208_v5  ;;  %v1491_v58 = vpop.f32.mrb[75].mxu0 }
 0x1ab   :  { %v3902_v4 = vadd.f32 %v1491_v58, %v1210_v55  ;;  %v1616_v32 = vpop.permute.xlu1 %1615 }
 0x1ac   :  { %v2666_v40 = vpack.c.bf16 %v2152_v12, %v2152_v12  ;;  %v2104_v23 = vadd.f32 %v3804_v31, %v2048_v61  ;;  %v1755_v6 = vmax.f32 %v3611_v18, %v1616_v32  ;;  %v1618_v13 = vpop.permute.xlu0 %1617 }
 0x1ad   :  { %1918 = vrot.lane.b32.xlu1 %v3890_v49, %s3054_s0  ;;  %1920 = vrot.lane.b32.xlu0 %v3902_v4, %s3054_s0  ;;  %v1214_v0 = vpop.f32.mrb[76].mxu1  ;;  %v1756_v12 = vmax.f32 %v3623_v24, %v1618_v13 }
 0x1ae   :  { %2399 = vst.msk [vmem:[%s4309_s3 + $0x14] sm:$0xf] %vm2393_vm0, %v2666_v40  ;;  %v2153_v52 = vmax.f32 %v2104_v23, 0.0  ;;  %v2049_v46 = vmax.f32 %v1755_v6, %v2000_v9  ;;  %v1495_v19 = vpop.f32.mrb[76].mxu0  ;;  %v1216_v55 = vpop.f32.mrb[77].mxu1 }
 0x1af   :  { %v3915_v5 = vadd.f32 %v1495_v19, %v1214_v0  ;;  %v1497_v21 = vpop.f32.mrb[77].mxu0  ;;  %v1863_v18 = vpop.permute.xlu1 %1862 }
 0x1b0   :  { %v2667_v17 = vpack.c.bf16 %v2153_v52, %v2153_v52  ;;  %v2105_v50 = vadd.f32 %v3804_v31, %v2049_v46  ;;  %v2001_v61 = vmax.f32 %v3625_v27, %v1863_v18  ;;  %v1865_v58 = vpop.permute.xlu0 %1864  ;;  %v3920_v32 = vadd.f32 %v1497_v21, %v1216_v55  ;;  %v1218_v40 = vpop.f32.mrb[78].mxu1 }
 0x1b1   :  { %v1499_v23 = vpop.f32.mrb[78].mxu0  ;;  %1675 = vrot.lane.b32.xlu1 %v3900_v15, %s3054_s0  ;;  %1677 = vrot.lane.b32.xlu0 %v3915_v5, %s3054_s0  ;;  %v1220_v13 = vpop.f32.mrb[79].mxu1  ;;  %v2002_v21 = vmax.f32 %v3633_v33, %v1865_v58 }
 0x1b2   :  { %2400 = vst.msk [vmem:[%s4309_s3 + $0x18] sm:$0xf] %vm2393_vm0, %v2667_v17  ;;  %v2154_v24 = vmax.f32 %v2105_v50, 0.0  ;;  %v2050_v9 = vmax.f32 %v1756_v12, %v2001_v61  ;;  %v3930_v27 = vadd.f32 %v1499_v23, %v1218_v40  ;;  %v1501_v6 = vpop.f32.mrb[79].mxu0 }
 0x1b3   :  { %v3932_v52 = vadd.f32 %v1501_v6, %v1220_v13  ;;  %v1620_v46 = vpop.permute.xlu1 %1619 }
 0x1b4   :  { %v2668_v0 = vpack.c.bf16 %v2154_v24, %v2154_v24  ;;  %v2106_v19 = vadd.f32 %v3804_v31, %v2050_v9  ;;  %v1757_v18 = vmax.f32 %v3627_v30, %v1620_v46  ;;  %v1622_v55 = vpop.permute.xlu0 %1621 }
 0x1b5   :  { %1922 = vrot.lane.b32.xlu1 %v3920_v32, %s3054_s0  ;;  %1924 = vrot.lane.b32.xlu0 %v3932_v52, %s3054_s0  ;;  %v1224_v12 = vpop.f32.mrb[80].mxu1  ;;  %v1758_v24 = vmax.f32 %v3639_v36, %v1622_v55 }
 0x1b6   :  { %2401 = vst.msk [vmem:[%s4309_s3 + $0x1c] sm:$0xf] %vm2393_vm0, %v2668_v0  ;;  %v2155_v17 = vmax.f32 %v2106_v19, 0.0  ;;  %v2051_v50 = vmax.f32 %v1757_v18, %v2002_v21  ;;  %v1505_v61 = vpop.f32.mrb[80].mxu0  ;;  %v1226_v13 = vpop.f32.mrb[81].mxu1 }
 0x1b7   :  { %v3945_v40 = vadd.f32 %v1505_v61, %v1224_v12  ;;  %v1507_v33 = vpop.f32.mrb[81].mxu0  ;;  %v1867_v30 = vpop.permute.xlu1 %1866 }
 0x1b8   :  { %v2669_v58 = vpack.c.bf16 %v2155_v17, %v2155_v17  ;;  %v2107_v23 = vadd.f32 %v3804_v31, %v2051_v50  ;;  %v2003_v9 = vmax.f32 %v3641_v39, %v1867_v30  ;;  %v1869_v6 = vpop.permute.xlu0 %1868  ;;  %v3950_v46 = vadd.f32 %v1507_v33, %v1226_v13  ;;  %v1228_v0 = vpop.f32.mrb[82].mxu1 }
 0x1b9   :  { %v1509_v19 = vpop.f32.mrb[82].mxu0  ;;  %1679 = vrot.lane.b32.xlu1 %v3930_v27, %s3054_s0  ;;  %1681 = vrot.lane.b32.xlu0 %v3945_v40, %s3054_s0  ;;  %v1230_v55 = vpop.f32.mrb[83].mxu1  ;;  %v2004_v33 = vmax.f32 %v3649_v48, %v1869_v6 }
 0x1ba   :  { %2402 = vst.msk [vmem:[%s4309_s3 + $0x20] sm:$0xf] %vm2393_vm0, %v2669_v58  ;;  %v2156_v36 = vmax.f32 %v2107_v23, 0.0  ;;  %v2052_v21 = vmax.f32 %v1758_v24, %v2003_v9  ;;  %v3960_v39 = vadd.f32 %v1509_v19, %v1228_v0  ;;  %v1511_v18 = vpop.f32.mrb[83].mxu0 }
 0x1bb   :  { %v3962_v17 = vadd.f32 %v1511_v18, %v1230_v55  ;;  %v1624_v50 = vpop.permute.xlu1 %1623 }
 0x1bc   :  { %v2670_v12 = vpack.c.bf16 %v2156_v36, %v2156_v36  ;;  %v2108_v61 = vadd.f32 %v3804_v31, %v2052_v21  ;;  %v1759_v30 = vmax.f32 %v3643_v44, %v1624_v50  ;;  %v1626_v13 = vpop.permute.xlu0 %1625 }
 0x1bd   :  { %1926 = vrot.lane.b32.xlu1 %v3950_v46, %s3054_s0  ;;  %1928 = vrot.lane.b32.xlu0 %v3962_v17, %s3054_s0  ;;  %v1234_v24 = vpop.f32.mrb[84].mxu1  ;;  %v1760_v36 = vmax.f32 %v3655_v53, %v1626_v13 }
 0x1be   :  { %2403 = vst.msk [vmem:[%s4309_s3 + $0x24] sm:$0xf] %vm2393_vm0, %v2670_v12  ;;  %v2157_v58 = vmax.f32 %v2108_v61, 0.0  ;;  %v2053_v23 = vmax.f32 %v1759_v30, %v2004_v33  ;;  %v1515_v9 = vpop.f32.mrb[84].mxu0  ;;  %v1236_v55 = vpop.f32.mrb[85].mxu1 }
 0x1bf   :  { %v3975_v0 = vadd.f32 %v1515_v9, %v1234_v24  ;;  %v1517_v48 = vpop.f32.mrb[85].mxu0  ;;  %v1871_v44 = vpop.permute.xlu1 %1870 }
 0x1c0   :  { %v2671_v6 = vpack.c.bf16 %v2157_v58, %v2157_v58  ;;  %v2109_v19 = vadd.f32 %v3804_v31, %v2053_v23  ;;  %v2005_v21 = vmax.f32 %v3657_v57, %v1871_v44  ;;  %v1873_v18 = vpop.permute.xlu0 %1872  ;;  %v3980_v50 = vadd.f32 %v1517_v48, %v1236_v55  ;;  %v1238_v12 = vpop.f32.mrb[86].mxu1 }
 0x1c1   :  { %v1519_v61 = vpop.f32.mrb[86].mxu0  ;;  %1683 = vrot.lane.b32.xlu1 %v3960_v39, %s3054_s0  ;;  %1685 = vrot.lane.b32.xlu0 %v3975_v0, %s3054_s0  ;;  %v1240_v13 = vpop.f32.mrb[87].mxu1  ;;  %v2006_v48 = vmax.f32 %v3665_v2, %v1873_v18 }
 0x1c2   :  { %2404 = vst.msk [vmem:[%s4309_s3 + $0x28] sm:$0xf] %vm2393_vm0, %v2671_v6  ;;  %v2158_v53 = vmax.f32 %v2109_v19, 0.0  ;;  %v2054_v33 = vmax.f32 %v1760_v36, %v2005_v21  ;;  %v3990_v57 = vadd.f32 %v1519_v61, %v1238_v12  ;;  %v1521_v30 = vpop.f32.mrb[87].mxu0 }
 0x1c3   :  { %v3992_v58 = vadd.f32 %v1521_v30, %v1240_v13  ;;  %v1628_v23 = vpop.permute.xlu1 %1627 }
 0x1c4   :  { %v2672_v24 = vpack.c.bf16 %v2158_v53, %v2158_v53  ;;  %v2110_v9 = vadd.f32 %v3804_v31, %v2054_v33  ;;  %v1761_v44 = vmax.f32 %v3659_v62, %v1628_v23  ;;  %v1630_v55 = vpop.permute.xlu0 %1629 }
 0x1c5   :  { %1930 = vrot.lane.b32.xlu1 %v3980_v50, %s3054_s0  ;;  %1932 = vrot.lane.b32.xlu0 %v3992_v58, %s3054_s0  ;;  %v1244_v36 = vpop.f32.mrb[88].mxu1  ;;  %v1762_v53 = vmax.f32 %v3671_v7, %v1630_v55 }
 0x1c6   :  { %2405 = vst.msk [vmem:[%s4309_s3 + $0x2c] sm:$0xf] %vm2393_vm0, %v2672_v24  ;;  %v2159_v6 = vmax.f32 %v2110_v9, 0.0  ;;  %v2055_v19 = vmax.f32 %v1761_v44, %v2006_v48  ;;  %v1525_v21 = vpop.f32.mrb[88].mxu0  ;;  %v1246_v13 = vpop.f32.mrb[89].mxu1 }
 0x1c7   :  { %v4005_v12 = vadd.f32 %v1525_v21, %v1244_v36  ;;  %v1527_v2 = vpop.f32.mrb[89].mxu0  ;;  %v1875_v62 = vpop.permute.xlu1 %1874 }
 0x1c8   :  { %v2673_v18 = vpack.c.bf16 %v2159_v6, %v2159_v6  ;;  %v2111_v61 = vadd.f32 %v3804_v31, %v2055_v19  ;;  %v2007_v33 = vmax.f32 %v3673_v11, %v1875_v62  ;;  %v1877_v30 = vpop.permute.xlu0 %1876  ;;  %v4010_v23 = vadd.f32 %v1527_v2, %v1246_v13  ;;  %v1248_v24 = vpop.f32.mrb[90].mxu1 }
 0x1c9   :  { %v1529_v9 = vpop.f32.mrb[90].mxu0  ;;  %1687 = vrot.lane.b32.xlu1 %v3990_v57, %s3054_s0  ;;  %1689 = vrot.lane.b32.xlu0 %v4005_v12, %s3054_s0  ;;  %v1250_v55 = vpop.f32.mrb[91].mxu1  ;;  %v2008_v2 = vmax.f32 %v3681_v20, %v1877_v30 }
 0x1ca   :  { %2406 = vst.msk [vmem:[%s4309_s3 + $0x30] sm:$0xf] %vm2393_vm0, %v2673_v18  ;;  %v2160_v7 = vmax.f32 %v2111_v61, 0.0  ;;  %v2056_v48 = vmax.f32 %v1762_v53, %v2007_v33  ;;  %v4020_v11 = vadd.f32 %v1529_v9, %v1248_v24  ;;  %v1531_v44 = vpop.f32.mrb[91].mxu0 }
 0x1cb   :  { %v4022_v6 = vadd.f32 %v1531_v44, %v1250_v55  ;;  %v1632_v19 = vpop.permute.xlu1 %1631 }
 0x1cc   :  { %v2674_v36 = vpack.c.bf16 %v2160_v7, %v2160_v7  ;;  %v2112_v21 = vadd.f32 %v3804_v31, %v2056_v48  ;;  %v1763_v62 = vmax.f32 %v3675_v16, %v1632_v19  ;;  %v1634_v13 = vpop.permute.xlu0 %1633 }
 0x1cd   :  { %1934 = vrot.lane.b32.xlu1 %v4010_v23, %s3054_s0  ;;  %1936 = vrot.lane.b32.xlu0 %v4022_v6, %s3054_s0  ;;  %v1254_v53 = vpop.f32.mrb[92].mxu1  ;;  %v1764_v7 = vmax.f32 %v3687_v25, %v1634_v13 }
 0x1ce   :  { %2407 = vst.msk [vmem:[%s4309_s3 + $0x34] sm:$0xf] %vm2393_vm0, %v2674_v36  ;;  %v2161_v18 = vmax.f32 %v2112_v21, 0.0  ;;  %v2057_v61 = vmax.f32 %v1763_v62, %v2008_v2  ;;  %v1535_v33 = vpop.f32.mrb[92].mxu0  ;;  %v1256_v55 = vpop.f32.mrb[93].mxu1 }
 0x1cf   :  { %v4035_v24 = vadd.f32 %v1535_v33, %v1254_v53  ;;  %v1537_v20 = vpop.f32.mrb[93].mxu0  ;;  %v1879_v16 = vpop.permute.xlu1 %1878 }
 0x1d0   :  { %v2675_v30 = vpack.c.bf16 %v2161_v18, %v2161_v18  ;;  %v2113_v9 = vadd.f32 %v3804_v31, %v2057_v61  ;;  %v2009_v48 = vmax.f32 %v3689_v29, %v1879_v16  ;;  %v1881_v44 = vpop.permute.xlu0 %1880  ;;  %v4040_v19 = vadd.f32 %v1537_v20, %v1256_v55  ;;  %v1258_v36 = vpop.f32.mrb[94].mxu1 }
 0x1d1   :  { %v1539_v21 = vpop.f32.mrb[94].mxu0  ;;  %1691 = vrot.lane.b32.xlu1 %v4020_v11, %s3054_s0  ;;  %1693 = vrot.lane.b32.xlu0 %v4035_v24, %s3054_s0  ;;  %v1260_v13 = vpop.f32.mrb[95].mxu1  ;;  %v2010_v20 = vmax.f32 %v3697_v38, %v1881_v44 }
 0x1d2   :  { %2408 = vst.msk [vmem:[%s4309_s3 + $0x38] sm:$0xf] %vm2393_vm0, %v2675_v30  ;;  %v2162_v25 = vmax.f32 %v2113_v9, 0.0  ;;  %v2058_v2 = vmax.f32 %v1764_v7, %v2009_v48  ;;  %v4050_v29 = vadd.f32 %v1539_v21, %v1258_v36  ;;  %v1541_v62 = vpop.f32.mrb[95].mxu0 }
 0x1d3   :  { %v4052_v18 = vadd.f32 %v1541_v62, %v1260_v13  ;;  %v1636_v61 = vpop.permute.xlu1 %1635 }
 0x1d4   :  { %v2676_v53 = vpack.c.bf16 %v2162_v25, %v2162_v25  ;;  %v2114_v33 = vadd.f32 %v3804_v31, %v2058_v2  ;;  %v1765_v16 = vmax.f32 %v3691_v34, %v1636_v61  ;;  %v1638_v55 = vpop.permute.xlu0 %1637 }
 0x1d5   :  { %1938 = vrot.lane.b32.xlu1 %v4040_v19, %s3054_s0  ;;  %v1264_v7 = vpop.f32.mrb[96].mxu1  ;;  %v1766_v44 = vmax.f32 %v3703_v45, %v1638_v55 }
 0x1d6   :  { %2409 = vst.msk [vmem:[%s4309_s3 + $0x3c] sm:$0xf] %vm2393_vm0, %v2676_v53  ;;  %v2163_v30 = vmax.f32 %v2114_v33, 0.0  ;;  %v2059_v9 = vmax.f32 %v1765_v16, %v2010_v20  ;;  %v1545_v48 = vpop.f32.mrb[96].mxu0  ;;  %v1266_v13 = vpop.f32.mrb[97].mxu1 }
 0x1d7   :  { %v4063_v36 = vadd.f32 %v1545_v48, %v1264_v7  ;;  %v1547_v21 = vpop.f32.mrb[97].mxu0  ;;  %v1883_v25 = vpop.permute.xlu1 %1882 }
 0x1d8   :  { %v2677_v38 = vpack.c.bf16 %v2163_v30, %v2163_v30  ;;  %v2115_v34 = vadd.f32 %v3804_v31, %v2059_v9  ;;  %v2011_v2 = vmax.f32 %v3705_v51, %v1883_v25  ;;  %v1885_v62 = vpop.permute.xlu0 %1884  ;;  %v4068_v61 = vadd.f32 %v1547_v21, %v1266_v13  ;;  %v1268_v53 = vpop.f32.mrb[98].mxu1 }
 0x1d9   :  { %v1549_v33 = vpop.f32.mrb[98].mxu0  ;;  %1695 = vrot.lane.b32.xlu1 %v4050_v29, %s3054_s0  ;;  %1697 = vrot.lane.b32.xlu0 %v4063_v36, %s3054_s0  ;;  %v1269_v16 = vpop.f32.mrb[99].mxu1  ;;  %v2012_v7 = vmax.f32 %v3713_v1, %v1885_v62 }
 0x1da   :  { %2410 = vst.msk [vmem:[%s4309_s3 + $0x40] sm:$0xf] %vm2393_vm0, %v2677_v38  ;;  %v2164_v45 = vmax.f32 %v2115_v34, 0.0  ;;  %v2060_v20 = vmax.f32 %v1766_v44, %v2011_v2  ;;  %v1550_v51 = vpop.f32.mrb[99].mxu0 }
 0x1db   :  { %v1640_v55 = vpop.permute.xlu1 %1639 }
 0x1dc   :  { %v2678_v30 = vpack.c.bf16 %v2164_v45, %v2164_v45  ;;  %v2116_v9 = vadd.f32 %v3804_v31, %v2060_v20  ;;  %v1767_v48 = vmax.f32 %v3707_v59, %v1640_v55  ;;  %v1642_v21 = vpop.permute.xlu0 %1641 }
 0x1dd   :  { %1940 = vrot.lane.b32.xlu0 %v4052_v18, %s3054_s0  ;;  %1942 = vrot.lane.b32.xlu1 %v4068_v61, %s3054_s0  ;;  %v1768_v59 = vmax.f32 %v3719_v8, %v1642_v21 }
 0x1de   :  { %2411 = vst.msk [vmem:[%s4309_s3 + $0x44] sm:$0xf] %vm2393_vm0, %v2678_v30  ;;  %v2165_v25 = vmax.f32 %v2116_v9, 0.0  ;;  %v2061_v38 = vmax.f32 %v1767_v48, %v2012_v7 }
 0x1df   :  { %v1887_v34 = vpop.permute.xlu1 %1886 }
 0x1e0   :  { %v2679_v44 = vpack.c.bf16 %v2165_v25, %v2165_v25  ;;  %v2117_v1 = vadd.f32 %v3804_v31, %v2061_v38  ;;  %v2013_v2 = vmax.f32 %v3721_v14, %v1887_v34  ;;  %v1889_v62 = vpop.permute.xlu0 %1888 }
 0x1e1   :  { %v2014_v51 = vmax.f32 %v3729_v28, %v1889_v62 }
 0x1e2   :  { %2412 = vst.msk [vmem:[%s4309_s3 + $0x48] sm:$0xf] %vm2393_vm0, %v2679_v44  ;;  %v2166_v13 = vmax.f32 %v2117_v1, 0.0  ;;  %v2062_v53 = vmax.f32 %v1768_v59, %v2013_v2 }
 0x1e3   :  { %v1644_v33 = vpop.permute.xlu1 %1643 }
 0x1e4   :  { %v2680_v45 = vpack.c.bf16 %v2166_v13, %v2166_v13  ;;  %v2118_v20 = vadd.f32 %v3804_v31, %v2062_v53  ;;  %v1769_v16 = vmax.f32 %v3723_v22, %v1644_v33  ;;  %v1646_v55 = vpop.permute.xlu0 %1645  ;;  %v4342_v33 = vld [vmem:[#allocation2_spill] sm:$0xff] }
 0x1e5   :  { %v1770_v48 = vmax.f32 %v3735_v35, %v1646_v55 }
 0x1e6   :  { %2413 = vst.msk [vmem:[%s4309_s3 + $0x4c] sm:$0xf] %vm2393_vm0, %v2680_v45  ;;  %v2167_v8 = vmax.f32 %v2118_v20, 0.0  ;;  %v2063_v14 = vmax.f32 %v1769_v16, %v2014_v51  ;;  %v4343_v20 = vld [vmem:[#allocation3_spill] sm:$0xff] }
 0x1e7   :  { %v1891_v30 = vpop.permute.xlu1 %1890 }
 0x1e8   :  { %v2681_v9 = vpack.c.bf16 %v2167_v8, %v2167_v8  ;;  %v2119_v7 = vadd.f32 %v3804_v31, %v2063_v14  ;;  %v2015_v21 = vmax.f32 %v3737_v42, %v1891_v30  ;;  %v1893_v25 = vpop.permute.xlu0 %1892  ;;  %v4344_v30 = vld [vmem:[#allocation5_spill] sm:$0xff] }
 0x1e9   :  { %v2016_v1 = vmax.f32 %v3745_v63, %v1893_v25 }
 0x1ea   :  { %2414 = vst.msk [vmem:[%s4309_s3 + $0x50] sm:$0xf] %vm2393_vm0, %v2681_v9  ;;  %v2168_v22 = vmax.f32 %v2119_v7, 0.0  ;;  %v2064_v28 = vmax.f32 %v1770_v48, %v2015_v21  ;;  %v4345_v7 = vld [vmem:[#allocation4_spill] sm:$0xff] }
 0x1eb   :  { %v1648_v38 = vpop.permute.xlu1 %1647 }
 0x1ec   :  { %v2682_v34 = vpack.c.bf16 %v2168_v22, %v2168_v22  ;;  %v2120_v44 = vadd.f32 %v3804_v31, %v2064_v28  ;;  %v1771_v59 = vmax.f32 %v3739_v54, %v1648_v38  ;;  %v1650_v2 = vpop.permute.xlu0 %1649 }
 0x1ed   :  { %v1772_v45 = vmax.f32 %v4342_v33, %v1650_v2 }
 0x1ee   :  { %2415 = vst.msk [vmem:[%s4309_s3 + $0x54] sm:$0xf] %vm2393_vm0, %v2682_v34  ;;  %v2169_v35 = vmax.f32 %v2120_v44, 0.0  ;;  %v2065_v42 = vmax.f32 %v1771_v59, %v2016_v1  ;;  %v4346_v44 = vld [vmem:[#allocation6_spill] sm:$0xff]  ;;  %v4347_v59 = vld [vmem:[#allocation7_spill] sm:$0xff] }
 0x1ef   :  { %v1895_v62 = vpop.permute.xlu1 %1894 }
 0x1f0   :  { %v2683_v13 = vpack.c.bf16 %v2169_v35, %v2169_v35  ;;  %v2121_v53 = vadd.f32 %v3804_v31, %v2065_v42  ;;  %v2017_v51 = vmax.f32 %v4343_v20, %v1895_v62  ;;  %v1897_v16 = vpop.permute.xlu0 %1896 }
 0x1f1   :  { %v2018_v9 = vmax.f32 %v4344_v30, %v1897_v16 }
 0x1f2   :  { %2416 = vst.msk [vmem:[%s4309_s3 + $0x58] sm:$0xf] %vm2393_vm0, %v2683_v13  ;;  %v2170_v54 = vmax.f32 %v2121_v53, 0.0  ;;  %v2066_v63 = vmax.f32 %v1772_v45, %v2017_v51  ;;  %v4348_v45 = vld [vmem:[#allocation9_spill] sm:$0xff]  ;;  %v4349_v51 = vld [vmem:[#allocation8_spill] sm:$0xff] }
 0x1f3   :  { %v1652_v55 = vpop.permute.xlu1 %1651 }
 0x1f4   :  { %v2684_v8 = vpack.c.bf16 %v2170_v54, %v2170_v54  ;;  %v2122_v14 = vadd.f32 %v3804_v31, %v2066_v63  ;;  %v1773_v48 = vmax.f32 %v4345_v7, %v1652_v55  ;;  %v1654_v21 = vpop.permute.xlu0 %1653 }
 0x1f5   :  { %v1774_v1 = vmax.f32 %v4346_v44, %v1654_v21 }
 0x1f6   :  { %2417 = vst.msk [vmem:[%s4309_s3 + $0x5c] sm:$0xf] %vm2393_vm0, %v2684_v8  ;;  %v2171_v25 = vmax.f32 %v2122_v14, 0.0  ;;  %v2067_v22 = vmax.f32 %v1773_v48, %v2018_v9  ;;  %v4350_v9 = vld [vmem:[#allocation10_spill] sm:$0xff]  ;;  %v4351_v48 = vld [vmem:[#allocation11_spill] sm:$0xff] }
 0x1f7   :  { %v1899_v28 = vpop.permute.xlu1 %1898 }
 0x1f8   :  { %v2685_v38 = vpack.c.bf16 %v2171_v25, %v2171_v25  ;;  %v2123_v34 = vadd.f32 %v3804_v31, %v2067_v22  ;;  %v2019_v2 = vmax.f32 %v4347_v59, %v1899_v28  ;;  %v1901_v35 = vpop.permute.xlu0 %1900 }
 0x1f9   :  { %v2020_v20 = vmax.f32 %v4348_v45, %v1901_v35  ;;  %v4353_v45 = vld [vmem:[#allocation13_spill] sm:$0xff] }
 0x1fa   :  { %2418 = vst.msk [vmem:[%s4309_s3 + $0x60] sm:$0xf] %vm2393_vm0, %v2685_v38  ;;  %v2172_v42 = vmax.f32 %v2123_v34, 0.0  ;;  %v2068_v62 = vmax.f32 %v1774_v1, %v2019_v2  ;;  %v4352_v1 = vld [vmem:[#allocation12_spill] sm:$0xff] }
 0x1fb   :  { %v1656_v13 = vpop.permute.xlu1 %1655 }
 0x1fc   :  { %v2686_v53 = vpack.c.bf16 %v2172_v42, %v2172_v42  ;;  %v2124_v33 = vadd.f32 %v3804_v31, %v2068_v62  ;;  %v1775_v16 = vmax.f32 %v4349_v51, %v1656_v13  ;;  %v1658_v54 = vpop.permute.xlu0 %1657  ;;  %v4354_v51 = vld [vmem:[#allocation14_spill] sm:$0xff] }
 0x1fd   :  { %v1776_v7 = vmax.f32 %v4350_v9, %v1658_v54 }
 0x1fe   :  { %2419 = vst.msk [vmem:[%s4309_s3 + $0x64] sm:$0xf] %vm2393_vm0, %v2686_v53  ;;  %v2173_v63 = vmax.f32 %v2124_v33, 0.0  ;;  %v2069_v55 = vmax.f32 %v1775_v16, %v2020_v20 }
 0x1ff   :  { %v1903_v8 = vpop.permute.xlu1 %1902 }
 0x200   :  { %v2687_v14 = vpack.c.bf16 %v2173_v63, %v2173_v63  ;;  %v2125_v30 = vadd.f32 %v3804_v31, %v2069_v55  ;;  %v2021_v21 = vmax.f32 %v4351_v48, %v1903_v8  ;;  %v1905_v25 = vpop.permute.xlu0 %1904 }
 0x201   :  { %v2022_v59 = vmax.f32 %v4352_v1, %v1905_v25 }
 0x202   :  { %2420 = vst.msk [vmem:[%s4309_s3 + $0x68] sm:$0xf] %vm2393_vm0, %v2687_v14  ;;  %v2174_v22 = vmax.f32 %v2125_v30, 0.0  ;;  %v2070_v28 = vmax.f32 %v1776_v7, %v2021_v21  ;;  %v4355_v30 = vld [vmem:[#allocation16_spill] sm:$0xff]  ;;  %v4356_v7 = vld [vmem:[#allocation15_spill] sm:$0xff] }
 0x203   :  { %v1660_v38 = vpop.permute.xlu1 %1659 }
 0x204   :  { %v2688_v34 = vpack.c.bf16 %v2174_v22, %v2174_v22  ;;  %v2126_v44 = vadd.f32 %v3804_v31, %v2070_v28  ;;  %v1777_v2 = vmax.f32 %v3787_v56, %v1660_v38  ;;  %v1662_v35 = vpop.permute.xlu0 %1661 }
 0x205   :  { %v1778_v20 = vmax.f32 %v4353_v45, %v1662_v35 }
 0x206   :  { %2421 = vst.msk [vmem:[%s4309_s3 + $0x6c] sm:$0xf] %vm2393_vm0, %v2688_v34  ;;  %v2175_v42 = vmax.f32 %v2126_v44, 0.0  ;;  %v2071_v62 = vmax.f32 %v1777_v2, %v2022_v59 }
 0x207   :  { %v1907_v13 = vpop.permute.xlu1 %1906 }
 0x208   :  { %v2689_v53 = vpack.c.bf16 %v2175_v42, %v2175_v42  ;;  %v2127_v33 = vadd.f32 %v3804_v31, %v2071_v62  ;;  %v2023_v16 = vmax.f32 %v4354_v51, %v1907_v13  ;;  %v1909_v54 = vpop.permute.xlu0 %1908 }
 0x209   :  { %v2024_v9 = vmax.f32 %v4355_v30, %v1909_v54 }
 0x20a   :  { %2422 = vst.msk [vmem:[%s4309_s3 + $0x70] sm:$0xf] %vm2393_vm0, %v2689_v53  ;;  %v2176_v56 = vmax.f32 %v2127_v33, 0.0  ;;  %v2072_v63 = vmax.f32 %v1778_v20, %v2023_v16  ;;  %v4357_v53 = vld [vmem:[#allocation17_spill] sm:$0xff] }
 0x20b   :  { %v1664_v55 = vpop.permute.xlu1 %1663 }
 0x20c   :  { %v2690_v8 = vpack.c.bf16 %v2176_v56, %v2176_v56  ;;  %v2128_v14 = vadd.f32 %v3804_v31, %v2072_v63  ;;  %v1779_v48 = vmax.f32 %v4356_v7, %v1664_v55  ;;  %v1666_v21 = vpop.permute.xlu0 %1665 }
 0x20d   :  { %v1780_v44 = vmax.f32 %v3829_v37, %v1666_v21 }
 0x20e   :  { %2423 = vst.msk [vmem:[%s4309_s3 + $0x74] sm:$0xf] %vm2393_vm0, %v2690_v8  ;;  %v2177_v25 = vmax.f32 %v2128_v14, 0.0  ;;  %v2073_v22 = vmax.f32 %v1779_v48, %v2024_v9 }
 0x20f   :  { %v1911_v28 = vpop.permute.xlu1 %1910 }
 0x210   :  { %v2691_v38 = vpack.c.bf16 %v2177_v25, %v2177_v25  ;;  %v2129_v34 = vadd.f32 %v3804_v31, %v2073_v22  ;;  %v2025_v1 = vmax.f32 %v3834_v60, %v1911_v28  ;;  %v1913_v59 = vpop.permute.xlu0 %1912 }
 0x211   :  { %v2026_v33 = vmax.f32 %v4357_v53, %v1913_v59 }
 0x212   :  { %2424 = vst.msk [vmem:[%s4309_s3 + $0x78] sm:$0xf] %vm2393_vm0, %v2691_v38  ;;  %v2178_v2 = vmax.f32 %v2129_v34, 0.0  ;;  %v2074_v35 = vmax.f32 %v1780_v44, %v2025_v1 }
 0x213   :  { %v1668_v42 = vpop.permute.xlu1 %1667 }
 0x214   :  { %v2692_v62 = vpack.c.bf16 %v2178_v2, %v2178_v2  ;;  %v2130_v13 = vadd.f32 %v3804_v31, %v2074_v35  ;;  %v1781_v45 = vmax.f32 %v3840_v43, %v1668_v42  ;;  %v1670_v20 = vpop.permute.xlu0 %1669 }
 0x215   :  { %v1782_v56 = vmax.f32 %v3855_v26, %v1670_v20 }
 0x216   :  { %2425 = vst.msk [vmem:[%s4309_s3 + $0x7c] sm:$0xf] %vm2393_vm0, %v2692_v62  ;;  %v2179_v37 = vmax.f32 %v2130_v13, 0.0  ;;  %v2075_v60 = vmax.f32 %v1781_v45, %v2026_v33 }
 0x217   :  { %v1915_v51 = vpop.permute.xlu1 %1914 }
 0x218   :  { %v2693_v16 = vpack.c.bf16 %v2179_v37, %v2179_v37  ;;  %v2131_v54 = vadd.f32 %v3804_v31, %v2075_v60  ;;  %v2027_v63 = vmax.f32 %v3860_v10, %v1915_v51  ;;  %v1917_v55 = vpop.permute.xlu0 %1916 }
 0x219   :  { %v2028_v7 = vmax.f32 %v3872_v41, %v1917_v55 }
 0x21a   :  { %2426 = vst.msk [vmem:[%s4309_s3 + $0x80] sm:$0xf] %vm2393_vm0, %v2693_v16  ;;  %v2180_v43 = vmax.f32 %v2131_v54, 0.0  ;;  %v2076_v8 = vmax.f32 %v1782_v56, %v2027_v63 }
 0x21b   :  { %v1672_v14 = vpop.permute.xlu1 %1671 }
 0x21c   :  { %v2694_v30 = vpack.c.bf16 %v2180_v43, %v2180_v43  ;;  %v2132_v9 = vadd.f32 %v3804_v31, %v2076_v8  ;;  %v1783_v48 = vmax.f32 %v3870_v3, %v1672_v14  ;;  %v1674_v21 = vpop.permute.xlu0 %1673  ;;  %v4232_v8 = vld [vmem:[%s4308_s2] ss:$0 sm:$0xff] }
 0x21d   :  { %v1784_v38 = vmax.f32 %v3885_v47, %v1674_v21 }
 0x21e   :  { %2427 = vst.msk [vmem:[%s4309_s3 + $0x84] sm:$0xf] %vm2393_vm0, %v2694_v30  ;;  %v2181_v10 = vmax.f32 %v2132_v9, 0.0  ;;  %v2077_v26 = vmax.f32 %v1783_v48, %v2028_v7 }
 0x21f   :  { %v1919_v25 = vpop.permute.xlu1 %1918 }
 0x220   :  { %v2695_v22 = vpack.c.bf16 %v2181_v10, %v2181_v10  ;;  %v2133_v28 = vadd.f32 %v3804_v31, %v2077_v26  ;;  %v2029_v34 = vmax.f32 %v3890_v49, %v1919_v25  ;;  %v1921_v44 = vpop.permute.xlu0 %1920 }
 0x221   :  { %v2030_v35 = vmax.f32 %v3902_v4, %v1921_v44 }
 0x222   :  { %2428 = vst.msk [vmem:[%s4309_s3 + $0x88] sm:$0xf] %vm2393_vm0, %v2695_v22  ;;  %v2182_v3 = vmax.f32 %v2133_v28, 0.0  ;;  %v2078_v41 = vmax.f32 %v1784_v38, %v2029_v34 }
 0x223   :  { %v1676_v1 = vpop.permute.xlu1 %1675 }
 0x224   :  { %v2696_v59 = vpack.c.bf16 %v2182_v3, %v2182_v3  ;;  %v2134_v2 = vadd.f32 %v3804_v31, %v2078_v41  ;;  %v1785_v42 = vmax.f32 %v3900_v15, %v1676_v1  ;;  %v1678_v62 = vpop.permute.xlu0 %1677 }
 0x225   :  { %v1786_v45 = vmax.f32 %v3915_v5, %v1678_v62 }
 0x226   :  { %2429 = vst.msk [vmem:[%s4309_s3 + $0x8c] sm:$0xf] %vm2393_vm0, %v2696_v59  ;;  %v2183_v47 = vmax.f32 %v2134_v2, 0.0  ;;  %v2079_v49 = vmax.f32 %v1785_v42, %v2030_v35 }
 0x227   :  { %v1923_v13 = vpop.permute.xlu1 %1922 }
 0x228   :  { %v2697_v53 = vpack.c.bf16 %v2183_v47, %v2183_v47  ;;  %v2135_v33 = vadd.f32 %v3804_v31, %v2079_v49  ;;  %v2031_v20 = vmax.f32 %v3920_v32, %v1923_v13  ;;  %v1925_v37 = vpop.permute.xlu0 %1924 }
 0x229   :  { %v2032_v54 = vmax.f32 %v3932_v52, %v1925_v37 }
 0x22a   :  { %2430 = vst.msk [vmem:[%s4309_s3 + $0x90] sm:$0xf] %vm2393_vm0, %v2697_v53  ;;  %v2184_v15 = vmax.f32 %v2135_v33, 0.0  ;;  %v2080_v4 = vmax.f32 %v1786_v45, %v2031_v20 }
 0x22b   :  { %v1680_v60 = vpop.permute.xlu1 %1679 }
 0x22c   :  { %v2698_v51 = vpack.c.bf16 %v2184_v15, %v2184_v15  ;;  %v2136_v16 = vadd.f32 %v3804_v31, %v2080_v4  ;;  %v1787_v56 = vmax.f32 %v3930_v27, %v1680_v60  ;;  %v1682_v63 = vpop.permute.xlu0 %1681 }
 0x22d   :  { %v1788_v52 = vmax.f32 %v3945_v40, %v1682_v63 }
 0x22e   :  { %2431 = vst.msk [vmem:[%s4309_s3 + $0x94] sm:$0xf] %vm2393_vm0, %v2698_v51  ;;  %v2185_v5 = vmax.f32 %v2136_v16, 0.0  ;;  %v2081_v32 = vmax.f32 %v1787_v56, %v2032_v54 }
 0x22f   :  { %v1927_v55 = vpop.permute.xlu1 %1926 }
 0x230   :  { %v2699_v43 = vpack.c.bf16 %v2185_v5, %v2185_v5  ;;  %v2137_v31 = vadd.f32 %v4232_v8, %v2081_v32  ;;  %v2033_v27 = vmax.f32 %v3950_v46, %v1927_v55  ;;  %v1929_v14 = vpop.permute.xlu0 %1928 }
 0x231   :  { %v2034_v10 = vmax.f32 %v3962_v17, %v1929_v14 }
 0x232   :  { %2432 = vst.msk [vmem:[%s4309_s3 + $0x98] sm:$0xf] %vm2393_vm0, %v2699_v43  ;;  %v2186_v30 = vmax.f32 %v2137_v31, 0.0  ;;  %v2082_v9 = vmax.f32 %v1788_v52, %v2033_v27 }
 0x233   :  { %v1684_v7 = vpop.permute.xlu1 %1683 }
 0x234   :  { %v2700_v48 = vpack.c.bf16 %v2186_v30, %v2186_v30  ;;  %v2138_v21 = vadd.f32 %v4232_v8, %v2082_v9  ;;  %v1789_v26 = vmax.f32 %v3960_v39, %v1684_v7  ;;  %v1686_v25 = vpop.permute.xlu0 %1685 }
 0x235   :  { %v1790_v34 = vmax.f32 %v3975_v0, %v1686_v25 }
 0x236   :  { %2433 = vst.msk [vmem:[%s4309_s3 + $0x9c] sm:$0xf] %vm2393_vm0, %v2700_v48  ;;  %v2187_v40 = vmax.f32 %v2138_v21, 0.0  ;;  %v2083_v46 = vmax.f32 %v1789_v26, %v2034_v10 }
 0x237   :  { %v1931_v22 = vpop.permute.xlu1 %1930 }
 0x238   :  { %v2701_v28 = vpack.c.bf16 %v2187_v40, %v2187_v40  ;;  %v2139_v38 = vadd.f32 %v4232_v8, %v2083_v46  ;;  %v2035_v44 = vmax.f32 %v3980_v50, %v1931_v22  ;;  %v1933_v3 = vpop.permute.xlu0 %1932 }
 0x239   :  { %v2036_v2 = vmax.f32 %v3992_v58, %v1933_v3 }
 0x23a   :  { %2434 = vst.msk [vmem:[%s4309_s3 + $0xa0] sm:$0xf] %vm2393_vm0, %v2701_v28  ;;  %v2188_v39 = vmax.f32 %v2139_v38, 0.0  ;;  %v2084_v17 = vmax.f32 %v1790_v34, %v2035_v44 }
 0x23b   :  { %v1688_v41 = vpop.permute.xlu1 %1687 }
 0x23c   :  { %v2702_v1 = vpack.c.bf16 %v2188_v39, %v2188_v39  ;;  %v2140_v59 = vadd.f32 %v4232_v8, %v2084_v17  ;;  %v1791_v35 = vmax.f32 %v3990_v57, %v1688_v41  ;;  %v1690_v42 = vpop.permute.xlu0 %1689 }
 0x23d   :  { %v1792_v13 = vmax.f32 %v4005_v12, %v1690_v42 }
 0x23e   :  { %2435 = vst.msk [vmem:[%s4309_s3 + $0xa4] sm:$0xf] %vm2393_vm0, %v2702_v1  ;;  %v2189_v0 = vmax.f32 %v2140_v59, 0.0  ;;  %v2085_v50 = vmax.f32 %v1791_v35, %v2036_v2 }
 0x23f   :  { %v1935_v62 = vpop.permute.xlu1 %1934 }
 0x240   :  { %v2703_v47 = vpack.c.bf16 %v2189_v0, %v2189_v0  ;;  %v2141_v49 = vadd.f32 %v4232_v8, %v2085_v50  ;;  %v2037_v53 = vmax.f32 %v4010_v23, %v1935_v62  ;;  %v1937_v33 = vpop.permute.xlu0 %1936 }
 0x241   :  { %v2038_v15 = vmax.f32 %v4022_v6, %v1937_v33 }
 0x242   :  { %2436 = vst.msk [vmem:[%s4309_s3 + $0xa8] sm:$0xf] %vm2393_vm0, %v2703_v47  ;;  %v2190_v57 = vmax.f32 %v2141_v49, 0.0  ;;  %v2086_v58 = vmax.f32 %v1792_v13, %v2037_v53 }
 0x243   :  { %v1692_v45 = vpop.permute.xlu1 %1691 }
 0x244   :  { %v2704_v20 = vpack.c.bf16 %v2190_v57, %v2190_v57  ;;  %v2142_v37 = vadd.f32 %v4232_v8, %v2086_v58  ;;  %v1793_v4 = vmax.f32 %v4020_v11, %v1692_v45  ;;  %v1694_v60 = vpop.permute.xlu0 %1693 }
 0x245   :  { %v1794_v56 = vmax.f32 %v4035_v24, %v1694_v60 }
 0x246   :  { %2437 = vst.msk [vmem:[%s4309_s3 + $0xac] sm:$0xf] %vm2393_vm0, %v2704_v20  ;;  %v2191_v12 = vmax.f32 %v2142_v37, 0.0  ;;  %v2087_v23 = vmax.f32 %v1793_v4, %v2038_v15 }
 0x247   :  { %v1939_v51 = vpop.permute.xlu1 %1938 }
 0x248   :  { %v2705_v16 = vpack.c.bf16 %v2191_v12, %v2191_v12  ;;  %v2143_v54 = vadd.f32 %v4232_v8, %v2087_v23  ;;  %v2039_v63 = vmax.f32 %v4040_v19, %v1939_v51 }
 0x24a   :  { %2438 = vst.msk [vmem:[%s4309_s3 + $0xb0] sm:$0xf] %vm2393_vm0, %v2705_v16  ;;  %v2192_v11 = vmax.f32 %v2143_v54, 0.0  ;;  %v2088_v6 = vmax.f32 %v1794_v56, %v2039_v63 }
 0x24b   :  { %v1696_v5 = vpop.permute.xlu1 %1695  ;;  %v1698_v32 = vpop.permute.xlu0 %1697 }
 0x24c   :  { %v2706_v55 = vpack.c.bf16 %v2192_v11, %v2192_v11  ;;  %v2144_v43 = vadd.f32 %v4232_v8, %v2088_v6  ;;  %v1795_v19 = vmax.f32 %v4050_v29, %v1696_v5  ;;  %v1796_v14 = vmax.f32 %v4063_v36, %v1698_v32 }
 0x24e   :  { %2439 = vst.msk [vmem:[%s4309_s3 + $0xb4] sm:$0xf] %vm2393_vm0, %v2706_v55  ;;  %v2193_v24 = vmax.f32 %v2144_v43, 0.0 }
 0x24f   :  { %v1941_v31 = vpop.permute.xlu0 %1940  ;;  %v1943_v52 = vpop.permute.xlu1 %1942 }
 0x250   :  { %v2707_v27 = vpack.c.bf16 %v2193_v24, %v2193_v24  ;;  %v2040_v30 = vmax.f32 %v4052_v18, %v1941_v31  ;;  %v2041_v9 = vmax.f32 %v4068_v61, %v1943_v52 }
 0x252   :  { %2440 = vst.msk [vmem:[%s4309_s3 + $0xb8] sm:$0xf] %vm2393_vm0, %v2707_v27  ;;  %v2089_v7 = vmax.f32 %v1795_v19, %v2040_v30  ;;  %v2090_v48 = vmax.f32 %v1796_v14, %v2041_v9 }
 0x254   :  { %v2145_v21 = vadd.f32 %v4232_v8, %v2089_v7  ;;  %v2146_v29 = vadd.f32 %v4232_v8, %v2090_v48 }
 0x256   :  { %v2194_v10 = vmax.f32 %v2145_v21, 0.0  ;;  %v2195_v26 = vmax.f32 %v2146_v29, 0.0 }
 0x258   :  { %v2708_v25 = vpack.c.bf16 %v2194_v10, %v2194_v10  ;;  %v2709_v40 = vpack.c.bf16 %v2195_v26, %v2195_v26 }
 0x25a   :  { %2441 = vst.msk [vmem:[%s4309_s3 + $0xbc] sm:$0xf] %vm2393_vm0, %v2708_v25  ;;  %2442 = vst.msk [vmem:[%s4309_s3 + $0xc0] sm:$0xf] %vm2393_vm0, %v2709_v40 }

// kernel: forward.5
= control target key start
LH: loop header
LB: loop body
LE: loop exit
PB: predicated region body
PF: predicated region fallthrough
CT: control target
= control target key end

     0   :  { %vm3113_vm0 = vmmov 0   ;;  %vm1696_vm1 = vcmask 523264   ;;  %vm2333_vm2 = vcmask 80896   ;;  %s3818_s1 = inlined_call_operand.vmem [shape: bf16[3136,128], index: 1, kind: input, shape index: {}]   ;;  %s3819_s0 = inlined_call_operand.vmem [shape: bf16[8,3136], index: 0, kind: input, shape index: {}]   ;;  %s3820_s2 = inlined_call_operand.vmem [shape: f32[1,128], index: 2, kind: input, shape index: {}]   ;;  %s3821_s3 = inlined_call_operand.vmem [shape: bf16[128,10], index: 3, kind: input, shape index: {}]   ;;  %s3822_s4 = inlined_call_operand.vmem [shape: f32[1,10], index: 4, kind: input, shape index: {}]   ;;  %s3823_s5 = inlined_call_operand.vmem [shape: f32[8,10], index: 5, kind: output, shape index: {}]  }
   0x1   :  { %v2883_v0 = vld [vmem:[%s3818_s1 + $0x40] sm:$0xff]   ;;  %v2887_v4 = vld [vmem:[%s3818_s1 + $0x48] sm:$0xff]   ;;  %v2891_v8 = vld [vmem:[%s3818_s1 + $0x50] sm:$0xff]  }
   0x2   :  { %v2884_v1 = vld [vmem:[%s3818_s1] sm:$0xff]   ;;  %2571 = vmatprep.subr.bf16.mxu0 %v2883_v0  ;;  %v2888_v5 = vld [vmem:[%s3818_s1 + $0x8] sm:$0xff]   ;;  %v2892_v9 = vld [vmem:[%s3818_s1 + $0x10] sm:$0xff]  }
   0x3   :  { %v2885_v2 = vld [vmem:[%s3818_s1 + $0xc0] sm:$0xff]   ;;  %2572 = vmatpush3.bf16.msra.mxu0 %v2884_v1  ;;  %v2889_v6 = vld [vmem:[%s3818_s1 + $0xc8] sm:$0xff]   ;;  %v2893_v10 = vld [vmem:[%s3818_s1 + $0xd0] sm:$0xff]  }
   0x4   :  { %v2886_v3 = vld [vmem:[%s3818_s1 + $0x80] sm:$0xff]   ;;  %2593 = vmatprep.subr.bf16.mxu1 %v2885_v2  ;;  %2573 = vmatprep.subr.bf16.mxu0 %v2887_v4  ;;  %v2890_v7 = vld [vmem:[%s3818_s1 + $0x88] sm:$0xff]   ;;  %v2894_v11 = vld [vmem:[%s3818_s1 + $0x90] sm:$0xff]  }
   0x5   :  { %2594 = vmatpush3.bf16.msra.mxu1 %v2886_v3  ;;  %v2895_v12 = vld [vmem:[%s3818_s1 + $0x58] sm:$0xff]   ;;  %v2899_v16 = vld [vmem:[%s3818_s1 + $0x60] sm:$0xff]   ;;  %v2903_v20 = vld [vmem:[%s3818_s1 + $0x68] sm:$0xff]  }
   0x6   :  { %2595 = vmatprep.subr.bf16.mxu1 %v2889_v6  ;;  %v2896_v13 = vld [vmem:[%s3818_s1 + $0x18] sm:$0xff]   ;;  %v2900_v17 = vld [vmem:[%s3818_s1 + $0x20] sm:$0xff]   ;;  %v2904_v21 = vld [vmem:[%s3818_s1 + $0x28] sm:$0xff]  }
   0x7   :  { %2574 = vmatpush3.bf16.msra.mxu0 %v2888_v5  ;;  %v2897_v14 = vld [vmem:[%s3818_s1 + $0xd8] sm:$0xff]   ;;  %v2901_v18 = vld [vmem:[%s3818_s1 + $0xe0] sm:$0xff]   ;;  %v2905_v22 = vld [vmem:[%s3818_s1 + $0xe8] sm:$0xff]  }
   0x8   :  { %2575 = vmatprep.subr.bf16.mxu0 %v2891_v8  ;;  %v2898_v15 = vld [vmem:[%s3818_s1 + $0x98] sm:$0xff]   ;;  %v2902_v19 = vld [vmem:[%s3818_s1 + $0xa0] sm:$0xff]   ;;  %v2906_v23 = vld [vmem:[%s3818_s1 + $0xa8] sm:$0xff]  }
   0x9   :  { %2596 = vmatpush3.bf16.msra.mxu1 %v2890_v7  ;;  %v2907_v24 = vld [vmem:[%s3818_s1 + $0x70] sm:$0xff]   ;;  %v2911_v28 = vld [vmem:[%s3818_s1 + $0x78] sm:$0xff]   ;;  %v21_v31 = vld [vmem:[%s3819_s0] sm:$0xff] }
   0xa   :  { %2597 = vmatprep.subr.bf16.mxu1 %v2893_v10  ;;  %v2908_v25 = vld [vmem:[%s3818_s1 + $0x30] sm:$0xff]   ;;  %v2912_v29 = vld [vmem:[%s3818_s1 + $0x38] sm:$0xff]   ;;  %v2340_v32 = vcombine.low %v21_v31, %v21_v31  ;;  %v2341_v33 = vcombine.high %v21_v31, %v21_v31  ;;  %v2917_v35 = vld [vmem:[%s3818_s1 + $0x140] sm:$0xff]  }
   0xb   :  { %2576 = vmatpush3.bf16.msra.mxu0 %v2892_v9  ;;  %v2909_v26 = vld [vmem:[%s3818_s1 + $0xf0] sm:$0xff]   ;;  %v2913_v30 = vld [vmem:[%s3818_s1 + $0xf8] sm:$0xff]   ;;  %v22_v36 = vld [vmem:[%s3819_s0 + $0x8] sm:$0xff] }
   0xc   :  { %2577 = vmatprep.subr.bf16.mxu0 %v2895_v12  ;;  %v2910_v27 = vld [vmem:[%s3818_s1 + $0xb0] sm:$0xff]   ;;  %v2916_v34 = vld [vmem:[%s3818_s1 + $0xb8] sm:$0xff]   ;;  %1732 = vmatprep.mubr.bf16.mxu0 %v2341_v33  ;;  %v2342_v37 = vcombine.low %v22_v36, %v22_v36  ;;  %v2343_v38 = vcombine.high %v22_v36, %v22_v36  ;;  %v2920_v39 = vld [vmem:[%s3818_s1 + $0x100] sm:$0xff]  }
   0xd   :  { %2598 = vmatpush3.bf16.msra.mxu1 %v2894_v11  ;;  %v2921_v40 = vld [vmem:[%s3818_s1 + $0x1c0] sm:$0xff]   ;;  %v2923_v42 = vld [vmem:[%s3818_s1 + $0x148] sm:$0xff]   ;;  %v2927_v46 = vld [vmem:[%s3818_s1 + $0x150] sm:$0xff]  }
   0xe   :  { %2599 = vmatprep.subr.bf16.mxu1 %v2897_v14  ;;  %1772 = vmatprep.mubr.bf16.mxu1 %v2343_v38  ;;  %v2922_v41 = vld [vmem:[%s3818_s1 + $0x180] sm:$0xff]   ;;  %v2924_v43 = vld [vmem:[%s3818_s1 + $0x108] sm:$0xff]   ;;  %v2928_v47 = vld [vmem:[%s3818_s1 + $0x110] sm:$0xff]  }
   0xf   :  { %2578 = vmatpush3.bf16.msra.mxu0 %v2896_v13  ;;  %v2925_v44 = vld [vmem:[%s3818_s1 + $0x1c8] sm:$0xff]   ;;  %v2929_v48 = vld [vmem:[%s3818_s1 + $0x1d0] sm:$0xff]   ;;  %v2931_v50 = vld [vmem:[%s3818_s1 + $0x158] sm:$0xff]  }
  0x10   :  { %2579 = vmatprep.subr.bf16.mxu0 %v2899_v16  ;;  %v2926_v45 = vld [vmem:[%s3818_s1 + $0x188] sm:$0xff]   ;;  %v2930_v49 = vld [vmem:[%s3818_s1 + $0x190] sm:$0xff]   ;;  %v2932_v51 = vld [vmem:[%s3818_s1 + $0x118] sm:$0xff]  }
  0x11   :  { %2600 = vmatpush3.bf16.msra.mxu1 %v2898_v15  ;;  %v2933_v52 = vld [vmem:[%s3818_s1 + $0x1d8] sm:$0xff]   ;;  %v2935_v54 = vld [vmem:[%s3818_s1 + $0x160] sm:$0xff]   ;;  %v2939_v58 = vld [vmem:[%s3818_s1 + $0x168] sm:$0xff]  }
  0x12   :  { %2601 = vmatprep.subr.bf16.mxu1 %v2901_v18  ;;  %v2934_v53 = vld [vmem:[%s3818_s1 + $0x198] sm:$0xff]   ;;  %v2936_v55 = vld [vmem:[%s3818_s1 + $0x120] sm:$0xff]   ;;  %v2940_v59 = vld [vmem:[%s3818_s1 + $0x128] sm:$0xff]  }
  0x13   :  { %2580 = vmatpush3.bf16.msra.mxu0 %v2900_v17  ;;  %v2937_v56 = vld [vmem:[%s3818_s1 + $0x1e0] sm:$0xff]   ;;  %v2941_v60 = vld [vmem:[%s3818_s1 + $0x1e8] sm:$0xff]   ;;  %v2943_v62 = vld [vmem:[%s3818_s1 + $0x170] sm:$0xff]  }
  0x14   :  { %2581 = vmatprep.subr.bf16.mxu0 %v2903_v20  ;;  %v2938_v57 = vld [vmem:[%s3818_s1 + $0x1a0] sm:$0xff]   ;;  %v2942_v61 = vld [vmem:[%s3818_s1 + $0x1a8] sm:$0xff]   ;;  %v2944_v63 = vld [vmem:[%s3818_s1 + $0x130] sm:$0xff]  }
  0x15   :  { %2602 = vmatpush3.bf16.msra.mxu1 %v2902_v19  ;;  %v2945_v0 = vld [vmem:[%s3818_s1 + $0x1f0] sm:$0xff]   ;;  %v2947_v2 = vld [vmem:[%s3818_s1 + $0x178] sm:$0xff]   ;;  %v2953_v9 = vld [vmem:[%s3818_s1 + $0x240] sm:$0xff]  }
  0x16   :  { %2603 = vmatprep.subr.bf16.mxu1 %v2905_v22  ;;  %v2946_v1 = vld [vmem:[%s3818_s1 + $0x1b0] sm:$0xff]   ;;  %v2948_v3 = vld [vmem:[%s3818_s1 + $0x138] sm:$0xff]   ;;  %v2956_v13 = vld [vmem:[%s3818_s1 + $0x200] sm:$0xff]  }
  0x17   :  { %2582 = vmatpush3.bf16.msra.mxu0 %v2904_v21  ;;  %v2949_v4 = vld [vmem:[%s3818_s1 + $0x1f8] sm:$0xff]   ;;  %v23_v5 = vld [vmem:[%s3819_s0 + $0x10] sm:$0xff]  ;;  %v2957_v14 = vld [vmem:[%s3818_s1 + $0x2c0] sm:$0xff]  }
  0x18   :  { %2583 = vmatprep.subr.bf16.mxu0 %v2907_v24  ;;  %v2344_v6 = vcombine.low %v23_v5, %v23_v5  ;;  %v2345_v7 = vcombine.high %v23_v5, %v23_v5  ;;  %v2952_v8 = vld [vmem:[%s3818_s1 + $0x1b8] sm:$0xff]   ;;  %v2958_v15 = vld [vmem:[%s3818_s1 + $0x280] sm:$0xff]   ;;  %v2959_v16 = vld [vmem:[%s3818_s1 + $0x248] sm:$0xff]  }
  0x19   :  { %2604 = vmatpush3.bf16.msra.mxu1 %v2906_v23  ;;  %v24_v10 = vld [vmem:[%s3819_s0 + $0x18] sm:$0xff]  ;;  %v2960_v17 = vld [vmem:[%s3818_s1 + $0x208] sm:$0xff]   ;;  %v2963_v20 = vld [vmem:[%s3818_s1 + $0x250] sm:$0xff]  }
  0x1a   :  { %2605 = vmatprep.subr.bf16.mxu1 %v2909_v26  ;;  %v2346_v11 = vcombine.low %v24_v10, %v24_v10  ;;  %v2347_v12 = vcombine.high %v24_v10, %v24_v10  ;;  %v2961_v18 = vld [vmem:[%s3818_s1 + $0x2c8] sm:$0xff]   ;;  %v2964_v21 = vld [vmem:[%s3818_s1 + $0x210] sm:$0xff]   ;;  %v2967_v24 = vld [vmem:[%s3818_s1 + $0x258] sm:$0xff]  }
  0x1b   :  { %2584 = vmatpush3.bf16.msra.mxu0 %v2908_v25  ;;  %v2962_v19 = vld [vmem:[%s3818_s1 + $0x288] sm:$0xff]   ;;  %v2965_v22 = vld [vmem:[%s3818_s1 + $0x2d0] sm:$0xff]   ;;  %v2968_v25 = vld [vmem:[%s3818_s1 + $0x218] sm:$0xff]  }
  0x1c   :  { %2585 = vmatprep.subr.bf16.mxu0 %v2911_v28  ;;  %v2966_v23 = vld [vmem:[%s3818_s1 + $0x290] sm:$0xff]   ;;  %v2969_v26 = vld [vmem:[%s3818_s1 + $0x2d8] sm:$0xff]   ;;  %v2971_v28 = vld [vmem:[%s3818_s1 + $0x260] sm:$0xff]  }
  0x1d   :  { %2606 = vmatpush3.bf16.msra.mxu1 %v2910_v27  ;;  %v2970_v27 = vld [vmem:[%s3818_s1 + $0x298] sm:$0xff]   ;;  %v2974_v31 = vld [vmem:[%s3818_s1 + $0x2a0] sm:$0xff]   ;;  %v2976_v33 = vld [vmem:[%s3818_s1 + $0x228] sm:$0xff]  }
  0x1e   :  { %2607 = vmatprep.subr.bf16.mxu1 %v2913_v30  ;;  %v2973_v30 = vld [vmem:[%s3818_s1 + $0x2e0] sm:$0xff]   ;;  %v2979_v36 = vld [vmem:[%s3818_s1 + $0x270] sm:$0xff]  }
  0x1f   :  { %2586 = vmatpush3.bf16.msra.mxu0 %v2912_v29  ;;  %v2972_v29 = vld [vmem:[%s3818_s1 + $0x220] sm:$0xff]   ;;  %v2981_v38 = vld [vmem:[%s3818_s1 + $0x2f0] sm:$0xff]  }
  0x20   :  { %2615 = vmatprep.subr.bf16.mxu0 %v2917_v35  ;;  %v2978_v35 = vld [vmem:[%s3818_s1 + $0x2a8] sm:$0xff]   ;;  %v3010_v5 = vld [vmem:[%s3818_s1 + $0x3a0] sm:$0xff]   ;;  %v3015_v10 = vld [vmem:[%s3818_s1 + $0x370] sm:$0xff]  }
  0x21   :  { %2608 = vmatpush3.bf16.msra.mxu1 %v2916_v34  ;;  %v2977_v34 = vld [vmem:[%s3818_s1 + $0x2e8] sm:$0xff]  }
  0x22   :  { %1733 = vmatmul.mubr.bf16.vlgmr.msra.gmra.mrb[0].mxu0 %v2340_v32  ;;  %2637 = vmatprep.subr.bf16.mxu1 %v2921_v40  ;;  %v2975_v32 = vld [vmem:[%s3818_s1 + $0x268] sm:$0xff]   ;;  %v2983_v40 = vld [vmem:[%s3818_s1 + $0x278] sm:$0xff]  }
  0x23   :  { %2616 = vmatpush3.bf16.msra.mxu0 %v2920_v39  ;;  %1812 = vmatprep.mubr.bf16.mxu0 %v2345_v7  ;;  %v2982_v39 = vld [vmem:[%s3818_s1 + $0x2b0] sm:$0xff]   ;;  %v3012_v7 = vld [vmem:[%s3818_s1 + $0x328] sm:$0xff]  }
  0x24   :  { %1773 = vmatmul.mubr.bf16.vlgmr.msra.gmra.mrb[0].mxu1 %v2342_v37  ;;  %2617 = vmatprep.subr.bf16.mxu0 %v2923_v42  ;;  %v2980_v37 = vld [vmem:[%s3818_s1 + $0x230] sm:$0xff]   ;;  %v2985_v42 = vld [vmem:[%s3818_s1 + $0x2f8] sm:$0xff]  }
  0x25   :  { %2638 = vmatpush3.bf16.msra.mxu1 %v2922_v41  ;;  %1852 = vmatprep.mubr.bf16.mxu1 %v2347_v12  ;;  %v2984_v41 = vld [vmem:[%s3818_s1 + $0x238] sm:$0xff]   ;;  %v3017_v12 = vld [vmem:[%s3818_s1 + $0x3f0] sm:$0xff]  }
  0x26   :  { %2639 = vmatprep.subr.bf16.mxu1 %v2925_v44 }
  0x27   :  { %2618 = vmatpush3.bf16.msra.mxu0 %v2924_v43  ;;  %v25_v43 = vld [vmem:[%s3819_s0 + $0x20] sm:$0xff] }
  0x28   :  { %2619 = vmatprep.subr.bf16.mxu0 %v2927_v46  ;;  %v2348_v44 = vcombine.low %v25_v43, %v25_v43  ;;  %v2988_v46 = vld [vmem:[%s3818_s1 + $0x2b8] sm:$0xff]  }
  0x29   :  { %2640 = vmatpush3.bf16.msra.mxu1 %v2926_v45  ;;  %v2349_v45 = vcombine.high %v25_v43, %v25_v43  ;;  %v3046_v43 = vld [vmem:[%s3818_s1 + $0x4a0] sm:$0xff]  }
  0x2a   :  { %2641 = vmatprep.subr.bf16.mxu1 %v2929_v48  ;;  %v26_v48 = vld [vmem:[%s3819_s0 + $0x28] sm:$0xff] }
  0x2b   :  { %2620 = vmatpush3.bf16.msra.mxu0 %v2928_v47  ;;  %v2989_v47 = vld [vmem:[%s3818_s1 + $0x340] sm:$0xff]  }
  0x2c   :  { %2621 = vmatprep.subr.bf16.mxu0 %v2931_v50  ;;  %v2351_v50 = vcombine.high %v26_v48, %v26_v48 }
  0x2d   :  { %2642 = vmatpush3.bf16.msra.mxu1 %v2930_v49  ;;  %v2350_v49 = vcombine.low %v26_v48, %v26_v48  ;;  %v3051_v48 = vld [vmem:[%s3818_s1 + $0x470] sm:$0xff]  }
  0x2e   :  { %2643 = vmatprep.subr.bf16.mxu1 %v2933_v52  ;;  %v2993_v52 = vld [vmem:[%s3818_s1 + $0x3c0] sm:$0xff]  }
  0x2f   :  { %2622 = vmatpush3.bf16.msra.mxu0 %v2932_v51  ;;  %v2992_v51 = vld [vmem:[%s3818_s1 + $0x300] sm:$0xff]  }
  0x30   :  { %2623 = vmatprep.subr.bf16.mxu0 %v2935_v54  ;;  %v2995_v54 = vld [vmem:[%s3818_s1 + $0x348] sm:$0xff]  }
  0x31   :  { %2644 = vmatpush3.bf16.msra.mxu1 %v2934_v53  ;;  %v2994_v53 = vld [vmem:[%s3818_s1 + $0x380] sm:$0xff]  }
  0x32   :  { %2645 = vmatprep.subr.bf16.mxu1 %v2937_v56  ;;  %v2997_v56 = vld [vmem:[%s3818_s1 + $0x3c8] sm:$0xff]  }
  0x33   :  { %2624 = vmatpush3.bf16.msra.mxu0 %v2936_v55  ;;  %v2996_v55 = vld [vmem:[%s3818_s1 + $0x308] sm:$0xff]  }
  0x34   :  { %2625 = vmatprep.subr.bf16.mxu0 %v2939_v58  ;;  %v2999_v58 = vld [vmem:[%s3818_s1 + $0x350] sm:$0xff]  }
  0x35   :  { %2646 = vmatpush3.bf16.msra.mxu1 %v2938_v57  ;;  %v2998_v57 = vld [vmem:[%s3818_s1 + $0x388] sm:$0xff]  }
  0x36   :  { %2647 = vmatprep.subr.bf16.mxu1 %v2941_v60  ;;  %v3001_v60 = vld [vmem:[%s3818_s1 + $0x3d0] sm:$0xff]  }
  0x37   :  { %2626 = vmatpush3.bf16.msra.mxu0 %v2940_v59  ;;  %v3000_v59 = vld [vmem:[%s3818_s1 + $0x310] sm:$0xff]  }
  0x38   :  { %2627 = vmatprep.subr.bf16.mxu0 %v2943_v62  ;;  %v3003_v62 = vld [vmem:[%s3818_s1 + $0x358] sm:$0xff]  }
  0x39   :  { %2648 = vmatpush3.bf16.msra.mxu1 %v2942_v61  ;;  %v3002_v61 = vld [vmem:[%s3818_s1 + $0x390] sm:$0xff]  }
  0x3a   :  { %2649 = vmatprep.subr.bf16.mxu1 %v2945_v0  ;;  %v3005_v0 = vld [vmem:[%s3818_s1 + $0x3d8] sm:$0xff]  }
  0x3b   :  { %2628 = vmatpush3.bf16.msra.mxu0 %v2944_v63  ;;  %v3004_v63 = vld [vmem:[%s3818_s1 + $0x318] sm:$0xff]  }
  0x3c   :  { %2629 = vmatprep.subr.bf16.mxu0 %v2947_v2  ;;  %v3007_v2 = vld [vmem:[%s3818_s1 + $0x360] sm:$0xff]  }
  0x3d   :  { %2650 = vmatpush3.bf16.msra.mxu1 %v2946_v1  ;;  %v3006_v1 = vld [vmem:[%s3818_s1 + $0x398] sm:$0xff]  }
  0x3e   :  { %2651 = vmatprep.subr.bf16.mxu1 %v2949_v4  ;;  %v3009_v4 = vld [vmem:[%s3818_s1 + $0x3e0] sm:$0xff]  }
  0x3f   :  { %2630 = vmatpush3.bf16.msra.mxu0 %v2948_v3  ;;  %v3008_v3 = vld [vmem:[%s3818_s1 + $0x320] sm:$0xff]  }
  0x40   :  { %2659 = vmatprep.subr.bf16.mxu0 %v2953_v9  ;;  %v3014_v9 = vld [vmem:[%s3818_s1 + $0x3a8] sm:$0xff]  }
  0x41   :  { %2652 = vmatpush3.bf16.msra.mxu1 %v2952_v8  ;;  %v3013_v8 = vld [vmem:[%s3818_s1 + $0x3e8] sm:$0xff]  }
  0x42   :  { %1813 = vmatmul.mubr.bf16.vlgmr.msra.gmra.mrb[4].mxu0 %v2344_v6  ;;  %2681 = vmatprep.subr.bf16.mxu1 %v2957_v14  ;;  %v3011_v6 = vld [vmem:[%s3818_s1 + $0x368] sm:$0xff]   ;;  %v3019_v14 = vld [vmem:[%s3818_s1 + $0x378] sm:$0xff]  }
  0x43   :  { %2660 = vmatpush3.bf16.msra.mxu0 %v2956_v13  ;;  %1892 = vmatprep.mubr.bf16.mxu0 %v2349_v45  ;;  %v3018_v13 = vld [vmem:[%s3818_s1 + $0x3b0] sm:$0xff]   ;;  %v3048_v45 = vld [vmem:[%s3818_s1 + $0x428] sm:$0xff]  }
  0x44   :  { %1853 = vmatmul.mubr.bf16.vlgmr.msra.gmra.mrb[4].mxu1 %v2346_v11  ;;  %2661 = vmatprep.subr.bf16.mxu0 %v2959_v16  ;;  %v3016_v11 = vld [vmem:[%s3818_s1 + $0x330] sm:$0xff]   ;;  %v3021_v16 = vld [vmem:[%s3818_s1 + $0x3f8] sm:$0xff]  }
  0x45   :  { %2682 = vmatpush3.bf16.msra.mxu1 %v2958_v15  ;;  %1932 = vmatprep.mubr.bf16.mxu1 %v2351_v50  ;;  %v3020_v15 = vld [vmem:[%s3818_s1 + $0x338] sm:$0xff]   ;;  %v3053_v50 = vld [vmem:[%s3818_s1 + $0x4f0] sm:$0xff]  }
  0x46   :  { %2683 = vmatprep.subr.bf16.mxu1 %v2961_v18 }
  0x47   :  { %2662 = vmatpush3.bf16.msra.mxu0 %v2960_v17  ;;  %v27_v17 = vld [vmem:[%s3819_s0 + $0x30] sm:$0xff] }
  0x48   :  { %2663 = vmatprep.subr.bf16.mxu0 %v2963_v20  ;;  %v2352_v18 = vcombine.low %v27_v17, %v27_v17  ;;  %v3024_v20 = vld [vmem:[%s3818_s1 + $0x3b8] sm:$0xff]  }
  0x49   :  { %2684 = vmatpush3.bf16.msra.mxu1 %v2962_v19  ;;  %v2353_v19 = vcombine.high %v27_v17, %v27_v17  ;;  %v3082_v17 = vld [vmem:[%s3818_s1 + $0x5a0] sm:$0xff]  }
  0x4a   :  { %2685 = vmatprep.subr.bf16.mxu1 %v2965_v22  ;;  %v28_v22 = vld [vmem:[%s3819_s0 + $0x38] sm:$0xff] }
  0x4b   :  { %2664 = vmatpush3.bf16.msra.mxu0 %v2964_v21  ;;  %v3025_v21 = vld [vmem:[%s3818_s1 + $0x440] sm:$0xff]  }
  0x4c   :  { %2665 = vmatprep.subr.bf16.mxu0 %v2967_v24  ;;  %v2355_v24 = vcombine.high %v28_v22, %v28_v22 }
  0x4d   :  { %2686 = vmatpush3.bf16.msra.mxu1 %v2966_v23  ;;  %v2354_v23 = vcombine.low %v28_v22, %v28_v22  ;;  %v3087_v22 = vld [vmem:[%s3818_s1 + $0x570] sm:$0xff]  }
  0x4e   :  { %2687 = vmatprep.subr.bf16.mxu1 %v2969_v26  ;;  %v3029_v26 = vld [vmem:[%s3818_s1 + $0x4c0] sm:$0xff]  }
  0x4f   :  { %2666 = vmatpush3.bf16.msra.mxu0 %v2968_v25  ;;  %v3028_v25 = vld [vmem:[%s3818_s1 + $0x400] sm:$0xff]  }
  0x50   :  { %2667 = vmatprep.subr.bf16.mxu0 %v2971_v28  ;;  %v3031_v28 = vld [vmem:[%s3818_s1 + $0x448] sm:$0xff]  }
  0x51   :  { %2688 = vmatpush3.bf16.msra.mxu1 %v2970_v27  ;;  %v3030_v27 = vld [vmem:[%s3818_s1 + $0x480] sm:$0xff]  }
  0x52   :  { %2689 = vmatprep.subr.bf16.mxu1 %v2973_v30  ;;  %v3033_v30 = vld [vmem:[%s3818_s1 + $0x4c8] sm:$0xff]  }
  0x53   :  { %2668 = vmatpush3.bf16.msra.mxu0 %v2972_v29  ;;  %v3032_v29 = vld [vmem:[%s3818_s1 + $0x408] sm:$0xff]  }
  0x54   :  { %2669 = vmatprep.subr.bf16.mxu0 %v2975_v32  ;;  %v3035_v32 = vld [vmem:[%s3818_s1 + $0x450] sm:$0xff]  }
  0x55   :  { %2690 = vmatpush3.bf16.msra.mxu1 %v2974_v31  ;;  %v3034_v31 = vld [vmem:[%s3818_s1 + $0x488] sm:$0xff]  }
  0x56   :  { %2691 = vmatprep.subr.bf16.mxu1 %v2977_v34  ;;  %v3037_v34 = vld [vmem:[%s3818_s1 + $0x4d0] sm:$0xff]  }
  0x57   :  { %2670 = vmatpush3.bf16.msra.mxu0 %v2976_v33  ;;  %v3036_v33 = vld [vmem:[%s3818_s1 + $0x410] sm:$0xff]  }
  0x58   :  { %2671 = vmatprep.subr.bf16.mxu0 %v2979_v36  ;;  %v3039_v36 = vld [vmem:[%s3818_s1 + $0x458] sm:$0xff]  }
  0x59   :  { %2692 = vmatpush3.bf16.msra.mxu1 %v2978_v35  ;;  %v3038_v35 = vld [vmem:[%s3818_s1 + $0x490] sm:$0xff]  }
  0x5a   :  { %2693 = vmatprep.subr.bf16.mxu1 %v2981_v38  ;;  %v3041_v38 = vld [vmem:[%s3818_s1 + $0x4d8] sm:$0xff]  }
  0x5b   :  { %2672 = vmatpush3.bf16.msra.mxu0 %v2980_v37  ;;  %v3040_v37 = vld [vmem:[%s3818_s1 + $0x418] sm:$0xff]  }
  0x5c   :  { %2673 = vmatprep.subr.bf16.mxu0 %v2983_v40  ;;  %v3043_v40 = vld [vmem:[%s3818_s1 + $0x460] sm:$0xff]  }
  0x5d   :  { %2694 = vmatpush3.bf16.msra.mxu1 %v2982_v39  ;;  %v3042_v39 = vld [vmem:[%s3818_s1 + $0x498] sm:$0xff]  }
  0x5e   :  { %2695 = vmatprep.subr.bf16.mxu1 %v2985_v42  ;;  %v3045_v42 = vld [vmem:[%s3818_s1 + $0x4e0] sm:$0xff]  }
  0x5f   :  { %2674 = vmatpush3.bf16.msra.mxu0 %v2984_v41  ;;  %v3044_v41 = vld [vmem:[%s3818_s1 + $0x420] sm:$0xff]  }
  0x60   :  { %2703 = vmatprep.subr.bf16.mxu0 %v2989_v47  ;;  %v3050_v47 = vld [vmem:[%s3818_s1 + $0x4a8] sm:$0xff]  }
  0x61   :  { %2696 = vmatpush3.bf16.msra.mxu1 %v2988_v46  ;;  %v3049_v46 = vld [vmem:[%s3818_s1 + $0x4e8] sm:$0xff]  }
  0x62   :  { %1893 = vmatmul.mubr.bf16.vlgmr.msra.gmra.mrb[8].mxu0 %v2348_v44  ;;  %2725 = vmatprep.subr.bf16.mxu1 %v2993_v52  ;;  %v3047_v44 = vld [vmem:[%s3818_s1 + $0x468] sm:$0xff]   ;;  %v3055_v52 = vld [vmem:[%s3818_s1 + $0x478] sm:$0xff]  }
  0x63   :  { %2704 = vmatpush3.bf16.msra.mxu0 %v2992_v51  ;;  %1972 = vmatprep.mubr.bf16.mxu0 %v2353_v19  ;;  %v3054_v51 = vld [vmem:[%s3818_s1 + $0x4b0] sm:$0xff]   ;;  %v3084_v19 = vld [vmem:[%s3818_s1 + $0x528] sm:$0xff]  }
  0x64   :  { %1933 = vmatmul.mubr.bf16.vlgmr.msra.gmra.mrb[8].mxu1 %v2350_v49  ;;  %2705 = vmatprep.subr.bf16.mxu0 %v2995_v54  ;;  %v3052_v49 = vld [vmem:[%s3818_s1 + $0x430] sm:$0xff]   ;;  %v3057_v54 = vld [vmem:[%s3818_s1 + $0x4f8] sm:$0xff]  }
  0x65   :  { %2726 = vmatpush3.bf16.msra.mxu1 %v2994_v53  ;;  %2012 = vmatprep.mubr.bf16.mxu1 %v2355_v24  ;;  %v3056_v53 = vld [vmem:[%s3818_s1 + $0x438] sm:$0xff]   ;;  %v3089_v24 = vld [vmem:[%s3818_s1 + $0x5f0] sm:$0xff]  }
  0x66   :  { %2727 = vmatprep.subr.bf16.mxu1 %v2997_v56 }
  0x67   :  { %2706 = vmatpush3.bf16.msra.mxu0 %v2996_v55  ;;  %v29_v55 = vld [vmem:[%s3819_s0 + $0x40] sm:$0xff] }
  0x68   :  { %2707 = vmatprep.subr.bf16.mxu0 %v2999_v58  ;;  %v2356_v56 = vcombine.low %v29_v55, %v29_v55  ;;  %v3060_v58 = vld [vmem:[%s3818_s1 + $0x4b8] sm:$0xff]  }
  0x69   :  { %2728 = vmatpush3.bf16.msra.mxu1 %v2998_v57  ;;  %v2357_v57 = vcombine.high %v29_v55, %v29_v55  ;;  %v3104_v55 = vld [vmem:[%s3821_s3] sm:$0xff]  }
  0x6a   :  { %2729 = vmatprep.subr.bf16.mxu1 %v3001_v60  ;;  %v30_v60 = vld [vmem:[%s3819_s0 + $0x48] sm:$0xff] }
  0x6b   :  { %2708 = vmatpush3.bf16.msra.mxu0 %v3000_v59  ;;  %v3061_v59 = vld [vmem:[%s3818_s1 + $0x540] sm:$0xff]  }
  0x6c   :  { %2709 = vmatprep.subr.bf16.mxu0 %v3003_v62  ;;  %v2359_v62 = vcombine.high %v30_v60, %v30_v60 }
  0x6d   :  { %2730 = vmatpush3.bf16.msra.mxu1 %v3002_v61  ;;  %v2358_v61 = vcombine.low %v30_v60, %v30_v60 }
  0x6e   :  { %2731 = vmatprep.subr.bf16.mxu1 %v3005_v0  ;;  %v3065_v0 = vld [vmem:[%s3818_s1 + $0x5c0] sm:$0xff]  }
  0x6f   :  { %2710 = vmatpush3.bf16.msra.mxu0 %v3004_v63  ;;  %v3064_v63 = vld [vmem:[%s3818_s1 + $0x500] sm:$0xff]  }
  0x70   :  { %2711 = vmatprep.subr.bf16.mxu0 %v3007_v2  ;;  %v3067_v2 = vld [vmem:[%s3818_s1 + $0x548] sm:$0xff]  }
  0x71   :  { %2732 = vmatpush3.bf16.msra.mxu1 %v3006_v1  ;;  %v3066_v1 = vld [vmem:[%s3818_s1 + $0x580] sm:$0xff]  }
  0x72   :  { %2733 = vmatprep.subr.bf16.mxu1 %v3009_v4  ;;  %v3069_v4 = vld [vmem:[%s3818_s1 + $0x5c8] sm:$0xff]  }
  0x73   :  { %2712 = vmatpush3.bf16.msra.mxu0 %v3008_v3  ;;  %v3068_v3 = vld [vmem:[%s3818_s1 + $0x508] sm:$0xff]  }
  0x74   :  { %2713 = vmatprep.subr.bf16.mxu0 %v3011_v6  ;;  %v3071_v6 = vld [vmem:[%s3818_s1 + $0x550] sm:$0xff]  }
  0x75   :  { %2734 = vmatpush3.bf16.msra.mxu1 %v3010_v5  ;;  %v3070_v5 = vld [vmem:[%s3818_s1 + $0x588] sm:$0xff]  }
  0x76   :  { %2735 = vmatprep.subr.bf16.mxu1 %v3013_v8  ;;  %v3073_v8 = vld [vmem:[%s3818_s1 + $0x5d0] sm:$0xff]  }
  0x77   :  { %2714 = vmatpush3.bf16.msra.mxu0 %v3012_v7  ;;  %v3072_v7 = vld [vmem:[%s3818_s1 + $0x510] sm:$0xff]  }
  0x78   :  { %2715 = vmatprep.subr.bf16.mxu0 %v3015_v10  ;;  %v3075_v10 = vld [vmem:[%s3818_s1 + $0x558] sm:$0xff]  }
  0x79   :  { %2736 = vmatpush3.bf16.msra.mxu1 %v3014_v9  ;;  %v3074_v9 = vld [vmem:[%s3818_s1 + $0x590] sm:$0xff]  }
  0x7a   :  { %2737 = vmatprep.subr.bf16.mxu1 %v3017_v12  ;;  %v3077_v12 = vld [vmem:[%s3818_s1 + $0x5d8] sm:$0xff]  }
  0x7b   :  { %2716 = vmatpush3.bf16.msra.mxu0 %v3016_v11  ;;  %v3076_v11 = vld [vmem:[%s3818_s1 + $0x518] sm:$0xff]  }
  0x7c   :  { %2717 = vmatprep.subr.bf16.mxu0 %v3019_v14  ;;  %v3079_v14 = vld [vmem:[%s3818_s1 + $0x560] sm:$0xff]  }
  0x7d   :  { %2738 = vmatpush3.bf16.msra.mxu1 %v3018_v13  ;;  %v3078_v13 = vld [vmem:[%s3818_s1 + $0x598] sm:$0xff]  }
  0x7e   :  { %2739 = vmatprep.subr.bf16.mxu1 %v3021_v16  ;;  %v3081_v16 = vld [vmem:[%s3818_s1 + $0x5e0] sm:$0xff]  }
  0x7f   :  { %2718 = vmatpush3.bf16.msra.mxu0 %v3020_v15  ;;  %v3080_v15 = vld [vmem:[%s3818_s1 + $0x520] sm:$0xff]  }
  0x80   :  { %2747 = vmatprep.subr.bf16.mxu0 %v3025_v21  ;;  %v3086_v21 = vld [vmem:[%s3818_s1 + $0x5a8] sm:$0xff]  }
  0x81   :  { %2740 = vmatpush3.bf16.msra.mxu1 %v3024_v20  ;;  %v3085_v20 = vld [vmem:[%s3818_s1 + $0x5e8] sm:$0xff]  }
  0x82   :  { %1973 = vmatmul.mubr.bf16.vlgmr.msra.gmra.mrb[12].mxu0 %v2352_v18  ;;  %2769 = vmatprep.subr.bf16.mxu1 %v3029_v26  ;;  %v3083_v18 = vld [vmem:[%s3818_s1 + $0x568] sm:$0xff]   ;;  %v3091_v26 = vld [vmem:[%s3818_s1 + $0x578] sm:$0xff]  }
  0x83   :  { %2748 = vmatpush3.bf16.msra.mxu0 %v3028_v25  ;;  %2052 = vmatprep.mubr.bf16.mxu0 %v2357_v57  ;;  %v3090_v25 = vld [vmem:[%s3818_s1 + $0x5b0] sm:$0xff]  }
  0x84   :  { %2013 = vmatmul.mubr.bf16.vlgmr.msra.gmra.mrb[12].mxu1 %v2354_v23  ;;  %2749 = vmatprep.subr.bf16.mxu0 %v3031_v28  ;;  %v3088_v23 = vld [vmem:[%s3818_s1 + $0x530] sm:$0xff]   ;;  %v3093_v28 = vld [vmem:[%s3818_s1 + $0x5f8] sm:$0xff]  }
  0x85   :  { %2770 = vmatpush3.bf16.msra.mxu1 %v3030_v27  ;;  %2092 = vmatprep.mubr.bf16.mxu1 %v2359_v62  ;;  %v3092_v27 = vld [vmem:[%s3818_s1 + $0x538] sm:$0xff]  }
  0x86   :  { %2771 = vmatprep.subr.bf16.mxu1 %v3033_v30 }
  0x87   :  { %2750 = vmatpush3.bf16.msra.mxu0 %v3032_v29  ;;  %v31_v29 = vld [vmem:[%s3819_s0 + $0x50] sm:$0xff] }
  0x88   :  { %2751 = vmatprep.subr.bf16.mxu0 %v3035_v32  ;;  %v2360_v30 = vcombine.low %v31_v29, %v31_v29  ;;  %v3096_v32 = vld [vmem:[%s3818_s1 + $0x5b8] sm:$0xff]  }
  0x89   :  { %2772 = vmatpush3.bf16.msra.mxu1 %v3034_v31  ;;  %v2361_v31 = vcombine.high %v31_v29, %v31_v29 }
  0x8a   :  { %2773 = vmatprep.subr.bf16.mxu1 %v3037_v34  ;;  %v3112_v34 = vmov 0.0  }
  0x8b   :  { %2752 = vmatpush3.bf16.msra.mxu0 %v3036_v33  ;;  %v32_v33 = vld [vmem:[%s3819_s0 + $0x58] sm:$0xff] }
  0x8c   :  { %2753 = vmatprep.subr.bf16.mxu0 %v3039_v36  ;;  %v2363_v36 = vcombine.high %v32_v33, %v32_v33 }
  0x8d   :  { %2774 = vmatpush3.bf16.msra.mxu1 %v3038_v35  ;;  %v2362_v35 = vcombine.low %v32_v33, %v32_v33 }
  0x8e   :  { %2775 = vmatprep.subr.bf16.mxu1 %v3041_v38  ;;  %v3100_v38 = vld [vmem:[%s3818_s1 + $0x608] sm:$0xff]  }
  0x8f   :  { %2754 = vmatpush3.bf16.msra.mxu0 %v3040_v37  ;;  %v3099_v37 = vld [vmem:[%s3818_s1 + $0x600] sm:$0xff]  }
  0x90   :  { %2755 = vmatprep.subr.bf16.mxu0 %v3043_v40  ;;  %v3102_v40 = vld [vmem:[%s3818_s1 + $0x618] sm:$0xff]  }
  0x91   :  { %2776 = vmatpush3.bf16.msra.mxu1 %v3042_v39  ;;  %v3101_v39 = vld [vmem:[%s3818_s1 + $0x610] sm:$0xff]  }
  0x92   :  { %2777 = vmatprep.subr.bf16.mxu1 %v3045_v42 }
  0x93   :  { %2756 = vmatpush3.bf16.msra.mxu0 %v3044_v41  ;;  %v3103_v41 = vld [vmem:[%s3819_s0 + $0x60] ss:$0 sps:$4 sm:$0xff]  }
  0x94   :  { %2757 = vmatprep.subr.bf16.mxu0 %v3047_v44 }
  0x95   :  { %2778 = vmatpush3.bf16.msra.mxu1 %v3046_v43  ;;  %v2339_v43 = vld [vmem:[%s3820_s2] ss:$0 sm:$0xff] }
  0x96   :  { %2779 = vmatprep.subr.bf16.mxu1 %v3049_v46 }
  0x97   :  { %2758 = vmatpush3.bf16.msra.mxu0 %v3048_v45 }
  0x98   :  { %2759 = vmatprep.subr.bf16.mxu0 %v3051_v48 }
  0x99   :  { %2780 = vmatpush3.bf16.msra.mxu1 %v3050_v47 }
  0x9a   :  { %2781 = vmatprep.subr.bf16.mxu1 %v3053_v50 }
  0x9b   :  { %2760 = vmatpush3.bf16.msra.mxu0 %v3052_v49 }
  0x9c   :  { %2761 = vmatprep.subr.bf16.mxu0 %v3055_v52 }
  0x9d   :  { %2782 = vmatpush3.bf16.msra.mxu1 %v3054_v51 }
  0x9e   :  { %2783 = vmatprep.subr.bf16.mxu1 %v3057_v54 }
  0x9f   :  { %2762 = vmatpush3.bf16.msra.mxu0 %v3056_v53 }
  0xa0   :  { %2791 = vmatprep.subr.bf16.mxu0 %v3061_v59  ;;  %v3106_v59 = vld [vmem:[%s3821_s3 + $0x10] sm:$0xff]  }
  0xa1   :  { %2784 = vmatpush3.bf16.msra.mxu1 %v3060_v58 }
  0xa2   :  { %2053 = vmatmul.mubr.bf16.vlgmr.msra.gmra.mrb[16].mxu0 %v2356_v56  ;;  %2813 = vmatprep.subr.bf16.mxu1 %v3065_v0  ;;  %v3105_v56 = vld [vmem:[%s3821_s3 + $0x8] sm:$0xff]  }
  0xa3   :  { %2792 = vmatpush3.bf16.msra.mxu0 %v3064_v63  ;;  %2132 = vmatprep.mubr.bf16.mxu0 %v2361_v31 }
  0xa4   :  { %2093 = vmatmul.mubr.bf16.vlgmr.msra.gmra.mrb[16].mxu1 %v2358_v61  ;;  %2793 = vmatprep.subr.bf16.mxu0 %v3067_v2 }
  0xa5   :  { %2814 = vmatpush3.bf16.msra.mxu1 %v3066_v1  ;;  %2172 = vmatprep.mubr.bf16.mxu1 %v2363_v36 }
  0xa6   :  { %2815 = vmatprep.subr.bf16.mxu1 %v3069_v4  ;;  %v3107_v4 = vld [vmem:[%s3821_s3 + $0x18] sm:$0xff]  }
  0xa7   :  { %2794 = vmatpush3.bf16.msra.mxu0 %v3068_v3 }
  0xa8   :  { %2795 = vmatprep.subr.bf16.mxu0 %v3071_v6 }
  0xa9   :  { %2816 = vmatpush3.bf16.msra.mxu1 %v3070_v5 }
  0xaa   :  { %2817 = vmatprep.subr.bf16.mxu1 %v3073_v8  ;;  %v3109_v8 = vld [vmem:[%s3821_s3 + $0x28] sm:$0xff]  }
  0xab   :  { %2796 = vmatpush3.bf16.msra.mxu0 %v3072_v7  ;;  %v3108_v7 = vld [vmem:[%s3821_s3 + $0x20] sm:$0xff]  }
  0xac   :  { %2797 = vmatprep.subr.bf16.mxu0 %v3075_v10  ;;  %v3111_v10 = vld [vmem:[%s3821_s3 + $0x38] sm:$0xff]  }
  0xad   :  { %2818 = vmatpush3.bf16.msra.mxu1 %v3074_v9  ;;  %v3110_v9 = vld [vmem:[%s3821_s3 + $0x30] sm:$0xff]  }
  0xae   :  { %2819 = vmatprep.subr.bf16.mxu1 %v3077_v12 }
  0xaf   :  { %2798 = vmatpush3.bf16.msra.mxu0 %v3076_v11 }
  0xb0   :  { %2799 = vmatprep.subr.bf16.mxu0 %v3079_v14 }
  0xb1   :  { %2820 = vmatpush3.bf16.msra.mxu1 %v3078_v13 }
  0xb2   :  { %2821 = vmatprep.subr.bf16.mxu1 %v3081_v16 }
  0xb3   :  { %2800 = vmatpush3.bf16.msra.mxu0 %v3080_v15 }
  0xb4   :  { %2801 = vmatprep.subr.bf16.mxu0 %v3083_v18 }
  0xb5   :  { %2822 = vmatpush3.bf16.msra.mxu1 %v3082_v17 }
  0xb6   :  { %2823 = vmatprep.subr.bf16.mxu1 %v3085_v20 }
  0xb7   :  { %2802 = vmatpush3.bf16.msra.mxu0 %v3084_v19 }
  0xb8   :  { %2803 = vmatprep.subr.bf16.mxu0 %v3087_v22 }
  0xb9   :  { %2824 = vmatpush3.bf16.msra.mxu1 %v3086_v21 }
  0xba   :  { %2825 = vmatprep.subr.bf16.mxu1 %v3089_v24 }
  0xbb   :  { %2804 = vmatpush3.bf16.msra.mxu0 %v3088_v23 }
  0xbc   :  { %2805 = vmatprep.subr.bf16.mxu0 %v3091_v26 }
  0xbd   :  { %2826 = vmatpush3.bf16.msra.mxu1 %v3090_v25 }
  0xbe   :  { %2827 = vmatprep.subr.bf16.mxu1 %v3093_v28 }
  0xbf   :  { %2806 = vmatpush3.bf16.msra.mxu0 %v3092_v27 }
  0xc0   :  { %2849 = vmatprep.subr.bf16.mxu0 %v3112_v34 }
  0xc1   :  { %2828 = vmatpush3.bf16.msra.mxu1 %v3096_v32 }
  0xc2   :  { %2133 = vmatmul.mubr.bf16.vlgmr.msra.gmra.mrb[20].mxu0 %v2360_v30  ;;  %2861 = vmatprep.subr.bf16.mxu1 %v3112_v34 }
  0xc3   :  { %2850 = vmatpush3.bf16.msra.mxu0 %v3099_v37  ;;  %2857 = vmatprep.mubr.msk.bf16.mxu0 %vm3113_vm0, %v3112_v34 }
  0xc4   :  { %2173 = vmatmul.mubr.bf16.vlgmr.msra.gmra.mrb[20].mxu1 %v2362_v35  ;;  %2851 = vmatprep.subr.bf16.mxu0 %v3112_v34 }
  0xc5   :  { %2877 = vmatprep.mubr.msk.bf16.mxu1 %vm3113_vm0, %v3112_v34  ;;  %2862 = vmatpush3.bf16.msra.mxu1 %v3104_v55 }
  0xc6   :  { %2863 = vmatprep.subr.bf16.mxu1 %v3112_v34 }
  0xc7   :  { %2852 = vmatpush3.bf16.msra.mxu0 %v3100_v38 }
  0xc8   :  { %2853 = vmatprep.subr.bf16.mxu0 %v3112_v34 }
  0xc9   :  { %2864 = vmatpush3.bf16.msra.mxu1 %v3105_v56 }
  0xca   :  { %2865 = vmatprep.subr.bf16.mxu1 %v3112_v34 }
  0xcb   :  { %2854 = vmatpush3.bf16.msra.mxu0 %v3101_v39 }
  0xcc   :  { %2855 = vmatprep.subr.bf16.mxu0 %v3112_v34 }
  0xcd   :  { %2866 = vmatpush3.bf16.msra.mxu1 %v3106_v59 }
  0xce   :  { %2867 = vmatprep.subr.bf16.mxu1 %v3112_v34 }
  0xcf   :  { %2856 = vmatpush3.bf16.msra.mxu0 %v3102_v40 }
  0xd1   :  { %2868 = vmatpush3.bf16.msra.mxu1 %v3107_v4 }
  0xd2   :  { %2858 = vmatmul.mubr.msk.bf16.vlgmr.msra.gmra.mrb[24].mxu0 %vm1696_vm1, %v3103_v41  ;;  %2869 = vmatprep.subr.bf16.mxu1 %v3112_v34 }
  0xd5   :  { %2870 = vmatpush3.bf16.msra.mxu1 %v3108_v7 }
  0xd6   :  { %2871 = vmatprep.subr.bf16.mxu1 %v3112_v34 }
  0xd9   :  { %2872 = vmatpush3.bf16.msra.mxu1 %v3109_v8 }
  0xda   :  { %2873 = vmatprep.subr.bf16.mxu1 %v3112_v34 }
  0xdd   :  { %2874 = vmatpush3.bf16.msra.mxu1 %v3110_v9 }
  0xde   :  { %2875 = vmatprep.subr.bf16.mxu1 %v3112_v34 }
  0xe1   :  { %2876 = vmatpush3.bf16.msra.mxu1 %v3111_v10 }
  0xf5   :  { %v2587_v42 = vpop.f32.mrb[0].mxu0 }
  0xf6   :  { %v2588_v44 = vpop.f32.mrb[1].mxu0 }
  0xf7   :  { %v2589_v45 = vadd.f32 %v2588_v44, %v2587_v42  ;;  %v2590_v46 = vpop.f32.mrb[2].mxu0  ;;  %v2609_v47 = vpop.f32.mrb[0].mxu1 }
  0xf8   :  { %v2591_v48 = vpop.f32.mrb[3].mxu0  ;;  %v2610_v49 = vpop.f32.mrb[1].mxu1 }
  0xf9   :  { %v1735_v50 = vadd.f32 %v2589_v45, %v2339_v43  ;;  %v2611_v51 = vadd.f32 %v2610_v49, %v2609_v47  ;;  %v2612_v52 = vpop.f32.mrb[2].mxu1 }
  0xfa   :  { %v2613_v53 = vpop.f32.mrb[3].mxu1 }
  0xfb   :  { %v1775_v54 = vadd.f32 %v2611_v51, %v1735_v50 }
 0x115   :  { %v2631_v57 = vpop.f32.mrb[4].mxu0 }
 0x116   :  { %v2632_v58 = vpop.f32.mrb[5].mxu0 }
 0x117   :  { %v2633_v60 = vadd.f32 %v2632_v58, %v2631_v57  ;;  %v2634_v61 = vpop.f32.mrb[6].mxu0  ;;  %v2653_v62 = vpop.f32.mrb[4].mxu1 }
 0x118   :  { %v2635_v63 = vpop.f32.mrb[7].mxu0  ;;  %v2654_v1 = vpop.f32.mrb[5].mxu1 }
 0x119   :  { %v1815_v0 = vadd.f32 %v2633_v60, %v1775_v54  ;;  %v2655_v2 = vadd.f32 %v2654_v1, %v2653_v62  ;;  %v2656_v3 = vpop.f32.mrb[6].mxu1 }
 0x11a   :  { %v2657_v5 = vpop.f32.mrb[7].mxu1 }
 0x11b   :  { %v1855_v6 = vadd.f32 %v2655_v2, %v1815_v0  ;;  %v2562_v2 = vld [vmem:[%s3822_s4] ss:$0 sm:$0xff] }
 0x135   :  { %v2675_v11 = vpop.f32.mrb[8].mxu0 }
 0x136   :  { %v2676_v12 = vpop.f32.mrb[9].mxu0 }
 0x137   :  { %v2677_v13 = vadd.f32 %v2676_v12, %v2675_v11  ;;  %v2678_v14 = vpop.f32.mrb[10].mxu0  ;;  %v2697_v15 = vpop.f32.mrb[8].mxu1 }
 0x138   :  { %v2679_v16 = vpop.f32.mrb[11].mxu0  ;;  %v2698_v17 = vpop.f32.mrb[9].mxu1 }
 0x139   :  { %v1895_v18 = vadd.f32 %v2677_v13, %v1855_v6  ;;  %v2699_v19 = vadd.f32 %v2698_v17, %v2697_v15  ;;  %v2700_v20 = vpop.f32.mrb[10].mxu1 }
 0x13a   :  { %v2701_v21 = vpop.f32.mrb[11].mxu1 }
 0x13b   :  { %v1935_v22 = vadd.f32 %v2699_v19, %v1895_v18 }
 0x155   :  { %v2719_v23 = vpop.f32.mrb[12].mxu0 }
 0x156   :  { %v2720_v24 = vpop.f32.mrb[13].mxu0 }
 0x157   :  { %v2721_v25 = vadd.f32 %v2720_v24, %v2719_v23  ;;  %v2722_v26 = vpop.f32.mrb[14].mxu0  ;;  %v2741_v27 = vpop.f32.mrb[12].mxu1 }
 0x158   :  { %v2723_v28 = vpop.f32.mrb[15].mxu0  ;;  %v2742_v29 = vpop.f32.mrb[13].mxu1 }
 0x159   :  { %v1975_v30 = vadd.f32 %v2721_v25, %v1935_v22  ;;  %v2743_v31 = vadd.f32 %v2742_v29, %v2741_v27  ;;  %v2744_v32 = vpop.f32.mrb[14].mxu1 }
 0x15a   :  { %v2745_v33 = vpop.f32.mrb[15].mxu1 }
 0x15b   :  { %v2015_v34 = vadd.f32 %v2743_v31, %v1975_v30 }
 0x175   :  { %v2763_v35 = vpop.f32.mrb[16].mxu0 }
 0x176   :  { %v2764_v36 = vpop.f32.mrb[17].mxu0 }
 0x177   :  { %v2765_v37 = vadd.f32 %v2764_v36, %v2763_v35  ;;  %v2766_v38 = vpop.f32.mrb[18].mxu0  ;;  %v2785_v39 = vpop.f32.mrb[16].mxu1 }
 0x178   :  { %v2767_v40 = vpop.f32.mrb[19].mxu0  ;;  %v2786_v42 = vpop.f32.mrb[17].mxu1 }
 0x179   :  { %v2055_v41 = vadd.f32 %v2765_v37, %v2015_v34  ;;  %v2787_v43 = vadd.f32 %v2786_v42, %v2785_v39  ;;  %v2788_v44 = vpop.f32.mrb[18].mxu1 }
 0x17a   :  { %v2789_v45 = vpop.f32.mrb[19].mxu1 }
 0x17b   :  { %v2095_v46 = vadd.f32 %v2787_v43, %v2055_v41 }
 0x195   :  { %v2807_v47 = vpop.f32.mrb[20].mxu0 }
 0x196   :  { %v2808_v48 = vpop.f32.mrb[21].mxu0 }
 0x197   :  { %v2809_v49 = vadd.f32 %v2808_v48, %v2807_v47  ;;  %v2810_v50 = vpop.f32.mrb[22].mxu0  ;;  %v2829_v51 = vpop.f32.mrb[20].mxu1 }
 0x198   :  { %v2811_v52 = vpop.f32.mrb[23].mxu0  ;;  %v2830_v53 = vpop.f32.mrb[21].mxu1 }
 0x199   :  { %v2135_v54 = vadd.f32 %v2809_v49, %v2095_v46  ;;  %v2831_v55 = vadd.f32 %v2830_v53, %v2829_v51  ;;  %v2832_v56 = vpop.f32.mrb[22].mxu1 }
 0x19a   :  { %v2833_v57 = vpop.f32.mrb[23].mxu1 }
 0x19b   :  { %v2175_v58 = vadd.f32 %v2831_v55, %v2135_v54 }
 0x1a5   :  { %v2214_v59 = vpop.f32.mrb[24].mxu0 }
 0x1a6   :  { %v2215_v60 = vadd.f32 %v2214_v59, %v2175_v58  ;;  %v2859_v61 = vpop.f32.mrb[25].mxu0 }
 0x1a7   :  { %v2217_v62 = vpop.f32.mrb[26].mxu0 }
 0x1a8   :  { %v2220_v63 = vmax.f32 %v2215_v60, 0.0  ;;  %v2860_v0 = vpop.f32.mrb[27].mxu0 }
 0x1aa   :  { %v2221_v1 = vpack.c.bf16 %v2220_v63, %v2220_v63 }
 0x1ac   :  { %2878 = vmatmul.mubr.bf16.vlgmr.msra.gmra.mrb[24].mxu1 %v2221_v1 }
 0x27f   :  { %v2327_v3 = vpop.f32.mrb[24].mxu1 }
 0x280   :  { %v2328_v4 = vadd.f32 %v2562_v2, %v2327_v3  ;;  %v2879_v5 = vpop.f32.mrb[25].mxu1 }
 0x281   :  { %v2330_v6 = vpop.f32.mrb[26].mxu1 }
 0x282   :  { %2334 = vst.msk [vmem:[%s3823_s5] sm:$0xff] %vm2333_vm2, %v2328_v4  ;;  %v2880_v7 = vpop.f32.mrb[27].mxu1 }

</bundles_post_ra>
